<compile_context>
chip_gen: v5e
topology: v5e:2x2
jax: 0.10.0
libtpu: 0.0.40
codegen_flags: <defaults>
</compile_context>

<pallas_src>
import math
import numpy as np
import jax
import jax.numpy as jnp
from jax.experimental import pallas as pl
from jax.experimental.pallas import tpu as pltpu

LANE = 128
SUBLANE = 8


def _round_up(x, m):
    return ((x + m - 1) // m) * m


# ----------------------------- fused kernel -------------------------------- #

def _make_fused_decoder_kernel(T, Bp, Hp, L):
    """Single-kernel DecoderRNN forward:
       layer-0 input GEMM -> layer-skewed GRU recurrence -> Linear head."""

    def kernel(*refs):
        x_ref = refs[0]
        layer_refs = [refs[1 + 4 * l: 1 + 4 * (l + 1)] for l in range(L)]
        base = 1 + 4 * L
        h0_ref, wlin_ref, blin_ref = refs[base], refs[base + 1], refs[base + 2]
        y_ref, hT_ref = refs[base + 3], refs[base + 4]
        gi0_scr, outL_scr = refs[base + 5], refs[base + 6]

        wi0_ref, bi0_ref = layer_refs[0][0], layer_refs[0][1]

        # (1) Hoisted layer-0 input projection: one big MXU-friendly GEMM over
        #     all T*Bp rows; result stays in VMEM scratch (never touches HBM).
        #     bi0 already contains b_ih plus folded b_hr/b_hz.
        gi0_scr[...] = (
            jnp.dot(x_ref[...], wi0_ref[...], preferred_element_type=jnp.float32)
            + bi0_ref[...])

        def gru_cell(gi, gh, bhn, h_prev):
            # PyTorch gate order (r, z, n); b_hr/b_hz are pre-folded into gi,
            # only b_hn remains (must sit inside r * (h@Whn + b_hn)).
            r = jax.nn.sigmoid(gi[:, :Hp] + gh[:, :Hp])
            z = jax.nn.sigmoid(gi[:, Hp:2 * Hp] + gh[:, Hp:2 * Hp])
            n = jnp.tanh(gi[:, 2 * Hp:] + r * (gh[:, 2 * Hp:] + bhn))
            return (1.0 - z) * n + z * h_prev

        # (2) Layer-skewed (wavefront) recurrence: at wavefront s, layer l
        #     processes timestep t = s - l, so the matmuls issued within one
        #     wavefront are mutually independent and overlap on the MXU.
        #     Fully unrolled at trace time (T=8): static slices, full
        #     scheduler visibility.
        h = [h0_ref[l] for l in range(L)]
        for s in range(T + L - 1):
            new_h = list(h)
            for l in reversed(range(L)):
                t = s - l
                if t < 0 or t >= T:
                    continue
                wi_ref, bi_ref, wh_ref, bhn_ref = layer_refs[l]
                if l == 0:
                    gi = gi0_scr[pl.ds(t * Bp, Bp), :]
                else:
                    # On-the-fly input gates from the previous layer's hidden
                    # state of timestep t (committed at wavefront s-1).
                    gi = (jnp.dot(h[l - 1], wi_ref[...],
                                  preferred_element_type=jnp.float32)
                          + bi_ref[...])
                gh = jnp.dot(h[l], wh_ref[...],
                             preferred_element_type=jnp.float32)
                h_new = gru_cell(gi, gh, bhn_ref[...], h[l])
                new_h[l] = h_new
                if l == L - 1:
                    outL_scr[pl.ds(t * Bp, Bp), :] = h_new
            h = new_h

        # (3) Final hidden states, written once at the end.
        for l in range(L):
            hT_ref[l] = h[l]

        # (4) Dropout is identity (eval semantics).  Linear head on the last
        #     layer's outputs, which never left VMEM.
        y_ref[...] = (
            jnp.dot(outL_scr[...], wlin_ref[...],
                    preferred_element_type=jnp.float32)
            + blin_ref[...]).astype(y_ref.dtype)

    return kernel


# ------------------- one-time parameter preparation ------------------------ #

def _pad_gates_cols(w, H, Hp):
    """w: (K, 3H), gates (r,z,n) stacked along columns -> (K, 3Hp)."""
    r, z, n = jnp.split(w, 3, axis=1)
    pad = ((0, 0), (0, Hp - H))
    return jnp.concatenate(
        [jnp.pad(r, pad), jnp.pad(z, pad), jnp.pad(n, pad)], axis=1)


def init_decoder_params(key, hidden_size, output_size, num_layers):
    """PyTorch-style parameters for DecoderRNN (GRU + Linear)."""
    H = output_size * 30
    k = 1.0 / math.sqrt(H)
    gru = []
    for layer in range(num_layers):
        d_in = hidden_size if layer == 0 else H
        key, k1, k2, k3, k4 = jax.random.split(key, 5)
        w_ih = jax.random.uniform(k1, (3 * H, d_in), jnp.float32, -k, k)
        w_hh = jax.random.uniform(k2, (3 * H, H), jnp.float32, -k, k)
        b_ih = jax.random.uniform(k3, (3 * H,), jnp.float32, -k, k)
        b_hh = jax.random.uniform(k4, (3 * H,), jnp.float32, -k, k)
        gru.append((w_ih, w_hh, b_ih, b_hh))
    key, k5, k6 = jax.random.split(key, 3)
    w_lin = jax.random.uniform(k5, (output_size, H), jnp.float32, -k, k)
    b_lin = jax.random.uniform(k6, (output_size,), jnp.float32, -k, k)
    return {"gru": gru, "linear": (w_lin, b_lin)}


def prepare_decoder_params(params, hidden_size):
    """Pad/transpose weights and fold biases ONCE, outside the jitted forward."""
    gru = params["gru"]
    w_lin, b_lin = params["linear"]
    H = gru[0][1].shape[1]                    # w_hh: (3H, H)
    out_size = w_lin.shape[0]
    Hp = _round_up(H, LANE)                   # 120 -> 128
    Dp = _round_up(hidden_size, LANE)         # 16  -> 128 (lane-dense layer-0 GEMM)
    Np = _round_up(out_size, LANE)            # 4   -> 128

    layers = []
    for layer, (w_ih, w_hh, b_ih, b_hh) in enumerate(gru):
        K = hidden_size if layer == 0 else H
        Kp = Dp if layer == 0 else Hp
        wi = _pad_gates_cols(w_ih.T, H, Hp)                 # (K, 3Hp)
        wi = jnp.pad(wi, ((0, Kp - K), (0, 0)))             # (Kp, 3Hp)
        b_ir, b_iz, b_in = jnp.split(b_ih, 3)
        b_hr, b_hz, b_hn = jnp.split(b_hh, 3)
        # Fold r/z hidden biases into the input bias; keep n-gate hidden bias.
        bi = jnp.concatenate([jnp.pad(b_ir + b_hr, (0, Hp - H)),
                              jnp.pad(b_iz + b_hz, (0, Hp - H)),
                              jnp.pad(b_in, (0, Hp - H))]).reshape(1, 3 * Hp)
        wh = _pad_gates_cols(w_hh.T, H, Hp)
        wh = jnp.pad(wh, ((0, Hp - H), (0, 0)))             # (Hp, 3Hp)
        bhn = jnp.pad(b_hn, (0, Hp - H)).reshape(1, Hp)
        layers.append((wi, bi, wh, bhn))

    wlin = jnp.pad(w_lin.T, ((0, Hp - H), (0, Np - out_size)))   # (Hp, Np)
    blin = jnp.pad(b_lin, (0, Np - out_size)).reshape(1, Np)

    return {"layers": layers, "wlin": wlin, "blin": blin,
            "H": H, "out_size": out_size, "Hp": Hp, "Dp": Dp, "Np": Np}


# ----------------------------- forward factory ------------------------------ #

def make_decoder_forward(prep):
    layers = prep["layers"]
    wlin, blin = prep["wlin"], prep["blin"]
    H, out_size = prep["H"], prep["out_size"]
    Hp, Dp, Np = prep["Hp"], prep["Dp"], prep["Np"]
    L = len(layers)

    def full_spec(shape):
        if len(shape) == 2:
            return pl.BlockSpec(shape, lambda i: (0, 0))
        return pl.BlockSpec(shape, lambda i: (0, 0, 0))

    @jax.jit
    def forward(encoded_input, hidden):
        B, T, D = encoded_input.shape
        Bp = _round_up(B, SUBLANE)

        # Batch-first -> time-major; pad batch to Bp and features to Dp;
        # flatten to a lane-dense (T*Bp, Dp) GEMM operand.
        x = jnp.transpose(encoded_input, (1, 0, 2))
        x = jnp.pad(x, ((0, 0), (0, Bp - B), (0, Dp - D)))
        x = x.reshape(T * Bp, Dp)
        h0 = jnp.pad(hidden, ((0, 0), (0, Bp - B), (0, Hp - H)))   # (L,Bp,Hp)

        args = [x]
        in_specs = [full_spec((T * Bp, Dp))]
        for (wi, bi, wh, bhn) in layers:
            args += [wi, bi, wh, bhn]
            in_specs += [full_spec(wi.shape), full_spec(bi.shape),
                         full_spec(wh.shape), full_spec(bhn.shape)]
        args += [h0, wlin, blin]
        in_specs += [full_spec((L, Bp, Hp)), full_spec(wlin.shape),
                     full_spec(blin.shape)]

        kernel = _make_fused_decoder_kernel(T, Bp, Hp, L)
        y_flat, hT = pl.pallas_call(
            kernel,
            out_shape=(jax.ShapeDtypeStruct((T * Bp, Np), jnp.float32),
                       jax.ShapeDtypeStruct((L, Bp, Hp), jnp.float32)),
            grid=(1,),
            in_specs=in_specs,
            out_specs=(full_spec((T * Bp, Np)), full_spec((L, Bp, Hp))),
            scratch_shapes=[pltpu.VMEM((T * Bp, 3 * Hp), jnp.float32),  # gi layer-0
                            pltpu.VMEM((T * Bp, Hp), jnp.float32)],      # last-layer out
            compiler_params=pltpu.CompilerParams(
                dimension_semantics=("arbitrary",)),   # recurrence is sequential
        )(*args)

        y = y_flat.reshape(T, Bp, Np)
        y = jnp.transpose(y, (1, 0, 2))[:B, :, :out_size]    # (B, T, out_size)
        hidden_out = hT[:, :B, :H]                           # (L, B, H)
        return y, hidden_out

    return forward


# -------------------------- pure-JAX reference ----------------------------- #

def decoder_rnn_reference(encoded_input, hidden, params):
    P = jax.lax.Precision.HIGHEST
    gru_params = params["gru"]
    w_lin, b_lin = params["linear"]
    inp = encoded_input
    h_lasts = []
    for layer, (w_ih, w_hh, b_ih, b_hh) in enumerate(gru_params):
        def step(h, x_t, w_ih=w_ih, w_hh=w_hh, b_ih=b_ih, b_hh=b_hh):
            gi = jnp.dot(x_t, w_ih.T, precision=P) + b_ih
            gh = jnp.dot(h, w_hh.T, precision=P) + b_hh
            i_r, i_z, i_n = jnp.split(gi, 3, axis=-1)
            h_r, h_z, h_n = jnp.split(gh, 3, axis=-1)
            r = jax.nn.sigmoid(i_r + h_r)
            z = jax.nn.sigmoid(i_z + h_z)
            n = jnp.tanh(i_n + r * h_n)
            h_new = (1.0 - z) * n + z * h
            return h_new, h_new

        h_last, ys = jax.lax.scan(step, hidden[layer], jnp.swapaxes(inp, 0, 1))
        inp = jnp.swapaxes(ys, 0, 1)
        h_lasts.append(h_last)
    y = jnp.dot(inp, w_lin.T, precision=P) + b_lin   # dropout = identity (eval)
    return y, jnp.stack(h_lasts, axis=0)


# --------------------------------- main ------------------------------------ #

if __name__ == "__main__":
    batch, seq = 2, 8
    hidden_size, output_size, num_layers = 16, 4, 2   # GRU hidden = 4*30 = 120

    key = jax.random.PRNGKey(0)
    key, kx, kh = jax.random.split(key, 3)
    H = output_size * 30
    encoded_input = jax.random.normal(kx, (batch, seq, hidden_size), jnp.float32)
    hidden0 = jax.random.normal(kh, (num_layers, batch, H), jnp.float32)

    params = init_decoder_params(key, hidden_size, output_size, num_layers)

    # One-time weight preprocessing hoisted out of the jitted forward.
    prep = prepare_decoder_params(params, hidden_size)
    fwd = make_decoder_forward(prep)

    y, hidden_out = fwd(encoded_input, hidden0)
    y = jax.block_until_ready(y)
    hidden_out = jax.block_until_ready(hidden_out)

    assert y.shape == (batch, seq, output_size)
    assert hidden_out.shape == (num_layers, batch, H)

    # Sanity check against a pure-JAX reference.
    # TODO(synk): training-mode stochastic dropout (p=0.5) not implemented.
    ref_y, ref_hidden = decoder_rnn_reference(encoded_input, hidden0, params)
    np.testing.assert_allclose(np.asarray(y), np.asarray(ref_y),
                               rtol=2e-3, atol=2e-3)
    np.testing.assert_allclose(np.asarray(hidden_out), np.asarray(ref_hidden),
                               rtol=2e-3, atol=2e-3)

    print("KERNEL_OK")
</pallas_src>

<mosaic_0001>
module attributes {stable_mosaic.version = 11 : i64} {
  func.func @kernel(%arg0: i32, %arg1: memref<64x128xf32, #tpu.memory_space<vmem>>, %arg2: memref<128x384xf32, #tpu.memory_space<vmem>>, %arg3: memref<1x384xf32, #tpu.memory_space<vmem>>, %arg4: memref<128x384xf32, #tpu.memory_space<vmem>>, %arg5: memref<1x128xf32, #tpu.memory_space<vmem>>, %arg6: memref<128x384xf32, #tpu.memory_space<vmem>>, %arg7: memref<1x384xf32, #tpu.memory_space<vmem>>, %arg8: memref<128x384xf32, #tpu.memory_space<vmem>>, %arg9: memref<1x128xf32, #tpu.memory_space<vmem>>, %arg10: memref<2x8x128xf32, #tpu.memory_space<vmem>>, %arg11: memref<128x128xf32, #tpu.memory_space<vmem>>, %arg12: memref<1x128xf32, #tpu.memory_space<vmem>>, %arg13: memref<64x128xf32, #tpu.memory_space<vmem>>, %arg14: memref<2x8x128xf32, #tpu.memory_space<vmem>>, %arg15: memref<64x384xf32, #tpu.memory_space<vmem>>, %arg16: memref<64x128xf32, #tpu.memory_space<vmem>>) attributes {dimension_semantics = [#tpu.dimension_semantics<arbitrary>], iteration_bounds = array<i64: 1>, scalar_prefetch = 0 : i64, scratch_operands = 2 : i64, tpu.core_type = #tpu.core_type<tc>, window_params = [{pipeline_mode = #tpu.pipeline_mode<synchronous>, transform_indices = @transform_0, window_bounds = array<i64: 64, 128>}, {pipeline_mode = #tpu.pipeline_mode<synchronous>, transform_indices = @transform_1, window_bounds = array<i64: 128, 384>}, {pipeline_mode = #tpu.pipeline_mode<synchronous>, transform_indices = @transform_2, window_bounds = array<i64: 1, 384>}, {pipeline_mode = #tpu.pipeline_mode<synchronous>, transform_indices = @transform_3, window_bounds = array<i64: 128, 384>}, {pipeline_mode = #tpu.pipeline_mode<synchronous>, transform_indices = @transform_4, window_bounds = array<i64: 1, 128>}, {pipeline_mode = #tpu.pipeline_mode<synchronous>, transform_indices = @transform_5, window_bounds = array<i64: 128, 384>}, {pipeline_mode = #tpu.pipeline_mode<synchronous>, transform_indices = @transform_6, window_bounds = array<i64: 1, 384>}, {pipeline_mode = #tpu.pipeline_mode<synchronous>, transform_indices = @transform_7, window_bounds = array<i64: 128, 384>}, {pipeline_mode = #tpu.pipeline_mode<synchronous>, transform_indices = @transform_8, window_bounds = array<i64: 1, 128>}, {pipeline_mode = #tpu.pipeline_mode<synchronous>, transform_indices = @transform_9, window_bounds = array<i64: 2, 8, 128>}, {pipeline_mode = #tpu.pipeline_mode<synchronous>, transform_indices = @transform_10, window_bounds = array<i64: 128, 128>}, {pipeline_mode = #tpu.pipeline_mode<synchronous>, transform_indices = @transform_11, window_bounds = array<i64: 1, 128>}, {pipeline_mode = #tpu.pipeline_mode<synchronous>, transform_indices = @transform_12, window_bounds = array<i64: 64, 128>}, {pipeline_mode = #tpu.pipeline_mode<synchronous>, transform_indices = @transform_13, window_bounds = array<i64: 2, 8, 128>}]} {
    %c0 = arith.constant 0 : index
    %c0_0 = arith.constant 0 : index
    %0 = vector.load %arg1[%c0, %c0_0] : memref<64x128xf32, #tpu.memory_space<vmem>>, vector<64x128xf32>
    %c0_1 = arith.constant 0 : index
    %c0_2 = arith.constant 0 : index
    %1 = vector.load %arg2[%c0_1, %c0_2] : memref<128x384xf32, #tpu.memory_space<vmem>>, vector<128x384xf32>
    %cst = arith.constant dense<0.000000e+00> : vector<64x384xf32>
    %2 = tpu.matmul %0, %1, %cst {dimension_numbers = #tpu.dot_dimension_numbers<[1], [0], [0], [1], [0, 0, 1, 1], [], []>} : vector<64x128xf32>, vector<128x384xf32>, vector<64x384xf32> -> vector<64x384xf32>
    %c0_3 = arith.constant 0 : index
    %c0_4 = arith.constant 0 : index
    %3 = vector.load %arg3[%c0_3, %c0_4] : memref<1x384xf32, #tpu.memory_space<vmem>>, vector<1x384xf32>
    %4 = vector.broadcast %3 : vector<1x384xf32> to vector<64x384xf32>
    %5 = arith.addf %2, %4 : vector<64x384xf32>
    %c0_5 = arith.constant 0 : index
    %c0_6 = arith.constant 0 : index
    %6 = vector.load %arg15[%c0_5, %c0_6] : memref<64x384xf32, #tpu.memory_space<vmem>>, vector<64x384xf32>
    tpu.vector_store %arg15[%c0_5, %c0_6], %5 {strides = array<i32>} : memref<64x384xf32, #tpu.memory_space<vmem>>, vector<64x384xf32>,
    %c0_7 = arith.constant 0 : index
    %c0_8 = arith.constant 0 : index
    %c0_9 = arith.constant 0 : index
    %7 = vector.load %arg10[%c0_7, %c0_8, %c0_9] : memref<2x8x128xf32, #tpu.memory_space<vmem>>, vector<1x8x128xf32>
    %8 = vector.shape_cast %7 : vector<1x8x128xf32> to vector<8x128xf32>
    %c1 = arith.constant 1 : index
    %c0_10 = arith.constant 0 : index
    %c0_11 = arith.constant 0 : index
    %9 = vector.load %arg10[%c1, %c0_10, %c0_11] : memref<2x8x128xf32, #tpu.memory_space<vmem>>, vector<1x8x128xf32>
    %10 = vector.shape_cast %9 : vector<1x8x128xf32> to vector<8x128xf32>
    %c0_12 = arith.constant 0 : index
    %c0_13 = arith.constant 0 : index
    %11 = vector.load %arg15[%c0_12, %c0_13] : memref<64x384xf32, #tpu.memory_space<vmem>>, vector<8x384xf32>
    %c0_14 = arith.constant 0 : index
    %c0_15 = arith.constant 0 : index
    %12 = vector.load %arg4[%c0_14, %c0_15] : memref<128x384xf32, #tpu.memory_space<vmem>>, vector<128x384xf32>
    %cst_16 = arith.constant dense<0.000000e+00> : vector<8x384xf32>
    %13 = tpu.matmul %8, %12, %cst_16 {dimension_numbers = #tpu.dot_dimension_numbers<[1], [0], [0], [1], [0, 0, 1, 1], [], []>} : vector<8x128xf32>, vector<128x384xf32>, vector<8x384xf32> -> vector<8x384xf32>
    %c0_17 = arith.constant 0 : index
    %c0_18 = arith.constant 0 : index
    %14 = vector.load %arg5[%c0_17, %c0_18] : memref<1x128xf32, #tpu.memory_space<vmem>>, vector<1x128xf32>
    %15 = vector.extract_strided_slice %11 {offsets = [0, 0], sizes = [8, 128], strides = [1, 1]} : vector<8x384xf32> to vector<8x128xf32>
    %16 = vector.extract_strided_slice %13 {offsets = [0, 0], sizes = [8, 128], strides = [1, 1]} : vector<8x384xf32> to vector<8x128xf32>
    %17 = arith.addf %15, %16 : vector<8x128xf32>
    %18 = arith.negf %17 : vector<8x128xf32>
    %19 = math.exp %18 : vector<8x128xf32>
    %cst_19 = arith.constant 1.000000e+00 : f32
    %20 = vector.broadcast %cst_19 : f32 to vector<8x128xf32>
    %21 = arith.addf %20, %19 : vector<8x128xf32>
    %22 = arith.divf %20, %21 : vector<8x128xf32>
    %23 = vector.extract_strided_slice %11 {offsets = [0, 128], sizes = [8, 128], strides = [1, 1]} : vector<8x384xf32> to vector<8x128xf32>
    %24 = vector.extract_strided_slice %13 {offsets = [0, 128], sizes = [8, 128], strides = [1, 1]} : vector<8x384xf32> to vector<8x128xf32>
    %25 = arith.addf %23, %24 : vector<8x128xf32>
    %26 = arith.negf %25 : vector<8x128xf32>
    %27 = math.exp %26 : vector<8x128xf32>
    %cst_20 = arith.constant 1.000000e+00 : f32
    %28 = vector.broadcast %cst_20 : f32 to vector<8x128xf32>
    %29 = arith.addf %28, %27 : vector<8x128xf32>
    %30 = arith.divf %28, %29 : vector<8x128xf32>
    %31 = vector.extract_strided_slice %11 {offsets = [0, 256], sizes = [8, 128], strides = [1, 1]} : vector<8x384xf32> to vector<8x128xf32>
    %32 = vector.extract_strided_slice %13 {offsets = [0, 256], sizes = [8, 128], strides = [1, 1]} : vector<8x384xf32> to vector<8x128xf32>
    %33 = vector.broadcast %14 : vector<1x128xf32> to vector<8x128xf32>
    %34 = arith.addf %32, %33 : vector<8x128xf32>
    %35 = arith.mulf %22, %34 : vector<8x128xf32>
    %36 = arith.addf %31, %35 : vector<8x128xf32>
    %37 = math.tanh %36 : vector<8x128xf32>
    %cst_21 = arith.constant 1.000000e+00 : f32
    %38 = vector.broadcast %cst_21 : f32 to vector<8x128xf32>
    %39 = arith.subf %38, %30 : vector<8x128xf32>
    %40 = arith.mulf %39, %37 : vector<8x128xf32>
    %41 = arith.mulf %30, %8 : vector<8x128xf32>
    %42 = arith.addf %40, %41 : vector<8x128xf32>
    %c0_22 = arith.constant 0 : index
    %c0_23 = arith.constant 0 : index
    %43 = vector.load %arg6[%c0_22, %c0_23] : memref<128x384xf32, #tpu.memory_space<vmem>>, vector<128x384xf32>
    %cst_24 = arith.constant dense<0.000000e+00> : vector<8x384xf32>
    %44 = tpu.matmul %42, %43, %cst_24 {dimension_numbers = #tpu.dot_dimension_numbers<[1], [0], [0], [1], [0, 0, 1, 1], [], []>} : vector<8x128xf32>, vector<128x384xf32>, vector<8x384xf32> -> vector<8x384xf32>
    %c0_25 = arith.constant 0 : index
    %c0_26 = arith.constant 0 : index
    %45 = vector.load %arg7[%c0_25, %c0_26] : memref<1x384xf32, #tpu.memory_space<vmem>>, vector<1x384xf32>
    %46 = vector.broadcast %45 : vector<1x384xf32> to vector<8x384xf32>
    %47 = arith.addf %44, %46 : vector<8x384xf32>
    %c0_27 = arith.constant 0 : index
    %c0_28 = arith.constant 0 : index
    %48 = vector.load %arg8[%c0_27, %c0_28] : memref<128x384xf32, #tpu.memory_space<vmem>>, vector<128x384xf32>
    %cst_29 = arith.constant dense<0.000000e+00> : vector<8x384xf32>
    %49 = tpu.matmul %10, %48, %cst_29 {dimension_numbers = #tpu.dot_dimension_numbers<[1], [0], [0], [1], [0, 0, 1, 1], [], []>} : vector<8x128xf32>, vector<128x384xf32>, vector<8x384xf32> -> vector<8x384xf32>
    %c0_30 = arith.constant 0 : index
    %c0_31 = arith.constant 0 : index
    %50 = vector.load %arg9[%c0_30, %c0_31] : memref<1x128xf32, #tpu.memory_space<vmem>>, vector<1x128xf32>
    %51 = vector.extract_strided_slice %47 {offsets = [0, 0], sizes = [8, 128], strides = [1, 1]} : vector<8x384xf32> to vector<8x128xf32>
    %52 = vector.extract_strided_slice %49 {offsets = [0, 0], sizes = [8, 128], strides = [1, 1]} : vector<8x384xf32> to vector<8x128xf32>
    %53 = arith.addf %51, %52 : vector<8x128xf32>
    %54 = arith.negf %53 : vector<8x128xf32>
    %55 = math.exp %54 : vector<8x128xf32>
    %cst_32 = arith.constant 1.000000e+00 : f32
    %56 = vector.broadcast %cst_32 : f32 to vector<8x128xf32>
    %57 = arith.addf %56, %55 : vector<8x128xf32>
    %58 = arith.divf %56, %57 : vector<8x128xf32>
    %59 = vector.extract_strided_slice %47 {offsets = [0, 128], sizes = [8, 128], strides = [1, 1]} : vector<8x384xf32> to vector<8x128xf32>
    %60 = vector.extract_strided_slice %49 {offsets = [0, 128], sizes = [8, 128], strides = [1, 1]} : vector<8x384xf32> to vector<8x128xf32>
    %61 = arith.addf %59, %60 : vector<8x128xf32>
    %62 = arith.negf %61 : vector<8x128xf32>
    %63 = math.exp %62 : vector<8x128xf32>
    %cst_33 = arith.constant 1.000000e+00 : f32
    %64 = vector.broadcast %cst_33 : f32 to vector<8x128xf32>
    %65 = arith.addf %64, %63 : vector<8x128xf32>
    %66 = arith.divf %64, %65 : vector<8x128xf32>
    %67 = vector.extract_strided_slice %47 {offsets = [0, 256], sizes = [8, 128], strides = [1, 1]} : vector<8x384xf32> to vector<8x128xf32>
    %68 = vector.extract_strided_slice %49 {offsets = [0, 256], sizes = [8, 128], strides = [1, 1]} : vector<8x384xf32> to vector<8x128xf32>
    %69 = vector.broadcast %50 : vector<1x128xf32> to vector<8x128xf32>
    %70 = arith.addf %68, %69 : vector<8x128xf32>
    %71 = arith.mulf %58, %70 : vector<8x128xf32>
    %72 = arith.addf %67, %71 : vector<8x128xf32>
    %73 = math.tanh %72 : vector<8x128xf32>
    %cst_34 = arith.constant 1.000000e+00 : f32
    %74 = vector.broadcast %cst_34 : f32 to vector<8x128xf32>
    %75 = arith.subf %74, %66 : vector<8x128xf32>
    %76 = arith.mulf %75, %73 : vector<8x128xf32>
    %77 = arith.mulf %66, %10 : vector<8x128xf32>
    %78 = arith.addf %76, %77 : vector<8x128xf32>
    %c0_35 = arith.constant 0 : index
    %c0_36 = arith.constant 0 : index
    %79 = vector.load %arg16[%c0_35, %c0_36] : memref<64x128xf32, #tpu.memory_space<vmem>>, vector<8x128xf32>
    tpu.vector_store %arg16[%c0_35, %c0_36], %78 {strides = array<i32>} : memref<64x128xf32, #tpu.memory_space<vmem>>, vector<8x128xf32>,
    %c8 = arith.constant 8 : index
    %c0_37 = arith.constant 0 : index
    %80 = vector.load %arg15[%c8, %c0_37] : memref<64x384xf32, #tpu.memory_space<vmem>>, vector<8x384xf32>
    %c0_38 = arith.constant 0 : index
    %c0_39 = arith.constant 0 : index
    %81 = vector.load %arg4[%c0_38, %c0_39] : memref<128x384xf32, #tpu.memory_space<vmem>>, vector<128x384xf32>
    %cst_40 = arith.constant dense<0.000000e+00> : vector<8x384xf32>
    %82 = tpu.matmul %42, %81, %cst_40 {dimension_numbers = #tpu.dot_dimension_numbers<[1], [0], [0], [1], [0, 0, 1, 1], [], []>} : vector<8x128xf32>, vector<128x384xf32>, vector<8x384xf32> -> vector<8x384xf32>
    %c0_41 = arith.constant 0 : index
    %c0_42 = arith.constant 0 : index
    %83 = vector.load %arg5[%c0_41, %c0_42] : memref<1x128xf32, #tpu.memory_space<vmem>>, vector<1x128xf32>
    %84 = vector.extract_strided_slice %80 {offsets = [0, 0], sizes = [8, 128], strides = [1, 1]} : vector<8x384xf32> to vector<8x128xf32>
    %85 = vector.extract_strided_slice %82 {offsets = [0, 0], sizes = [8, 128], strides = [1, 1]} : vector<8x384xf32> to vector<8x128xf32>
    %86 = arith.addf %84, %85 : vector<8x128xf32>
    %87 = arith.negf %86 : vector<8x128xf32>
    %88 = math.exp %87 : vector<8x128xf32>
    %cst_43 = arith.constant 1.000000e+00 : f32
    %89 = vector.broadcast %cst_43 : f32 to vector<8x128xf32>
    %90 = arith.addf %89, %88 : vector<8x128xf32>
    %91 = arith.divf %89, %90 : vector<8x128xf32>
    %92 = vector.extract_strided_slice %80 {offsets = [0, 128], sizes = [8, 128], strides = [1, 1]} : vector<8x384xf32> to vector<8x128xf32>
    %93 = vector.extract_strided_slice %82 {offsets = [0, 128], sizes = [8, 128], strides = [1, 1]} : vector<8x384xf32> to vector<8x128xf32>
    %94 = arith.addf %92, %93 : vector<8x128xf32>
    %95 = arith.negf %94 : vector<8x128xf32>
    %96 = math.exp %95 : vector<8x128xf32>
    %cst_44 = arith.constant 1.000000e+00 : f32
    %97 = vector.broadcast %cst_44 : f32 to vector<8x128xf32>
    %98 = arith.addf %97, %96 : vector<8x128xf32>
    %99 = arith.divf %97, %98 : vector<8x128xf32>
    %100 = vector.extract_strided_slice %80 {offsets = [0, 256], sizes = [8, 128], strides = [1, 1]} : vector<8x384xf32> to vector<8x128xf32>
    %101 = vector.extract_strided_slice %82 {offsets = [0, 256], sizes = [8, 128], strides = [1, 1]} : vector<8x384xf32> to vector<8x128xf32>
    %102 = vector.broadcast %83 : vector<1x128xf32> to vector<8x128xf32>
    %103 = arith.addf %101, %102 : vector<8x128xf32>
    %104 = arith.mulf %91, %103 : vector<8x128xf32>
    %105 = arith.addf %100, %104 : vector<8x128xf32>
    %106 = math.tanh %105 : vector<8x128xf32>
    %cst_45 = arith.constant 1.000000e+00 : f32
    %107 = vector.broadcast %cst_45 : f32 to vector<8x128xf32>
    %108 = arith.subf %107, %99 : vector<8x128xf32>
    %109 = arith.mulf %108, %106 : vector<8x128xf32>
    %110 = arith.mulf %99, %42 : vector<8x128xf32>
    %111 = arith.addf %109, %110 : vector<8x128xf32>
    %c0_46 = arith.constant 0 : index
    %c0_47 = arith.constant 0 : index
    %112 = vector.load %arg6[%c0_46, %c0_47] : memref<128x384xf32, #tpu.memory_space<vmem>>, vector<128x384xf32>
    %cst_48 = arith.constant dense<0.000000e+00> : vector<8x384xf32>
    %113 = tpu.matmul %111, %112, %cst_48 {dimension_numbers = #tpu.dot_dimension_numbers<[1], [0], [0], [1], [0, 0, 1, 1], [], []>} : vector<8x128xf32>, vector<128x384xf32>, vector<8x384xf32> -> vector<8x384xf32>
    %c0_49 = arith.constant 0 : index
    %c0_50 = arith.constant 0 : index
    %114 = vector.load %arg7[%c0_49, %c0_50] : memref<1x384xf32, #tpu.memory_space<vmem>>, vector<1x384xf32>
    %115 = vector.broadcast %114 : vector<1x384xf32> to vector<8x384xf32>
    %116 = arith.addf %113, %115 : vector<8x384xf32>
    %c0_51 = arith.constant 0 : index
    %c0_52 = arith.constant 0 : index
    %117 = vector.load %arg8[%c0_51, %c0_52] : memref<128x384xf32, #tpu.memory_space<vmem>>, vector<128x384xf32>
    %cst_53 = arith.constant dense<0.000000e+00> : vector<8x384xf32>
    %118 = tpu.matmul %78, %117, %cst_53 {dimension_numbers = #tpu.dot_dimension_numbers<[1], [0], [0], [1], [0, 0, 1, 1], [], []>} : vector<8x128xf32>, vector<128x384xf32>, vector<8x384xf32> -> vector<8x384xf32>
    %c0_54 = arith.constant 0 : index
    %c0_55 = arith.constant 0 : index
    %119 = vector.load %arg9[%c0_54, %c0_55] : memref<1x128xf32, #tpu.memory_space<vmem>>, vector<1x128xf32>
    %120 = vector.extract_strided_slice %116 {offsets = [0, 0], sizes = [8, 128], strides = [1, 1]} : vector<8x384xf32> to vector<8x128xf32>
    %121 = vector.extract_strided_slice %118 {offsets = [0, 0], sizes = [8, 128], strides = [1, 1]} : vector<8x384xf32> to vector<8x128xf32>
    %122 = arith.addf %120, %121 : vector<8x128xf32>
    %123 = arith.negf %122 : vector<8x128xf32>
    %124 = math.exp %123 : vector<8x128xf32>
    %cst_56 = arith.constant 1.000000e+00 : f32
    %125 = vector.broadcast %cst_56 : f32 to vector<8x128xf32>
    %126 = arith.addf %125, %124 : vector<8x128xf32>
    %127 = arith.divf %125, %126 : vector<8x128xf32>
    %128 = vector.extract_strided_slice %116 {offsets = [0, 128], sizes = [8, 128], strides = [1, 1]} : vector<8x384xf32> to vector<8x128xf32>
    %129 = vector.extract_strided_slice %118 {offsets = [0, 128], sizes = [8, 128], strides = [1, 1]} : vector<8x384xf32> to vector<8x128xf32>
    %130 = arith.addf %128, %129 : vector<8x128xf32>
    %131 = arith.negf %130 : vector<8x128xf32>
    %132 = math.exp %131 : vector<8x128xf32>
    %cst_57 = arith.constant 1.000000e+00 : f32
    %133 = vector.broadcast %cst_57 : f32 to vector<8x128xf32>
    %134 = arith.addf %133, %132 : vector<8x128xf32>
    %135 = arith.divf %133, %134 : vector<8x128xf32>
    %136 = vector.extract_strided_slice %116 {offsets = [0, 256], sizes = [8, 128], strides = [1, 1]} : vector<8x384xf32> to vector<8x128xf32>
    %137 = vector.extract_strided_slice %118 {offsets = [0, 256], sizes = [8, 128], strides = [1, 1]} : vector<8x384xf32> to vector<8x128xf32>
    %138 = vector.broadcast %119 : vector<1x128xf32> to vector<8x128xf32>
    %139 = arith.addf %137, %138 : vector<8x128xf32>
    %140 = arith.mulf %127, %139 : vector<8x128xf32>
    %141 = arith.addf %136, %140 : vector<8x128xf32>
    %142 = math.tanh %141 : vector<8x128xf32>
    %cst_58 = arith.constant 1.000000e+00 : f32
    %143 = vector.broadcast %cst_58 : f32 to vector<8x128xf32>
    %144 = arith.subf %143, %135 : vector<8x128xf32>
    %145 = arith.mulf %144, %142 : vector<8x128xf32>
    %146 = arith.mulf %135, %78 : vector<8x128xf32>
    %147 = arith.addf %145, %146 : vector<8x128xf32>
    %c8_59 = arith.constant 8 : index
    %c0_60 = arith.constant 0 : index
    %148 = vector.load %arg16[%c8_59, %c0_60] : memref<64x128xf32, #tpu.memory_space<vmem>>, vector<8x128xf32>
    tpu.vector_store %arg16[%c8_59, %c0_60], %147 {strides = array<i32>} : memref<64x128xf32, #tpu.memory_space<vmem>>, vector<8x128xf32>,
    %c16 = arith.constant 16 : index
    %c0_61 = arith.constant 0 : index
    %149 = vector.load %arg15[%c16, %c0_61] : memref<64x384xf32, #tpu.memory_space<vmem>>, vector<8x384xf32>
    %c0_62 = arith.constant 0 : index
    %c0_63 = arith.constant 0 : index
    %150 = vector.load %arg4[%c0_62, %c0_63] : memref<128x384xf32, #tpu.memory_space<vmem>>, vector<128x384xf32>
    %cst_64 = arith.constant dense<0.000000e+00> : vector<8x384xf32>
    %151 = tpu.matmul %111, %150, %cst_64 {dimension_numbers = #tpu.dot_dimension_numbers<[1], [0], [0], [1], [0, 0, 1, 1], [], []>} : vector<8x128xf32>, vector<128x384xf32>, vector<8x384xf32> -> vector<8x384xf32>
    %c0_65 = arith.constant 0 : index
    %c0_66 = arith.constant 0 : index
    %152 = vector.load %arg5[%c0_65, %c0_66] : memref<1x128xf32, #tpu.memory_space<vmem>>, vector<1x128xf32>
    %153 = vector.extract_strided_slice %149 {offsets = [0, 0], sizes = [8, 128], strides = [1, 1]} : vector<8x384xf32> to vector<8x128xf32>
    %154 = vector.extract_strided_slice %151 {offsets = [0, 0], sizes = [8, 128], strides = [1, 1]} : vector<8x384xf32> to vector<8x128xf32>
    %155 = arith.addf %153, %154 : vector<8x128xf32>
    %156 = arith.negf %155 : vector<8x128xf32>
    %157 = math.exp %156 : vector<8x128xf32>
    %cst_67 = arith.constant 1.000000e+00 : f32
    %158 = vector.broadcast %cst_67 : f32 to vector<8x128xf32>
    %159 = arith.addf %158, %157 : vector<8x128xf32>
    %160 = arith.divf %158, %159 : vector<8x128xf32>
    %161 = vector.extract_strided_slice %149 {offsets = [0, 128], sizes = [8, 128], strides = [1, 1]} : vector<8x384xf32> to vector<8x128xf32>
    %162 = vector.extract_strided_slice %151 {offsets = [0, 128], sizes = [8, 128], strides = [1, 1]} : vector<8x384xf32> to vector<8x128xf32>
    %163 = arith.addf %161, %162 : vector<8x128xf32>
    %164 = arith.negf %163 : vector<8x128xf32>
    %165 = math.exp %164 : vector<8x128xf32>
    %cst_68 = arith.constant 1.000000e+00 : f32
    %166 = vector.broadcast %cst_68 : f32 to vector<8x128xf32>
    %167 = arith.addf %166, %165 : vector<8x128xf32>
    %168 = arith.divf %166, %167 : vector<8x128xf32>
    %169 = vector.extract_strided_slice %149 {offsets = [0, 256], sizes = [8, 128], strides = [1, 1]} : vector<8x384xf32> to vector<8x128xf32>
    %170 = vector.extract_strided_slice %151 {offsets = [0, 256], sizes = [8, 128], strides = [1, 1]} : vector<8x384xf32> to vector<8x128xf32>
    %171 = vector.broadcast %152 : vector<1x128xf32> to vector<8x128xf32>
    %172 = arith.addf %170, %171 : vector<8x128xf32>
    %173 = arith.mulf %160, %172 : vector<8x128xf32>
    %174 = arith.addf %169, %173 : vector<8x128xf32>
    %175 = math.tanh %174 : vector<8x128xf32>
    %cst_69 = arith.constant 1.000000e+00 : f32
    %176 = vector.broadcast %cst_69 : f32 to vector<8x128xf32>
    %177 = arith.subf %176, %168 : vector<8x128xf32>
    %178 = arith.mulf %177, %175 : vector<8x128xf32>
    %179 = arith.mulf %168, %111 : vector<8x128xf32>
    %180 = arith.addf %178, %179 : vector<8x128xf32>
    %c0_70 = arith.constant 0 : index
    %c0_71 = arith.constant 0 : index
    %181 = vector.load %arg6[%c0_70, %c0_71] : memref<128x384xf32, #tpu.memory_space<vmem>>, vector<128x384xf32>
    %cst_72 = arith.constant dense<0.000000e+00> : vector<8x384xf32>
    %182 = tpu.matmul %180, %181, %cst_72 {dimension_numbers = #tpu.dot_dimension_numbers<[1], [0], [0], [1], [0, 0, 1, 1], [], []>} : vector<8x128xf32>, vector<128x384xf32>, vector<8x384xf32> -> vector<8x384xf32>
    %c0_73 = arith.constant 0 : index
    %c0_74 = arith.constant 0 : index
    %183 = vector.load %arg7[%c0_73, %c0_74] : memref<1x384xf32, #tpu.memory_space<vmem>>, vector<1x384xf32>
    %184 = vector.broadcast %183 : vector<1x384xf32> to vector<8x384xf32>
    %185 = arith.addf %182, %184 : vector<8x384xf32>
    %c0_75 = arith.constant 0 : index
    %c0_76 = arith.constant 0 : index
    %186 = vector.load %arg8[%c0_75, %c0_76] : memref<128x384xf32, #tpu.memory_space<vmem>>, vector<128x384xf32>
    %cst_77 = arith.constant dense<0.000000e+00> : vector<8x384xf32>
    %187 = tpu.matmul %147, %186, %cst_77 {dimension_numbers = #tpu.dot_dimension_numbers<[1], [0], [0], [1], [0, 0, 1, 1], [], []>} : vector<8x128xf32>, vector<128x384xf32>, vector<8x384xf32> -> vector<8x384xf32>
    %c0_78 = arith.constant 0 : index
    %c0_79 = arith.constant 0 : index
    %188 = vector.load %arg9[%c0_78, %c0_79] : memref<1x128xf32, #tpu.memory_space<vmem>>, vector<1x128xf32>
    %189 = vector.extract_strided_slice %185 {offsets = [0, 0], sizes = [8, 128], strides = [1, 1]} : vector<8x384xf32> to vector<8x128xf32>
    %190 = vector.extract_strided_slice %187 {offsets = [0, 0], sizes = [8, 128], strides = [1, 1]} : vector<8x384xf32> to vector<8x128xf32>
    %191 = arith.addf %189, %190 : vector<8x128xf32>
    %192 = arith.negf %191 : vector<8x128xf32>
    %193 = math.exp %192 : vector<8x128xf32>
    %cst_80 = arith.constant 1.000000e+00 : f32
    %194 = vector.broadcast %cst_80 : f32 to vector<8x128xf32>
    %195 = arith.addf %194, %193 : vector<8x128xf32>
    %196 = arith.divf %194, %195 : vector<8x128xf32>
    %197 = vector.extract_strided_slice %185 {offsets = [0, 128], sizes = [8, 128], strides = [1, 1]} : vector<8x384xf32> to vector<8x128xf32>
    %198 = vector.extract_strided_slice %187 {offsets = [0, 128], sizes = [8, 128], strides = [1, 1]} : vector<8x384xf32> to vector<8x128xf32>
    %199 = arith.addf %197, %198 : vector<8x128xf32>
    %200 = arith.negf %199 : vector<8x128xf32>
    %201 = math.exp %200 : vector<8x128xf32>
    %cst_81 = arith.constant 1.000000e+00 : f32
    %202 = vector.broadcast %cst_81 : f32 to vector<8x128xf32>
    %203 = arith.addf %202, %201 : vector<8x128xf32>
    %204 = arith.divf %202, %203 : vector<8x128xf32>
    %205 = vector.extract_strided_slice %185 {offsets = [0, 256], sizes = [8, 128], strides = [1, 1]} : vector<8x384xf32> to vector<8x128xf32>
    %206 = vector.extract_strided_slice %187 {offsets = [0, 256], sizes = [8, 128], strides = [1, 1]} : vector<8x384xf32> to vector<8x128xf32>
    %207 = vector.broadcast %188 : vector<1x128xf32> to vector<8x128xf32>
    %208 = arith.addf %206, %207 : vector<8x128xf32>
    %209 = arith.mulf %196, %208 : vector<8x128xf32>
    %210 = arith.addf %205, %209 : vector<8x128xf32>
    %211 = math.tanh %210 : vector<8x128xf32>
    %cst_82 = arith.constant 1.000000e+00 : f32
    %212 = vector.broadcast %cst_82 : f32 to vector<8x128xf32>
    %213 = arith.subf %212, %204 : vector<8x128xf32>
    %214 = arith.mulf %213, %211 : vector<8x128xf32>
    %215 = arith.mulf %204, %147 : vector<8x128xf32>
    %216 = arith.addf %214, %215 : vector<8x128xf32>
    %c16_83 = arith.constant 16 : index
    %c0_84 = arith.constant 0 : index
    %217 = vector.load %arg16[%c16_83, %c0_84] : memref<64x128xf32, #tpu.memory_space<vmem>>, vector<8x128xf32>
    tpu.vector_store %arg16[%c16_83, %c0_84], %216 {strides = array<i32>} : memref<64x128xf32, #tpu.memory_space<vmem>>, vector<8x128xf32>,
    %c24 = arith.constant 24 : index
    %c0_85 = arith.constant 0 : index
    %218 = vector.load %arg15[%c24, %c0_85] : memref<64x384xf32, #tpu.memory_space<vmem>>, vector<8x384xf32>
    %c0_86 = arith.constant 0 : index
    %c0_87 = arith.constant 0 : index
    %219 = vector.load %arg4[%c0_86, %c0_87] : memref<128x384xf32, #tpu.memory_space<vmem>>, vector<128x384xf32>
    %cst_88 = arith.constant dense<0.000000e+00> : vector<8x384xf32>
    %220 = tpu.matmul %180, %219, %cst_88 {dimension_numbers = #tpu.dot_dimension_numbers<[1], [0], [0], [1], [0, 0, 1, 1], [], []>} : vector<8x128xf32>, vector<128x384xf32>, vector<8x384xf32> -> vector<8x384xf32>
    %c0_89 = arith.constant 0 : index
    %c0_90 = arith.constant 0 : index
    %221 = vector.load %arg5[%c0_89, %c0_90] : memref<1x128xf32, #tpu.memory_space<vmem>>, vector<1x128xf32>
    %222 = vector.extract_strided_slice %218 {offsets = [0, 0], sizes = [8, 128], strides = [1, 1]} : vector<8x384xf32> to vector<8x128xf32>
    %223 = vector.extract_strided_slice %220 {offsets = [0, 0], sizes = [8, 128], strides = [1, 1]} : vector<8x384xf32> to vector<8x128xf32>
    %224 = arith.addf %222, %223 : vector<8x128xf32>
    %225 = arith.negf %224 : vector<8x128xf32>
    %226 = math.exp %225 : vector<8x128xf32>
    %cst_91 = arith.constant 1.000000e+00 : f32
    %227 = vector.broadcast %cst_91 : f32 to vector<8x128xf32>
    %228 = arith.addf %227, %226 : vector<8x128xf32>
    %229 = arith.divf %227, %228 : vector<8x128xf32>
    %230 = vector.extract_strided_slice %218 {offsets = [0, 128], sizes = [8, 128], strides = [1, 1]} : vector<8x384xf32> to vector<8x128xf32>
    %231 = vector.extract_strided_slice %220 {offsets = [0, 128], sizes = [8, 128], strides = [1, 1]} : vector<8x384xf32> to vector<8x128xf32>
    %232 = arith.addf %230, %231 : vector<8x128xf32>
    %233 = arith.negf %232 : vector<8x128xf32>
    %234 = math.exp %233 : vector<8x128xf32>
    %cst_92 = arith.constant 1.000000e+00 : f32
    %235 = vector.broadcast %cst_92 : f32 to vector<8x128xf32>
    %236 = arith.addf %235, %234 : vector<8x128xf32>
    %237 = arith.divf %235, %236 : vector<8x128xf32>
    %238 = vector.extract_strided_slice %218 {offsets = [0, 256], sizes = [8, 128], strides = [1, 1]} : vector<8x384xf32> to vector<8x128xf32>
    %239 = vector.extract_strided_slice %220 {offsets = [0, 256], sizes = [8, 128], strides = [1, 1]} : vector<8x384xf32> to vector<8x128xf32>
    %240 = vector.broadcast %221 : vector<1x128xf32> to vector<8x128xf32>
    %241 = arith.addf %239, %240 : vector<8x128xf32>
    %242 = arith.mulf %229, %241 : vector<8x128xf32>
    %243 = arith.addf %238, %242 : vector<8x128xf32>
    %244 = math.tanh %243 : vector<8x128xf32>
    %cst_93 = arith.constant 1.000000e+00 : f32
    %245 = vector.broadcast %cst_93 : f32 to vector<8x128xf32>
    %246 = arith.subf %245, %237 : vector<8x128xf32>
    %247 = arith.mulf %246, %244 : vector<8x128xf32>
    %248 = arith.mulf %237, %180 : vector<8x128xf32>
    %249 = arith.addf %247, %248 : vector<8x128xf32>
    %c0_94 = arith.constant 0 : index
    %c0_95 = arith.constant 0 : index
    %250 = vector.load %arg6[%c0_94, %c0_95] : memref<128x384xf32, #tpu.memory_space<vmem>>, vector<128x384xf32>
    %cst_96 = arith.constant dense<0.000000e+00> : vector<8x384xf32>
    %251 = tpu.matmul %249, %250, %cst_96 {dimension_numbers = #tpu.dot_dimension_numbers<[1], [0], [0], [1], [0, 0, 1, 1], [], []>} : vector<8x128xf32>, vector<128x384xf32>, vector<8x384xf32> -> vector<8x384xf32>
    %c0_97 = arith.constant 0 : index
    %c0_98 = arith.constant 0 : index
    %252 = vector.load %arg7[%c0_97, %c0_98] : memref<1x384xf32, #tpu.memory_space<vmem>>, vector<1x384xf32>
    %253 = vector.broadcast %252 : vector<1x384xf32> to vector<8x384xf32>
    %254 = arith.addf %251, %253 : vector<8x384xf32>
    %c0_99 = arith.constant 0 : index
    %c0_100 = arith.constant 0 : index
    %255 = vector.load %arg8[%c0_99, %c0_100] : memref<128x384xf32, #tpu.memory_space<vmem>>, vector<128x384xf32>
    %cst_101 = arith.constant dense<0.000000e+00> : vector<8x384xf32>
    %256 = tpu.matmul %216, %255, %cst_101 {dimension_numbers = #tpu.dot_dimension_numbers<[1], [0], [0], [1], [0, 0, 1, 1], [], []>} : vector<8x128xf32>, vector<128x384xf32>, vector<8x384xf32> -> vector<8x384xf32>
    %c0_102 = arith.constant 0 : index
    %c0_103 = arith.constant 0 : index
    %257 = vector.load %arg9[%c0_102, %c0_103] : memref<1x128xf32, #tpu.memory_space<vmem>>, vector<1x128xf32>
    %258 = vector.extract_strided_slice %254 {offsets = [0, 0], sizes = [8, 128], strides = [1, 1]} : vector<8x384xf32> to vector<8x128xf32>
    %259 = vector.extract_strided_slice %256 {offsets = [0, 0], sizes = [8, 128], strides = [1, 1]} : vector<8x384xf32> to vector<8x128xf32>
    %260 = arith.addf %258, %259 : vector<8x128xf32>
    %261 = arith.negf %260 : vector<8x128xf32>
    %262 = math.exp %261 : vector<8x128xf32>
    %cst_104 = arith.constant 1.000000e+00 : f32
    %263 = vector.broadcast %cst_104 : f32 to vector<8x128xf32>
    %264 = arith.addf %263, %262 : vector<8x128xf32>
    %265 = arith.divf %263, %264 : vector<8x128xf32>
    %266 = vector.extract_strided_slice %254 {offsets = [0, 128], sizes = [8, 128], strides = [1, 1]} : vector<8x384xf32> to vector<8x128xf32>
    %267 = vector.extract_strided_slice %256 {offsets = [0, 128], sizes = [8, 128], strides = [1, 1]} : vector<8x384xf32> to vector<8x128xf32>
    %268 = arith.addf %266, %267 : vector<8x128xf32>
    %269 = arith.negf %268 : vector<8x128xf32>
    %270 = math.exp %269 : vector<8x128xf32>
    %cst_105 = arith.constant 1.000000e+00 : f32
    %271 = vector.broadcast %cst_105 : f32 to vector<8x128xf32>
    %272 = arith.addf %271, %270 : vector<8x128xf32>
    %273 = arith.divf %271, %272 : vector<8x128xf32>
    %274 = vector.extract_strided_slice %254 {offsets = [0, 256], sizes = [8, 128], strides = [1, 1]} : vector<8x384xf32> to vector<8x128xf32>
    %275 = vector.extract_strided_slice %256 {offsets = [0, 256], sizes = [8, 128], strides = [1, 1]} : vector<8x384xf32> to vector<8x128xf32>
    %276 = vector.broadcast %257 : vector<1x128xf32> to vector<8x128xf32>
    %277 = arith.addf %275, %276 : vector<8x128xf32>
    %278 = arith.mulf %265, %277 : vector<8x128xf32>
    %279 = arith.addf %274, %278 : vector<8x128xf32>
    %280 = math.tanh %279 : vector<8x128xf32>
    %cst_106 = arith.constant 1.000000e+00 : f32
    %281 = vector.broadcast %cst_106 : f32 to vector<8x128xf32>
    %282 = arith.subf %281, %273 : vector<8x128xf32>
    %283 = arith.mulf %282, %280 : vector<8x128xf32>
    %284 = arith.mulf %273, %216 : vector<8x128xf32>
    %285 = arith.addf %283, %284 : vector<8x128xf32>
    %c24_107 = arith.constant 24 : index
    %c0_108 = arith.constant 0 : index
    %286 = vector.load %arg16[%c24_107, %c0_108] : memref<64x128xf32, #tpu.memory_space<vmem>>, vector<8x128xf32>
    tpu.vector_store %arg16[%c24_107, %c0_108], %285 {strides = array<i32>} : memref<64x128xf32, #tpu.memory_space<vmem>>, vector<8x128xf32>,
    %c32 = arith.constant 32 : index
    %c0_109 = arith.constant 0 : index
    %287 = vector.load %arg15[%c32, %c0_109] : memref<64x384xf32, #tpu.memory_space<vmem>>, vector<8x384xf32>
    %c0_110 = arith.constant 0 : index
    %c0_111 = arith.constant 0 : index
    %288 = vector.load %arg4[%c0_110, %c0_111] : memref<128x384xf32, #tpu.memory_space<vmem>>, vector<128x384xf32>
    %cst_112 = arith.constant dense<0.000000e+00> : vector<8x384xf32>
    %289 = tpu.matmul %249, %288, %cst_112 {dimension_numbers = #tpu.dot_dimension_numbers<[1], [0], [0], [1], [0, 0, 1, 1], [], []>} : vector<8x128xf32>, vector<128x384xf32>, vector<8x384xf32> -> vector<8x384xf32>
    %c0_113 = arith.constant 0 : index
    %c0_114 = arith.constant 0 : index
    %290 = vector.load %arg5[%c0_113, %c0_114] : memref<1x128xf32, #tpu.memory_space<vmem>>, vector<1x128xf32>
    %291 = vector.extract_strided_slice %287 {offsets = [0, 0], sizes = [8, 128], strides = [1, 1]} : vector<8x384xf32> to vector<8x128xf32>
    %292 = vector.extract_strided_slice %289 {offsets = [0, 0], sizes = [8, 128], strides = [1, 1]} : vector<8x384xf32> to vector<8x128xf32>
    %293 = arith.addf %291, %292 : vector<8x128xf32>
    %294 = arith.negf %293 : vector<8x128xf32>
    %295 = math.exp %294 : vector<8x128xf32>
    %cst_115 = arith.constant 1.000000e+00 : f32
    %296 = vector.broadcast %cst_115 : f32 to vector<8x128xf32>
    %297 = arith.addf %296, %295 : vector<8x128xf32>
    %298 = arith.divf %296, %297 : vector<8x128xf32>
    %299 = vector.extract_strided_slice %287 {offsets = [0, 128], sizes = [8, 128], strides = [1, 1]} : vector<8x384xf32> to vector<8x128xf32>
    %300 = vector.extract_strided_slice %289 {offsets = [0, 128], sizes = [8, 128], strides = [1, 1]} : vector<8x384xf32> to vector<8x128xf32>
    %301 = arith.addf %299, %300 : vector<8x128xf32>
    %302 = arith.negf %301 : vector<8x128xf32>
    %303 = math.exp %302 : vector<8x128xf32>
    %cst_116 = arith.constant 1.000000e+00 : f32
    %304 = vector.broadcast %cst_116 : f32 to vector<8x128xf32>
    %305 = arith.addf %304, %303 : vector<8x128xf32>
    %306 = arith.divf %304, %305 : vector<8x128xf32>
    %307 = vector.extract_strided_slice %287 {offsets = [0, 256], sizes = [8, 128], strides = [1, 1]} : vector<8x384xf32> to vector<8x128xf32>
    %308 = vector.extract_strided_slice %289 {offsets = [0, 256], sizes = [8, 128], strides = [1, 1]} : vector<8x384xf32> to vector<8x128xf32>
    %309 = vector.broadcast %290 : vector<1x128xf32> to vector<8x128xf32>
    %310 = arith.addf %308, %309 : vector<8x128xf32>
    %311 = arith.mulf %298, %310 : vector<8x128xf32>
    %312 = arith.addf %307, %311 : vector<8x128xf32>
    %313 = math.tanh %312 : vector<8x128xf32>
    %cst_117 = arith.constant 1.000000e+00 : f32
    %314 = vector.broadcast %cst_117 : f32 to vector<8x128xf32>
    %315 = arith.subf %314, %306 : vector<8x128xf32>
    %316 = arith.mulf %315, %313 : vector<8x128xf32>
    %317 = arith.mulf %306, %249 : vector<8x128xf32>
    %318 = arith.addf %316, %317 : vector<8x128xf32>
    %c0_118 = arith.constant 0 : index
    %c0_119 = arith.constant 0 : index
    %319 = vector.load %arg6[%c0_118, %c0_119] : memref<128x384xf32, #tpu.memory_space<vmem>>, vector<128x384xf32>
    %cst_120 = arith.constant dense<0.000000e+00> : vector<8x384xf32>
    %320 = tpu.matmul %318, %319, %cst_120 {dimension_numbers = #tpu.dot_dimension_numbers<[1], [0], [0], [1], [0, 0, 1, 1], [], []>} : vector<8x128xf32>, vector<128x384xf32>, vector<8x384xf32> -> vector<8x384xf32>
    %c0_121 = arith.constant 0 : index
    %c0_122 = arith.constant 0 : index
    %321 = vector.load %arg7[%c0_121, %c0_122] : memref<1x384xf32, #tpu.memory_space<vmem>>, vector<1x384xf32>
    %322 = vector.broadcast %321 : vector<1x384xf32> to vector<8x384xf32>
    %323 = arith.addf %320, %322 : vector<8x384xf32>
    %c0_123 = arith.constant 0 : index
    %c0_124 = arith.constant 0 : index
    %324 = vector.load %arg8[%c0_123, %c0_124] : memref<128x384xf32, #tpu.memory_space<vmem>>, vector<128x384xf32>
    %cst_125 = arith.constant dense<0.000000e+00> : vector<8x384xf32>
    %325 = tpu.matmul %285, %324, %cst_125 {dimension_numbers = #tpu.dot_dimension_numbers<[1], [0], [0], [1], [0, 0, 1, 1], [], []>} : vector<8x128xf32>, vector<128x384xf32>, vector<8x384xf32> -> vector<8x384xf32>
    %c0_126 = arith.constant 0 : index
    %c0_127 = arith.constant 0 : index
    %326 = vector.load %arg9[%c0_126, %c0_127] : memref<1x128xf32, #tpu.memory_space<vmem>>, vector<1x128xf32>
    %327 = vector.extract_strided_slice %323 {offsets = [0, 0], sizes = [8, 128], strides = [1, 1]} : vector<8x384xf32> to vector<8x128xf32>
    %328 = vector.extract_strided_slice %325 {offsets = [0, 0], sizes = [8, 128], strides = [1, 1]} : vector<8x384xf32> to vector<8x128xf32>
    %329 = arith.addf %327, %328 : vector<8x128xf32>
    %330 = arith.negf %329 : vector<8x128xf32>
    %331 = math.exp %330 : vector<8x128xf32>
    %cst_128 = arith.constant 1.000000e+00 : f32
    %332 = vector.broadcast %cst_128 : f32 to vector<8x128xf32>
    %333 = arith.addf %332, %331 : vector<8x128xf32>
    %334 = arith.divf %332, %333 : vector<8x128xf32>
    %335 = vector.extract_strided_slice %323 {offsets = [0, 128], sizes = [8, 128], strides = [1, 1]} : vector<8x384xf32> to vector<8x128xf32>
    %336 = vector.extract_strided_slice %325 {offsets = [0, 128], sizes = [8, 128], strides = [1, 1]} : vector<8x384xf32> to vector<8x128xf32>
    %337 = arith.addf %335, %336 : vector<8x128xf32>
    %338 = arith.negf %337 : vector<8x128xf32>
    %339 = math.exp %338 : vector<8x128xf32>
    %cst_129 = arith.constant 1.000000e+00 : f32
    %340 = vector.broadcast %cst_129 : f32 to vector<8x128xf32>
    %341 = arith.addf %340, %339 : vector<8x128xf32>
    %342 = arith.divf %340, %341 : vector<8x128xf32>
    %343 = vector.extract_strided_slice %323 {offsets = [0, 256], sizes = [8, 128], strides = [1, 1]} : vector<8x384xf32> to vector<8x128xf32>
    %344 = vector.extract_strided_slice %325 {offsets = [0, 256], sizes = [8, 128], strides = [1, 1]} : vector<8x384xf32> to vector<8x128xf32>
    %345 = vector.broadcast %326 : vector<1x128xf32> to vector<8x128xf32>
    %346 = arith.addf %344, %345 : vector<8x128xf32>
    %347 = arith.mulf %334, %346 : vector<8x128xf32>
    %348 = arith.addf %343, %347 : vector<8x128xf32>
    %349 = math.tanh %348 : vector<8x128xf32>
    %cst_130 = arith.constant 1.000000e+00 : f32
    %350 = vector.broadcast %cst_130 : f32 to vector<8x128xf32>
    %351 = arith.subf %350, %342 : vector<8x128xf32>
    %352 = arith.mulf %351, %349 : vector<8x128xf32>
    %353 = arith.mulf %342, %285 : vector<8x128xf32>
    %354 = arith.addf %352, %353 : vector<8x128xf32>
    %c32_131 = arith.constant 32 : index
    %c0_132 = arith.constant 0 : index
    %355 = vector.load %arg16[%c32_131, %c0_132] : memref<64x128xf32, #tpu.memory_space<vmem>>, vector<8x128xf32>
    tpu.vector_store %arg16[%c32_131, %c0_132], %354 {strides = array<i32>} : memref<64x128xf32, #tpu.memory_space<vmem>>, vector<8x128xf32>,
    %c40 = arith.constant 40 : index
    %c0_133 = arith.constant 0 : index
    %356 = vector.load %arg15[%c40, %c0_133] : memref<64x384xf32, #tpu.memory_space<vmem>>, vector<8x384xf32>
    %c0_134 = arith.constant 0 : index
    %c0_135 = arith.constant 0 : index
    %357 = vector.load %arg4[%c0_134, %c0_135] : memref<128x384xf32, #tpu.memory_space<vmem>>, vector<128x384xf32>
    %cst_136 = arith.constant dense<0.000000e+00> : vector<8x384xf32>
    %358 = tpu.matmul %318, %357, %cst_136 {dimension_numbers = #tpu.dot_dimension_numbers<[1], [0], [0], [1], [0, 0, 1, 1], [], []>} : vector<8x128xf32>, vector<128x384xf32>, vector<8x384xf32> -> vector<8x384xf32>
    %c0_137 = arith.constant 0 : index
    %c0_138 = arith.constant 0 : index
    %359 = vector.load %arg5[%c0_137, %c0_138] : memref<1x128xf32, #tpu.memory_space<vmem>>, vector<1x128xf32>
    %360 = vector.extract_strided_slice %356 {offsets = [0, 0], sizes = [8, 128], strides = [1, 1]} : vector<8x384xf32> to vector<8x128xf32>
    %361 = vector.extract_strided_slice %358 {offsets = [0, 0], sizes = [8, 128], strides = [1, 1]} : vector<8x384xf32> to vector<8x128xf32>
    %362 = arith.addf %360, %361 : vector<8x128xf32>
    %363 = arith.negf %362 : vector<8x128xf32>
    %364 = math.exp %363 : vector<8x128xf32>
    %cst_139 = arith.constant 1.000000e+00 : f32
    %365 = vector.broadcast %cst_139 : f32 to vector<8x128xf32>
    %366 = arith.addf %365, %364 : vector<8x128xf32>
    %367 = arith.divf %365, %366 : vector<8x128xf32>
    %368 = vector.extract_strided_slice %356 {offsets = [0, 128], sizes = [8, 128], strides = [1, 1]} : vector<8x384xf32> to vector<8x128xf32>
    %369 = vector.extract_strided_slice %358 {offsets = [0, 128], sizes = [8, 128], strides = [1, 1]} : vector<8x384xf32> to vector<8x128xf32>
    %370 = arith.addf %368, %369 : vector<8x128xf32>
    %371 = arith.negf %370 : vector<8x128xf32>
    %372 = math.exp %371 : vector<8x128xf32>
    %cst_140 = arith.constant 1.000000e+00 : f32
    %373 = vector.broadcast %cst_140 : f32 to vector<8x128xf32>
    %374 = arith.addf %373, %372 : vector<8x128xf32>
    %375 = arith.divf %373, %374 : vector<8x128xf32>
    %376 = vector.extract_strided_slice %356 {offsets = [0, 256], sizes = [8, 128], strides = [1, 1]} : vector<8x384xf32> to vector<8x128xf32>
    %377 = vector.extract_strided_slice %358 {offsets = [0, 256], sizes = [8, 128], strides = [1, 1]} : vector<8x384xf32> to vector<8x128xf32>
    %378 = vector.broadcast %359 : vector<1x128xf32> to vector<8x128xf32>
    %379 = arith.addf %377, %378 : vector<8x128xf32>
    %380 = arith.mulf %367, %379 : vector<8x128xf32>
    %381 = arith.addf %376, %380 : vector<8x128xf32>
    %382 = math.tanh %381 : vector<8x128xf32>
    %cst_141 = arith.constant 1.000000e+00 : f32
    %383 = vector.broadcast %cst_141 : f32 to vector<8x128xf32>
    %384 = arith.subf %383, %375 : vector<8x128xf32>
    %385 = arith.mulf %384, %382 : vector<8x128xf32>
    %386 = arith.mulf %375, %318 : vector<8x128xf32>
    %387 = arith.addf %385, %386 : vector<8x128xf32>
    %c0_142 = arith.constant 0 : index
    %c0_143 = arith.constant 0 : index
    %388 = vector.load %arg6[%c0_142, %c0_143] : memref<128x384xf32, #tpu.memory_space<vmem>>, vector<128x384xf32>
    %cst_144 = arith.constant dense<0.000000e+00> : vector<8x384xf32>
    %389 = tpu.matmul %387, %388, %cst_144 {dimension_numbers = #tpu.dot_dimension_numbers<[1], [0], [0], [1], [0, 0, 1, 1], [], []>} : vector<8x128xf32>, vector<128x384xf32>, vector<8x384xf32> -> vector<8x384xf32>
    %c0_145 = arith.constant 0 : index
    %c0_146 = arith.constant 0 : index
    %390 = vector.load %arg7[%c0_145, %c0_146] : memref<1x384xf32, #tpu.memory_space<vmem>>, vector<1x384xf32>
    %391 = vector.broadcast %390 : vector<1x384xf32> to vector<8x384xf32>
    %392 = arith.addf %389, %391 : vector<8x384xf32>
    %c0_147 = arith.constant 0 : index
    %c0_148 = arith.constant 0 : index
    %393 = vector.load %arg8[%c0_147, %c0_148] : memref<128x384xf32, #tpu.memory_space<vmem>>, vector<128x384xf32>
    %cst_149 = arith.constant dense<0.000000e+00> : vector<8x384xf32>
    %394 = tpu.matmul %354, %393, %cst_149 {dimension_numbers = #tpu.dot_dimension_numbers<[1], [0], [0], [1], [0, 0, 1, 1], [], []>} : vector<8x128xf32>, vector<128x384xf32>, vector<8x384xf32> -> vector<8x384xf32>
    %c0_150 = arith.constant 0 : index
    %c0_151 = arith.constant 0 : index
    %395 = vector.load %arg9[%c0_150, %c0_151] : memref<1x128xf32, #tpu.memory_space<vmem>>, vector<1x128xf32>
    %396 = vector.extract_strided_slice %392 {offsets = [0, 0], sizes = [8, 128], strides = [1, 1]} : vector<8x384xf32> to vector<8x128xf32>
    %397 = vector.extract_strided_slice %394 {offsets = [0, 0], sizes = [8, 128], strides = [1, 1]} : vector<8x384xf32> to vector<8x128xf32>
    %398 = arith.addf %396, %397 : vector<8x128xf32>
    %399 = arith.negf %398 : vector<8x128xf32>
    %400 = math.exp %399 : vector<8x128xf32>
    %cst_152 = arith.constant 1.000000e+00 : f32
    %401 = vector.broadcast %cst_152 : f32 to vector<8x128xf32>
    %402 = arith.addf %401, %400 : vector<8x128xf32>
    %403 = arith.divf %401, %402 : vector<8x128xf32>
    %404 = vector.extract_strided_slice %392 {offsets = [0, 128], sizes = [8, 128], strides = [1, 1]} : vector<8x384xf32> to vector<8x128xf32>
    %405 = vector.extract_strided_slice %394 {offsets = [0, 128], sizes = [8, 128], strides = [1, 1]} : vector<8x384xf32> to vector<8x128xf32>
    %406 = arith.addf %404, %405 : vector<8x128xf32>
    %407 = arith.negf %406 : vector<8x128xf32>
    %408 = math.exp %407 : vector<8x128xf32>
    %cst_153 = arith.constant 1.000000e+00 : f32
    %409 = vector.broadcast %cst_153 : f32 to vector<8x128xf32>
    %410 = arith.addf %409, %408 : vector<8x128xf32>
    %411 = arith.divf %409, %410 : vector<8x128xf32>
    %412 = vector.extract_strided_slice %392 {offsets = [0, 256], sizes = [8, 128], strides = [1, 1]} : vector<8x384xf32> to vector<8x128xf32>
    %413 = vector.extract_strided_slice %394 {offsets = [0, 256], sizes = [8, 128], strides = [1, 1]} : vector<8x384xf32> to vector<8x128xf32>
    %414 = vector.broadcast %395 : vector<1x128xf32> to vector<8x128xf32>
    %415 = arith.addf %413, %414 : vector<8x128xf32>
    %416 = arith.mulf %403, %415 : vector<8x128xf32>
    %417 = arith.addf %412, %416 : vector<8x128xf32>
    %418 = math.tanh %417 : vector<8x128xf32>
    %cst_154 = arith.constant 1.000000e+00 : f32
    %419 = vector.broadcast %cst_154 : f32 to vector<8x128xf32>
    %420 = arith.subf %419, %411 : vector<8x128xf32>
    %421 = arith.mulf %420, %418 : vector<8x128xf32>
    %422 = arith.mulf %411, %354 : vector<8x128xf32>
    %423 = arith.addf %421, %422 : vector<8x128xf32>
    %c40_155 = arith.constant 40 : index
    %c0_156 = arith.constant 0 : index
    %424 = vector.load %arg16[%c40_155, %c0_156] : memref<64x128xf32, #tpu.memory_space<vmem>>, vector<8x128xf32>
    tpu.vector_store %arg16[%c40_155, %c0_156], %423 {strides = array<i32>} : memref<64x128xf32, #tpu.memory_space<vmem>>, vector<8x128xf32>,
    %c48 = arith.constant 48 : index
    %c0_157 = arith.constant 0 : index
    %425 = vector.load %arg15[%c48, %c0_157] : memref<64x384xf32, #tpu.memory_space<vmem>>, vector<8x384xf32>
    %c0_158 = arith.constant 0 : index
    %c0_159 = arith.constant 0 : index
    %426 = vector.load %arg4[%c0_158, %c0_159] : memref<128x384xf32, #tpu.memory_space<vmem>>, vector<128x384xf32>
    %cst_160 = arith.constant dense<0.000000e+00> : vector<8x384xf32>
    %427 = tpu.matmul %387, %426, %cst_160 {dimension_numbers = #tpu.dot_dimension_numbers<[1], [0], [0], [1], [0, 0, 1, 1], [], []>} : vector<8x128xf32>, vector<128x384xf32>, vector<8x384xf32> -> vector<8x384xf32>
    %c0_161 = arith.constant 0 : index
    %c0_162 = arith.constant 0 : index
    %428 = vector.load %arg5[%c0_161, %c0_162] : memref<1x128xf32, #tpu.memory_space<vmem>>, vector<1x128xf32>
    %429 = vector.extract_strided_slice %425 {offsets = [0, 0], sizes = [8, 128], strides = [1, 1]} : vector<8x384xf32> to vector<8x128xf32>
    %430 = vector.extract_strided_slice %427 {offsets = [0, 0], sizes = [8, 128], strides = [1, 1]} : vector<8x384xf32> to vector<8x128xf32>
    %431 = arith.addf %429, %430 : vector<8x128xf32>
    %432 = arith.negf %431 : vector<8x128xf32>
    %433 = math.exp %432 : vector<8x128xf32>
    %cst_163 = arith.constant 1.000000e+00 : f32
    %434 = vector.broadcast %cst_163 : f32 to vector<8x128xf32>
    %435 = arith.addf %434, %433 : vector<8x128xf32>
    %436 = arith.divf %434, %435 : vector<8x128xf32>
    %437 = vector.extract_strided_slice %425 {offsets = [0, 128], sizes = [8, 128], strides = [1, 1]} : vector<8x384xf32> to vector<8x128xf32>
    %438 = vector.extract_strided_slice %427 {offsets = [0, 128], sizes = [8, 128], strides = [1, 1]} : vector<8x384xf32> to vector<8x128xf32>
    %439 = arith.addf %437, %438 : vector<8x128xf32>
    %440 = arith.negf %439 : vector<8x128xf32>
    %441 = math.exp %440 : vector<8x128xf32>
    %cst_164 = arith.constant 1.000000e+00 : f32
    %442 = vector.broadcast %cst_164 : f32 to vector<8x128xf32>
    %443 = arith.addf %442, %441 : vector<8x128xf32>
    %444 = arith.divf %442, %443 : vector<8x128xf32>
    %445 = vector.extract_strided_slice %425 {offsets = [0, 256], sizes = [8, 128], strides = [1, 1]} : vector<8x384xf32> to vector<8x128xf32>
    %446 = vector.extract_strided_slice %427 {offsets = [0, 256], sizes = [8, 128], strides = [1, 1]} : vector<8x384xf32> to vector<8x128xf32>
    %447 = vector.broadcast %428 : vector<1x128xf32> to vector<8x128xf32>
    %448 = arith.addf %446, %447 : vector<8x128xf32>
    %449 = arith.mulf %436, %448 : vector<8x128xf32>
    %450 = arith.addf %445, %449 : vector<8x128xf32>
    %451 = math.tanh %450 : vector<8x128xf32>
    %cst_165 = arith.constant 1.000000e+00 : f32
    %452 = vector.broadcast %cst_165 : f32 to vector<8x128xf32>
    %453 = arith.subf %452, %444 : vector<8x128xf32>
    %454 = arith.mulf %453, %451 : vector<8x128xf32>
    %455 = arith.mulf %444, %387 : vector<8x128xf32>
    %456 = arith.addf %454, %455 : vector<8x128xf32>
    %c0_166 = arith.constant 0 : index
    %c0_167 = arith.constant 0 : index
    %457 = vector.load %arg6[%c0_166, %c0_167] : memref<128x384xf32, #tpu.memory_space<vmem>>, vector<128x384xf32>
    %cst_168 = arith.constant dense<0.000000e+00> : vector<8x384xf32>
    %458 = tpu.matmul %456, %457, %cst_168 {dimension_numbers = #tpu.dot_dimension_numbers<[1], [0], [0], [1], [0, 0, 1, 1], [], []>} : vector<8x128xf32>, vector<128x384xf32>, vector<8x384xf32> -> vector<8x384xf32>
    %c0_169 = arith.constant 0 : index
    %c0_170 = arith.constant 0 : index
    %459 = vector.load %arg7[%c0_169, %c0_170] : memref<1x384xf32, #tpu.memory_space<vmem>>, vector<1x384xf32>
    %460 = vector.broadcast %459 : vector<1x384xf32> to vector<8x384xf32>
    %461 = arith.addf %458, %460 : vector<8x384xf32>
    %c0_171 = arith.constant 0 : index
    %c0_172 = arith.constant 0 : index
    %462 = vector.load %arg8[%c0_171, %c0_172] : memref<128x384xf32, #tpu.memory_space<vmem>>, vector<128x384xf32>
    %cst_173 = arith.constant dense<0.000000e+00> : vector<8x384xf32>
    %463 = tpu.matmul %423, %462, %cst_173 {dimension_numbers = #tpu.dot_dimension_numbers<[1], [0], [0], [1], [0, 0, 1, 1], [], []>} : vector<8x128xf32>, vector<128x384xf32>, vector<8x384xf32> -> vector<8x384xf32>
    %c0_174 = arith.constant 0 : index
    %c0_175 = arith.constant 0 : index
    %464 = vector.load %arg9[%c0_174, %c0_175] : memref<1x128xf32, #tpu.memory_space<vmem>>, vector<1x128xf32>
    %465 = vector.extract_strided_slice %461 {offsets = [0, 0], sizes = [8, 128], strides = [1, 1]} : vector<8x384xf32> to vector<8x128xf32>
    %466 = vector.extract_strided_slice %463 {offsets = [0, 0], sizes = [8, 128], strides = [1, 1]} : vector<8x384xf32> to vector<8x128xf32>
    %467 = arith.addf %465, %466 : vector<8x128xf32>
    %468 = arith.negf %467 : vector<8x128xf32>
    %469 = math.exp %468 : vector<8x128xf32>
    %cst_176 = arith.constant 1.000000e+00 : f32
    %470 = vector.broadcast %cst_176 : f32 to vector<8x128xf32>
    %471 = arith.addf %470, %469 : vector<8x128xf32>
    %472 = arith.divf %470, %471 : vector<8x128xf32>
    %473 = vector.extract_strided_slice %461 {offsets = [0, 128], sizes = [8, 128], strides = [1, 1]} : vector<8x384xf32> to vector<8x128xf32>
    %474 = vector.extract_strided_slice %463 {offsets = [0, 128], sizes = [8, 128], strides = [1, 1]} : vector<8x384xf32> to vector<8x128xf32>
    %475 = arith.addf %473, %474 : vector<8x128xf32>
    %476 = arith.negf %475 : vector<8x128xf32>
    %477 = math.exp %476 : vector<8x128xf32>
    %cst_177 = arith.constant 1.000000e+00 : f32
    %478 = vector.broadcast %cst_177 : f32 to vector<8x128xf32>
    %479 = arith.addf %478, %477 : vector<8x128xf32>
    %480 = arith.divf %478, %479 : vector<8x128xf32>
    %481 = vector.extract_strided_slice %461 {offsets = [0, 256], sizes = [8, 128], strides = [1, 1]} : vector<8x384xf32> to vector<8x128xf32>
    %482 = vector.extract_strided_slice %463 {offsets = [0, 256], sizes = [8, 128], strides = [1, 1]} : vector<8x384xf32> to vector<8x128xf32>
    %483 = vector.broadcast %464 : vector<1x128xf32> to vector<8x128xf32>
    %484 = arith.addf %482, %483 : vector<8x128xf32>
    %485 = arith.mulf %472, %484 : vector<8x128xf32>
    %486 = arith.addf %481, %485 : vector<8x128xf32>
    %487 = math.tanh %486 : vector<8x128xf32>
    %cst_178 = arith.constant 1.000000e+00 : f32
    %488 = vector.broadcast %cst_178 : f32 to vector<8x128xf32>
    %489 = arith.subf %488, %480 : vector<8x128xf32>
    %490 = arith.mulf %489, %487 : vector<8x128xf32>
    %491 = arith.mulf %480, %423 : vector<8x128xf32>
    %492 = arith.addf %490, %491 : vector<8x128xf32>
    %c48_179 = arith.constant 48 : index
    %c0_180 = arith.constant 0 : index
    %493 = vector.load %arg16[%c48_179, %c0_180] : memref<64x128xf32, #tpu.memory_space<vmem>>, vector<8x128xf32>
    tpu.vector_store %arg16[%c48_179, %c0_180], %492 {strides = array<i32>} : memref<64x128xf32, #tpu.memory_space<vmem>>, vector<8x128xf32>,
    %c56 = arith.constant 56 : index
    %c0_181 = arith.constant 0 : index
    %494 = vector.load %arg15[%c56, %c0_181] : memref<64x384xf32, #tpu.memory_space<vmem>>, vector<8x384xf32>
    %c0_182 = arith.constant 0 : index
    %c0_183 = arith.constant 0 : index
    %495 = vector.load %arg4[%c0_182, %c0_183] : memref<128x384xf32, #tpu.memory_space<vmem>>, vector<128x384xf32>
    %cst_184 = arith.constant dense<0.000000e+00> : vector<8x384xf32>
    %496 = tpu.matmul %456, %495, %cst_184 {dimension_numbers = #tpu.dot_dimension_numbers<[1], [0], [0], [1], [0, 0, 1, 1], [], []>} : vector<8x128xf32>, vector<128x384xf32>, vector<8x384xf32> -> vector<8x384xf32>
    %c0_185 = arith.constant 0 : index
    %c0_186 = arith.constant 0 : index
    %497 = vector.load %arg5[%c0_185, %c0_186] : memref<1x128xf32, #tpu.memory_space<vmem>>, vector<1x128xf32>
    %498 = vector.extract_strided_slice %494 {offsets = [0, 0], sizes = [8, 128], strides = [1, 1]} : vector<8x384xf32> to vector<8x128xf32>
    %499 = vector.extract_strided_slice %496 {offsets = [0, 0], sizes = [8, 128], strides = [1, 1]} : vector<8x384xf32> to vector<8x128xf32>
    %500 = arith.addf %498, %499 : vector<8x128xf32>
    %501 = arith.negf %500 : vector<8x128xf32>
    %502 = math.exp %501 : vector<8x128xf32>
    %cst_187 = arith.constant 1.000000e+00 : f32
    %503 = vector.broadcast %cst_187 : f32 to vector<8x128xf32>
    %504 = arith.addf %503, %502 : vector<8x128xf32>
    %505 = arith.divf %503, %504 : vector<8x128xf32>
    %506 = vector.extract_strided_slice %494 {offsets = [0, 128], sizes = [8, 128], strides = [1, 1]} : vector<8x384xf32> to vector<8x128xf32>
    %507 = vector.extract_strided_slice %496 {offsets = [0, 128], sizes = [8, 128], strides = [1, 1]} : vector<8x384xf32> to vector<8x128xf32>
    %508 = arith.addf %506, %507 : vector<8x128xf32>
    %509 = arith.negf %508 : vector<8x128xf32>
    %510 = math.exp %509 : vector<8x128xf32>
    %cst_188 = arith.constant 1.000000e+00 : f32
    %511 = vector.broadcast %cst_188 : f32 to vector<8x128xf32>
    %512 = arith.addf %511, %510 : vector<8x128xf32>
    %513 = arith.divf %511, %512 : vector<8x128xf32>
    %514 = vector.extract_strided_slice %494 {offsets = [0, 256], sizes = [8, 128], strides = [1, 1]} : vector<8x384xf32> to vector<8x128xf32>
    %515 = vector.extract_strided_slice %496 {offsets = [0, 256], sizes = [8, 128], strides = [1, 1]} : vector<8x384xf32> to vector<8x128xf32>
    %516 = vector.broadcast %497 : vector<1x128xf32> to vector<8x128xf32>
    %517 = arith.addf %515, %516 : vector<8x128xf32>
    %518 = arith.mulf %505, %517 : vector<8x128xf32>
    %519 = arith.addf %514, %518 : vector<8x128xf32>
    %520 = math.tanh %519 : vector<8x128xf32>
    %cst_189 = arith.constant 1.000000e+00 : f32
    %521 = vector.broadcast %cst_189 : f32 to vector<8x128xf32>
    %522 = arith.subf %521, %513 : vector<8x128xf32>
    %523 = arith.mulf %522, %520 : vector<8x128xf32>
    %524 = arith.mulf %513, %456 : vector<8x128xf32>
    %525 = arith.addf %523, %524 : vector<8x128xf32>
    %c0_190 = arith.constant 0 : index
    %c0_191 = arith.constant 0 : index
    %526 = vector.load %arg6[%c0_190, %c0_191] : memref<128x384xf32, #tpu.memory_space<vmem>>, vector<128x384xf32>
    %cst_192 = arith.constant dense<0.000000e+00> : vector<8x384xf32>
    %527 = tpu.matmul %525, %526, %cst_192 {dimension_numbers = #tpu.dot_dimension_numbers<[1], [0], [0], [1], [0, 0, 1, 1], [], []>} : vector<8x128xf32>, vector<128x384xf32>, vector<8x384xf32> -> vector<8x384xf32>
    %c0_193 = arith.constant 0 : index
    %c0_194 = arith.constant 0 : index
    %528 = vector.load %arg7[%c0_193, %c0_194] : memref<1x384xf32, #tpu.memory_space<vmem>>, vector<1x384xf32>
    %529 = vector.broadcast %528 : vector<1x384xf32> to vector<8x384xf32>
    %530 = arith.addf %527, %529 : vector<8x384xf32>
    %c0_195 = arith.constant 0 : index
    %c0_196 = arith.constant 0 : index
    %531 = vector.load %arg8[%c0_195, %c0_196] : memref<128x384xf32, #tpu.memory_space<vmem>>, vector<128x384xf32>
    %cst_197 = arith.constant dense<0.000000e+00> : vector<8x384xf32>
    %532 = tpu.matmul %492, %531, %cst_197 {dimension_numbers = #tpu.dot_dimension_numbers<[1], [0], [0], [1], [0, 0, 1, 1], [], []>} : vector<8x128xf32>, vector<128x384xf32>, vector<8x384xf32> -> vector<8x384xf32>
    %c0_198 = arith.constant 0 : index
    %c0_199 = arith.constant 0 : index
    %533 = vector.load %arg9[%c0_198, %c0_199] : memref<1x128xf32, #tpu.memory_space<vmem>>, vector<1x128xf32>
    %534 = vector.extract_strided_slice %530 {offsets = [0, 0], sizes = [8, 128], strides = [1, 1]} : vector<8x384xf32> to vector<8x128xf32>
    %535 = vector.extract_strided_slice %532 {offsets = [0, 0], sizes = [8, 128], strides = [1, 1]} : vector<8x384xf32> to vector<8x128xf32>
    %536 = arith.addf %534, %535 : vector<8x128xf32>
    %537 = arith.negf %536 : vector<8x128xf32>
    %538 = math.exp %537 : vector<8x128xf32>
    %cst_200 = arith.constant 1.000000e+00 : f32
    %539 = vector.broadcast %cst_200 : f32 to vector<8x128xf32>
    %540 = arith.addf %539, %538 : vector<8x128xf32>
    %541 = arith.divf %539, %540 : vector<8x128xf32>
    %542 = vector.extract_strided_slice %530 {offsets = [0, 128], sizes = [8, 128], strides = [1, 1]} : vector<8x384xf32> to vector<8x128xf32>
    %543 = vector.extract_strided_slice %532 {offsets = [0, 128], sizes = [8, 128], strides = [1, 1]} : vector<8x384xf32> to vector<8x128xf32>
    %544 = arith.addf %542, %543 : vector<8x128xf32>
    %545 = arith.negf %544 : vector<8x128xf32>
    %546 = math.exp %545 : vector<8x128xf32>
    %cst_201 = arith.constant 1.000000e+00 : f32
    %547 = vector.broadcast %cst_201 : f32 to vector<8x128xf32>
    %548 = arith.addf %547, %546 : vector<8x128xf32>
    %549 = arith.divf %547, %548 : vector<8x128xf32>
    %550 = vector.extract_strided_slice %530 {offsets = [0, 256], sizes = [8, 128], strides = [1, 1]} : vector<8x384xf32> to vector<8x128xf32>
    %551 = vector.extract_strided_slice %532 {offsets = [0, 256], sizes = [8, 128], strides = [1, 1]} : vector<8x384xf32> to vector<8x128xf32>
    %552 = vector.broadcast %533 : vector<1x128xf32> to vector<8x128xf32>
    %553 = arith.addf %551, %552 : vector<8x128xf32>
    %554 = arith.mulf %541, %553 : vector<8x128xf32>
    %555 = arith.addf %550, %554 : vector<8x128xf32>
    %556 = math.tanh %555 : vector<8x128xf32>
    %cst_202 = arith.constant 1.000000e+00 : f32
    %557 = vector.broadcast %cst_202 : f32 to vector<8x128xf32>
    %558 = arith.subf %557, %549 : vector<8x128xf32>
    %559 = arith.mulf %558, %556 : vector<8x128xf32>
    %560 = arith.mulf %549, %492 : vector<8x128xf32>
    %561 = arith.addf %559, %560 : vector<8x128xf32>
    %c56_203 = arith.constant 56 : index
    %c0_204 = arith.constant 0 : index
    %562 = vector.load %arg16[%c56_203, %c0_204] : memref<64x128xf32, #tpu.memory_space<vmem>>, vector<8x128xf32>
    tpu.vector_store %arg16[%c56_203, %c0_204], %561 {strides = array<i32>} : memref<64x128xf32, #tpu.memory_space<vmem>>, vector<8x128xf32>,
    %c0_205 = arith.constant 0 : index
    %c0_206 = arith.constant 0 : index
    %c0_207 = arith.constant 0 : index
    %563 = vector.load %arg14[%c0_205, %c0_206, %c0_207] : memref<2x8x128xf32, #tpu.memory_space<vmem>>, vector<1x8x128xf32>
    %564 = vector.shape_cast %563 : vector<1x8x128xf32> to vector<8x128xf32>
    %565 = vector.shape_cast %525 : vector<8x128xf32> to vector<1x8x128xf32>
    tpu.vector_store %arg14[%c0_205, %c0_206, %c0_207], %565 {strides = array<i32>} : memref<2x8x128xf32, #tpu.memory_space<vmem>>, vector<1x8x128xf32>,
    %c1_208 = arith.constant 1 : index
    %c0_209 = arith.constant 0 : index
    %c0_210 = arith.constant 0 : index
    %566 = vector.load %arg14[%c1_208, %c0_209, %c0_210] : memref<2x8x128xf32, #tpu.memory_space<vmem>>, vector<1x8x128xf32>
    %567 = vector.shape_cast %566 : vector<1x8x128xf32> to vector<8x128xf32>
    %568 = vector.shape_cast %561 : vector<8x128xf32> to vector<1x8x128xf32>
    tpu.vector_store %arg14[%c1_208, %c0_209, %c0_210], %568 {strides = array<i32>} : memref<2x8x128xf32, #tpu.memory_space<vmem>>, vector<1x8x128xf32>,
    %c0_211 = arith.constant 0 : index
    %c0_212 = arith.constant 0 : index
    %569 = vector.load %arg16[%c0_211, %c0_212] : memref<64x128xf32, #tpu.memory_space<vmem>>, vector<64x128xf32>
    %c0_213 = arith.constant 0 : index
    %c0_214 = arith.constant 0 : index
    %570 = vector.load %arg11[%c0_213, %c0_214] : memref<128x128xf32, #tpu.memory_space<vmem>>, vector<128x128xf32>
    %cst_215 = arith.constant dense<0.000000e+00> : vector<64x128xf32>
    %571 = tpu.matmul %569, %570, %cst_215 {dimension_numbers = #tpu.dot_dimension_numbers<[1], [0], [0], [1], [0, 0, 1, 1], [], []>} : vector<64x128xf32>, vector<128x128xf32>, vector<64x128xf32> -> vector<64x128xf32>
    %c0_216 = arith.constant 0 : index
    %c0_217 = arith.constant 0 : index
    %572 = vector.load %arg12[%c0_216, %c0_217] : memref<1x128xf32, #tpu.memory_space<vmem>>, vector<1x128xf32>
    %573 = vector.broadcast %572 : vector<1x128xf32> to vector<64x128xf32>
    %574 = arith.addf %571, %573 : vector<64x128xf32>
    %c0_218 = arith.constant 0 : index
    %c0_219 = arith.constant 0 : index
    %575 = vector.load %arg13[%c0_218, %c0_219] : memref<64x128xf32, #tpu.memory_space<vmem>>, vector<64x128xf32>
    tpu.vector_store %arg13[%c0_218, %c0_219], %574 {strides = array<i32>} : memref<64x128xf32, #tpu.memory_space<vmem>>, vector<64x128xf32>,
    return
  }
  func.func @transform_0(%arg0: i32) -> (i32, i32) {
    %c0_i32 = arith.constant 0 : i32
    %c0_i32_0 = arith.constant 0 : i32
    %c0_i32_1 = arith.constant 0 : i32
    return %c0_i32, %c0_i32_0 : i32, i32
  }
  func.func @transform_1(%arg0: i32) -> (i32, i32) {
    %c0_i32 = arith.constant 0 : i32
    %c0_i32_0 = arith.constant 0 : i32
    %c0_i32_1 = arith.constant 0 : i32
    return %c0_i32, %c0_i32_0 : i32, i32
  }
  func.func @transform_2(%arg0: i32) -> (i32, i32) {
    %c0_i32 = arith.constant 0 : i32
    %c0_i32_0 = arith.constant 0 : i32
    %c0_i32_1 = arith.constant 0 : i32
    return %c0_i32, %c0_i32_0 : i32, i32
  }
  func.func @transform_3(%arg0: i32) -> (i32, i32) {
    %c0_i32 = arith.constant 0 : i32
    %c0_i32_0 = arith.constant 0 : i32
    %c0_i32_1 = arith.constant 0 : i32
    return %c0_i32, %c0_i32_0 : i32, i32
  }
  func.func @transform_4(%arg0: i32) -> (i32, i32) {
    %c0_i32 = arith.constant 0 : i32
    %c0_i32_0 = arith.constant 0 : i32
    %c0_i32_1 = arith.constant 0 : i32
    return %c0_i32, %c0_i32_0 : i32, i32
  }
  func.func @transform_5(%arg0: i32) -> (i32, i32) {
    %c0_i32 = arith.constant 0 : i32
    %c0_i32_0 = arith.constant 0 : i32
    %c0_i32_1 = arith.constant 0 : i32
    return %c0_i32, %c0_i32_0 : i32, i32
  }
  func.func @transform_6(%arg0: i32) -> (i32, i32) {
    %c0_i32 = arith.constant 0 : i32
    %c0_i32_0 = arith.constant 0 : i32
    %c0_i32_1 = arith.constant 0 : i32
    return %c0_i32, %c0_i32_0 : i32, i32
  }
  func.func @transform_7(%arg0: i32) -> (i32, i32) {
    %c0_i32 = arith.constant 0 : i32
    %c0_i32_0 = arith.constant 0 : i32
    %c0_i32_1 = arith.constant 0 : i32
    return %c0_i32, %c0_i32_0 : i32, i32
  }
  func.func @transform_8(%arg0: i32) -> (i32, i32) {
    %c0_i32 = arith.constant 0 : i32
    %c0_i32_0 = arith.constant 0 : i32
    %c0_i32_1 = arith.constant 0 : i32
    return %c0_i32, %c0_i32_0 : i32, i32
  }
  func.func @transform_9(%arg0: i32) -> (i32, i32, i32) {
    %c0_i32 = arith.constant 0 : i32
    %c0_i32_0 = arith.constant 0 : i32
    %c0_i32_1 = arith.constant 0 : i32
    %c0_i32_2 = arith.constant 0 : i32
    return %c0_i32, %c0_i32_0, %c0_i32_1 : i32, i32, i32
  }
  func.func @transform_10(%arg0: i32) -> (i32, i32) {
    %c0_i32 = arith.constant 0 : i32
    %c0_i32_0 = arith.constant 0 : i32
    %c0_i32_1 = arith.constant 0 : i32
    return %c0_i32, %c0_i32_0 : i32, i32
  }
  func.func @transform_11(%arg0: i32) -> (i32, i32) {
    %c0_i32 = arith.constant 0 : i32
    %c0_i32_0 = arith.constant 0 : i32
    %c0_i32_1 = arith.constant 0 : i32
    return %c0_i32, %c0_i32_0 : i32, i32
  }
  func.func @transform_12(%arg0: i32) -> (i32, i32) {
    %c0_i32 = arith.constant 0 : i32
    %c0_i32_0 = arith.constant 0 : i32
    %c0_i32_1 = arith.constant 0 : i32
    return %c0_i32, %c0_i32_0 : i32, i32
  }
  func.func @transform_13(%arg0: i32) -> (i32, i32, i32) {
    %c0_i32 = arith.constant 0 : i32
    %c0_i32_0 = arith.constant 0 : i32
    %c0_i32_1 = arith.constant 0 : i32
    %c0_i32_2 = arith.constant 0 : i32
    return %c0_i32, %c0_i32_0, %c0_i32_1 : i32, i32, i32
  }
}

</mosaic_0001>

<bundles_post_ra>
// kernel: forward.1
= control target key start
LH: loop header
LB: loop body
LE: loop exit
PB: predicated region body
PF: predicated region fallthrough
CT: control target
= control target key end

     0   :  { %19 = vsyncpa [#allocation5], 0  ;;  %s7499_s0 = inlined_call_operand.vmem [shape: f32[64,128], index: 0, kind: input, shape index: {}]   ;;  %s7500_s1 = inlined_call_operand.hbm [shape: f32[128,384], index: 1, kind: input, shape index: {}]   ;;  %s7501_s2 = inlined_call_operand.hbm [shape: f32[1,384], index: 2, kind: input, shape index: {}]   ;;  %s7502_s3 = inlined_call_operand.hbm [shape: f32[128,384], index: 3, kind: input, shape index: {}]   ;;  %s7503_s4 = inlined_call_operand.vmem [shape: f32[1,128], index: 4, kind: input, shape index: {}]   ;;  %s7504_s5 = inlined_call_operand.hbm [shape: f32[128,384], index: 5, kind: input, shape index: {}]   ;;  %s7505_s6 = inlined_call_operand.vmem [shape: f32[1,384], index: 6, kind: input, shape index: {}]   ;;  %s7506_s7 = inlined_call_operand.hbm [shape: f32[128,384], index: 7, kind: input, shape index: {}]   ;;  %s7507_s8 = inlined_call_operand.vmem [shape: f32[1,128], index: 8, kind: input, shape index: {}]   ;;  %s7508_s9 = inlined_call_operand.vmem [shape: f32[2,8,128], index: 9, kind: input, shape index: {}]   ;;  %s7509_s10 = inlined_call_operand.vmem [shape: f32[128,128], index: 10, kind: input, shape index: {}]   ;;  %s7510_s11 = inlined_call_operand.vmem [shape: f32[1,128], index: 11, kind: input, shape index: {}]   ;;  %s7511_s12 = inlined_call_operand.vmem [shape: f32[64,128], index: 12, kind: output, shape index: {0}]   ;;  %s7512_s13 = inlined_call_operand.vmem [shape: f32[2,8,128], index: 13, kind: output, shape index: {1}]  }
   0x1   :  { %20 = vsyncpa [#allocation7], 0  ;;  %s42_s27 = sshll.u32 %s7501_s2, 4  ;;  %s43_s27 = int_to_ptr.hbm [resolvable:$true] %s42_s27 }
   0x2   :  { %21 = vsyncpa [#allocation10], 0  ;;  %s4304_s28 = smov [#allocation6]   ;;  %s67_s15 = sshll.u32 %s7504_s5, 4  ;;  %s68_s15 = int_to_ptr.hbm [resolvable:$true] %s67_s15 }
   0x3   :  { %s44_s29 = sshll.u32 %s4304_s28, 4  ;;  %s4305_s16 = smov [#allocation9]   ;;  %s45_s29 = int_to_ptr.vmem [resolvable:$true] %s44_s29 }
   0x4   :  { %47 = dma.hbm_to_vmem [thread:$0]  %s43_s27, 48, %s45_s29, [#allocation7]  }
   0x5   :  { %s69_s17 = sshll.u32 %s4305_s16, 4  ;;  %s28_s20 = sshll.u32 %s7500_s1, 4  ;;  %s70_s17 = int_to_ptr.vmem [resolvable:$true] %s69_s17  ;;  %s29_s20 = int_to_ptr.hbm [resolvable:$true] %s28_s20 }
   0x6   :  { %s4306_s2 = smov 384   ;;  %s4307_s21 = smov 24  }
   0x7   :  { %75 = dma.hbm_to_vmem [thread:$0]  %s68_s15, 6144, %s70_s17, [#allocation10], %s4306_s2, %s4306_s2, %s4307_s21  }
   0x8   :  { %s52_s24 = sshll.u32 %s7502_s3, 4  ;;  %s4308_s25 = smov [#allocation4]   ;;  %s53_s24 = int_to_ptr.hbm [resolvable:$true] %s52_s24 }
   0x9   :  { %s30_s26 = sshll.u32 %s4308_s25, 4  ;;  %s4309_s5 = smov [#allocation8]   ;;  %s31_s26 = int_to_ptr.vmem [resolvable:$true] %s30_s26 }
   0xa   :  { %36 = dma.hbm_to_vmem [thread:$0]  %s29_s20, 6144, %s31_s26, [#allocation5], %s4306_s2, %s4306_s2, %s4307_s21  }
   0xb   :  { %s54_s27 = sshll.u32 %s4309_s5, 4  ;;  %s82_s1 = sshll.u32 %s7506_s7, 4  ;;  %s55_s27 = int_to_ptr.vmem [resolvable:$true] %s54_s27  ;;  %s83_s1 = int_to_ptr.hbm [resolvable:$true] %s82_s1 }
   0xc   :  { %60 = dma.hbm_to_vmem [thread:$0]  %s53_s24, 6144, %s55_s27, [#allocation7], %s4306_s2, %s4306_s2, %s4307_s21  }
   0xd   :  { %s4310_s30 = smov [#allocation11]  }
   0xe   :  { %s84_s14 = sshll.u32 %s4310_s30, 4  ;;  %s85_s14 = int_to_ptr.vmem [resolvable:$true] %s84_s14 }
   0xf   :  { %90 = dma.hbm_to_vmem [thread:$0]  %s83_s1, 6144, %s85_s14, [#allocation10], %s4306_s2, %s4306_s2, %s4307_s21  }
  0x10   :  { %4298 = dma.done.wait [#allocation5], 6144  }
  0x11   :  { %4299 = vsyncadd [#allocation5], 4294961152 }
  0x12   :  { %4300 = dma.done.wait [#allocation7], 6192  }
  0x13   :  { %4301 = vsyncadd [#allocation7], 4294961104 }
  0x14   :  { %4302 = dma.done.wait [#allocation10], 12288  }
  0x15   :  { %4303 = vsyncadd [#allocation10], 4294955008  ;;  %v174_v0 = vld [vmem:[#allocation4 + $0x178] sm:$0xff]  ;;  %v172_v1 = vld [vmem:[#allocation4 + $0x168] sm:$0xff] }
  0x16   :  { %v171_v2 = vld [vmem:[#allocation4 + $0x160] sm:$0xff]  ;;  %3978 = vmatpush.msra.mxu3 %v174_v0  ;;  %183 = vmatpush.msra.mxu0 %v172_v1  ;;  %v169_v3 = vld [vmem:[#allocation4 + $0x150] sm:$0xff]  ;;  %v168_v4 = vld [vmem:[#allocation4 + $0x148] sm:$0xff] }
  0x17   :  { %v166_v5 = vld [vmem:[#allocation4 + $0x138] sm:$0xff]  ;;  %265 = vmatpush.msra.mxu2 %v174_v0  ;;  %v165_v6 = vld [vmem:[#allocation4 + $0x130] sm:$0xff]  ;;  %v163_v7 = vld [vmem:[#allocation4 + $0x120] sm:$0xff] }
  0x18   :  { %3979 = vmatpush.msra.mxu3 %v171_v2  ;;  %184 = vmatpush.msra.mxu0 %v169_v3  ;;  %v162_v8 = vld [vmem:[#allocation4 + $0x118] sm:$0xff]  ;;  %v160_v9 = vld [vmem:[#allocation4 + $0x108] sm:$0xff]  ;;  %v159_v10 = vld [vmem:[#allocation4 + $0x100] sm:$0xff] }
  0x19   :  { %266 = vmatpush.msra.mxu2 %v171_v2  ;;  %v157_v11 = vld [vmem:[#allocation4 + $0xf0] sm:$0xff]  ;;  %v156_v12 = vld [vmem:[#allocation4 + $0xe8] sm:$0xff]  ;;  %v154_v13 = vld [vmem:[#allocation4 + $0xd8] sm:$0xff] }
  0x1a   :  { %3980 = vmatpush.msra.mxu3 %v168_v4  ;;  %185 = vmatpush.msra.mxu0 %v166_v5  ;;  %v153_v14 = vld [vmem:[#allocation4 + $0xd0] sm:$0xff]  ;;  %v151_v15 = vld [vmem:[#allocation4 + $0xc0] sm:$0xff]  ;;  %v150_v16 = vld [vmem:[#allocation4 + $0xb8] sm:$0xff] }
  0x1b   :  { %267 = vmatpush.msra.mxu2 %v168_v4  ;;  %v148_v17 = vld [vmem:[#allocation4 + $0xa8] sm:$0xff]  ;;  %v147_v18 = vld [vmem:[#allocation4 + $0xa0] sm:$0xff]  ;;  %v145_v19 = vld [vmem:[#allocation4 + $0x90] sm:$0xff] }
  0x1c   :  { %3981 = vmatpush.msra.mxu3 %v165_v6  ;;  %186 = vmatpush.msra.mxu0 %v163_v7  ;;  %v144_v20 = vld [vmem:[#allocation4 + $0x88] sm:$0xff]  ;;  %v142_v21 = vld [vmem:[#allocation4 + $0x78] sm:$0xff]  ;;  %v141_v22 = vld [vmem:[#allocation4 + $0x70] sm:$0xff] }
  0x1d   :  { %268 = vmatpush.msra.mxu2 %v165_v6  ;;  %v139_v23 = vld [vmem:[#allocation4 + $0x60] sm:$0xff]  ;;  %v138_v24 = vld [vmem:[#allocation4 + $0x58] sm:$0xff]  ;;  %v136_v25 = vld [vmem:[#allocation4 + $0x48] sm:$0xff] }
  0x1e   :  { %3982 = vmatpush.msra.mxu3 %v162_v8  ;;  %187 = vmatpush.msra.mxu0 %v160_v9  ;;  %v135_v26 = vld [vmem:[#allocation4 + $0x40] sm:$0xff]  ;;  %v133_v27 = vld [vmem:[#allocation4 + $0x30] sm:$0xff]  ;;  %v132_v28 = vld [vmem:[#allocation4 + $0x28] sm:$0xff] }
  0x1f   :  { %269 = vmatpush.msra.mxu2 %v162_v8  ;;  %v130_v29 = vld [vmem:[#allocation4 + $0x18] sm:$0xff]  ;;  %v129_v30 = vld [vmem:[#allocation4 + $0x10] sm:$0xff]  ;;  %v127_v31 = vld [vmem:[#allocation4] sm:$0xff] }
  0x20   :  { %3983 = vmatpush.msra.mxu3 %v159_v10  ;;  %188 = vmatpush.msra.mxu0 %v157_v11  ;;  %v4399_v32 = vld [vmem:[%s7499_s0 + $0x20] sm:$0xff]  ;;  %v4406_v34 = vld [vmem:[#allocation8 + $0x168] sm:$0xff]  ;;  %v4412_v36 = vld [vmem:[#allocation8 + $0x150] sm:$0xff] }
  0x21   :  { %270 = vmatpush.msra.mxu2 %v159_v10  ;;  %v4404_v33 = vld [vmem:[%s7499_s0] sm:$0xff]  ;;  %v4420_v39 = vld [vmem:[#allocation8 + $0x148] sm:$0xff]  ;;  %v4426_v42 = vld [vmem:[#allocation8 + $0x130] sm:$0xff] }
  0x22   :  { %3984 = vmatpush.msra.mxu3 %v156_v12  ;;  %189 = vmatpush.msra.mxu0 %v154_v13  ;;  %v4408_v35 = vld [vmem:[#allocation8 + $0x178] sm:$0xff]  ;;  %v4414_v37 = vld [vmem:[#allocation8 + $0x160] sm:$0xff]  ;;  %v173_v40 = vld [vmem:[#allocation4 + $0x170] sm:$0xff]  ;;  %7820 = vst [vmem:[#allocation15_spill] sm:$0xff] %v4426_v42 }
  0x23   :  { %271 = vmatpush.msra.mxu2 %v156_v12  ;;  %v4418_v38 = vld [vmem:[#allocation8 + $0x138] sm:$0xff]  ;;  %v4424_v41 = vld [vmem:[#allocation8 + $0x120] sm:$0xff]  ;;  %224 = vmatpush.msra.mxu1 %v173_v40  ;;  %v4441_v46 = vld [vmem:[#allocation8 + $0x108] sm:$0xff] }
  0x24   :  { %3985 = vmatpush.msra.mxu3 %v153_v14  ;;  %190 = vmatpush.msra.mxu0 %v151_v15  ;;  %v170_v43 = vld [vmem:[#allocation4 + $0x158] sm:$0xff]  ;;  %v4433_v44 = vld [vmem:[%s7499_s0 + $0x28] sm:$0xff]  ;;  %v167_v47 = vld [vmem:[#allocation4 + $0x140] sm:$0xff] }
  0x25   :  { %272 = vmatpush.msra.mxu2 %v153_v14  ;;  %v4438_v45 = vld [vmem:[%s7499_s0 + $0x8] sm:$0xff]  ;;  %225 = vmatpush.msra.mxu1 %v170_v43  ;;  %v4447_v48 = vld [vmem:[#allocation8 + $0xf0] sm:$0xff]  ;;  %v4449_v49 = vld [vmem:[#allocation8 + $0x118] sm:$0xff] }
  0x26   :  { %3986 = vmatpush.msra.mxu3 %v150_v16  ;;  %191 = vmatpush.msra.mxu0 %v148_v17  ;;  %7821 = vst [vmem:[#allocation16_spill] sm:$0xff] %v4449_v49  ;;  %v164_v50 = vld [vmem:[#allocation4 + $0x128] sm:$0xff]  ;;  %v4452_v51 = vld [vmem:[#allocation8 + $0xd8] sm:$0xff]  ;;  %v161_v52 = vld [vmem:[#allocation4 + $0x110] sm:$0xff] }
  0x27   :  { %273 = vmatpush.msra.mxu2 %v150_v16  ;;  %226 = vmatpush.msra.mxu1 %v167_v47  ;;  %v4456_v53 = vld [vmem:[#allocation8 + $0xc0] sm:$0xff]  ;;  %v158_v55 = vld [vmem:[#allocation4 + $0xf8] sm:$0xff]  ;;  %v4465_v56 = vld [vmem:[%s7499_s0 + $0x30] sm:$0xff] }
  0x28   :  { %3987 = vmatpush.msra.mxu3 %v147_v18  ;;  %192 = vmatpush.msra.mxu0 %v145_v19  ;;  %v4458_v54 = vld [vmem:[#allocation8 + $0x100] sm:$0xff]  ;;  %v4470_v57 = vld [vmem:[%s7499_s0 + $0x10] sm:$0xff]  ;;  %v4485_v0 = vld [vmem:[#allocation8 + $0x78] sm:$0xff] }
  0x29   :  { %274 = vmatpush.msra.mxu2 %v147_v18  ;;  %227 = vmatpush.msra.mxu1 %v164_v50  ;;  %7822 = vst [vmem:[#allocation17_spill] sm:$0xff] %v4458_v54  ;;  %v4472_v58 = vld [vmem:[#allocation8 + $0xa8] sm:$0xff]  ;;  %v155_v59 = vld [vmem:[#allocation4 + $0xe0] sm:$0xff]  ;;  %v4480_v61 = vld [vmem:[#allocation8 + $0x90] sm:$0xff] }
  0x2a   :  { %3988 = vmatpush.msra.mxu3 %v144_v20  ;;  %193 = vmatpush.msra.mxu0 %v142_v21  ;;  %v4476_v60 = vld [vmem:[#allocation8 + $0xe8] sm:$0xff]  ;;  %v4483_v63 = vld [vmem:[#allocation8 + $0xd0] sm:$0xff]  ;;  %v4489_v2 = vld [vmem:[#allocation8 + $0xb8] sm:$0xff] }
  0x2b   :  { %275 = vmatpush.msra.mxu2 %v144_v20  ;;  %228 = vmatpush.msra.mxu1 %v161_v52  ;;  %7823 = vst [vmem:[#allocation18_spill] sm:$0xff] %v4476_v60  ;;  %v152_v62 = vld [vmem:[#allocation4 + $0xc8] sm:$0xff]  ;;  %v149_v1 = vld [vmem:[#allocation4 + $0xb0] sm:$0xff]  ;;  %v146_v4 = vld [vmem:[#allocation4 + $0x98] sm:$0xff] }
  0x2c   :  { %3989 = vmatpush.msra.mxu3 %v141_v22  ;;  %194 = vmatpush.msra.mxu0 %v139_v23  ;;  %7824 = vst [vmem:[#allocation19_spill] sm:$0xff] %v4483_v63  ;;  %v4491_v3 = vld [vmem:[#allocation8 + $0x60] sm:$0xff]  ;;  %v4499_v5 = vld [vmem:[%s7499_s0 + $0x38] sm:$0xff]  ;;  %v4506_v7 = vld [vmem:[#allocation8 + $0x48] sm:$0xff] }
  0x2d   :  { %276 = vmatpush.msra.mxu2 %v141_v22  ;;  %229 = vmatpush.msra.mxu1 %v158_v55  ;;  %7825 = vst [vmem:[#allocation20_spill] sm:$0xff] %v4489_v2  ;;  %v4504_v6 = vld [vmem:[%s7499_s0 + $0x18] sm:$0xff]  ;;  %v4509_v8 = vld [vmem:[#allocation8 + $0xa0] sm:$0xff]  ;;  %v4516_v11 = vld [vmem:[#allocation8 + $0x88] sm:$0xff] }
  0x2e   :  { %3990 = vmatpush.msra.mxu3 %v138_v24  ;;  %195 = vmatpush.msra.mxu0 %v136_v25  ;;  %7826 = vst [vmem:[#allocation21_spill] sm:$0xff] %v4509_v8  ;;  %v143_v9 = vld [vmem:[#allocation4 + $0x80] sm:$0xff]  ;;  %v4514_v10 = vld [vmem:[#allocation8 + $0x30] sm:$0xff]  ;;  %v140_v12 = vld [vmem:[#allocation4 + $0x68] sm:$0xff] }
  0x2f   :  { %277 = vmatpush.msra.mxu2 %v138_v24  ;;  %230 = vmatpush.msra.mxu1 %v155_v59  ;;  %7827 = vst [vmem:[#allocation22_spill] sm:$0xff] %v4516_v11  ;;  %v4520_v13 = vld [vmem:[#allocation8 + $0x18] sm:$0xff]  ;;  %v4522_v14 = vld [vmem:[#allocation8 + $0x70] sm:$0xff]  ;;  %v4526_v16 = vld [vmem:[#allocation8] sm:$0xff] }
  0x30   :  { %3991 = vmatpush.msra.mxu3 %v135_v26  ;;  %196 = vmatpush.msra.mxu0 %v133_v27  ;;  %7828 = vst [vmem:[#allocation23_spill] sm:$0xff] %v4522_v14  ;;  %v137_v15 = vld [vmem:[#allocation4 + $0x50] sm:$0xff]  ;;  %v4528_v17 = vld [vmem:[#allocation8 + $0x58] sm:$0xff]  ;;  %v4544_v22 = vld [vmem:[#allocation8 + $0x40] sm:$0xff] }
  0x31   :  { %278 = vmatpush.msra.mxu2 %v135_v26  ;;  %231 = vmatpush.msra.mxu1 %v152_v62  ;;  %7829 = vst [vmem:[#allocation24_spill] sm:$0xff] %v4528_v17  ;;  %v4532_v18 = vld [vmem:[#allocation8 + $0x170] sm:$0xff]  ;;  %v4538_v19 = vld [vmem:[%s7508_s9] sm:$0xff]  ;;  %v4551_v25 = vld [vmem:[#allocation8 + $0x28] sm:$0xff] }
  0x32   :  { %3992 = vmatpush.msra.mxu3 %v132_v28  ;;  %197 = vmatpush.msra.mxu0 %v130_v29  ;;  %v134_v20 = vld [vmem:[#allocation4 + $0x38] sm:$0xff]  ;;  %7830 = vst [vmem:[#allocation25_spill] sm:$0xff] %v4544_v22  ;;  %v131_v23 = vld [vmem:[#allocation4 + $0x20] sm:$0xff]  ;;  %v128_v26 = vld [vmem:[#allocation4 + $0x8] sm:$0xff] }
  0x33   :  { %279 = vmatpush.msra.mxu2 %v132_v28  ;;  %232 = vmatpush.msra.mxu1 %v149_v1  ;;  %v4541_v21 = vld [vmem:[#allocation8 + $0x158] sm:$0xff]  ;;  %v4549_v24 = vld [vmem:[#allocation8 + $0x140] sm:$0xff]  ;;  %7831 = vst [vmem:[#allocation26_spill] sm:$0xff] %v4551_v25  ;;  %v4555_v27 = vld [vmem:[#allocation8 + $0x128] sm:$0xff] }
  0x34   :  { %3993 = vmatpush.msra.mxu3 %v129_v30  ;;  %198 = vmatpush.msra.mxu0 %v127_v31  ;;  %v4557_v28 = vld [vmem:[#allocation8 + $0x10] sm:$0xff]  ;;  %v4570_v31 = vld [vmem:[#allocation8 + $0xe0] sm:$0xff]  ;;  %v4573_v40 = vld [vmem:[#allocation8 + $0xc8] sm:$0xff] }
  0x35   :  { %293 = vmatmul.f32.vlgmr.msra.gmra.mxu3 %v4399_v32  ;;  %199 = vmatmul.f32.vlgmr.msra.gmra.mxu0 %v4404_v33  ;;  %7832 = vst [vmem:[#allocation27_spill] sm:$0xff] %v4557_v28  ;;  %v4561_v29 = vld [vmem:[#allocation8 + $0x110] sm:$0xff]  ;;  %v4579_v47 = vld [vmem:[#allocation8 + $0x98] sm:$0xff]  ;;  %v4587_v50 = vld [vmem:[#allocation8 + $0x68] sm:$0xff] }
  0x36   :  { %384 = vmatpush.msrb.mxu3 %v4406_v34  ;;  %424 = vmatpush.msrb.mxu0 %v4408_v35  ;;  %v4576_v43 = vld [vmem:[#allocation8 + $0xb0] sm:$0xff]  ;;  %v4593_v55 = vld [vmem:[#allocation8 + $0x38] sm:$0xff]  ;;  %v4601_v59 = vld [vmem:[#allocation8 + $0x8] sm:$0xff] }
  0x37   :  { %280 = vmatpush.msra.mxu2 %v129_v30  ;;  %233 = vmatpush.msra.mxu1 %v146_v4  ;;  %v4565_v30 = vld [vmem:[#allocation8 + $0xf8] sm:$0xff]  ;;  %v4590_v52 = vld [vmem:[#allocation8 + $0x50] sm:$0xff]  ;;  %v4618_v4 = vld [vmem:[#allocation9 + $0x168] sm:$0xff] }
  0x38   :  { %385 = vmatpush.msrb.mxu3 %v4412_v36  ;;  %425 = vmatpush.msrb.mxu0 %v4414_v37 }
  0x39   :  { %281 = vmatmul.f32.vlgmr.msra.gmra.mxu2 %v4404_v33  ;;  %234 = vmatpush.msra.mxu1 %v143_v9  ;;  %v4620_v9 = vld [vmem:[#allocation11 + $0x168] sm:$0xff] }
  0x3a   :  { %386 = vmatpush.msrb.mxu3 %v4418_v38  ;;  %426 = vmatpush.msrb.mxu0 %v4420_v39  ;;  %7835 = vst [vmem:[#allocation30_spill] sm:$0xff] %v4620_v9 }
  0x3b   :  { %235 = vmatpush.msra.mxu1 %v140_v12  ;;  %v4637_v12 = vld [vmem:[#allocation9 + $0x138] sm:$0xff] }
  0x3c   :  { %387 = vmatpush.msrb.mxu3 %v4424_v41  ;;  %427 = vmatpush.msrb.mxu0 %v4426_v42  ;;  %v4779_v42 = vld [vmem:[#allocation9 + $0x70] sm:$0xff] }
  0x3d   :  { %296 = vmatmul.f32.gmra.mxu3 %v4433_v44  ;;  %202 = vmatmul.f32.gmra.mxu0 %v4438_v45 }
  0x3e   :  { %388 = vmatpush.msrb.mxu3 %v4441_v46  ;;  %428 = vmatpush.msrb.mxu0 %v4449_v49 }
  0x3f   :  { %236 = vmatpush.msra.mxu1 %v137_v15  ;;  %v4639_v15 = vld [vmem:[#allocation11 + $0x138] sm:$0xff] }
  0x40   :  { %389 = vmatpush.msrb.mxu3 %v4447_v48  ;;  %429 = vmatpush.msrb.mxu0 %v4458_v54  ;;  %7839 = vst [vmem:[#allocation34_spill] sm:$0xff] %v4639_v15 }
  0x41   :  { %284 = vmatmul.f32.gmra.mxu2 %v4438_v45  ;;  %237 = vmatpush.msra.mxu1 %v134_v20 }
  0x42   :  { %390 = vmatpush.msrb.mxu3 %v4452_v51  ;;  %430 = vmatpush.msrb.mxu0 %v4476_v60 }
  0x43   :  { %238 = vmatpush.msra.mxu1 %v131_v23 }
  0x44   :  { %391 = vmatpush.msrb.mxu3 %v4456_v53  ;;  %431 = vmatpush.msrb.mxu0 %v4483_v63  ;;  %v4721_v63 = vld [vmem:[#allocation9 + $0xd0] sm:$0xff] }
  0x45   :  { %299 = vmatmul.f32.gmra.mxu3 %v4465_v56  ;;  %205 = vmatmul.f32.gmra.mxu0 %v4470_v57 }
  0x46   :  { %392 = vmatpush.msrb.mxu3 %v4472_v58  ;;  %432 = vmatpush.msrb.mxu0 %v4489_v2  ;;  %v4699_v2 = vld [vmem:[#allocation9 + $0x90] sm:$0xff] }
  0x47   :  { %239 = vmatpush.msra.mxu1 %v128_v26  ;;  %v4646_v26 = vld [vmem:[#allocation9 + $0x120] sm:$0xff]  ;;  %7855 = vst [vmem:[#allocation50_spill] sm:$0xff] %v4699_v2 }
  0x48   :  { %393 = vmatpush.msrb.mxu3 %v4480_v61  ;;  %433 = vmatpush.msrb.mxu0 %v4509_v8  ;;  %7841 = vst [vmem:[#allocation36_spill] sm:$0xff] %v4646_v26  ;;  %v4692_v8 = vld [vmem:[#allocation9 + $0x118] sm:$0xff] }
  0x49   :  { %287 = vmatmul.f32.gmra.mxu2 %v4470_v57  ;;  %240 = vmatmul.f32.vlgmr.msra.gmra.mxu1 %v4404_v33  ;;  %v4584_v33 = vld [vmem:[#allocation8 + $0x80] sm:$0xff] }
  0x4a   :  { %394 = vmatpush.msrb.mxu3 %v4485_v0  ;;  %434 = vmatpush.msrb.mxu0 %v4516_v11  ;;  %v4690_v11 = vld [vmem:[#allocation9 + $0xa8] sm:$0xff] }
  0x4b   :  { %552 = vmatpush.msrb.mxu1 %v4618_v4  ;;  %7853 = vst [vmem:[#allocation48_spill] sm:$0xff] %v4690_v11 }
  0x4c   :  { %395 = vmatpush.msrb.mxu3 %v4491_v3  ;;  %435 = vmatpush.msrb.mxu0 %v4522_v14 }
  0x4d   :  { %302 = vmatmul.f32.gmra.mxu3 %v4499_v5  ;;  %208 = vmatmul.f32.gmra.mxu0 %v4504_v6 }
  0x4e   :  { %396 = vmatpush.msrb.mxu3 %v4506_v7  ;;  %436 = vmatpush.msrb.mxu0 %v4528_v17 }
  0x50   :  { %397 = vmatpush.msrb.mxu3 %v4514_v10  ;;  %437 = vmatpush.msrb.mxu0 %v4544_v22  ;;  %v4680_v22 = vld [vmem:[#allocation9 + $0x130] sm:$0xff] }
  0x51   :  { %290 = vmatmul.f32.gmra.mxu2 %v4504_v6  ;;  %243 = vmatmul.f32.gmra.mxu1 %v4438_v45  ;;  %v4598_v45 = vld [vmem:[#allocation8 + $0x20] sm:$0xff] }
  0x52   :  { %398 = vmatpush.msrb.mxu3 %v4520_v13  ;;  %438 = vmatpush.msrb.mxu0 %v4551_v25  ;;  %v4675_v25 = vld [vmem:[#allocation11 + $0xd8] sm:$0xff] }
  0x53   :  { %7849 = vst [vmem:[#allocation44_spill] sm:$0xff] %v4675_v25 }
  0x54   :  { %399 = vmatpush.msrb.mxu3 %v4526_v16  ;;  %439 = vmatpush.msrb.mxu0 %v4557_v28  ;;  %v4673_v28 = vld [vmem:[#allocation9 + $0x148] sm:$0xff] }
  0x55   :  { %211 = vmatmul.f32.gmra.mxu0 %v4399_v32  ;;  %400 = vmatmul.f32.vlgmr.msrb.gmra.mxu3 %v4538_v19 }
  0x56   :  { %404 = vmatpush.msra.mxu3 %v4532_v18  ;;  %660 = vmatpush.msra.mxu0 %v4620_v9 }
  0x58   :  { %405 = vmatpush.msra.mxu3 %v4541_v21 }
  0x59   :  { %246 = vmatmul.f32.gmra.mxu1 %v4470_v57 }
  0x5a   :  { %406 = vmatpush.msra.mxu3 %v4549_v24 }
  0x5c   :  { %407 = vmatpush.msra.mxu3 %v4555_v27 }
  0x5d   :  { %214 = vmatmul.f32.gmra.mxu0 %v4433_v44 }
  0x5e   :  { %408 = vmatpush.msra.mxu3 %v4561_v29 }
  0x60   :  { %409 = vmatpush.msra.mxu3 %v4565_v30 }
  0x61   :  { %249 = vmatmul.f32.gmra.mxu1 %v4504_v6  ;;  %v4622_v6 = vld [vmem:[#allocation6] sm:$0x7] }
  0x62   :  { %410 = vmatpush.msra.mxu3 %v4570_v31 }
  0x64   :  { %411 = vmatpush.msra.mxu3 %v4573_v40 }
  0x65   :  { %217 = vmatmul.f32.gmra.mxu0 %v4465_v56 }
  0x66   :  { %412 = vmatpush.msra.mxu3 %v4576_v43 }
  0x68   :  { %413 = vmatpush.msra.mxu3 %v4579_v47 }
  0x69   :  { %252 = vmatmul.f32.gmra.mxu1 %v4399_v32  ;;  %v4626_v32 = vld [vmem:[#allocation9 + $0x150] sm:$0xff] }
  0x6a   :  { %414 = vmatpush.msra.mxu3 %v4584_v33  ;;  %553 = vmatpush.msrb.mxu1 %v4626_v32 }
  0x6c   :  { %415 = vmatpush.msra.mxu3 %v4587_v50  ;;  %554 = vmatpush.msrb.mxu1 %v4637_v12 }
  0x6d   :  { %220 = vmatmul.f32.gmra.mxu0 %v4499_v5 }
  0x6e   :  { %416 = vmatpush.msra.mxu3 %v4590_v52  ;;  %555 = vmatpush.msrb.mxu1 %v4646_v26  ;;  %v4764_v26 = vld [vmem:[#allocation9 + $0x88] sm:$0xff] }
  0x70   :  { %417 = vmatpush.msra.mxu3 %v4593_v55 }
  0x71   :  { %255 = vmatmul.f32.gmra.mxu1 %v4433_v44  ;;  %v4628_v44 = vld [vmem:[#allocation11 + $0x150] sm:$0xff] }
  0x72   :  { %418 = vmatpush.msra.mxu3 %v4598_v45  ;;  %7836 = vst [vmem:[#allocation31_spill] sm:$0xff] %v4628_v44  ;;  %661 = vmatpush.msra.mxu0 %v4628_v44  ;;  %v4656_v44 = vld [vmem:[#allocation11 + $0x108] sm:$0xff] }
  0x73   :  { %7844 = vst [vmem:[#allocation39_spill] sm:$0xff] %v4656_v44 }
  0x74   :  { %419 = vmatpush.msra.mxu3 %v4601_v59  ;;  %662 = vmatpush.msra.mxu0 %v4639_v15  ;;  %v4665_v15 = vld [vmem:[#allocation11 + $0xf0] sm:$0xff] }
  0x75   :  { %420 = vmatmul.f32.vlgmr.msra.gmra.mxu3 %v4538_v19  ;;  %440 = vmatmul.f32.vlgmr.msrb.gmra.mxu0 %v4538_v19  ;;  %7846 = vst [vmem:[#allocation41_spill] sm:$0xff] %v4665_v15 }
  0x79   :  { %258 = vmatmul.f32.gmra.mxu1 %v4465_v56 }
  0x81   :  { %261 = vmatmul.f32.gmra.mxu1 %v4499_v5  ;;  %v4635_v5 = vperm.slane %v4622_v6, 0 }
  0x83   :  { %7838 = vst [vmem:[#allocation33_spill] sm:$0xff] %v4635_v5 }
  0xb2   :  { %v4612_v57 = vpop.f32.mrf.mxu0 }
  0xb8   :  { %v4614_v62 = vpop.f32.mrf.mxu3 }
  0xb9   :  { %7833 = vst [vmem:[#allocation28_spill] sm:$0xff] %v4614_v62  ;;  %v4652_v62 = vld [vmem:[#allocation9 + $0x108] sm:$0xff] }
  0xba   :  { %v4616_v1 = vpop.f32.mrf.mxu0  ;;  %7843 = vst [vmem:[#allocation38_spill] sm:$0xff] %v4652_v62  ;;  %556 = vmatpush.msrb.mxu1 %v4652_v62 }
  0xbb   :  { %7834 = vst [vmem:[#allocation29_spill] sm:$0xff] %v4616_v1  ;;  %v4654_v1 = vld [vmem:[#allocation9 + $0x178] sm:$0xff] }
  0xbc   :  { %592 = vmatpush.msrb.mxu3 %v4654_v1 }
  0xc0   :  { %v4630_v56 = vpop.f32.mrf.mxu3 }
  0xc1   :  { %7837 = vst [vmem:[#allocation32_spill] sm:$0xff] %v4630_v56  ;;  %v4648_v56 = vld [vmem:[#allocation11 + $0x120] sm:$0xff] }
  0xc2   :  { %v206_v20 = vpop.f32.mrf.mxu0  ;;  %7842 = vst [vmem:[#allocation37_spill] sm:$0xff] %v4648_v56  ;;  %663 = vmatpush.msra.mxu0 %v4648_v56  ;;  %v4671_v56 = vld [vmem:[#allocation9 + $0xd8] sm:$0xff] }
  0xc3   :  { %v4644_v23 = vadd.f32 %v206_v20, %v4635_v5  ;;  %v4661_v20 = vld [vmem:[#allocation9 + $0xf0] sm:$0xff]  ;;  %7848 = vst [vmem:[#allocation43_spill] sm:$0xff] %v4671_v56 }
  0xc4   :  { %664 = vmatpush.msra.mxu0 %v4656_v44  ;;  %7845 = vst [vmem:[#allocation40_spill] sm:$0xff] %v4661_v20  ;;  %557 = vmatpush.msrb.mxu1 %v4661_v20  ;;  %v4678_v44 = vld [vmem:[#allocation9 + $0xc0] sm:$0xff] }
  0xc5   :  { %7840 = vst [vmem:[#allocation35_spill] sm:$0xff] %v4644_v23  ;;  %v4663_v23 = vld [vmem:[#allocation9 + $0x160] sm:$0xff] }
  0xc6   :  { %593 = vmatpush.msrb.mxu3 %v4663_v23  ;;  %665 = vmatpush.msra.mxu0 %v4665_v15  ;;  %7850 = vst [vmem:[#allocation45_spill] sm:$0xff] %v4678_v44  ;;  %v4696_v15 = vld [vmem:[#allocation11 + $0xa8] sm:$0xff] }
  0xc7   :  { %558 = vmatpush.msrb.mxu1 %v4671_v56  ;;  %7854 = vst [vmem:[#allocation49_spill] sm:$0xff] %v4696_v15  ;;  %v4701_v56 = vld [vmem:[#allocation9 + $0x100] sm:$0xff] }
  0xc8   :  { %v4667_v9 = vpop.f32.mrf.mxu3  ;;  %594 = vmatpush.msrb.mxu3 %v4673_v28  ;;  %666 = vmatpush.msra.mxu0 %v4675_v25  ;;  %v4710_v25 = vld [vmem:[#allocation9 + $0xe8] sm:$0xff] }
  0xc9   :  { %7847 = vst [vmem:[#allocation42_spill] sm:$0xff] %v4667_v9  ;;  %v4684_v9 = vld [vmem:[#allocation11 + $0xc0] sm:$0xff]  ;;  %559 = vmatpush.msrb.mxu1 %v4678_v44 }
  0xca   :  { %v209_v17 = vpop.f32.mrf.mxu0  ;;  %7851 = vst [vmem:[#allocation46_spill] sm:$0xff] %v4684_v9  ;;  %595 = vmatpush.msrb.mxu3 %v4680_v22  ;;  %667 = vmatpush.msra.mxu0 %v4684_v9  ;;  %v4716_v9 = vld [vmem:[#allocation11 + $0x78] sm:$0xff] }
  0xcb   :  { %v4687_v14 = vadd.f32 %v209_v17, %v4635_v5  ;;  %560 = vmatpush.msrb.mxu1 %v4690_v11  ;;  %v4705_v17 = vld [vmem:[#allocation11 + $0x90] sm:$0xff]  ;;  %7859 = vst [vmem:[#allocation54_spill] sm:$0xff] %v4716_v9  ;;  %v4719_v11 = vld [vmem:[#allocation9 + $0x60] sm:$0xff] }
  0xcc   :  { %596 = vmatpush.msrb.mxu3 %v4692_v8  ;;  %7856 = vst [vmem:[#allocation51_spill] sm:$0xff] %v4705_v17  ;;  %668 = vmatpush.msra.mxu0 %v4696_v15  ;;  %v4725_v15 = vld [vmem:[#allocation11 + $0x60] sm:$0xff] }
  0xcd   :  { %7852 = vst [vmem:[#allocation47_spill] sm:$0xff] %v4687_v14  ;;  %v4708_v14 = vld [vmem:[#allocation9 + $0x78] sm:$0xff]  ;;  %561 = vmatpush.msrb.mxu1 %v4699_v2  ;;  %v4736_v2 = vld [vmem:[#allocation9 + $0x170] sm:$0xff] }
  0xce   :  { %7857 = vst [vmem:[#allocation52_spill] sm:$0xff] %v4708_v14  ;;  %597 = vmatpush.msrb.mxu3 %v4701_v56  ;;  %669 = vmatpush.msra.mxu0 %v4705_v17  ;;  %v4734_v17 = vld [vmem:[#allocation9 + $0x48] sm:$0xff] }
  0xcf   :  { %7860 = vst [vmem:[#allocation55_spill] sm:$0xff] %v4719_v11  ;;  %562 = vmatpush.msrb.mxu1 %v4708_v14  ;;  %v4738_v14 = vld [vmem:[#allocation9 + $0xb8] sm:$0xff]  ;;  %572 = vmatpush.msrb.mxu2 %v4736_v2 }
  0xd0   :  { %v4712_v44 = vpop.f32.mrf.mxu3  ;;  %598 = vmatpush.msrb.mxu3 %v4710_v25  ;;  %7861 = vst [vmem:[#allocation56_spill] sm:$0xff] %v4725_v15  ;;  %670 = vmatpush.msra.mxu0 %v4716_v9  ;;  %v4750_v9 = vld [vmem:[#allocation9 + $0x158] sm:$0xff] }
  0xd1   :  { %7858 = vst [vmem:[#allocation53_spill] sm:$0xff] %v4712_v44  ;;  %563 = vmatpush.msrb.mxu1 %v4719_v11  ;;  %v4752_v11 = vld [vmem:[#allocation9 + $0xa0] sm:$0xff]  ;;  %573 = vmatpush.msrb.mxu2 %v4750_v9 }
  0xd2   :  { %v212_v20 = vpop.f32.mrf.mxu0  ;;  %599 = vmatpush.msrb.mxu3 %v4721_v63  ;;  %671 = vmatpush.msra.mxu0 %v4725_v15  ;;  %7863 = vst [vmem:[#allocation58_spill] sm:$0xff] %v4734_v17  ;;  %v4748_v15 = vld [vmem:[#allocation9 + $0x30] sm:$0xff] }
  0xd3   :  { %v4728_v44 = vadd.f32 %v212_v20, %v4635_v5  ;;  %564 = vmatpush.msrb.mxu1 %v4734_v17  ;;  %v4742_v20 = vld [vmem:[#allocation11 + $0x48] sm:$0xff]  ;;  %7865 = vst [vmem:[#allocation60_spill] sm:$0xff] %v4748_v15  ;;  %v4756_v17 = vld [vmem:[#allocation11 + $0x30] sm:$0xff] }
  0xd4   :  { %7864 = vst [vmem:[#allocation59_spill] sm:$0xff] %v4742_v20  ;;  %600 = vmatpush.msrb.mxu3 %v4738_v14  ;;  %672 = vmatpush.msra.mxu0 %v4742_v20  ;;  %v4762_v20 = vld [vmem:[#allocation9 + $0x140] sm:$0xff] }
  0xd5   :  { %7862 = vst [vmem:[#allocation57_spill] sm:$0xff] %v4728_v44  ;;  %v201_v44 = vadd.f32 %v4612_v57, %v4635_v5  ;;  %565 = vmatpush.msrb.mxu1 %v4748_v15  ;;  %v4760_v57 = vld [vmem:[#allocation9 + $0x18] sm:$0xff]  ;;  %574 = vmatpush.msrb.mxu2 %v4762_v20 }
  0xd6   :  { %7866 = vst [vmem:[#allocation61_spill] sm:$0xff] %v4756_v17  ;;  %601 = vmatpush.msrb.mxu3 %v4752_v11  ;;  %673 = vmatpush.msra.mxu0 %v4756_v17  ;;  %v4771_v15 = vld [vmem:[#allocation11 + $0x18] sm:$0xff]  ;;  %v4777_v17 = vld [vmem:[#allocation9 + $0x128] sm:$0xff] }
  0xd7   :  { %7867 = vst [vmem:[#allocation62_spill] sm:$0xff] %v4760_v57  ;;  %566 = vmatpush.msrb.mxu1 %v4760_v57  ;;  %575 = vmatpush.msrb.mxu2 %v4777_v17  ;;  %v4799_v57 = vld [vmem:[#allocation9 + $0xf8] sm:$0xff] }
  0xd8   :  { %v401_v60 = vpop.f32.mrf.mxu3  ;;  %7868 = vst [vmem:[#allocation63_spill] sm:$0xff] %v4762_v20  ;;  %602 = vmatpush.msrb.mxu3 %v4764_v26  ;;  %674 = vmatpush.msra.mxu0 %v4771_v15  ;;  %v4824_v20 = vld [vmem:[#allocation9 + $0x10] sm:$0xff] }
  0xd9   :  { %v445_v62 = vadd.f32 %v401_v60, %v201_v44  ;;  %7870 = vst [vmem:[#allocation65_spill] sm:$0xff] %v4771_v15  ;;  %v4775_v44 = vld [vmem:[#allocation9] sm:$0xff]  ;;  %v4791_v15 = vld [vmem:[#allocation9 + $0x58] sm:$0xff] }
  0xda   :  { %v215_v54 = vpop.f32.mrf.mxu0  ;;  %7871 = vst [vmem:[#allocation66_spill] sm:$0xff] %v4775_v44  ;;  %567 = vmatpush.msrb.mxu1 %v4775_v44  ;;  %603 = vmatpush.msrb.mxu3 %v4779_v42  ;;  %v4795_v44 = vld [vmem:[#allocation11 + $0x158] sm:$0xff] }
  0xdb   :  { %v4767_v49 = vadd.f32 %v215_v54, %v4635_v5  ;;  %v3945_v60 = vmul.f32 -1.442695, %v445_v62  ;;  %7872 = vst [vmem:[#allocation67_spill] sm:$0xff] %v4777_v17  ;;  %v4783_v54 = vld [vmem:[#allocation11] sm:$0xff]  ;;  %v4789_v62 = vld [vmem:[#allocation9 + $0x110] sm:$0xff] }
  0xdc   :  { %7873 = vst [vmem:[#allocation68_spill] sm:$0xff] %v4783_v54  ;;  %675 = vmatpush.msra.mxu0 %v4783_v54  ;;  %576 = vmatpush.msrb.mxu2 %v4789_v62  ;;  %v4805_v54 = vld [vmem:[#allocation11 + $0x140] sm:$0xff] }
  0xdd   :  { %7869 = vst [vmem:[#allocation64_spill] sm:$0xff] %v4767_v49  ;;  %v4785_v49 = vld [vmem:[#allocation11 + $0x170] sm:$0xff]  ;;  %4018 = vpow2.f32 %v3945_v60  ;;  %604 = vmatpush.msrb.mxu3 %v4791_v15  ;;  %v4801_v60 = vld [vmem:[#allocation9 + $0x40] sm:$0xff] }
  0xde   :  { %7874 = vst [vmem:[#allocation69_spill] sm:$0xff] %v4785_v49  ;;  %680 = vmatpush.msra.mxu1 %v4785_v49  ;;  %844 = vmatpush.msrb.mxu0 %v4532_v18  ;;  %v4809_v18 = vld [vmem:[#allocation9 + $0xe0] sm:$0xff]  ;;  %v4811_v49 = vld [vmem:[#allocation9 + $0x28] sm:$0xff] }
  0xdf   :  { %7875 = vst [vmem:[#allocation70_spill] sm:$0xff] %v4789_v62  ;;  %577 = vmatpush.msrb.mxu2 %v4799_v57  ;;  %605 = vmatpush.msrb.mxu3 %v4801_v60 }
  0xe0   :  { %7876 = vst [vmem:[#allocation71_spill] sm:$0xff] %v4795_v44  ;;  %681 = vmatpush.msra.mxu1 %v4795_v44  ;;  %845 = vmatpush.msrb.mxu0 %v4541_v21  ;;  %v4818_v44 = vld [vmem:[#allocation11 + $0x128] sm:$0xff] }
  0xe1   :  { %7877 = vst [vmem:[#allocation72_spill] sm:$0xff] %v4799_v57  ;;  %578 = vmatpush.msrb.mxu2 %v4809_v18  ;;  %606 = vmatpush.msrb.mxu3 %v4811_v49  ;;  %v4822_v57 = vld [vmem:[#allocation9 + $0xc8] sm:$0xff] }
  0xe2   :  { %7878 = vst [vmem:[#allocation73_spill] sm:$0xff] %v4805_v54  ;;  %v218_v17 = vpop.f32.mrf.mxu0  ;;  %682 = vmatpush.msra.mxu1 %v4805_v54  ;;  %846 = vmatpush.msrb.mxu0 %v4549_v24  ;;  %v4832_v24 = vld [vmem:[#allocation9 + $0xb0] sm:$0xff]  ;;  %v4838_v54 = vld [vmem:[#allocation11 + $0xf8] sm:$0xff] }
  0xe3   :  { %v4814_v62 = vadd.f32 %v218_v17, %v4635_v5  ;;  %7880 = vst [vmem:[#allocation75_spill] sm:$0xff] %v4818_v44  ;;  %v4019_v21 = vpop.eup %4018  ;;  %v4828_v17 = vld [vmem:[#allocation11 + $0x110] sm:$0xff]  ;;  %579 = vmatpush.msrb.mxu2 %v4822_v57  ;;  %607 = vmatpush.msrb.mxu3 %v4824_v20 }
  0xe4   :  { %683 = vmatpush.msra.mxu1 %v4818_v44  ;;  %847 = vmatpush.msrb.mxu0 %v4555_v27  ;;  %7881 = vst [vmem:[#allocation76_spill] sm:$0xff] %v4838_v54  ;;  %v4842_v27 = vld [vmem:[#allocation9 + $0x98] sm:$0xff]  ;;  %v4846_v44 = vld [vmem:[#allocation11 + $0xe0] sm:$0xff] }
  0xe5   :  { %7879 = vst [vmem:[#allocation74_spill] sm:$0xff] %v4814_v62  ;;  %v4834_v62 = vadd.f32 1.0, %v4019_v21  ;;  %824 = vmatpush.msra.mxu3 %v4406_v34  ;;  %580 = vmatpush.msrb.mxu2 %v4832_v24  ;;  %v4850_v34 = vld [vmem:[#allocation9 + $0x80] sm:$0xff] }
  0xe6   :  { %684 = vmatpush.msra.mxu1 %v4828_v17  ;;  %848 = vmatpush.msrb.mxu0 %v4561_v29  ;;  %7882 = vst [vmem:[#allocation77_spill] sm:$0xff] %v4846_v44 }
  0xe7   :  { %825 = vmatpush.msra.mxu3 %v4412_v36  ;;  %581 = vmatpush.msrb.mxu2 %v4842_v27  ;;  %4020 = vrcp.f32 %v4834_v62  ;;  %v4862_v36 = vld [vmem:[#allocation9 + $0x68] sm:$0xff]  ;;  %vm455_vm1 = vweird.f32 %v4834_v62 }
  0xe8   :  { %685 = vmatpush.msra.mxu1 %v4838_v54  ;;  %849 = vmatpush.msrb.mxu0 %v4565_v30  ;;  %v4858_v54 = vld [vmem:[#allocation11 + $0xc8] sm:$0xff]  ;;  %v4866_v30 = vld [vmem:[#allocation11 + $0xb0] sm:$0xff] }
  0xe9   :  { %826 = vmatpush.msra.mxu3 %v4418_v38  ;;  %7884 = vst [vmem:[#allocation79_spill] sm:$0xff] %v4858_v54  ;;  %582 = vmatpush.msrb.mxu2 %v4850_v34  ;;  %v4874_v38 = vld [vmem:[#allocation11 + $0x98] sm:$0xff] }
  0xea   :  { %v221_v21 = vpop.f32.mrf.mxu0  ;;  %686 = vmatpush.msra.mxu1 %v4846_v44  ;;  %850 = vmatpush.msrb.mxu0 %v4570_v31  ;;  %7885 = vst [vmem:[#allocation80_spill] sm:$0xff] %v4866_v30  ;;  %v4877_v31 = vperm.slane %v4622_v6, 1 }
  0xeb   :  { %v4854_v29 = vadd.f32 %v221_v21, %v4635_v5  ;;  %827 = vmatpush.msra.mxu3 %v4424_v41  ;;  %583 = vmatpush.msrb.mxu2 %v4862_v36  ;;  %v4870_v21 = vld [vmem:[#allocation9 + $0x50] sm:$0xff]  ;;  %7886 = vst [vmem:[#allocation81_spill] sm:$0xff] %v4874_v38  ;;  %v4881_v41 = vld [vmem:[#allocation9 + $0x38] sm:$0xff]  ;;  %v4887_v5 = vld [vmem:[#allocation11 + $0x80] sm:$0xff] }
  0xec   :  { %687 = vmatpush.msra.mxu1 %v4858_v54  ;;  %851 = vmatpush.msrb.mxu0 %v4573_v40  ;;  %7887 = vst [vmem:[#allocation82_spill] sm:$0xff] %v4877_v31 }
  0xed   :  { %7883 = vst [vmem:[#allocation78_spill] sm:$0xff] %v4854_v29  ;;  %828 = vmatpush.msra.mxu3 %v4441_v46  ;;  %584 = vmatpush.msrb.mxu2 %v4870_v21  ;;  %v4883_v40 = vpop.eup %4020  ;;  %v241_v29 = vpop.f32.mrf.mxu1  ;;  %v4891_v46 = vld [vmem:[#allocation9 + $0x20] sm:$0xff] }
  0xee   :  { %688 = vmatpush.msra.mxu1 %v4866_v30  ;;  %852 = vmatpush.msrb.mxu0 %v4576_v43  ;;  %7888 = vst [vmem:[#allocation83_spill] sm:$0xff] %v4887_v5  ;;  %v4895_v43 = vld [vmem:[#allocation11 + $0x68] sm:$0xff]  ;;  %v242_v30 = vadd.f32 %v241_v29, %v4877_v31  ;;  %v4913_v29 = vld [vmem:[#allocation11 + $0x178] sm:$0xff]  ;;  %vm456_vm0 = vweird.f32 %v4883_v40 }
  0xef   :  { %829 = vmatpush.msra.mxu3 %v4447_v48  ;;  %585 = vmatpush.msrb.mxu2 %v4881_v41  ;;  %7889 = vst [vmem:[#allocation84_spill] sm:$0xff] %v4895_v43  ;;  %v4902_v48 = vld [vmem:[#allocation9 + $0x8] sm:$0xff]  ;;  %v4919_v31 = vld [vmem:[#allocation11 + $0x38] sm:$0xff]  ;;  %vm4964_vm2 = vmor %vm455_vm1, %vm456_vm0 }
  0xf0   :  { %689 = vmatpush.msra.mxu1 %v4874_v38  ;;  %853 = vmatpush.msrb.mxu0 %v4579_v47  ;;  %v451_v38 = vmul.f32 %v4883_v40, %v4834_v62  ;;  %v4907_v47 = vld [vmem:[%s7508_s9 + $0x8] sm:$0xff] }
  0xf1   :  { %830 = vmatpush.msra.mxu3 %v4452_v51  ;;  %586 = vmatpush.msrb.mxu2 %v4891_v46  ;;  %v4911_v51 = vld [vmem:[#allocation11 + $0x50] sm:$0xff] }
  0xf2   :  { %690 = vmatpush.msra.mxu1 %v4887_v5  ;;  %854 = vmatpush.msrb.mxu0 %v4584_v33  ;;  %v4921_v5 = vld [vmem:[#allocation11 + $0x160] sm:$0xff] }
  0xf3   :  { %831 = vmatpush.msra.mxu3 %v4456_v53  ;;  %587 = vmatpush.msrb.mxu2 %v4902_v48  ;;  %v4927_v53 = vld [vmem:[#allocation11 + $0x20] sm:$0xff] }
  0xf4   :  { %691 = vmatpush.msra.mxu1 %v4895_v43  ;;  %855 = vmatpush.msrb.mxu0 %v4587_v50  ;;  %v452_v43 = vsub.f32 1.0, %v451_v38  ;;  %v4929_v50 = vld [vmem:[#allocation11 + $0x148] sm:$0xff] }
  0xf5   :  { %676 = vmatmul.f32.vlgmr.msra.gmra.mxu0 %v4907_v47  ;;  %700 = vmatpush.msra.mxu2 %v4913_v29  ;;  %v4968_v38 = vld [vmem:[#allocation11 + $0xe8] sm:$0xff] }
  0xf6   :  { %692 = vmatpush.msra.mxu1 %v4911_v51  ;;  %832 = vmatpush.msra.mxu3 %v4472_v58  ;;  %v4937_v58 = vld [vmem:[#allocation11 + $0x130] sm:$0xff] }
  0xf7   :  { %856 = vmatpush.msrb.mxu0 %v4590_v52  ;;  %701 = vmatpush.msra.mxu2 %v4921_v5  ;;  %v453_v52 = vmul.f32 %v4883_v40, %v452_v43  ;;  %v4976_v43 = vld [vmem:[#allocation11 + $0xd0] sm:$0xff] }
  0xf8   :  { %v421_v33 = vpop.f32.mrf.mxu3  ;;  %693 = vmatpush.msra.mxu1 %v4919_v31  ;;  %833 = vmatpush.msra.mxu3 %v4480_v61  ;;  %v4947_v61 = vld [vmem:[#allocation11 + $0x118] sm:$0xff] }
  0xf9   :  { %v465_v54 = vadd.f32 %v421_v33, %v242_v30  ;;  %857 = vmatpush.msrb.mxu0 %v4593_v55  ;;  %v4935_v30 = vld [vmem:[#allocation11 + $0x8] sm:$0xff]  ;;  %702 = vmatpush.msra.mxu2 %v4929_v50  ;;  %v454_v55 = vadd.f32 %v4883_v40, %v453_v52  ;;  %v282_v52 = vpop.f32.mrf.mxu2 }
  0xfa   :  { %694 = vmatpush.msra.mxu1 %v4927_v53  ;;  %834 = vmatpush.msra.mxu3 %v4485_v0  ;;  %v461_v0 = vand.u32 2147483648, %v4834_v62 }
  0xfb   :  { %v3946_v44 = vmul.f32 -1.442695, %v465_v54  ;;  %858 = vmatpush.msrb.mxu0 %v4598_v45  ;;  %703 = vmatpush.msra.mxu2 %v4937_v58  ;;  %v4954_v45 = vld [vmem:[#allocation11 + $0x100] sm:$0xff] }
  0xfc   :  { %695 = vmatpush.msra.mxu1 %v4935_v30  ;;  %835 = vmatpush.msra.mxu3 %v4491_v3  ;;  %v459_v3 = vand.u32 2147483647, %v4834_v62 }
  0xfd   :  { %4022 = vpow2.f32 %v3946_v44  ;;  %859 = vmatpush.msrb.mxu0 %v4601_v59  ;;  %704 = vmatpush.msra.mxu2 %v4947_v61  ;;  %v4001_v59 = vld [vmem:[%s7503_s4] ss:$0 sm:$0xff] }
  0xfe   :  { %836 = vmatpush.msra.mxu3 %v4506_v7  ;;  %v441_v7 = vpop.f32.mrf.mxu0  ;;  %vm460_vm3 = vcmp.eq.f32.partialorder %v459_v3, 8.507059e+37 }
  0xff   :  { %1032 = vmatpush.msra.mxu0 %v4654_v1  ;;  %705 = vmatpush.msra.mxu2 %v4954_v45  ;;  %v458_v1 = vsel %vm4964_vm2, %v4883_v40, %v454_v55  ;;  %v488_v33 = vadd.f32 %v4001_v59, %v441_v7  ;;  %v4981_v40 = vld [vmem:[#allocation11 + $0xb8] sm:$0xff]  ;;  %v4988_v55 = vld [vmem:[#allocation11 + $0xa0] sm:$0xff] }
 0x100   :  { %837 = vmatpush.msra.mxu3 %v4514_v10  ;;  %v462_v10 = vor.u32 1.1754944e-38, %v461_v0 }
 0x101   :  { %1033 = vmatpush.msra.mxu0 %v4663_v23  ;;  %706 = vmatpush.msra.mxu2 %v4968_v38 }
 0x102   :  { %838 = vmatpush.msra.mxu3 %v4520_v13  ;;  %v463_v23 = vsel %vm460_vm3, %v462_v10, %v458_v1  ;;  %v4985_v13 = vperm.slane %v4622_v6, 2  ;;  %v4997_v6 = vld [vmem:[#allocation11 + $0x70] sm:$0xff]  ;;  %v5005_v1 = vld [vmem:[#allocation11 + $0x40] sm:$0xff]  ;;  %v5009_v10 = vld [vmem:[#allocation11 + $0x28] sm:$0xff] }
 0x103   :  { %v4023_v44 = vpop.eup %4022  ;;  %1034 = vmatpush.msra.mxu0 %v4673_v28  ;;  %707 = vmatpush.msra.mxu2 %v4976_v43  ;;  %v489_v28 = vmul.f32 %v488_v33, %v463_v23  ;;  %v5013_v23 = vld [vmem:[#allocation11 + $0x10] sm:$0xff] }
 0x104   :  { %v469_v62 = vadd.f32 1.0, %v4023_v44  ;;  %839 = vmatpush.msra.mxu3 %v4526_v16  ;;  %7892 = vst [vmem:[#allocation85_spill] sm:$0xff] %v4985_v13  ;;  %v283_v0 = vadd.f32 %v282_v52, %v4985_v13  ;;  %v4993_v16 = vld [vmem:[#allocation11 + $0x88] sm:$0xff]  ;;  %v5001_v44 = vld [vmem:[#allocation11 + $0x58] sm:$0xff] }
 0x105   :  { %1035 = vmatpush.msra.mxu0 %v4680_v22  ;;  %708 = vmatpush.msra.mxu2 %v4981_v40 }
 0x106   :  { %4024 = vrcp.f32 %v469_v62  ;;  %v490_v59 = vadd.f32 %v489_v28, %v283_v0  ;;  %v481_v7 = vand.u32 2147483648, %v469_v62  ;;  %v479_v54 = vand.u32 2147483647, %v469_v62 }
 0x107   :  { %1036 = vmatpush.msra.mxu0 %v4692_v8  ;;  %709 = vmatpush.msra.mxu2 %v4988_v55  ;;  %vm475_vm5 = vweird.f32 %v469_v62 }
 0x108   :  { %4026 = vtanh.f32 %v490_v59  ;;  %vm480_vm7 = vcmp.eq.f32.partialorder %v479_v54, 8.507059e+37  ;;  %v7910_v59 = vld [vmem:[#allocation22_spill] sm:$0xff]  ;;  %v7916_v54 = vld [vmem:[#allocation25_spill] sm:$0xff] }
 0x109   :  { %1037 = vmatpush.msra.mxu0 %v4701_v56  ;;  %710 = vmatpush.msra.mxu2 %v4993_v16 }
 0x10b   :  { %1038 = vmatpush.msra.mxu0 %v4710_v25  ;;  %711 = vmatpush.msra.mxu2 %v4997_v6 }
 0x10c   :  { %v4025_v3 = vpop.eup %4024 }
 0x10d   :  { %v471_v22 = vmul.f32 %v4025_v3, %v469_v62  ;;  %1039 = vmatpush.msra.mxu0 %v4721_v63  ;;  %712 = vmatpush.msra.mxu2 %v5001_v44  ;;  %vm476_vm4 = vweird.f32 %v4025_v3  ;;  %v482_v63 = vor.u32 1.1754944e-38, %v481_v7  ;;  %v7912_v7 = vld [vmem:[#allocation23_spill] sm:$0xff] }
 0x10e   :  { %vm477_vm6 = vmor %vm475_vm5, %vm476_vm4  ;;  %v4027_v62 = vpop.eup %4026 }
 0x10f   :  { %v472_v8 = vsub.f32 1.0, %v471_v22  ;;  %1040 = vmatpush.msra.mxu0 %v4738_v14  ;;  %713 = vmatpush.msra.mxu2 %v5005_v1  ;;  %v7909_v22 = vld [vmem:[#allocation48_spill] sm:$0xff] }
 0x111   :  { %v473_v56 = vmul.f32 %v4025_v3, %v472_v8  ;;  %1041 = vmatpush.msra.mxu0 %v4752_v11  ;;  %714 = vmatpush.msra.mxu2 %v5009_v10  ;;  %v7911_v8 = vld [vmem:[#allocation50_spill] sm:$0xff] }
 0x113   :  { %v474_v25 = vadd.f32 %v4025_v3, %v473_v56  ;;  %1042 = vmatpush.msra.mxu0 %v4764_v26  ;;  %715 = vmatpush.msra.mxu2 %v5013_v23  ;;  %v7905_v26 = vld [vmem:[#allocation43_spill] sm:$0xff]  ;;  %v7914_v56 = vld [vmem:[#allocation24_spill] sm:$0xff] }
 0x115   :  { %v478_v33 = vsel %vm477_vm6, %v4025_v3, %v474_v25  ;;  %1043 = vmatpush.msra.mxu0 %v4779_v42  ;;  %v7893_v42 = vld [vmem:[#allocation63_spill] sm:$0xff]  ;;  %v7908_v3 = vld [vmem:[#allocation21_spill] sm:$0xff]  ;;  %v7918_v25 = vld [vmem:[#allocation26_spill] sm:$0xff] }
 0x116   :  { %v483_v14 = vsel %vm480_vm7, %v482_v63, %v478_v33  ;;  %v7920_v63 = vld [vmem:[#allocation27_spill] sm:$0xff]  ;;  %v7923_v33 = vld [vmem:[#allocation66_spill] sm:$0xff] }
 0x117   :  { %v492_v52 = vsub.f32 1.0, %v483_v14  ;;  %v494_v11 = vmul.f32 %v483_v14, %v4538_v19  ;;  %1044 = vmatpush.msra.mxu0 %v4791_v15  ;;  %v7898_v19 = vld [vmem:[#allocation17_spill] sm:$0xff]  ;;  %v7904_v15 = vld [vmem:[#allocation19_spill] sm:$0xff] }
 0x118   :  { %v7924_v14 = vld [vmem:[#allocation69_spill] sm:$0xff] }
 0x119   :  { %v493_v28 = vmul.f32 %v4027_v62, %v492_v52  ;;  %1045 = vmatpush.msra.mxu0 %v4801_v60  ;;  %v7907_v60 = vld [vmem:[#allocation45_spill] sm:$0xff]  ;;  %v7927_v52 = vld [vmem:[#allocation34_spill] sm:$0xff] }
 0x11a   :  { %v7928_v62 = vld [vmem:[#allocation73_spill] sm:$0xff] }
 0x11b   :  { %v5020_v0 = vadd.f32 %v494_v11, %v493_v28  ;;  %1046 = vmatpush.msra.mxu0 %v4811_v49  ;;  %v7896_v49 = vld [vmem:[#allocation36_spill] sm:$0xff]  ;;  %v7930_v28 = vld [vmem:[#allocation75_spill] sm:$0xff] }
 0x11c   :  { %v7931_v11 = vld [vmem:[#allocation39_spill] sm:$0xff] }
 0x11d   :  { %568 = vmatmul.f32.vlgmr.msrb.gmra.mxu1 %v5020_v0  ;;  %588 = vmatmul.f32.vlgmr.msrb.gmra.mxu2 %v5020_v0 }
 0x11e   :  { %608 = vmatmul.f32.vlgmr.msrb.gmra.mxu3 %v5020_v0  ;;  %860 = vmatmul.f32.vlgmr.msrb.gmra.mxu0 %v5020_v0 }
 0x11f   :  { %864 = vmatpush.msrb.mxu1 %v4408_v35  ;;  %992 = vmatpush.msrb.mxu2 %v4618_v4  ;;  %v7894_v35 = vld [vmem:[#allocation15_spill] sm:$0xff]  ;;  %v7900_v4 = vld [vmem:[#allocation70_spill] sm:$0xff] }
 0x120   :  { %1012 = vmatpush.msrb.mxu3 %v4736_v2  ;;  %1047 = vmatpush.msra.mxu0 %v4824_v20  ;;  %v7897_v2 = vld [vmem:[#allocation67_spill] sm:$0xff]  ;;  %v7906_v20 = vld [vmem:[#allocation20_spill] sm:$0xff] }
 0x121   :  { %865 = vmatpush.msrb.mxu1 %v4414_v37  ;;  %993 = vmatpush.msrb.mxu2 %v4626_v32  ;;  %v7895_v37 = vld [vmem:[#allocation16_spill] sm:$0xff] }
 0x122   :  { %1013 = vmatpush.msrb.mxu3 %v4750_v9  ;;  %v7901_v9 = vld [vmem:[#allocation18_spill] sm:$0xff]  ;;  %v7902_v32 = vld [vmem:[#allocation40_spill] sm:$0xff] }
 0x123   :  { %866 = vmatpush.msrb.mxu1 %v4420_v39  ;;  %994 = vmatpush.msrb.mxu2 %v4637_v12  ;;  %v7899_v39 = vld [vmem:[#allocation38_spill] sm:$0xff]  ;;  %v7903_v12 = vld [vmem:[#allocation72_spill] sm:$0xff] }
 0x124   :  { %1014 = vmatpush.msrb.mxu3 %v7893_v42  ;;  %v7935_v42 = vld [vmem:[#allocation77_spill] sm:$0xff] }
 0x125   :  { %867 = vmatpush.msrb.mxu1 %v7894_v35  ;;  %716 = vmatmul.f32.vlgmr.msra.gmra.mxu2 %v4907_v47  ;;  %v7937_v35 = vld [vmem:[#allocation79_spill] sm:$0xff] }
 0x126   :  { %696 = vmatmul.f32.vlgmr.msra.gmra.mxu1 %v4907_v47  ;;  %840 = vmatmul.f32.vlgmr.msra.gmra.mxu3 %v5020_v0 }
 0x127   :  { %868 = vmatpush.msrb.mxu1 %v7895_v37  ;;  %995 = vmatpush.msrb.mxu2 %v7896_v49  ;;  %v7941_v37 = vld [vmem:[#allocation81_spill] sm:$0xff]  ;;  %v244_v49 = vpop.f32.mrf.mxu1 }
 0x128   :  { %1015 = vmatpush.msrb.mxu3 %v7897_v2  ;;  %v7944_v2 = vld [vmem:[#allocation56_spill] sm:$0xff] }
 0x129   :  { %869 = vmatpush.msrb.mxu1 %v7898_v19  ;;  %996 = vmatpush.msrb.mxu2 %v7899_v39  ;;  %v7946_v19 = vld [vmem:[#allocation59_spill] sm:$0xff] }
 0x12a   :  { %1016 = vmatpush.msrb.mxu3 %v7900_v4 }
 0x12b   :  { %870 = vmatpush.msrb.mxu1 %v7901_v9  ;;  %997 = vmatpush.msrb.mxu2 %v7902_v32  ;;  %v5153_v32 = vld [vmem:[#allocation8 + $0x170] sm:$0xff] }
 0x12c   :  { %1017 = vmatpush.msrb.mxu3 %v7903_v12 }
 0x12d   :  { %871 = vmatpush.msrb.mxu1 %v7904_v15  ;;  %998 = vmatpush.msrb.mxu2 %v7905_v26  ;;  %v5156_v15 = vld [vmem:[#allocation8 + $0x158] sm:$0xff] }
 0x12e   :  { %1018 = vmatpush.msrb.mxu3 %v4809_v18  ;;  %v7913_v18 = vld [vmem:[#allocation52_spill] sm:$0xff]  ;;  %v7956_v26 = vld [vmem:[#allocation82_spill] sm:$0xff] }
 0x12f   :  { %872 = vmatpush.msrb.mxu1 %v7906_v20  ;;  %999 = vmatpush.msrb.mxu2 %v7907_v60  ;;  %v5127_v39 = vpop.f32.mrf.mxu1  ;;  %v245_v20 = vadd.f32 %v244_v49, %v7956_v26  ;;  %v5210_v49 = vld [vmem:[#allocation8 + $0xd8] sm:$0xff] }
 0x130   :  { %1019 = vmatpush.msrb.mxu3 %v4822_v57  ;;  %v7915_v57 = vld [vmem:[#allocation55_spill] sm:$0xff] }
 0x131   :  { %873 = vmatpush.msrb.mxu1 %v7908_v3  ;;  %1000 = vmatpush.msrb.mxu2 %v7909_v22  ;;  %v5160_v22 = vld [vmem:[#allocation8 + $0x140] sm:$0xff] }
 0x132   :  { %1020 = vmatpush.msrb.mxu3 %v4832_v24  ;;  %v7917_v24 = vld [vmem:[#allocation58_spill] sm:$0xff] }
 0x133   :  { %874 = vmatpush.msrb.mxu1 %v7910_v59  ;;  %1001 = vmatpush.msrb.mxu2 %v7911_v8 }
 0x134   :  { %1021 = vmatpush.msrb.mxu3 %v4842_v27  ;;  %v7919_v27 = vld [vmem:[#allocation60_spill] sm:$0xff] }
 0x135   :  { %875 = vmatpush.msrb.mxu1 %v7912_v7  ;;  %1002 = vmatpush.msrb.mxu2 %v7913_v18  ;;  %v5164_v18 = vld [vmem:[#allocation8 + $0x128] sm:$0xff] }
 0x136   :  { %1022 = vmatpush.msrb.mxu3 %v4850_v34  ;;  %v7921_v34 = vld [vmem:[#allocation62_spill] sm:$0xff] }
 0x137   :  { %876 = vmatpush.msrb.mxu1 %v7914_v56  ;;  %1003 = vmatpush.msrb.mxu2 %v7915_v57 }
 0x138   :  { %1023 = vmatpush.msrb.mxu3 %v4862_v36  ;;  %v7922_v36 = vld [vmem:[#allocation30_spill] sm:$0xff] }
 0x139   :  { %877 = vmatpush.msrb.mxu1 %v7916_v54  ;;  %1004 = vmatpush.msrb.mxu2 %v7917_v24  ;;  %v5167_v54 = vld [vmem:[#allocation8 + $0x168] sm:$0xff]  ;;  %v5169_v24 = vld [vmem:[#allocation8 + $0x110] sm:$0xff] }
 0x13a   :  { %1024 = vmatpush.msrb.mxu3 %v4870_v21  ;;  %v7925_v21 = vld [vmem:[#allocation31_spill] sm:$0xff]  ;;  %1264 = vmatpush.msrb.mxu0 %v5167_v54 }
 0x13b   :  { %878 = vmatpush.msrb.mxu1 %v7918_v25  ;;  %1005 = vmatpush.msrb.mxu2 %v7919_v27 }
 0x13c   :  { %1025 = vmatpush.msrb.mxu3 %v4881_v41  ;;  %v7926_v41 = vld [vmem:[#allocation71_spill] sm:$0xff] }
 0x13d   :  { %879 = vmatpush.msrb.mxu1 %v7920_v63  ;;  %1006 = vmatpush.msrb.mxu2 %v7921_v34  ;;  %v5175_v34 = vld [vmem:[#allocation8 + $0x150] sm:$0xff] }
 0x13e   :  { %880 = vmatmul.f32.vlgmr.msrb.gmra.mxu1 %v5020_v0  ;;  %1026 = vmatpush.msrb.mxu3 %v4891_v46  ;;  %v7929_v46 = vld [vmem:[#allocation37_spill] sm:$0xff] }
 0x13f   :  { %1100 = vmatpush.msra.mxu1 %v7922_v36  ;;  %1007 = vmatpush.msrb.mxu2 %v7923_v33  ;;  %v5177_v36 = vld [vmem:[#allocation8 + $0xf8] sm:$0xff] }
 0x140   :  { %1027 = vmatpush.msrb.mxu3 %v4902_v48  ;;  %v7932_v48 = vld [vmem:[#allocation41_spill] sm:$0xff]  ;;  %1265 = vmatpush.msrb.mxu0 %v5175_v34 }
 0x141   :  { %1120 = vmatpush.msra.mxu2 %v7924_v14  ;;  %1101 = vmatpush.msra.mxu1 %v7925_v21  ;;  %v5181_v21 = vld [vmem:[#allocation8 + $0x138] sm:$0xff] }
 0x142   :  { %1140 = vmatpush.msra.mxu3 %v4913_v29  ;;  %v7933_v29 = vld [vmem:[#allocation76_spill] sm:$0xff]  ;;  %1266 = vmatpush.msrb.mxu0 %v5181_v21 }
 0x143   :  { %1121 = vmatpush.msra.mxu2 %v7926_v41  ;;  %1102 = vmatpush.msra.mxu1 %v7927_v52  ;;  %v5183_v41 = vld [vmem:[#allocation8 + $0xe0] sm:$0xff] }
 0x144   :  { %1141 = vmatpush.msra.mxu3 %v4921_v5  ;;  %v7934_v5 = vld [vmem:[#allocation44_spill] sm:$0xff] }
 0x145   :  { %1122 = vmatpush.msra.mxu2 %v7928_v62  ;;  %1103 = vmatpush.msra.mxu1 %v7929_v46  ;;  %v5187_v62 = vld [vmem:[#allocation8 + $0x120] sm:$0xff]  ;;  %v5189_v46 = vld [vmem:[#allocation8 + $0xc8] sm:$0xff] }
 0x146   :  { %1142 = vmatpush.msra.mxu3 %v4929_v50  ;;  %v7936_v50 = vld [vmem:[#allocation46_spill] sm:$0xff]  ;;  %1267 = vmatpush.msrb.mxu0 %v5187_v62 }
 0x147   :  { %1123 = vmatpush.msra.mxu2 %v7930_v28  ;;  %1104 = vmatpush.msra.mxu1 %v7931_v11  ;;  %v7957_v11 = vld [vmem:[#allocation33_spill] sm:$0xff] }
 0x148   :  { %1143 = vmatpush.msra.mxu3 %v4937_v58  ;;  %v7938_v58 = vld [vmem:[#allocation49_spill] sm:$0xff] }
 0x149   :  { %1124 = vmatpush.msra.mxu2 %v4828_v17  ;;  %1105 = vmatpush.msra.mxu1 %v7932_v48  ;;  %v7939_v17 = vld [vmem:[#allocation80_spill] sm:$0xff]  ;;  %v7958_v48 = vld [vmem:[#allocation29_spill] sm:$0xff] }
 0x14a   :  { %1144 = vmatpush.msra.mxu3 %v4947_v61  ;;  %v7940_v61 = vld [vmem:[#allocation51_spill] sm:$0xff] }
 0x14b   :  { %1125 = vmatpush.msra.mxu2 %v7933_v29  ;;  %1106 = vmatpush.msra.mxu1 %v7934_v5  ;;  %v204_v29 = vadd.f32 %v7958_v48, %v7957_v11 }
 0x14c   :  { %1145 = vmatpush.msra.mxu3 %v4954_v45  ;;  %v7942_v45 = vld [vmem:[#allocation54_spill] sm:$0xff] }
 0x14d   :  { %1126 = vmatpush.msra.mxu2 %v7935_v42  ;;  %1107 = vmatpush.msra.mxu1 %v7936_v50  ;;  %v5197_v42 = vld [vmem:[#allocation8 + $0x108] sm:$0xff]  ;;  %v5199_v50 = vld [vmem:[#allocation8 + $0xb0] sm:$0xff] }
 0x14e   :  { %1146 = vmatpush.msra.mxu3 %v4968_v38  ;;  %v7943_v38 = vld [vmem:[#allocation83_spill] sm:$0xff]  ;;  %1268 = vmatpush.msrb.mxu0 %v5197_v42 }
 0x14f   :  { %1127 = vmatpush.msra.mxu2 %v7937_v35  ;;  %1108 = vmatpush.msra.mxu1 %v7938_v58 }
 0x150   :  { %1147 = vmatpush.msra.mxu3 %v4976_v43  ;;  %v7945_v43 = vld [vmem:[#allocation84_spill] sm:$0xff] }
 0x151   :  { %1128 = vmatpush.msra.mxu2 %v7939_v17  ;;  %1109 = vmatpush.msra.mxu1 %v7940_v61  ;;  %v5204_v17 = vld [vmem:[#allocation8 + $0xf0] sm:$0xff]  ;;  %v5206_v61 = vld [vmem:[#allocation8 + $0x98] sm:$0xff] }
 0x152   :  { %1148 = vmatpush.msra.mxu3 %v4981_v40  ;;  %v7947_v40 = vld [vmem:[#allocation61_spill] sm:$0xff]  ;;  %1269 = vmatpush.msrb.mxu0 %v5204_v17 }
 0x153   :  { %1129 = vmatpush.msra.mxu2 %v7941_v37  ;;  %1110 = vmatpush.msra.mxu1 %v7942_v45 }
 0x154   :  { %1149 = vmatpush.msra.mxu3 %v4988_v55  ;;  %v7948_v55 = vld [vmem:[#allocation65_spill] sm:$0xff]  ;;  %1270 = vmatpush.msrb.mxu0 %v5210_v49 }
 0x155   :  { %1130 = vmatpush.msra.mxu2 %v7943_v38  ;;  %1111 = vmatpush.msra.mxu1 %v7944_v2  ;;  %v5212_v38 = vld [vmem:[#allocation8 + $0x80] sm:$0xff] }
 0x156   :  { %1150 = vmatpush.msra.mxu3 %v4993_v16  ;;  %v7949_v16 = vld [vmem:[#allocation68_spill] sm:$0xff] }
 0x157   :  { %1131 = vmatpush.msra.mxu2 %v7945_v43  ;;  %1112 = vmatpush.msra.mxu1 %v7946_v19  ;;  %v5218_v19 = vld [vmem:[#allocation8 + $0xc0] sm:$0xff] }
 0x158   :  { %1151 = vmatpush.msra.mxu3 %v4997_v6  ;;  %1271 = vmatpush.msrb.mxu0 %v5218_v19 }
 0x159   :  { %1132 = vmatpush.msra.mxu2 %v4911_v51  ;;  %1113 = vmatpush.msra.mxu1 %v7947_v40  ;;  %v5131_v51 = vpop.f32.mrf.mxu1  ;;  %v5220_v40 = vld [vmem:[#allocation8 + $0x68] sm:$0xff] }
 0x15a   :  { %1152 = vmatpush.msra.mxu3 %v5001_v44  ;;  %7950 = vst [vmem:[#allocation63_spill] sm:$0xff] %v5131_v51  ;;  %v5137_v44 = vpop.f32.mrf.mxu2  ;;  %v5390_v51 = vld [vmem:[#allocation9 + $0xf0] sm:$0xff] }
 0x15b   :  { %1133 = vmatpush.msra.mxu2 %v4919_v31  ;;  %1114 = vmatpush.msra.mxu1 %v7948_v55  ;;  %7974 = vst [vmem:[#allocation24_spill] sm:$0xff] %v5390_v51 }
 0x15c   :  { %1153 = vmatpush.msra.mxu3 %v5005_v1 }
 0x15d   :  { %1134 = vmatpush.msra.mxu2 %v4927_v53  ;;  %1115 = vmatpush.msra.mxu1 %v7949_v16 }
 0x15e   :  { %1154 = vmatpush.msra.mxu3 %v5009_v10 }
 0x15f   :  { %1135 = vmatpush.msra.mxu2 %v4935_v30  ;;  %v5148_v30 = vld [vmem:[%s7505_s6] sm:$0x7]  ;;  %1284 = vmatpush.msrb.mxu1 %v5153_v32 }
 0x160   :  { %1155 = vmatpush.msra.mxu3 %v5013_v23  ;;  %v546_v9 = vperm.slane %v5148_v30, 0  ;;  %v547_v7 = vperm.slane %v5148_v30, 1  ;;  %v548_v48 = vperm.slane %v5148_v30, 2 }
 0x161   :  { %v5133_v6 = vpop.f32.mrf.mxu1  ;;  %1285 = vmatpush.msrb.mxu1 %v5156_v15 }
 0x162   :  { %7951 = vst [vmem:[#allocation15_spill] sm:$0xff] %v5133_v6  ;;  %v5141_v53 = vpop.f32.mrf.mxu2 }
 0x163   :  { %1286 = vmatpush.msrb.mxu1 %v5160_v22 }
 0x165   :  { %1287 = vmatpush.msrb.mxu1 %v5164_v18 }
 0x167   :  { %1288 = vmatpush.msrb.mxu1 %v5169_v24 }
 0x169   :  { %v5135_v31 = vpop.f32.mrf.mxu1  ;;  %1289 = vmatpush.msrb.mxu1 %v5177_v36 }
 0x16a   :  { %7952 = vst [vmem:[#allocation16_spill] sm:$0xff] %v5135_v31  ;;  %v5150_v23 = vpop.f32.mrf.mxu2 }
 0x16b   :  { %7955 = vst [vmem:[#allocation17_spill] sm:$0xff] %v5150_v23  ;;  %1290 = vmatpush.msrb.mxu1 %v5183_v41  ;;  %v5386_v23 = vld [vmem:[#allocation11 + $0x150] sm:$0xff] }
 0x16c   :  { %7973 = vst [vmem:[#allocation52_spill] sm:$0xff] %v5386_v23 }
 0x16d   :  { %1291 = vmatpush.msrb.mxu1 %v5189_v46 }
 0x16f   :  { %1292 = vmatpush.msrb.mxu1 %v5199_v50 }
 0x171   :  { %v5139_v1 = vpop.f32.mrf.mxu1  ;;  %1293 = vmatpush.msrb.mxu1 %v5206_v61 }
 0x172   :  { %7953 = vst [vmem:[#allocation36_spill] sm:$0xff] %v5139_v1  ;;  %v677_v10 = vpop.f32.mrf.mxu0  ;;  %v5272_v1 = vld [vmem:[#allocation8 + $0x30] sm:$0xff] }
 0x173   :  { %1294 = vmatpush.msrb.mxu1 %v5212_v38 }
 0x175   :  { %1295 = vmatpush.msrb.mxu1 %v5220_v40 }
 0x179   :  { %v5143_v4 = vpop.f32.mrf.mxu1 }
 0x17a   :  { %7954 = vst [vmem:[#allocation67_spill] sm:$0xff] %v5143_v4 }
 0x19a   :  { %v569_v12 = vpop.f32.mrf.mxu1 }
 0x19b   :  { %v570_v60 = vadd.f32 %v569_v12, %v546_v9  ;;  %v861_v3 = vpop.f32.mrf.mxu0  ;;  %v5228_v9 = vld [vmem:[#allocation8 + $0x50] sm:$0xff] }
 0x19c   :  { %v905_v8 = vadd.f32 %v861_v3, %v245_v20  ;;  %1296 = vmatpush.msrb.mxu1 %v5228_v9  ;;  %v5235_v20 = vld [vmem:[#allocation8 + $0x90] sm:$0xff] }
 0x19d   :  { %v721_v59 = vadd.f32 %v677_v10, %v570_v60  ;;  %v5226_v10 = vld [vmem:[#allocation8 + $0xa8] sm:$0xff]  ;;  %v5237_v60 = vld [vmem:[#allocation8 + $0x38] sm:$0xff] }
 0x19e   :  { %v3950_v25 = vmul.f32 -1.442695, %v905_v8  ;;  %1272 = vmatpush.msrb.mxu0 %v5226_v10  ;;  %1297 = vmatpush.msrb.mxu1 %v5237_v60  ;;  %v4002_v8 = vld [vmem:[%s7507_s8] ss:$0 sm:$0xff] }
 0x19f   :  { %v3947_v56 = vmul.f32 -1.442695, %v721_v59 }
 0x1a0   :  { %v589_v57 = vpop.f32.mrf.mxu2  ;;  %1273 = vmatpush.msrb.mxu0 %v5235_v20 }
 0x1a1   :  { %4028 = vpow2.f32 %v3947_v56  ;;  %v590_v27 = vadd.f32 %v589_v57, %v547_v7  ;;  %v5171_v63 = vpop.f32.mrf.mxu3  ;;  %v5244_v7 = vld [vmem:[#allocation8 + $0x78] sm:$0xff]  ;;  %v5246_v56 = vld [vmem:[#allocation8 + $0x20] sm:$0xff] }
 0x1a2   :  { %4030 = vpow2.f32 %v3950_v25  ;;  %1274 = vmatpush.msrb.mxu0 %v5244_v7  ;;  %1298 = vmatpush.msrb.mxu1 %v5246_v56 }
 0x1a3   :  { %v697_v33 = vpop.f32.mrf.mxu1 }
 0x1a4   :  { %v741_v14 = vadd.f32 %v697_v33, %v590_v27  ;;  %v5253_v33 = vld [vmem:[#allocation8 + $0x60] sm:$0xff] }
 0x1a5   :  { %1275 = vmatpush.msrb.mxu0 %v5253_v33 }
 0x1a6   :  { %v3948_v52 = vmul.f32 -1.442695, %v741_v14  ;;  %v5255_v14 = vld [vmem:[#allocation8 + $0x8] sm:$0xff] }
 0x1a7   :  { %v4029_v28 = vpop.eup %4028  ;;  %1299 = vmatpush.msrb.mxu1 %v5255_v14 }
 0x1a8   :  { %v5195_v5 = vadd.f32 1.0, %v4029_v28  ;;  %4032 = vpow2.f32 %v3948_v52  ;;  %v4031_v37 = vpop.eup %4030  ;;  %v717_v25 = vpop.f32.mrf.mxu2 }
 0x1a9   :  { %v841_v35 = vpop.f32.mrf.mxu3  ;;  %v5216_v43 = vadd.f32 1.0, %v4031_v37  ;;  %v764_v37 = vadd.f32 %v4002_v8, %v717_v25 }
 0x1aa   :  { %4034 = vrcp.f32 %v5195_v5  ;;  %v885_v58 = vadd.f32 %v841_v35, %v204_v29  ;;  %v737_v27 = vand.u32 2147483648, %v5195_v5  ;;  %v735_v28 = vand.u32 2147483647, %v5195_v5 }
 0x1ab   :  { %vm731_vm9 = vweird.f32 %v5195_v5  ;;  %vm915_vm5 = vweird.f32 %v5216_v43 }
 0x1ac   :  { %v3949_v45 = vmul.f32 -1.442695, %v885_v58  ;;  %vm736_vm11 = vcmp.eq.f32.partialorder %v735_v28, 8.507059e+37 }
 0x1ae   :  { %v4033_v2 = vpop.eup %4032  ;;  %4036 = vpow2.f32 %v3949_v45  ;;  %v738_v45 = vor.u32 1.1754944e-38, %v737_v27  ;;  %v5277_v27 = vld [vmem:[#allocation8 + $0x18] sm:$0xff] }
 0x1af   :  { %v5222_v55 = vadd.f32 1.0, %v4033_v2  ;;  %v5266_v2 = vld [vmem:[#allocation8 + $0x48] sm:$0xff] }
 0x1b0   :  { %v4035_v16 = vpop.eup %4034  ;;  %1276 = vmatpush.msrb.mxu0 %v5266_v2 }
 0x1b1   :  { %4038 = vrcp.f32 %v5222_v55  ;;  %v727_v12 = vmul.f32 %v4035_v16, %v5195_v5  ;;  %vm732_vm8 = vweird.f32 %v4035_v16  ;;  %v757_v5 = vand.u32 2147483648, %v5222_v55 }
 0x1b2   :  { %4040 = vrcp.f32 %v5216_v43  ;;  %vm733_vm10 = vmor %vm731_vm9, %vm732_vm8  ;;  %1277 = vmatpush.msrb.mxu0 %v5272_v1  ;;  %vm751_vm13 = vweird.f32 %v5222_v55 }
 0x1b3   :  { %v728_v59 = vsub.f32 1.0, %v727_v12 }
 0x1b4   :  { %v4037_v3 = vpop.eup %4036  ;;  %1278 = vmatpush.msrb.mxu0 %v5277_v27 }
 0x1b5   :  { %v5248_v57 = vadd.f32 1.0, %v4037_v3  ;;  %v729_v52 = vmul.f32 %v4035_v16, %v728_v59  ;;  %v610_v59 = vadd.f32 %v5171_v63, %v548_v48 }
 0x1b7   :  { %v4039_v11 = vpop.eup %4038  ;;  %4042 = vrcp.f32 %v5248_v57  ;;  %v730_v58 = vadd.f32 %v4035_v16, %v729_v52  ;;  %vm895_vm1 = vweird.f32 %v5248_v57 }
 0x1b8   :  { %v5262_v29 = vpop.eup %4040  ;;  %v747_v35 = vmul.f32 %v4039_v11, %v5222_v55  ;;  %vm752_vm12 = vweird.f32 %v4039_v11 }
 0x1b9   :  { %v734_v30 = vsel %vm733_vm10, %v4035_v16, %v730_v58  ;;  %v911_v3 = vmul.f32 %v5262_v29, %v5216_v43  ;;  %v755_v16 = vand.u32 2147483647, %v5222_v55  ;;  %vm753_vm14 = vmor %vm751_vm13, %vm752_vm12  ;;  %v5282_v58 = vld [vmem:[#allocation8] sm:$0xff]  ;;  %vm916_vm3 = vweird.f32 %v5262_v29 }
 0x1ba   :  { %v748_v12 = vsub.f32 1.0, %v747_v35  ;;  %v739_v4 = vsel %vm736_vm11, %v738_v45, %v734_v30  ;;  %1279 = vmatpush.msrb.mxu0 %v5282_v58  ;;  %vm917_vm6 = vmor %vm915_vm5, %vm916_vm3 }
 0x1bb   :  { %v765_v8 = vmul.f32 %v764_v37, %v739_v4  ;;  %v912_v48 = vsub.f32 1.0, %v911_v3  ;;  %v758_v4 = vor.u32 1.1754944e-38, %v757_v5  ;;  %vm756_vm15 = vcmp.eq.f32.partialorder %v755_v16, 8.507059e+37  ;;  %v4003_v3 = vld [vmem:[%s7503_s4] ss:$0 sm:$0xff]  ;;  %v881_v5 = vpop.f32.mrf.mxu1 }
 0x1bc   :  { %v749_v52 = vmul.f32 %v4039_v11, %v748_v12  ;;  %v901_v12 = vand.u32 2147483648, %v5248_v57 }
 0x1bd   :  { %v4043_v25 = vpop.eup %4042  ;;  %v766_v35 = vadd.f32 %v765_v8, %v610_v59  ;;  %v899_v59 = vand.u32 2147483647, %v5248_v57 }
 0x1be   :  { %v750_v28 = vadd.f32 %v4039_v11, %v749_v52  ;;  %v891_v63 = vmul.f32 %v4043_v25, %v5248_v57  ;;  %vm896_vm0 = vweird.f32 %v4043_v25  ;;  %v913_v52 = vmul.f32 %v5262_v29, %v912_v48 }
 0x1bf   :  { %4044 = vtanh.f32 %v766_v35  ;;  %vm897_vm2 = vmor %vm895_vm1, %vm896_vm0  ;;  %v902_v16 = vor.u32 1.1754944e-38, %v901_v12  ;;  %vm900_vm4 = vcmp.eq.f32.partialorder %v899_v59, 8.507059e+37  ;;  %v286_v48 = vadd.f32 %v5137_v44, %v4985_v13 }
 0x1c0   :  { %v754_v37 = vsel %vm753_vm14, %v4039_v11, %v750_v28  ;;  %v892_v45 = vsub.f32 1.0, %v891_v63  ;;  %v928_v63 = vadd.f32 %v4003_v3, %v881_v5  ;;  %v921_v57 = vand.u32 2147483648, %v5216_v43 }
 0x1c1   :  { %v759_v30 = vsel %vm756_vm15, %v758_v4, %v754_v37  ;;  %v914_v4 = vadd.f32 %v5262_v29, %v913_v52  ;;  %v919_v12 = vand.u32 2147483647, %v5216_v43  ;;  %v5307_v43 = vld [vmem:[#allocation8 + $0x178] sm:$0xff] }
 0x1c2   :  { %v893_v55 = vmul.f32 %v4043_v25, %v892_v45  ;;  %v768_v8 = vsub.f32 1.0, %v759_v30  ;;  %v770_v31 = vmul.f32 %v4907_v47, %v759_v30  ;;  %v922_v3 = vor.u32 1.1754944e-38, %v921_v57  ;;  %v5352_v57 = vld [vmem:[#allocation8 + $0x40] sm:$0xff] }
 0x1c3   :  { %v918_v59 = vsel %vm917_vm6, %v5262_v29, %v914_v4  ;;  %vm920_vm7 = vcmp.eq.f32.partialorder %v919_v12, 8.507059e+37  ;;  %v5316_v29 = vld [vmem:[#allocation8 + $0x148] sm:$0xff]  ;;  %v5340_v4 = vld [vmem:[#allocation8 + $0xa0] sm:$0xff]  ;;  %7968 = vst [vmem:[#allocation21_spill] sm:$0xff] %v5352_v57  ;;  %v5358_v12 = vld [vmem:[#allocation8 + $0x10] sm:$0xff] }
 0x1c4   :  { %v894_v11 = vadd.f32 %v4043_v25, %v893_v55  ;;  %v923_v47 = vsel %vm920_vm7, %v922_v3, %v918_v59  ;;  %7964 = vst [vmem:[#allocation19_spill] sm:$0xff] %v5340_v4  ;;  %v5365_v59 = vld [vmem:[#allocation9 + $0x150] sm:$0xff]  ;;  %v5368_v3 = vld [vmem:[#allocation9 + $0x138] sm:$0xff] }
 0x1c5   :  { %v4045_v28 = vpop.eup %4044  ;;  %v932_v44 = vsub.f32 1.0, %v923_v47  ;;  %v934_v5 = vmul.f32 %v923_v47, %v5020_v0  ;;  %v5319_v0 = vld [vmem:[#allocation8 + $0x130] sm:$0xff]  ;;  %7970 = vst [vmem:[#allocation22_spill] sm:$0xff] %v5358_v12  ;;  %v5371_v47 = vld [vmem:[#allocation9 + $0x120] sm:$0xff] }
 0x1c6   :  { %v898_v35 = vsel %vm897_vm2, %v4043_v25, %v894_v11  ;;  %v769_v37 = vmul.f32 %v4045_v28, %v768_v8  ;;  %v5322_v8 = vld [vmem:[#allocation8 + $0x118] sm:$0xff]  ;;  %v5331_v28 = vld [vmem:[#allocation8 + $0xe8] sm:$0xff] }
 0x1c7   :  { %v903_v45 = vsel %vm900_vm4, %v902_v16, %v898_v35  ;;  %v5328_v16 = vld [vmem:[#allocation8 + $0x100] sm:$0xff]  ;;  %7961 = vst [vmem:[#allocation18_spill] sm:$0xff] %v5331_v28  ;;  %v5334_v35 = vld [vmem:[#allocation8 + $0xd0] sm:$0xff] }
 0x1c8   :  { %v929_v55 = vmul.f32 %v928_v63, %v903_v45  ;;  %v5300_v6 = vadd.f32 %v770_v31, %v769_v37  ;;  %v5313_v31 = vld [vmem:[#allocation8 + $0x160] sm:$0xff]  ;;  %7960 = vst [vmem:[#allocation70_spill] sm:$0xff] %v5328_v16  ;;  %v5337_v63 = vld [vmem:[#allocation8 + $0xb8] sm:$0xff]  ;;  %v5343_v37 = vld [vmem:[#allocation8 + $0x88] sm:$0xff] }
 0x1c9   :  { %7962 = vst [vmem:[#allocation40_spill] sm:$0xff] %v5334_v35  ;;  %v5346_v45 = vld [vmem:[#allocation8 + $0x70] sm:$0xff] }
 0x1ca   :  { %7959 = vst [vmem:[#allocation38_spill] sm:$0xff] %v5300_v6  ;;  %v930_v25 = vadd.f32 %v929_v55, %v286_v48  ;;  %1116 = vmatmul.f32.vlgmr.msra.gmra.mxu1 %v5300_v6  ;;  %v5349_v48 = vld [vmem:[#allocation8 + $0x58] sm:$0xff]  ;;  %v5355_v55 = vld [vmem:[#allocation8 + $0x28] sm:$0xff] }
 0x1cb   :  { %7963 = vst [vmem:[#allocation72_spill] sm:$0xff] %v5337_v63 }
 0x1cc   :  { %4046 = vtanh.f32 %v930_v25  ;;  %7965 = vst [vmem:[#allocation43_spill] sm:$0xff] %v5343_v37  ;;  %v5363_v25 = vld [vmem:[#allocation9 + $0x168] sm:$0xff] }
 0x1cd   :  { %7966 = vst [vmem:[#allocation20_spill] sm:$0xff] %v5346_v45 }
 0x1ce   :  { %7967 = vst [vmem:[#allocation45_spill] sm:$0xff] %v5349_v48 }
 0x1cf   :  { %7969 = vst [vmem:[#allocation48_spill] sm:$0xff] %v5355_v55 }
 0x1d2   :  { %v4047_v30 = vpop.eup %4046 }
 0x1d3   :  { %v933_v52 = vmul.f32 %v4047_v30, %v932_v44  ;;  %v5375_v44 = vld [vmem:[#allocation11 + $0x168] sm:$0xff] }
 0x1d4   :  { %7971 = vst [vmem:[#allocation50_spill] sm:$0xff] %v5375_v44  ;;  %v5378_v30 = vld [vmem:[#allocation9 + $0x108] sm:$0xff] }
 0x1d5   :  { %v5305_v11 = vadd.f32 %v934_v5, %v933_v52  ;;  %7972 = vst [vmem:[#allocation23_spill] sm:$0xff] %v5378_v30  ;;  %v5380_v52 = vld [vmem:[#allocation9 + $0x170] sm:$0xff]  ;;  %v5382_v5 = vld [vmem:[#allocation9 + $0x178] sm:$0xff] }
 0x1d6   :  { %1472 = vmatpush.msra.mxu1 %v5382_v5 }
 0x1d7   :  { %1008 = vmatmul.f32.vlgmr.msrb.gmra.mxu2 %v5305_v11  ;;  %1028 = vmatmul.f32.vlgmr.msrb.gmra.mxu3 %v5305_v11 }
 0x1d8   :  { %1048 = vmatmul.f32.vlgmr.msra.gmra.mxu0 %v5305_v11  ;;  %1300 = vmatmul.f32.vlgmr.msrb.gmra.mxu1 %v5305_v11 }
 0x1d9   :  { %1304 = vmatpush.msrb.mxu2 %v5307_v43  ;;  %1432 = vmatpush.msrb.mxu3 %v5363_v25 }
 0x1da   :  { %1452 = vmatpush.msra.mxu0 %v5380_v52 }
 0x1db   :  { %1305 = vmatpush.msrb.mxu2 %v5313_v31  ;;  %1433 = vmatpush.msrb.mxu3 %v5365_v59 }
 0x1dd   :  { %1306 = vmatpush.msrb.mxu2 %v5316_v29  ;;  %1434 = vmatpush.msrb.mxu3 %v5368_v3 }
 0x1df   :  { %1307 = vmatpush.msrb.mxu2 %v5319_v0  ;;  %1156 = vmatmul.f32.vlgmr.msra.gmra.mxu3 %v5300_v6 }
 0x1e0   :  { %1136 = vmatmul.f32.vlgmr.msra.gmra.mxu2 %v5300_v6  ;;  %1280 = vmatmul.f32.vlgmr.msrb.gmra.mxu0 %v5305_v11 }
 0x1e1   :  { %1308 = vmatpush.msrb.mxu2 %v5322_v8  ;;  %1435 = vmatpush.msrb.mxu3 %v5371_v47 }
 0x1e3   :  { %1309 = vmatpush.msrb.mxu2 %v5328_v16  ;;  %1436 = vmatpush.msrb.mxu3 %v5378_v30  ;;  %v5446_v30 = vld [vmem:[#allocation11 + $0xd8] sm:$0xff] }
 0x1e4   :  { %7989 = vst [vmem:[#allocation37_spill] sm:$0xff] %v5446_v30 }
 0x1e5   :  { %1310 = vmatpush.msrb.mxu2 %v5331_v28  ;;  %1437 = vmatpush.msrb.mxu3 %v5390_v51  ;;  %v5434_v51 = vld [vmem:[#allocation11 + $0xf0] sm:$0xff]  ;;  %v5440_v28 = vld [vmem:[#allocation9 + $0xf8] sm:$0xff] }
 0x1e6   :  { %7985 = vst [vmem:[#allocation31_spill] sm:$0xff] %v5434_v51 }
 0x1e7   :  { %1311 = vmatpush.msrb.mxu2 %v5334_v35  ;;  %v5428_v35 = vld [vmem:[#allocation9 + $0x110] sm:$0xff]  ;;  %7987 = vst [vmem:[#allocation34_spill] sm:$0xff] %v5440_v28 }
 0x1e8   :  { %7983 = vst [vmem:[#allocation66_spill] sm:$0xff] %v5428_v35 }
 0x1e9   :  { %1312 = vmatpush.msrb.mxu2 %v5337_v63  ;;  %v5422_v63 = vld [vmem:[#allocation11 + $0x108] sm:$0xff] }
 0x1ea   :  { %7981 = vst [vmem:[#allocation62_spill] sm:$0xff] %v5422_v63 }
 0x1eb   :  { %1313 = vmatpush.msrb.mxu2 %v5340_v4  ;;  %v5416_v4 = vld [vmem:[#allocation9 + $0x128] sm:$0xff] }
 0x1ec   :  { %7979 = vst [vmem:[#allocation60_spill] sm:$0xff] %v5416_v4 }
 0x1ed   :  { %1314 = vmatpush.msrb.mxu2 %v5343_v37  ;;  %v5414_v37 = vld [vmem:[#allocation9 + $0xc0] sm:$0xff] }
 0x1ee   :  { %7978 = vst [vmem:[#allocation26_spill] sm:$0xff] %v5414_v37 }
 0x1ef   :  { %1315 = vmatpush.msrb.mxu2 %v5346_v45  ;;  %v5410_v45 = vld [vmem:[#allocation11 + $0x120] sm:$0xff] }
 0x1f0   :  { %7977 = vst [vmem:[#allocation58_spill] sm:$0xff] %v5410_v45 }
 0x1f1   :  { %1316 = vmatpush.msrb.mxu2 %v5349_v48  ;;  %v5404_v48 = vld [vmem:[#allocation9 + $0x140] sm:$0xff] }
 0x1f3   :  { %1317 = vmatpush.msrb.mxu2 %v5352_v57  ;;  %v5402_v57 = vld [vmem:[#allocation9 + $0xd8] sm:$0xff] }
 0x1f4   :  { %7976 = vst [vmem:[#allocation25_spill] sm:$0xff] %v5402_v57  ;;  %1438 = vmatpush.msrb.mxu3 %v5402_v57  ;;  %v5426_v57 = vld [vmem:[#allocation9 + $0xa8] sm:$0xff] }
 0x1f5   :  { %1318 = vmatpush.msrb.mxu2 %v5355_v55  ;;  %v5398_v55 = vld [vmem:[#allocation11 + $0x138] sm:$0xff]  ;;  %7982 = vst [vmem:[#allocation30_spill] sm:$0xff] %v5426_v57 }
 0x1f6   :  { %7975 = vst [vmem:[#allocation55_spill] sm:$0xff] %v5398_v55  ;;  %1439 = vmatpush.msrb.mxu3 %v5414_v37  ;;  %v5438_v37 = vld [vmem:[#allocation9 + $0x90] sm:$0xff] }
 0x1f7   :  { %1319 = vmatpush.msrb.mxu2 %v5358_v12  ;;  %v5392_v12 = vld [vmem:[#allocation9 + $0x158] sm:$0xff]  ;;  %7986 = vst [vmem:[#allocation71_spill] sm:$0xff] %v5438_v37 }
 0x1f8   :  { %1320 = vmatmul.f32.vlgmr.msrb.gmra.mxu2 %v5305_v11  ;;  %1453 = vmatpush.msra.mxu0 %v5392_v12 }
 0x1f9   :  { %1540 = vmatpush.msra.mxu2 %v5375_v44  ;;  %v5394_v44 = vld [vmem:[#allocation9 + $0x160] sm:$0xff]  ;;  %1440 = vmatpush.msrb.mxu3 %v5426_v57  ;;  %v5450_v57 = vld [vmem:[#allocation9 + $0x78] sm:$0xff] }
 0x1fa   :  { %1473 = vmatpush.msra.mxu1 %v5394_v44  ;;  %1454 = vmatpush.msra.mxu0 %v5404_v48  ;;  %7990 = vst [vmem:[#allocation75_spill] sm:$0xff] %v5450_v57 }
 0x1fb   :  { %1541 = vmatpush.msra.mxu2 %v5386_v23  ;;  %v5406_v23 = vld [vmem:[#allocation9 + $0x148] sm:$0xff]  ;;  %1441 = vmatpush.msrb.mxu3 %v5438_v37  ;;  %v5462_v37 = vld [vmem:[#allocation9 + $0x60] sm:$0xff] }
 0x1fc   :  { %1474 = vmatpush.msra.mxu1 %v5406_v23  ;;  %1455 = vmatpush.msra.mxu0 %v5416_v4  ;;  %7994 = vst [vmem:[#allocation44_spill] sm:$0xff] %v5462_v37  ;;  %v5574_v4 = vld [vmem:[#allocation11 + $0x178] sm:$0xff] }
 0x1fd   :  { %1542 = vmatpush.msra.mxu2 %v5398_v55  ;;  %v5418_v55 = vld [vmem:[#allocation9 + $0x130] sm:$0xff]  ;;  %1442 = vmatpush.msrb.mxu3 %v5450_v57  ;;  %v5474_v57 = vld [vmem:[#allocation9 + $0x48] sm:$0xff] }
 0x1fe   :  { %7980 = vst [vmem:[#allocation27_spill] sm:$0xff] %v5418_v55  ;;  %1475 = vmatpush.msra.mxu1 %v5418_v55  ;;  %1456 = vmatpush.msra.mxu0 %v5428_v35  ;;  %v5458_v35 = vld [vmem:[#allocation11 + $0xc0] sm:$0xff]  ;;  %v5532_v55 = vld [vmem:[#allocation11 + $0x30] sm:$0xff] }
 0x1ff   :  { %1543 = vmatpush.msra.mxu2 %v5410_v45  ;;  %v5430_v45 = vld [vmem:[#allocation9 + $0x118] sm:$0xff]  ;;  %7993 = vst [vmem:[#allocation76_spill] sm:$0xff] %v5458_v35  ;;  %1443 = vmatpush.msrb.mxu3 %v5462_v37  ;;  %v5486_v37 = vld [vmem:[#allocation9 + $0x30] sm:$0xff] }
 0x200   :  { %7984 = vst [vmem:[#allocation69_spill] sm:$0xff] %v5430_v45  ;;  %1476 = vmatpush.msra.mxu1 %v5430_v45  ;;  %1457 = vmatpush.msra.mxu0 %v5440_v28  ;;  %v5452_v45 = vld [vmem:[#allocation9 + $0xe0] sm:$0xff]  ;;  %v5470_v28 = vld [vmem:[#allocation11 + $0xa8] sm:$0xff] }
 0x201   :  { %1544 = vmatpush.msra.mxu2 %v5422_v63  ;;  %v5442_v63 = vld [vmem:[#allocation9 + $0x100] sm:$0xff]  ;;  %7991 = vst [vmem:[#allocation39_spill] sm:$0xff] %v5452_v45  ;;  %1444 = vmatpush.msrb.mxu3 %v5474_v57 }
 0x202   :  { %7988 = vst [vmem:[#allocation73_spill] sm:$0xff] %v5442_v63  ;;  %1477 = vmatpush.msra.mxu1 %v5442_v63  ;;  %1458 = vmatpush.msra.mxu0 %v5452_v45  ;;  %v5464_v63 = vld [vmem:[#allocation9 + $0xc8] sm:$0xff]  ;;  %v5482_v45 = vld [vmem:[#allocation11 + $0x90] sm:$0xff] }
 0x203   :  { %1545 = vmatpush.msra.mxu2 %v5434_v51  ;;  %v5454_v51 = vld [vmem:[#allocation9 + $0xe8] sm:$0xff]  ;;  %7995 = vst [vmem:[#allocation77_spill] sm:$0xff] %v5464_v63  ;;  %1445 = vmatpush.msrb.mxu3 %v5486_v37 }
 0x204   :  { %7992 = vst [vmem:[#allocation41_spill] sm:$0xff] %v5454_v51  ;;  %1478 = vmatpush.msra.mxu1 %v5454_v51  ;;  %1459 = vmatpush.msra.mxu0 %v5464_v63  ;;  %v5476_v51 = vld [vmem:[#allocation9 + $0xb0] sm:$0xff]  ;;  %v5494_v63 = vld [vmem:[#allocation11 + $0x78] sm:$0xff] }
 0x205   :  { %1546 = vmatpush.msra.mxu2 %v5446_v30  ;;  %v5466_v30 = vld [vmem:[#allocation9 + $0xd0] sm:$0xff]  ;;  %7997 = vst [vmem:[#allocation79_spill] sm:$0xff] %v5470_v28 }
 0x206   :  { %7996 = vst [vmem:[#allocation46_spill] sm:$0xff] %v5466_v30  ;;  %1479 = vmatpush.msra.mxu1 %v5466_v30  ;;  %1460 = vmatpush.msra.mxu0 %v5476_v51  ;;  %v5488_v30 = vld [vmem:[#allocation9 + $0x98] sm:$0xff] }
 0x207   :  { %1547 = vmatpush.msra.mxu2 %v5458_v35  ;;  %7998 = vst [vmem:[#allocation49_spill] sm:$0xff] %v5474_v57  ;;  %v5478_v35 = vld [vmem:[#allocation9 + $0xb8] sm:$0xff] }
 0x208   :  { %7999 = vst [vmem:[#allocation80_spill] sm:$0xff] %v5476_v51  ;;  %1480 = vmatpush.msra.mxu1 %v5478_v35  ;;  %1461 = vmatpush.msra.mxu0 %v5488_v30  ;;  %v5498_v57 = vld [vmem:[#allocation9 + $0x18] sm:$0xff]  ;;  %v5506_v51 = vld [vmem:[#allocation11 + $0x60] sm:$0xff] }
 0x209   :  { %1548 = vmatpush.msra.mxu2 %v5470_v28  ;;  %8000 = vst [vmem:[#allocation51_spill] sm:$0xff] %v5478_v35  ;;  %v5490_v28 = vld [vmem:[#allocation9 + $0xa0] sm:$0xff]  ;;  %1446 = vmatpush.msrb.mxu3 %v5498_v57 }
 0x20a   :  { %8001 = vst [vmem:[#allocation81_spill] sm:$0xff] %v5482_v45  ;;  %1481 = vmatpush.msra.mxu1 %v5490_v28  ;;  %v5500_v35 = vld [vmem:[#allocation9 + $0x80] sm:$0xff] }
 0x20b   :  { %1549 = vmatpush.msra.mxu2 %v5482_v45  ;;  %8002 = vst [vmem:[#allocation54_spill] sm:$0xff] %v5486_v37  ;;  %v5502_v45 = vld [vmem:[#allocation9 + $0x88] sm:$0xff]  ;;  %1462 = vmatpush.msra.mxu0 %v5500_v35  ;;  %v5510_v37 = vld [vmem:[#allocation9] sm:$0xff] }
 0x20c   :  { %8003 = vst [vmem:[#allocation83_spill] sm:$0xff] %v5488_v30  ;;  %1482 = vmatpush.msra.mxu1 %v5502_v45  ;;  %1447 = vmatpush.msrb.mxu3 %v5510_v37 }
 0x20d   :  { %8004 = vst [vmem:[#allocation56_spill] sm:$0xff] %v5490_v28  ;;  %1550 = vmatpush.msra.mxu2 %v5494_v63  ;;  %v5512_v28 = vld [vmem:[#allocation9 + $0x68] sm:$0xff] }
 0x20e   :  { %8005 = vst [vmem:[#allocation84_spill] sm:$0xff] %v5494_v63  ;;  %v5514_v63 = vld [vmem:[#allocation9 + $0x70] sm:$0xff]  ;;  %1463 = vmatpush.msra.mxu0 %v5512_v28 }
 0x20f   :  { %8006 = vst [vmem:[#allocation59_spill] sm:$0xff] %v5498_v57  ;;  %1551 = vmatpush.msra.mxu2 %v5506_v51  ;;  %v5520_v57 = vld [vmem:[#allocation11 + $0x48] sm:$0xff]  ;;  %1483 = vmatpush.msra.mxu1 %v5514_v63 }
 0x210   :  { %8007 = vst [vmem:[#allocation61_spill] sm:$0xff] %v5500_v35  ;;  %v5522_v35 = vld [vmem:[#allocation11 + $0x170] sm:$0xff] }
 0x211   :  { %8008 = vst [vmem:[#allocation65_spill] sm:$0xff] %v5502_v45  ;;  %1552 = vmatpush.msra.mxu2 %v5520_v57  ;;  %v5528_v45 = vld [vmem:[#allocation9 + $0x58] sm:$0xff]  ;;  %1560 = vmatpush.msra.mxu3 %v5522_v35 }
 0x212   :  { %8009 = vst [vmem:[#allocation68_spill] sm:$0xff] %v5506_v51  ;;  %v5526_v51 = vld [vmem:[#allocation9 + $0x50] sm:$0xff]  ;;  %1484 = vmatpush.msra.mxu1 %v5528_v45 }
 0x213   :  { %8010 = vst [vmem:[#allocation33_spill] sm:$0xff] %v5510_v37  ;;  %1464 = vmatpush.msra.mxu0 %v5526_v51  ;;  %v5534_v37 = vld [vmem:[#allocation11 + $0x158] sm:$0xff]  ;;  %1553 = vmatpush.msra.mxu2 %v5532_v55 }
 0x214   :  { %8011 = vst [vmem:[#allocation29_spill] sm:$0xff] %v5512_v28  ;;  %v5538_v28 = vld [vmem:[#allocation9 + $0x38] sm:$0xff]  ;;  %1561 = vmatpush.msra.mxu3 %v5534_v37 }
 0x215   :  { %8012 = vst [vmem:[#allocation86_spill] sm:$0xff] %v5514_v63  ;;  %v5540_v63 = vld [vmem:[#allocation9 + $0x40] sm:$0xff]  ;;  %1465 = vmatpush.msra.mxu0 %v5538_v28 }
 0x216   :  { %8013 = vst [vmem:[#allocation87_spill] sm:$0xff] %v5520_v57  ;;  %v5544_v57 = vld [vmem:[#allocation11 + $0x18] sm:$0xff]  ;;  %1485 = vmatpush.msra.mxu1 %v5540_v63 }
 0x217   :  { %8014 = vst [vmem:[#allocation88_spill] sm:$0xff] %v5522_v35  ;;  %v5546_v35 = vld [vmem:[#allocation11 + $0x140] sm:$0xff]  ;;  %1554 = vmatpush.msra.mxu2 %v5544_v57 }
 0x218   :  { %8015 = vst [vmem:[#allocation89_spill] sm:$0xff] %v5526_v51  ;;  %v5550_v51 = vld [vmem:[#allocation9 + $0x20] sm:$0xff]  ;;  %1562 = vmatpush.msra.mxu3 %v5546_v35 }
 0x219   :  { %8016 = vst [vmem:[#allocation90_spill] sm:$0xff] %v5528_v45  ;;  %v5552_v45 = vld [vmem:[#allocation9 + $0x28] sm:$0xff]  ;;  %1466 = vmatpush.msra.mxu0 %v5550_v51 }
 0x21a   :  { %8017 = vst [vmem:[#allocation91_spill] sm:$0xff] %v5532_v55  ;;  %v5556_v55 = vld [vmem:[#allocation11] sm:$0xff]  ;;  %1486 = vmatpush.msra.mxu1 %v5552_v45 }
 0x21b   :  { %8018 = vst [vmem:[#allocation92_spill] sm:$0xff] %v5534_v37  ;;  %v5558_v37 = vld [vmem:[#allocation11 + $0x128] sm:$0xff]  ;;  %1555 = vmatpush.msra.mxu2 %v5556_v55 }
 0x21c   :  { %8019 = vst [vmem:[#allocation93_spill] sm:$0xff] %v5538_v28  ;;  %v248_v28 = vadd.f32 %v5127_v39, %v7956_v26  ;;  %1563 = vmatpush.msra.mxu3 %v5558_v37  ;;  %v5579_v39 = vld [vmem:[%s7505_s6] sm:$0x7] }
 0x21d   :  { %8020 = vst [vmem:[#allocation94_spill] sm:$0xff] %v5540_v63  ;;  %v5566_v63 = vld [vmem:[#allocation9 + $0x10] sm:$0xff]  ;;  %1724 = vmatpush.msrb.mxu2 %v5153_v32  ;;  %v5594_v32 = vld [vmem:[#allocation11 + $0xe0] sm:$0xff] }
 0x21e   :  { %8021 = vst [vmem:[#allocation95_spill] sm:$0xff] %v5544_v57  ;;  %v5564_v57 = vld [vmem:[#allocation9 + $0x8] sm:$0xff]  ;;  %1487 = vmatpush.msra.mxu1 %v5566_v63 }
 0x21f   :  { %8022 = vst [vmem:[#allocation96_spill] sm:$0xff] %v5546_v35  ;;  %1467 = vmatpush.msra.mxu0 %v5564_v57  ;;  %1725 = vmatpush.msrb.mxu2 %v5156_v15  ;;  %v5602_v15 = vld [vmem:[#allocation11 + $0xc8] sm:$0xff] }
 0x220   :  { %8023 = vst [vmem:[#allocation97_spill] sm:$0xff] %v5550_v51  ;;  %v5572_v51 = vld [vmem:[#allocation11 + $0x110] sm:$0xff]  ;;  %1704 = vmatpush.msrb.mxu1 %v5167_v54 }
 0x221   :  { %8024 = vst [vmem:[#allocation98_spill] sm:$0xff] %v5552_v45  ;;  %1564 = vmatpush.msra.mxu3 %v5572_v51  ;;  %1580 = vmatpush.msrb.mxu0 %v5574_v4 }
 0x222   :  { %8025 = vst [vmem:[#allocation99_spill] sm:$0xff] %v5556_v55  ;;  %v986_v55 = vperm.slane %v5579_v39, 0  ;;  %1705 = vmatpush.msrb.mxu1 %v5175_v34  ;;  %1726 = vmatpush.msrb.mxu2 %v5160_v22  ;;  %v5611_v22 = vld [vmem:[#allocation11 + $0xb0] sm:$0xff]  ;;  %v5613_v34 = vld [vmem:[#allocation11 + $0x118] sm:$0xff] }
 0x223   :  { %8026 = vst [vmem:[#allocation100_spill] sm:$0xff] %v5558_v37  ;;  %v5586_v37 = vld [vmem:[#allocation11 + $0xf8] sm:$0xff] }
 0x224   :  { %8027 = vst [vmem:[#allocation101_spill] sm:$0xff] %v5564_v57  ;;  %v5588_v57 = vld [vmem:[#allocation11 + $0x160] sm:$0xff]  ;;  %1565 = vmatpush.msra.mxu3 %v5586_v37  ;;  %1706 = vmatpush.msrb.mxu1 %v5181_v21 }
 0x225   :  { %8028 = vst [vmem:[#allocation102_spill] sm:$0xff] %v5572_v51  ;;  %1581 = vmatpush.msrb.mxu0 %v5588_v57  ;;  %1727 = vmatpush.msrb.mxu2 %v5164_v18 }
 0x226   :  { %8029 = vst [vmem:[#allocation103_spill] sm:$0xff] %v5586_v37  ;;  %1566 = vmatpush.msra.mxu3 %v5594_v32  ;;  %1707 = vmatpush.msrb.mxu1 %v5187_v62  ;;  %v5631_v62 = vld [vmem:[#allocation11 + $0xe8] sm:$0xff] }
 0x227   :  { %8030 = vst [vmem:[#allocation104_spill] sm:$0xff] %v5594_v32  ;;  %1728 = vmatpush.msrb.mxu2 %v5169_v24  ;;  %v5629_v24 = vld [vmem:[#allocation11 + $0x80] sm:$0xff] }
 0x228   :  { %8031 = vst [vmem:[#allocation105_spill] sm:$0xff] %v5602_v15  ;;  %1567 = vmatpush.msra.mxu3 %v5602_v15  ;;  %1708 = vmatpush.msrb.mxu1 %v5197_v42 }
 0x229   :  { %1729 = vmatpush.msrb.mxu2 %v5177_v36  ;;  %v5639_v36 = vld [vmem:[#allocation11 + $0x68] sm:$0xff] }
 0x22a   :  { %1568 = vmatpush.msra.mxu3 %v5611_v22  ;;  %1709 = vmatpush.msrb.mxu1 %v5204_v17  ;;  %v5649_v17 = vld [vmem:[#allocation11 + $0xb8] sm:$0xff] }
 0x22b   :  { %1730 = vmatpush.msrb.mxu2 %v5183_v41  ;;  %v5647_v41 = vld [vmem:[#allocation11 + $0x50] sm:$0xff] }
 0x22c   :  { %1710 = vmatpush.msrb.mxu1 %v5210_v49  ;;  %v5658_v49 = vld [vmem:[#allocation11 + $0xa0] sm:$0xff] }
 0x22d   :  { %1731 = vmatpush.msrb.mxu2 %v5189_v46  ;;  %v5656_v46 = vld [vmem:[#allocation11 + $0x38] sm:$0xff] }
 0x22e   :  { %1711 = vmatpush.msrb.mxu1 %v5218_v19  ;;  %8034 = vst [vmem:[#allocation106_spill] sm:$0xff] %v5656_v46  ;;  %v5668_v19 = vld [vmem:[#allocation11 + $0x20] sm:$0xff] }
 0x22f   :  { %1732 = vmatpush.msrb.mxu2 %v5199_v50  ;;  %8035 = vst [vmem:[#allocation107_spill] sm:$0xff] %v5668_v19 }
 0x230   :  { %1712 = vmatpush.msrb.mxu1 %v5226_v10  ;;  %v5680_v10 = vld [vmem:[#allocation11 + $0x70] sm:$0xff] }
 0x231   :  { %1733 = vmatpush.msrb.mxu2 %v5206_v61  ;;  %v5678_v61 = vld [vmem:[#allocation11 + $0x8] sm:$0xff]  ;;  %8038 = vst [vmem:[#allocation110_spill] sm:$0xff] %v5680_v10 }
 0x232   :  { %1713 = vmatpush.msrb.mxu1 %v5235_v20  ;;  %8037 = vst [vmem:[#allocation109_spill] sm:$0xff] %v5678_v61  ;;  %v5690_v20 = vld [vmem:[#allocation11 + $0x58] sm:$0xff] }
 0x233   :  { %1734 = vmatpush.msrb.mxu2 %v5212_v38  ;;  %8039 = vst [vmem:[#allocation111_spill] sm:$0xff] %v5690_v20 }
 0x234   :  { %1714 = vmatpush.msrb.mxu1 %v5244_v7 }
 0x235   :  { %1735 = vmatpush.msrb.mxu2 %v5220_v40  ;;  %v5697_v40 = vld [vmem:[#allocation11 + $0x40] sm:$0xff] }
 0x236   :  { %1715 = vmatpush.msrb.mxu1 %v5253_v33  ;;  %8040 = vst [vmem:[#allocation112_spill] sm:$0xff] %v5697_v40 }
 0x237   :  { %1736 = vmatpush.msrb.mxu2 %v5228_v9 }
 0x238   :  { %1716 = vmatpush.msrb.mxu1 %v5266_v2  ;;  %v5707_v2 = vld [vmem:[#allocation11 + $0x28] sm:$0xff] }
 0x239   :  { %1737 = vmatpush.msrb.mxu2 %v5237_v60  ;;  %8041 = vst [vmem:[#allocation113_spill] sm:$0xff] %v5707_v2  ;;  %v4004_v60 = vld [vmem:[%s7507_s8] ss:$0 sm:$0xff] }
 0x23a   :  { %1717 = vmatpush.msrb.mxu1 %v5272_v1  ;;  %v5716_v1 = vld [vmem:[#allocation11 + $0x10] sm:$0xff] }
 0x23b   :  { %1738 = vmatpush.msrb.mxu2 %v5246_v56  ;;  %8042 = vst [vmem:[#allocation114_spill] sm:$0xff] %v5716_v1 }
 0x23c   :  { %1718 = vmatpush.msrb.mxu1 %v5277_v27 }
 0x23d   :  { %1739 = vmatpush.msrb.mxu2 %v5255_v14  ;;  %v289_v14 = vadd.f32 %v5141_v53, %v4985_v13  ;;  %v4005_v53 = vld [vmem:[%s7503_s4] ss:$0 sm:$0xff] }
 0x23e   :  { %1719 = vmatpush.msrb.mxu1 %v5282_v58 }
 0x247   :  { %v5516_v30 = vpop.f32.mrf.mxu1 }
 0x255   :  { %v5568_v16 = vpop.f32.mrf.mxu0  ;;  %v1301_v35 = vpop.f32.mrf.mxu1 }
 0x256   :  { %v1345_v26 = vadd.f32 %v1301_v35, %v248_v28  ;;  %v5596_v28 = vld [vmem:[#allocation11 + $0x148] sm:$0xff] }
 0x257   :  { %1582 = vmatpush.msrb.mxu0 %v5596_v28 }
 0x258   :  { %v3954_v45 = vmul.f32 -1.442695, %v1345_v26  ;;  %v5604_v26 = vld [vmem:[#allocation11 + $0x130] sm:$0xff] }
 0x259   :  { %1583 = vmatpush.msrb.mxu0 %v5604_v26 }
 0x25a   :  { %4048 = vpow2.f32 %v3954_v45  ;;  %v1009_v35 = vpop.f32.mrf.mxu2  ;;  %v1029_v21 = vpop.f32.mrf.mxu3 }
 0x25b   :  { %v1010_v51 = vadd.f32 %v1009_v35, %v986_v55  ;;  %v987_v55 = vperm.slane %v5579_v39, 1  ;;  %v8032_v35 = vld [vmem:[#allocation35_spill] sm:$0xff]  ;;  %1584 = vmatpush.msrb.mxu0 %v5613_v34 }
 0x25c   :  { %8033 = vst [vmem:[#allocation35_spill] sm:$0xff] %v5647_v41 }
 0x25d   :  { %v1161_v54 = vadd.f32 %v5516_v30, %v1010_v51  ;;  %v1281_v45 = vpop.f32.mrf.mxu0  ;;  %v5621_v51 = vld [vmem:[#allocation11 + $0x98] sm:$0xff]  ;;  %v5623_v30 = vld [vmem:[#allocation11 + $0x100] sm:$0xff] }
 0x25e   :  { %v1325_v32 = vadd.f32 %v1281_v45, %v8032_v35  ;;  %1569 = vmatpush.msra.mxu3 %v5621_v51  ;;  %1585 = vmatpush.msrb.mxu0 %v5623_v30  ;;  %v5641_v45 = vld [vmem:[#allocation11 + $0xd0] sm:$0xff] }
 0x25f   :  { %v3951_v18 = vmul.f32 -1.442695, %v1161_v54  ;;  %v1030_v54 = vadd.f32 %v1029_v21, %v987_v55  ;;  %v5670_v21 = vld [vmem:[#allocation11 + $0x88] sm:$0xff] }
 0x260   :  { %v4049_v15 = vpop.eup %4048  ;;  %v3953_v37 = vmul.f32 -1.442695, %v1325_v32  ;;  %1570 = vmatpush.msra.mxu3 %v5629_v24  ;;  %1586 = vmatpush.msrb.mxu0 %v5631_v62  ;;  %8036 = vst [vmem:[#allocation108_spill] sm:$0xff] %v5670_v21 }
 0x261   :  { %4050 = vpow2.f32 %v3951_v18  ;;  %v5635_v32 = vadd.f32 1.0, %v4049_v15 }
 0x262   :  { %4052 = vpow2.f32 %v3953_v37  ;;  %1571 = vmatpush.msra.mxu3 %v5639_v36  ;;  %1587 = vmatpush.msrb.mxu0 %v5641_v45 }
 0x263   :  { %v1137_v42 = vpop.f32.mrf.mxu2  ;;  %4054 = vrcp.f32 %v5635_v32  ;;  %vm1355_vm3 = vweird.f32 %v5635_v32 }
 0x264   :  { %v1181_v35 = vadd.f32 %v1137_v42, %v1030_v54  ;;  %1572 = vmatpush.msra.mxu3 %v5647_v41  ;;  %1588 = vmatpush.msrb.mxu0 %v5649_v17 }
 0x266   :  { %v3952_v37 = vmul.f32 -1.442695, %v1181_v35  ;;  %1573 = vmatpush.msra.mxu3 %v5656_v46  ;;  %1589 = vmatpush.msrb.mxu0 %v5658_v49 }
 0x267   :  { %v4051_v15 = vpop.eup %4050 }
 0x268   :  { %v4053_v55 = vpop.eup %4052  ;;  %v5660_v18 = vadd.f32 1.0, %v4051_v15  ;;  %4056 = vpow2.f32 %v3952_v37  ;;  %1574 = vmatpush.msra.mxu3 %v5668_v19  ;;  %1590 = vmatpush.msrb.mxu0 %v5670_v21  ;;  %v1157_v15 = vpop.f32.mrf.mxu3 }
 0x269   :  { %v5664_v50 = vadd.f32 1.0, %v4053_v55  ;;  %v5684_v54 = vpop.eup %4054 }
 0x26a   :  { %4058 = vrcp.f32 %v5660_v18  ;;  %1575 = vmatpush.msra.mxu3 %v5678_v61  ;;  %1591 = vmatpush.msrb.mxu0 %v5680_v10  ;;  %v1351_v37 = vmul.f32 %v5684_v54, %v5635_v32  ;;  %vm1171_vm10 = vweird.f32 %v5660_v18  ;;  %vm1356_vm1 = vweird.f32 %v5684_v54 }
 0x26b   :  { %4060 = vrcp.f32 %v5664_v50  ;;  %v1341_v19 = vand.u32 2147483648, %v5664_v50  ;;  %vm1335_vm12 = vweird.f32 %v5664_v50  ;;  %vm1357_vm5 = vmor %vm1355_vm3, %vm1356_vm1 }
 0x26c   :  { %1592 = vmatpush.msrb.mxu0 %v5690_v20  ;;  %v1352_v56 = vsub.f32 1.0, %v1351_v37  ;;  %v988_v37 = vperm.slane %v5579_v39, 2 }
 0x26e   :  { %v4057_v38 = vpop.eup %4056  ;;  %1593 = vmatpush.msrb.mxu0 %v5697_v40  ;;  %v1177_v40 = vand.u32 2147483648, %v5660_v18  ;;  %v1353_v58 = vmul.f32 %v5684_v54, %v1352_v56 }
 0x26f   :  { %v5692_v42 = vadd.f32 1.0, %v4057_v38  ;;  %v1175_v38 = vand.u32 2147483647, %v5660_v18 }
 0x270   :  { %v4059_v7 = vpop.eup %4058  ;;  %1594 = vmatpush.msrb.mxu0 %v5707_v2  ;;  %v1178_v39 = vor.u32 1.1754944e-38, %v1177_v40  ;;  %v1354_v56 = vadd.f32 %v5684_v54, %v1353_v58 }
 0x271   :  { %v4061_v35 = vpop.eup %4060  ;;  %4062 = vrcp.f32 %v5692_v42  ;;  %v1167_v9 = vmul.f32 %v4059_v7, %v5660_v18  ;;  %vm1172_vm8 = vweird.f32 %v4059_v7  ;;  %vm1176_vm13 = vcmp.eq.f32.partialorder %v1175_v38, 8.507059e+37 }
 0x272   :  { %v1331_v33 = vmul.f32 %v4061_v35, %v5664_v50  ;;  %1595 = vmatpush.msrb.mxu0 %v5716_v1  ;;  %vm1336_vm9 = vweird.f32 %v4061_v35  ;;  %vm5729_vm11 = vmor %vm1171_vm10, %vm1172_vm8  ;;  %v1342_v18 = vor.u32 1.1754944e-38, %v1341_v19  ;;  %v1195_v19 = vand.u32 2147483647, %v5692_v42 }
 0x273   :  { %v1168_v55 = vsub.f32 1.0, %v1167_v9  ;;  %v1339_v9 = vand.u32 2147483647, %v5664_v50  ;;  %vm1337_vm14 = vmor %vm1335_vm12, %vm1336_vm9  ;;  %v1197_v50 = vand.u32 2147483648, %v5692_v42  ;;  %vm1191_vm2 = vweird.f32 %v5692_v42 }
 0x274   :  { %v1332_v61 = vsub.f32 1.0, %v1331_v33  ;;  %v1204_v33 = vadd.f32 %v4004_v60, %v1157_v15  ;;  %vm1196_vm6 = vcmp.eq.f32.partialorder %v1195_v19, 8.507059e+37  ;;  %v8072_v19 = vld [vmem:[#allocation56_spill] sm:$0xff] }
 0x275   :  { %v1169_v2 = vmul.f32 %v4059_v7, %v1168_v55  ;;  %vm1340_vm15 = vcmp.eq.f32.partialorder %v1339_v9, 8.507059e+37 }
 0x276   :  { %v1333_v20 = vmul.f32 %v4061_v35, %v1332_v61 }
 0x277   :  { %v4063_v27 = vpop.eup %4062  ;;  %v1170_v10 = vadd.f32 %v4059_v7, %v1169_v2 }
 0x278   :  { %v1187_v46 = vmul.f32 %v4063_v27, %v5692_v42  ;;  %v1334_v55 = vadd.f32 %v4061_v35, %v1333_v20  ;;  %v1050_v20 = vadd.f32 %v5568_v16, %v988_v37  ;;  %vm1192_vm0 = vweird.f32 %v4063_v27 }
 0x279   :  { %v1174_v60 = vsel %vm5729_vm11, %v4059_v7, %v1170_v10  ;;  %vm1193_vm4 = vmor %vm1191_vm2, %vm1192_vm0  ;;  %v1358_v37 = vsel %vm1357_vm5, %v5684_v54, %v1354_v56  ;;  %v8062_v54 = vld [vmem:[#allocation77_spill] sm:$0xff]  ;;  %v8070_v56 = vld [vmem:[#allocation83_spill] sm:$0xff] }
 0x27a   :  { %v1188_v2 = vsub.f32 1.0, %v1187_v46  ;;  %v1338_v15 = vsel %vm1337_vm14, %v4061_v35, %v1334_v55  ;;  %v1179_v13 = vsel %vm1176_vm13, %v1178_v39, %v1174_v60  ;;  %v1361_v46 = vand.u32 2147483648, %v5635_v32  ;;  %v8064_v60 = vld [vmem:[#allocation46_spill] sm:$0xff] }
 0x27b   :  { %v1321_v1 = vpop.f32.mrf.mxu2  ;;  %v1343_v41 = vsel %vm1340_vm15, %v1342_v18, %v1338_v15  ;;  %v1205_v38 = vmul.f32 %v1204_v33, %v1179_v13  ;;  %v1359_v35 = vand.u32 2147483647, %v5635_v32  ;;  %v1198_v13 = vor.u32 1.1754944e-38, %v1197_v50  ;;  %v8065_v15 = vld [vmem:[#allocation30_spill] sm:$0xff]  ;;  %v8067_v50 = vld [vmem:[#allocation43_spill] sm:$0xff] }
 0x27c   :  { %v1189_v21 = vmul.f32 %v4063_v27, %v1188_v2  ;;  %v1368_v40 = vadd.f32 %v4005_v53, %v1321_v1  ;;  %v1362_v33 = vor.u32 1.1754944e-38, %v1361_v46  ;;  %v8063_v2 = vld [vmem:[#allocation19_spill] sm:$0xff]  ;;  %v8071_v46 = vld [vmem:[#allocation20_spill] sm:$0xff] }
 0x27d   :  { %v1206_v16 = vadd.f32 %v1205_v38, %v1050_v20  ;;  %vm1360_vm7 = vcmp.eq.f32.partialorder %v1359_v35, 8.507059e+37  ;;  %v8066_v20 = vld [vmem:[#allocation80_spill] sm:$0xff]  ;;  %v8068_v38 = vld [vmem:[#allocation51_spill] sm:$0xff]  ;;  %v8076_v35 = vld [vmem:[#allocation65_spill] sm:$0xff] }
 0x27e   :  { %v1190_v10 = vadd.f32 %v4063_v27, %v1189_v21  ;;  %v1369_v7 = vmul.f32 %v1368_v40, %v1343_v41  ;;  %v1363_v21 = vsel %vm1360_vm7, %v1362_v33, %v1358_v37  ;;  %v8069_v40 = vld [vmem:[#allocation71_spill] sm:$0xff]  ;;  %v8080_v37 = vld [vmem:[#allocation86_spill] sm:$0xff]  ;;  %v8081_v33 = vld [vmem:[#allocation49_spill] sm:$0xff] }
 0x27f   :  { %4064 = vtanh.f32 %v1206_v16  ;;  %v1372_v53 = vsub.f32 1.0, %v1363_v21  ;;  %v8074_v16 = vld [vmem:[#allocation61_spill] sm:$0xff] }
 0x280   :  { %v1194_v1 = vsel %vm1193_vm4, %v4063_v27, %v1190_v10  ;;  %v1370_v9 = vadd.f32 %v1369_v7, %v289_v14  ;;  %v1374_v27 = vmul.f32 %v1363_v21, %v5305_v11  ;;  %v8046_v11 = vld [vmem:[#allocation60_spill] sm:$0xff]  ;;  %v8073_v10 = vld [vmem:[#allocation75_spill] sm:$0xff]  ;;  %v8075_v7 = vld [vmem:[#allocation45_spill] sm:$0xff] }
 0x281   :  { %v1199_v61 = vsel %vm1196_vm6, %v1198_v13, %v1194_v1  ;;  %v8077_v13 = vld [vmem:[#allocation44_spill] sm:$0xff]  ;;  %v8078_v1 = vld [vmem:[#allocation29_spill] sm:$0xff] }
 0x282   :  { %4066 = vtanh.f32 %v1370_v9  ;;  %v1208_v42 = vsub.f32 1.0, %v1199_v61  ;;  %v1210_v32 = vmul.f32 %v1199_v61, %v5300_v6  ;;  %v8079_v9 = vld [vmem:[#allocation21_spill] sm:$0xff]  ;;  %v8083_v21 = vld [vmem:[#allocation48_spill] sm:$0xff] }
 0x283   :  { %v8082_v61 = vld [vmem:[#allocation89_spill] sm:$0xff] }
 0x285   :  { %v4065_v41 = vpop.eup %4064 }
 0x286   :  { %v1209_v55 = vmul.f32 %v4065_v41, %v1208_v42  ;;  %v8084_v42 = vld [vmem:[#allocation90_spill] sm:$0xff] }
 0x287   :  { %v8085_v41 = vld [vmem:[#allocation54_spill] sm:$0xff] }
 0x288   :  { %v4067_v58 = vpop.eup %4066  ;;  %v5753_v18 = vadd.f32 %v1210_v32, %v1209_v55  ;;  %v8086_v55 = vld [vmem:[#allocation93_spill] sm:$0xff]  ;;  %v8088_v32 = vld [vmem:[#allocation94_spill] sm:$0xff] }
 0x289   :  { %v1373_v39 = vmul.f32 %v4067_v58, %v1372_v53  ;;  %v8087_v53 = vld [vmem:[#allocation22_spill] sm:$0xff]  ;;  %v8089_v58 = vld [vmem:[#allocation59_spill] sm:$0xff] }
 0x28a   :  { %8045 = vst [vmem:[#allocation115_spill] sm:$0xff] %v5753_v18  ;;  %1556 = vmatmul.f32.vlgmr.msra.gmra.mxu2 %v5753_v18 }
 0x28b   :  { %v5755_v14 = vadd.f32 %v1374_v27, %v1373_v39  ;;  %1912 = vmatpush.msra.mxu2 %v5382_v5  ;;  %v8061_v5 = vld [vmem:[#allocation26_spill] sm:$0xff]  ;;  %v8091_v27 = vld [vmem:[#allocation97_spill] sm:$0xff] }
 0x28c   :  { %v8090_v39 = vld [vmem:[#allocation50_spill] sm:$0xff] }
 0x28d   :  { %1448 = vmatmul.f32.vlgmr.msrb.gmra.mxu3 %v5755_v14  ;;  %1468 = vmatmul.f32.vlgmr.msra.gmra.mxu0 %v5755_v14 }
 0x28e   :  { %1488 = vmatmul.f32.vlgmr.msra.gmra.mxu1 %v5755_v14  ;;  %1744 = vmatpush.msrb.mxu3 %v5307_v43  ;;  %v8048_v43 = vld [vmem:[#allocation27_spill] sm:$0xff] }
 0x28f   :  { %1872 = vmatpush.msra.mxu0 %v5363_v25  ;;  %1892 = vmatpush.msra.mxu1 %v5380_v52  ;;  %v8054_v25 = vld [vmem:[#allocation34_spill] sm:$0xff]  ;;  %v8060_v52 = vld [vmem:[#allocation41_spill] sm:$0xff] }
 0x290   :  { %1745 = vmatpush.msrb.mxu3 %v5313_v31  ;;  %1913 = vmatpush.msra.mxu2 %v5394_v44  ;;  %v8049_v31 = vld [vmem:[#allocation23_spill] sm:$0xff]  ;;  %v8059_v44 = vld [vmem:[#allocation72_spill] sm:$0xff] }
 0x291   :  { %1873 = vmatpush.msra.mxu0 %v5365_v59  ;;  %1893 = vmatpush.msra.mxu1 %v5392_v12  ;;  %v8053_v12 = vld [vmem:[#allocation24_spill] sm:$0xff]  ;;  %v8056_v59 = vld [vmem:[#allocation73_spill] sm:$0xff] }
 0x292   :  { %1746 = vmatpush.msrb.mxu3 %v5316_v29  ;;  %1914 = vmatpush.msra.mxu2 %v5406_v23  ;;  %v8047_v23 = vld [vmem:[#allocation70_spill] sm:$0xff] }
 0x293   :  { %1740 = vmatmul.f32.vlgmr.msrb.gmra.mxu2 %v5755_v14  ;;  %1874 = vmatpush.msra.mxu0 %v5368_v3  ;;  %v8050_v29 = vld [vmem:[#allocation66_spill] sm:$0xff]  ;;  %v8057_v3 = vld [vmem:[#allocation25_spill] sm:$0xff] }
 0x294   :  { %1747 = vmatpush.msrb.mxu3 %v5319_v0  ;;  %1894 = vmatpush.msra.mxu1 %v5404_v48  ;;  %v8051_v0 = vld [vmem:[#allocation18_spill] sm:$0xff]  ;;  %v8052_v48 = vld [vmem:[#allocation69_spill] sm:$0xff] }
 0x295   :  { %1576 = vmatmul.f32.vlgmr.msra.gmra.mxu3 %v5753_v18  ;;  %1596 = vmatmul.f32.vlgmr.msrb.gmra.mxu0 %v5753_v18 }
 0x296   :  { %1720 = vmatmul.f32.vlgmr.msrb.gmra.mxu1 %v5755_v14  ;;  %1748 = vmatpush.msrb.mxu3 %v5322_v8  ;;  %v8055_v8 = vld [vmem:[#allocation40_spill] sm:$0xff] }
 0x297   :  { %1875 = vmatpush.msra.mxu0 %v5371_v47  ;;  %1895 = vmatpush.msra.mxu1 %v8046_v11  ;;  %v8058_v47 = vld [vmem:[#allocation39_spill] sm:$0xff]  ;;  %v8092_v11 = vld [vmem:[#allocation33_spill] sm:$0xff] }
 0x298   :  { %1749 = vmatpush.msrb.mxu3 %v8047_v23  ;;  %1915 = vmatpush.msra.mxu2 %v8048_v43  ;;  %v8093_v23 = vld [vmem:[#allocation98_spill] sm:$0xff]  ;;  %v8094_v43 = vld [vmem:[#allocation52_spill] sm:$0xff] }
 0x299   :  { %1876 = vmatpush.msra.mxu0 %v8049_v31  ;;  %1896 = vmatpush.msra.mxu1 %v8050_v29  ;;  %v8095_v31 = vld [vmem:[#allocation88_spill] sm:$0xff]  ;;  %v8096_v29 = vld [vmem:[#allocation101_spill] sm:$0xff] }
 0x29a   :  { %1750 = vmatpush.msrb.mxu3 %v8051_v0  ;;  %1916 = vmatpush.msra.mxu2 %v8052_v48  ;;  %v8097_v0 = vld [vmem:[#allocation55_spill] sm:$0xff]  ;;  %v8098_v48 = vld [vmem:[#allocation92_spill] sm:$0xff] }
 0x29b   :  { %1877 = vmatpush.msra.mxu0 %v8053_v12  ;;  %1897 = vmatpush.msra.mxu1 %v8054_v25  ;;  %v8099_v12 = vld [vmem:[#allocation58_spill] sm:$0xff]  ;;  %v8100_v25 = vld [vmem:[#allocation96_spill] sm:$0xff] }
 0x29c   :  { %1751 = vmatpush.msrb.mxu3 %v8055_v8  ;;  %1917 = vmatpush.msra.mxu2 %v8056_v59  ;;  %v8101_v8 = vld [vmem:[#allocation62_spill] sm:$0xff]  ;;  %v8102_v59 = vld [vmem:[#allocation100_spill] sm:$0xff] }
 0x29d   :  { %1878 = vmatpush.msra.mxu0 %v8057_v3  ;;  %1898 = vmatpush.msra.mxu1 %v8058_v47  ;;  %v8103_v3 = vld [vmem:[#allocation31_spill] sm:$0xff]  ;;  %v8105_v47 = vld [vmem:[#allocation37_spill] sm:$0xff] }
 0x29e   :  { %1752 = vmatpush.msrb.mxu3 %v8059_v44  ;;  %1918 = vmatpush.msra.mxu2 %v8060_v52  ;;  %v8107_v44 = vld [vmem:[#allocation76_spill] sm:$0xff]  ;;  %v8109_v52 = vld [vmem:[#allocation79_spill] sm:$0xff] }
 0x29f   :  { %1879 = vmatpush.msra.mxu0 %v8061_v5  ;;  %1899 = vmatpush.msra.mxu1 %v8062_v54  ;;  %v8111_v5 = vld [vmem:[#allocation81_spill] sm:$0xff]  ;;  %v8118_v54 = vld [vmem:[#allocation110_spill] sm:$0xff] }
 0x2a0   :  { %1753 = vmatpush.msrb.mxu3 %v8063_v2  ;;  %1919 = vmatpush.msra.mxu2 %v8064_v60  ;;  %v8121_v2 = vld [vmem:[#allocation111_spill] sm:$0xff]  ;;  %v8124_v60 = vld [vmem:[#allocation112_spill] sm:$0xff] }
 0x2a1   :  { %1880 = vmatpush.msra.mxu0 %v8065_v15  ;;  %1900 = vmatpush.msra.mxu1 %v8066_v20  ;;  %v8126_v15 = vld [vmem:[#allocation113_spill] sm:$0xff]  ;;  %v8127_v20 = vld [vmem:[#allocation114_spill] sm:$0xff] }
 0x2a2   :  { %1754 = vmatpush.msrb.mxu3 %v8067_v50  ;;  %1920 = vmatpush.msra.mxu2 %v8068_v38  ;;  %v5878_v50 = vld [vmem:[#allocation8 + $0x170] sm:$0xff] }
 0x2a3   :  { %1881 = vmatpush.msra.mxu0 %v8069_v40  ;;  %1901 = vmatpush.msra.mxu1 %v8070_v56  ;;  %v5883_v40 = vld [vmem:[#allocation8 + $0x168] sm:$0xff]  ;;  %v5888_v56 = vld [vmem:[%s7505_s6] sm:$0x7] }
 0x2a4   :  { %1755 = vmatpush.msrb.mxu3 %v8071_v46  ;;  %1921 = vmatpush.msra.mxu2 %v8072_v19  ;;  %v5891_v46 = vld [vmem:[#allocation8 + $0x158] sm:$0xff]  ;;  %v1426_v19 = vperm.slane %v5888_v56, 0 }
 0x2a5   :  { %1882 = vmatpush.msra.mxu0 %v8073_v10  ;;  %1902 = vmatpush.msra.mxu1 %v8074_v16  ;;  %v5895_v10 = vld [vmem:[#allocation8 + $0x150] sm:$0xff] }
 0x2a6   :  { %1756 = vmatpush.msrb.mxu3 %v8075_v7  ;;  %1922 = vmatpush.msra.mxu2 %v8076_v35  ;;  %v5898_v7 = vld [vmem:[#allocation8 + $0x140] sm:$0xff]  ;;  %v5901_v35 = vld [vmem:[#allocation8 + $0x138] sm:$0xff] }
 0x2a7   :  { %1883 = vmatpush.msra.mxu0 %v8077_v13  ;;  %1903 = vmatpush.msra.mxu1 %v8078_v1  ;;  %v5904_v1 = vld [vmem:[#allocation8 + $0x128] sm:$0xff] }
 0x2a8   :  { %1757 = vmatpush.msrb.mxu3 %v8079_v9  ;;  %1923 = vmatpush.msra.mxu2 %v8080_v37  ;;  %v5907_v37 = vld [vmem:[#allocation8 + $0x120] sm:$0xff] }
 0x2a9   :  { %1884 = vmatpush.msra.mxu0 %v8081_v33  ;;  %1904 = vmatpush.msra.mxu1 %v8082_v61  ;;  %v5910_v33 = vld [vmem:[#allocation8 + $0x110] sm:$0xff]  ;;  %v1427_v61 = vperm.slane %v5888_v56, 1 }
 0x2aa   :  { %1758 = vmatpush.msrb.mxu3 %v8083_v21  ;;  %1924 = vmatpush.msra.mxu2 %v8084_v42 }
 0x2ab   :  { %1885 = vmatpush.msra.mxu0 %v8085_v41  ;;  %1905 = vmatpush.msra.mxu1 %v8086_v55  ;;  %v5914_v41 = vld [vmem:[#allocation8 + $0x108] sm:$0xff] }
 0x2ac   :  { %1759 = vmatpush.msrb.mxu3 %v8087_v53  ;;  %1925 = vmatpush.msra.mxu2 %v8088_v32  ;;  %v8128_v53 = vld [vmem:[#allocation47_spill] sm:$0xff] }
 0x2ad   :  { %1760 = vmatmul.f32.vlgmr.msrb.gmra.mxu3 %v5755_v14  ;;  %1886 = vmatpush.msra.mxu0 %v8089_v58  ;;  %v5918_v58 = vld [vmem:[#allocation8 + $0xf8] sm:$0xff] }
 0x2ae   :  { %1980 = vmatpush.msra.mxu3 %v8090_v39  ;;  %1906 = vmatpush.msra.mxu1 %v8091_v27  ;;  %v8129_v39 = vld [vmem:[#allocation82_spill] sm:$0xff]  ;;  %v8130_v27 = vld [vmem:[#allocation63_spill] sm:$0xff] }
 0x2af   :  { %1887 = vmatpush.msra.mxu0 %v8092_v11  ;;  %1926 = vmatpush.msra.mxu2 %v8093_v23  ;;  %v251_v11 = vadd.f32 %v8130_v27, %v8129_v39 }
 0x2b0   :  { %1981 = vmatpush.msra.mxu3 %v8094_v43  ;;  %1907 = vmatpush.msra.mxu1 %v8096_v29  ;;  %v5923_v43 = vld [vmem:[#allocation8 + $0xf0] sm:$0xff] }
 0x2b1   :  { %2000 = vmatpush.msrb.mxu0 %v8095_v31  ;;  %1927 = vmatpush.msra.mxu2 %v5566_v63  ;;  %v8104_v63 = vld [vmem:[#allocation102_spill] sm:$0xff] }
 0x2b2   :  { %1982 = vmatpush.msra.mxu3 %v8097_v0  ;;  %2020 = vmatpush.msrb.mxu1 %v5574_v4  ;;  %v8106_v4 = vld [vmem:[#allocation103_spill] sm:$0xff] }
 0x2b3   :  { %2001 = vmatpush.msrb.mxu0 %v8098_v48  ;;  %2144 = vmatpush.msrb.mxu2 %v5883_v40  ;;  %v5926_v0 = vld [vmem:[#allocation8 + $0xe0] sm:$0xff] }
 0x2b4   :  { %1983 = vmatpush.msra.mxu3 %v8099_v12  ;;  %2021 = vmatpush.msrb.mxu1 %v5588_v57  ;;  %v8108_v57 = vld [vmem:[#allocation104_spill] sm:$0xff] }
 0x2b5   :  { %2002 = vmatpush.msrb.mxu0 %v8100_v25  ;;  %2145 = vmatpush.msrb.mxu2 %v5895_v10  ;;  %v5929_v25 = vld [vmem:[#allocation8 + $0xd8] sm:$0xff] }
 0x2b6   :  { %1984 = vmatpush.msra.mxu3 %v8101_v8  ;;  %2022 = vmatpush.msrb.mxu1 %v5596_v28  ;;  %v8110_v28 = vld [vmem:[#allocation105_spill] sm:$0xff] }
 0x2b7   :  { %2003 = vmatpush.msrb.mxu0 %v8102_v59  ;;  %2146 = vmatpush.msrb.mxu2 %v5901_v35  ;;  %v5932_v59 = vld [vmem:[#allocation8 + $0xc8] sm:$0xff] }
 0x2b8   :  { %1985 = vmatpush.msra.mxu3 %v8103_v3  ;;  %2023 = vmatpush.msrb.mxu1 %v5604_v26  ;;  %v8112_v26 = vld [vmem:[#allocation84_spill] sm:$0xff] }
 0x2b9   :  { %2004 = vmatpush.msrb.mxu0 %v8104_v63  ;;  %2147 = vmatpush.msrb.mxu2 %v5907_v37 }
 0x2ba   :  { %1986 = vmatpush.msra.mxu3 %v8105_v47  ;;  %2024 = vmatpush.msrb.mxu1 %v5613_v34  ;;  %v8113_v34 = vld [vmem:[#allocation68_spill] sm:$0xff]  ;;  %v5935_v47 = vld [vmem:[#allocation8 + $0xc0] sm:$0xff] }
 0x2bb   :  { %2005 = vmatpush.msrb.mxu0 %v8106_v4  ;;  %2148 = vmatpush.msrb.mxu2 %v5914_v41  ;;  %v5938_v4 = vld [vmem:[#allocation8 + $0xb0] sm:$0xff] }
 0x2bc   :  { %1987 = vmatpush.msra.mxu3 %v8107_v44  ;;  %2025 = vmatpush.msrb.mxu1 %v5623_v30  ;;  %v8114_v30 = vld [vmem:[#allocation87_spill] sm:$0xff] }
 0x2bd   :  { %2006 = vmatpush.msrb.mxu0 %v8108_v57  ;;  %2149 = vmatpush.msrb.mxu2 %v5923_v43  ;;  %v5941_v57 = vld [vmem:[#allocation8 + $0xa8] sm:$0xff] }
 0x2be   :  { %1988 = vmatpush.msra.mxu3 %v8109_v52  ;;  %2026 = vmatpush.msrb.mxu1 %v5631_v62  ;;  %v8115_v62 = vld [vmem:[#allocation108_spill] sm:$0xff]  ;;  %v5944_v52 = vld [vmem:[#allocation8 + $0x98] sm:$0xff] }
 0x2bf   :  { %2007 = vmatpush.msrb.mxu0 %v8110_v28  ;;  %2150 = vmatpush.msrb.mxu2 %v5929_v25 }
 0x2c0   :  { %1989 = vmatpush.msra.mxu3 %v8111_v5  ;;  %2027 = vmatpush.msrb.mxu1 %v5641_v45  ;;  %v8117_v45 = vld [vmem:[#allocation35_spill] sm:$0xff]  ;;  %v5947_v5 = vld [vmem:[#allocation8 + $0x90] sm:$0xff] }
 0x2c1   :  { %2008 = vmatpush.msrb.mxu0 %v5611_v22  ;;  %v8116_v22 = vld [vmem:[#allocation91_spill] sm:$0xff]  ;;  %2151 = vmatpush.msrb.mxu2 %v5935_v47 }
 0x2c2   :  { %1990 = vmatpush.msra.mxu3 %v8112_v26  ;;  %2028 = vmatpush.msrb.mxu1 %v5649_v17  ;;  %v8120_v17 = vld [vmem:[#allocation106_spill] sm:$0xff] }
 0x2c3   :  { %2009 = vmatpush.msrb.mxu0 %v5621_v51  ;;  %v8119_v51 = vld [vmem:[#allocation95_spill] sm:$0xff]  ;;  %2152 = vmatpush.msrb.mxu2 %v5941_v57 }
 0x2c4   :  { %1991 = vmatpush.msra.mxu3 %v8113_v34  ;;  %2029 = vmatpush.msrb.mxu1 %v5658_v49  ;;  %v8123_v49 = vld [vmem:[#allocation107_spill] sm:$0xff] }
 0x2c5   :  { %2010 = vmatpush.msrb.mxu0 %v5629_v24  ;;  %v8122_v24 = vld [vmem:[#allocation99_spill] sm:$0xff]  ;;  %2153 = vmatpush.msrb.mxu2 %v5947_v5 }
 0x2c6   :  { %1992 = vmatpush.msra.mxu3 %v8114_v30  ;;  %2030 = vmatpush.msrb.mxu1 %v8115_v62  ;;  %v5952_v30 = vld [vmem:[#allocation8 + $0x80] sm:$0xff] }
 0x2c7   :  { %2011 = vmatpush.msrb.mxu0 %v5639_v36  ;;  %v8125_v36 = vld [vmem:[#allocation109_spill] sm:$0xff] }
 0x2c8   :  { %1993 = vmatpush.msra.mxu3 %v8116_v22  ;;  %2031 = vmatpush.msrb.mxu1 %v8118_v54  ;;  %v5957_v22 = vld [vmem:[#allocation8 + $0x78] sm:$0xff]  ;;  %v5963_v54 = vld [vmem:[#allocation8 + $0x60] sm:$0xff] }
 0x2c9   :  { %2012 = vmatpush.msrb.mxu0 %v8117_v45  ;;  %2154 = vmatpush.msrb.mxu2 %v5957_v22  ;;  %v5961_v45 = vld [vmem:[#allocation8 + $0x68] sm:$0xff] }
 0x2ca   :  { %1994 = vmatpush.msra.mxu3 %v8119_v51  ;;  %2032 = vmatpush.msrb.mxu1 %v8121_v2  ;;  %v5970_v2 = vld [vmem:[#allocation8 + $0x50] sm:$0xff] }
 0x2cb   :  { %2013 = vmatpush.msrb.mxu0 %v8120_v17  ;;  %2155 = vmatpush.msrb.mxu2 %v5963_v54 }
 0x2cc   :  { %1995 = vmatpush.msra.mxu3 %v8122_v24  ;;  %2033 = vmatpush.msrb.mxu1 %v8124_v60  ;;  %v5975_v60 = vld [vmem:[#allocation8 + $0x38] sm:$0xff] }
 0x2cd   :  { %2014 = vmatpush.msrb.mxu0 %v8123_v49  ;;  %v5973_v49 = vld [vmem:[#allocation8 + $0x48] sm:$0xff] }
 0x2ce   :  { %2034 = vmatpush.msrb.mxu1 %v8126_v15  ;;  %2164 = vmatpush.msrb.mxu3 %v5878_v50  ;;  %v5982_v15 = vld [vmem:[#allocation8 + $0x30] sm:$0xff] }
 0x2cf   :  { %2015 = vmatpush.msrb.mxu0 %v8125_v36  ;;  %2156 = vmatpush.msrb.mxu2 %v5973_v49 }
 0x2d0   :  { %2035 = vmatpush.msrb.mxu1 %v8127_v20  ;;  %2165 = vmatpush.msrb.mxu3 %v5891_v46  ;;  %v5984_v20 = vld [vmem:[#allocation8 + $0x20] sm:$0xff] }
 0x2d1   :  { %2157 = vmatpush.msrb.mxu2 %v5982_v15 }
 0x2d2   :  { %2166 = vmatpush.msrb.mxu3 %v5898_v7 }
 0x2d4   :  { %2167 = vmatpush.msrb.mxu3 %v5904_v1 }
 0x2d6   :  { %2168 = vmatpush.msrb.mxu3 %v5910_v33 }
 0x2d8   :  { %2169 = vmatpush.msrb.mxu3 %v5918_v58 }
 0x2da   :  { %2170 = vmatpush.msrb.mxu3 %v5926_v0 }
 0x2dc   :  { %2171 = vmatpush.msrb.mxu3 %v5932_v59 }
 0x2de   :  { %2172 = vmatpush.msrb.mxu3 %v5938_v4 }
 0x2e0   :  { %2173 = vmatpush.msrb.mxu3 %v5944_v52 }
 0x2e2   :  { %2174 = vmatpush.msrb.mxu3 %v5952_v30 }
 0x2e4   :  { %2175 = vmatpush.msrb.mxu3 %v5961_v45 }
 0x2e6   :  { %2176 = vmatpush.msrb.mxu3 %v5970_v2 }
 0x2e8   :  { %2177 = vmatpush.msrb.mxu3 %v5975_v60 }
 0x2ea   :  { %2178 = vmatpush.msrb.mxu3 %v5984_v20 }
 0x30a   :  { %v1469_v55 = vpop.f32.mrf.mxu0 }
 0x30b   :  { %v5880_v38 = vpop.f32.mrf.mxu1  ;;  %v1470_v48 = vadd.f32 %v1469_v55, %v1427_v61  ;;  %v5992_v61 = vld [vmem:[#allocation8 + $0x8] sm:$0xff] }
 0x30c   :  { %2179 = vmatpush.msrb.mxu3 %v5992_v61 }
 0x30d   :  { %v1557_v16 = vpop.f32.mrf.mxu2 }
 0x310   :  { %v1449_v13 = vpop.f32.mrf.mxu3 }
 0x311   :  { %v1450_v9 = vadd.f32 %v1449_v13, %v1426_v19 }
 0x313   :  { %v1601_v21 = vadd.f32 %v1557_v16, %v1450_v9  ;;  %v1721_v42 = vpop.f32.mrf.mxu1  ;;  %v5990_v9 = vld [vmem:[#allocation8 + $0x18] sm:$0xff] }
 0x314   :  { %v1765_v32 = vadd.f32 %v1721_v42, %v8128_v53  ;;  %v4006_v42 = vld [vmem:[%s7507_s8] ss:$0 sm:$0xff]  ;;  %2158 = vmatpush.msrb.mxu2 %v5990_v9  ;;  %v8131_v53 = vld [vmem:[#allocation85_spill] sm:$0xff] }
 0x315   :  { %v3955_v23 = vmul.f32 -1.442695, %v1601_v21  ;;  %v1428_v21 = vperm.slane %v5888_v56, 2 }
 0x316   :  { %v3957_v31 = vmul.f32 -1.442695, %v1765_v32  ;;  %v1741_v29 = vpop.f32.mrf.mxu2  ;;  %v8132_v32 = vld [vmem:[#allocation17_spill] sm:$0xff] }
 0x317   :  { %4068 = vpow2.f32 %v3955_v23  ;;  %v1785_v12 = vadd.f32 %v1741_v29, %v251_v11  ;;  %v292_v27 = vadd.f32 %v8132_v32, %v8131_v53  ;;  %v1597_v11 = vpop.f32.mrf.mxu0  ;;  %v4007_v32 = vld [vmem:[%s7503_s4] ss:$0 sm:$0xff] }
 0x318   :  { %4070 = vpow2.f32 %v3957_v31  ;;  %v1577_v8 = vpop.f32.mrf.mxu3  ;;  %v6003_v31 = vld [vmem:[#allocation8] sm:$0xff] }
 0x319   :  { %v3958_v3 = vmul.f32 -1.442695, %v1785_v12  ;;  %v1621_v63 = vadd.f32 %v1577_v8, %v1470_v48  ;;  %8133 = vst [vmem:[#allocation60_spill] sm:$0xff] %v6003_v31  ;;  %2159 = vmatpush.msrb.mxu2 %v6003_v31 }
 0x31b   :  { %4072 = vpow2.f32 %v3958_v3  ;;  %v3956_v44 = vmul.f32 -1.442695, %v1621_v63 }
 0x31d   :  { %v4069_v28 = vpop.eup %4068  ;;  %4074 = vpow2.f32 %v3956_v44 }
 0x31e   :  { %v4071_v26 = vpop.eup %4070  ;;  %v5949_v34 = vadd.f32 1.0, %v4069_v28  ;;  %v1490_v28 = vadd.f32 %v5880_v38, %v1428_v21 }
 0x31f   :  { %v5954_v62 = vadd.f32 1.0, %v4071_v26  ;;  %v1644_v26 = vadd.f32 %v4006_v42, %v1597_v11 }
 0x320   :  { %4076 = vrcp.f32 %v5949_v34  ;;  %v1615_v56 = vand.u32 2147483647, %v5949_v34  ;;  %v1617_v48 = vand.u32 2147483648, %v5949_v34  ;;  %vm1611_vm10 = vweird.f32 %v5949_v34 }
 0x321   :  { %v4073_v51 = vpop.eup %4072  ;;  %4078 = vrcp.f32 %v5954_v62  ;;  %v1779_v8 = vand.u32 2147483647, %v5954_v62  ;;  %v1781_v44 = vand.u32 2147483648, %v5954_v62  ;;  %vm1775_vm11 = vweird.f32 %v5954_v62 }
 0x322   :  { %v5967_v17 = vadd.f32 1.0, %v4073_v51  ;;  %vm1616_vm13 = vcmp.eq.f32.partialorder %v1615_v56, 8.507059e+37 }
 0x323   :  { %v4075_v24 = vpop.eup %4074  ;;  %vm1780_vm15 = vcmp.eq.f32.partialorder %v1779_v8, 8.507059e+37  ;;  %v1782_v11 = vor.u32 1.1754944e-38, %v1781_v44  ;;  %v6083_v44 = vld [vmem:[#allocation8 + $0x88] sm:$0xff] }
 0x324   :  { %4080 = vrcp.f32 %v5967_v17  ;;  %v5979_v36 = vadd.f32 1.0, %v4075_v24  ;;  %vm1795_vm2 = vweird.f32 %v5967_v17  ;;  %8143 = vst [vmem:[#allocation34_spill] sm:$0xff] %v6083_v44 }
 0x326   :  { %v4077_v19 = vpop.eup %4076  ;;  %4082 = vrcp.f32 %v5979_v36  ;;  %vm1631_vm4 = vweird.f32 %v5979_v36 }
 0x327   :  { %v4079_v16 = vpop.eup %4078  ;;  %v1607_v13 = vmul.f32 %v4077_v19, %v5949_v34  ;;  %vm1612_vm8 = vweird.f32 %v4077_v19 }
 0x328   :  { %v1771_v55 = vmul.f32 %v4079_v16, %v5954_v62  ;;  %vm1776_vm9 = vweird.f32 %v4079_v16  ;;  %vm1613_vm12 = vmor %vm1611_vm10, %vm1612_vm8  ;;  %v1637_v62 = vand.u32 2147483648, %v5979_v36 }
 0x329   :  { %v1608_v23 = vsub.f32 1.0, %v1607_v13  ;;  %vm1777_vm14 = vmor %vm1775_vm11, %vm1776_vm9 }
 0x32a   :  { %v6005_v29 = vpop.eup %4080  ;;  %v1772_v12 = vsub.f32 1.0, %v1771_v55 }
 0x32b   :  { %v1609_v3 = vmul.f32 %v4077_v19, %v1608_v23  ;;  %v1791_v63 = vmul.f32 %v6005_v29, %v5967_v17  ;;  %v1618_v23 = vor.u32 1.1754944e-38, %v1617_v48  ;;  %vm1796_vm0 = vweird.f32 %v6005_v29 }
 0x32c   :  { %v1773_v51 = vmul.f32 %v4079_v16, %v1772_v12  ;;  %v4083_v24 = vpop.eup %4082  ;;  %vm6028_vm3 = vmor %vm1795_vm2, %vm1796_vm0 }
 0x32d   :  { %v1610_v13 = vadd.f32 %v4077_v19, %v1609_v3  ;;  %v1792_v55 = vsub.f32 1.0, %v1791_v63  ;;  %v1627_v6 = vmul.f32 %v4083_v24, %v5979_v36  ;;  %vm1632_vm1 = vweird.f32 %v4083_v24 }
 0x32e   :  { %v1774_v38 = vadd.f32 %v4079_v16, %v1773_v51  ;;  %vm1633_vm5 = vmor %vm1631_vm4, %vm1632_vm1 }
 0x32f   :  { %v1614_v21 = vsel %vm1613_vm12, %v4077_v19, %v1610_v13  ;;  %v1793_v42 = vmul.f32 %v6005_v29, %v1792_v55  ;;  %v1628_v12 = vsub.f32 1.0, %v1627_v6  ;;  %v1635_v19 = vand.u32 2147483647, %v5979_v36 }
 0x330   :  { %v1619_v34 = vsel %vm1616_vm13, %v1618_v23, %v1614_v21  ;;  %v1761_v3 = vpop.f32.mrf.mxu3  ;;  %v1778_v63 = vsel %vm1777_vm14, %v4079_v16, %v1774_v38  ;;  %v1801_v6 = vand.u32 2147483648, %v5967_v17  ;;  %v1799_v16 = vand.u32 2147483647, %v5967_v17 }
 0x331   :  { %v1645_v53 = vmul.f32 %v1644_v26, %v1619_v34  ;;  %v1783_v56 = vsel %vm1780_vm15, %v1782_v11, %v1778_v63  ;;  %v1808_v48 = vadd.f32 %v4007_v32, %v1761_v3  ;;  %v1794_v31 = vadd.f32 %v6005_v29, %v1793_v42 }
 0x332   :  { %v1629_v51 = vmul.f32 %v4083_v24, %v1628_v12  ;;  %v1638_v55 = vor.u32 1.1754944e-38, %v1637_v62  ;;  %vm1636_vm6 = vcmp.eq.f32.partialorder %v1635_v19, 8.507059e+37  ;;  %v1802_v23 = vor.u32 1.1754944e-38, %v1801_v6  ;;  %v6071_v19 = vld [vmem:[#allocation8 + $0xe8] sm:$0xff]  ;;  %v6077_v6 = vld [vmem:[#allocation8 + $0xb8] sm:$0xff] }
 0x333   :  { %v1646_v13 = vadd.f32 %v1645_v53, %v1490_v28  ;;  %v1809_v8 = vmul.f32 %v1808_v48, %v1783_v56  ;;  %v1798_v53 = vsel %vm6028_vm3, %v6005_v29, %v1794_v31  ;;  %vm1800_vm7 = vcmp.eq.f32.partialorder %v1799_v16, 8.507059e+37  ;;  %v6044_v31 = vld [vmem:[#allocation8 + $0x178] sm:$0xff]  ;;  %v6048_v29 = vld [vmem:[#allocation8 + $0x160] sm:$0xff]  ;;  %v6058_v56 = vld [vmem:[#allocation8 + $0x130] sm:$0xff]  ;;  %8139 = vst [vmem:[#allocation66_spill] sm:$0xff] %v6071_v19 }
 0x334   :  { %v1630_v26 = vadd.f32 %v4083_v24, %v1629_v51  ;;  %v1803_v21 = vsel %vm1800_vm7, %v1802_v23, %v1798_v53  ;;  %v6062_v48 = vld [vmem:[#allocation8 + $0x118] sm:$0xff]  ;;  %v6067_v51 = vld [vmem:[#allocation8 + $0x100] sm:$0xff]  ;;  %8141 = vst [vmem:[#allocation69_spill] sm:$0xff] %v6077_v6  ;;  %v6086_v16 = vld [vmem:[#allocation8 + $0x70] sm:$0xff] }
 0x335   :  { %4084 = vtanh.f32 %v1646_v13  ;;  %v1810_v32 = vadd.f32 %v1809_v8, %v292_v27  ;;  %v1812_v11 = vsub.f32 1.0, %v1803_v21  ;;  %v1814_v27 = vmul.f32 %v1803_v21, %v5755_v14  ;;  %v6054_v14 = vld [vmem:[#allocation8 + $0x148] sm:$0xff]  ;;  %8137 = vst [vmem:[#allocation27_spill] sm:$0xff] %v6062_v48  ;;  %v6074_v13 = vld [vmem:[#allocation8 + $0xd0] sm:$0xff]  ;;  %v6080_v8 = vld [vmem:[#allocation8 + $0xa0] sm:$0xff] }
 0x336   :  { %v1634_v28 = vsel %vm1633_vm5, %v4083_v24, %v1630_v26  ;;  %v6050_v24 = vld [vmem:[#allocation9 + $0x168] sm:$0xff]  ;;  %8138 = vst [vmem:[#allocation23_spill] sm:$0xff] %v6067_v51  ;;  %v6089_v26 = vld [vmem:[#allocation8 + $0x58] sm:$0xff]  ;;  %v6098_v53 = vld [vmem:[#allocation8 + $0x10] sm:$0xff] }
 0x337   :  { %4086 = vtanh.f32 %v1810_v32  ;;  %v1639_v38 = vsel %vm1636_vm6, %v1638_v55, %v1634_v28  ;;  %8140 = vst [vmem:[#allocation18_spill] sm:$0xff] %v6074_v13  ;;  %v6092_v55 = vld [vmem:[#allocation8 + $0x40] sm:$0xff]  ;;  %v6095_v32 = vld [vmem:[#allocation8 + $0x28] sm:$0xff]  ;;  %v6106_v23 = vld [vmem:[#allocation9 + $0x150] sm:$0xff] }
 0x338   :  { %v1648_v42 = vsub.f32 1.0, %v1639_v38  ;;  %v1650_v36 = vmul.f32 %v1639_v38, %v5753_v18  ;;  %8142 = vst [vmem:[#allocation24_spill] sm:$0xff] %v6080_v8  ;;  %v6101_v28 = vld [vmem:[#allocation11 + $0x168] sm:$0xff]  ;;  %v6108_v38 = vld [vmem:[#allocation11 + $0x150] sm:$0xff]  ;;  %v6112_v21 = vld [vmem:[#allocation9 + $0x138] sm:$0xff] }
 0x339   :  { %8144 = vst [vmem:[#allocation40_spill] sm:$0xff] %v6086_v16  ;;  %v6138_v18 = vld [vmem:[#allocation9 + $0x158] sm:$0xff] }
 0x33a   :  { %8145 = vst [vmem:[#allocation73_spill] sm:$0xff] %v6089_v26 }
 0x33b   :  { %v4085_v17 = vpop.eup %4084  ;;  %8146 = vst [vmem:[#allocation25_spill] sm:$0xff] %v6092_v55 }
 0x33c   :  { %v1649_v34 = vmul.f32 %v4085_v17, %v1648_v42  ;;  %8147 = vst [vmem:[#allocation39_spill] sm:$0xff] %v6095_v32  ;;  %v6114_v42 = vld [vmem:[#allocation11 + $0x138] sm:$0xff]  ;;  %v6116_v17 = vld [vmem:[#allocation9 + $0x120] sm:$0xff] }
 0x33d   :  { %v4087_v12 = vpop.eup %4086  ;;  %8148 = vst [vmem:[#allocation72_spill] sm:$0xff] %v6098_v53 }
 0x33e   :  { %v1813_v62 = vmul.f32 %v4087_v12, %v1812_v11  ;;  %v6039_v3 = vadd.f32 %v1650_v36, %v1649_v34  ;;  %8149 = vst [vmem:[#allocation41_spill] sm:$0xff] %v6101_v28  ;;  %v6118_v11 = vld [vmem:[#allocation11 + $0x120] sm:$0xff]  ;;  %v6124_v34 = vld [vmem:[#allocation9 + $0x108] sm:$0xff]  ;;  %v6126_v36 = vld [vmem:[#allocation9 + $0x170] sm:$0xff] }
 0x33f   :  { %8150 = vst [vmem:[#allocation26_spill] sm:$0xff] %v6108_v38  ;;  %v6128_v12 = vld [vmem:[#allocation9 + $0x178] sm:$0xff] }
 0x340   :  { %8136 = vst [vmem:[#allocation70_spill] sm:$0xff] %v6039_v3  ;;  %v6041_v63 = vadd.f32 %v1814_v27, %v1813_v62  ;;  %1996 = vmatmul.f32.vlgmr.msra.gmra.mxu3 %v6039_v3  ;;  %v6132_v62 = vld [vmem:[#allocation11 + $0x108] sm:$0xff]  ;;  %v6136_v27 = vld [vmem:[#allocation9 + $0xf0] sm:$0xff] }
 0x341   :  { %8151 = vst [vmem:[#allocation77_spill] sm:$0xff] %v6114_v42  ;;  %2352 = vmatpush.msra.mxu3 %v6128_v12 }
 0x342   :  { %1888 = vmatmul.f32.vlgmr.msra.gmra.mxu0 %v6041_v63  ;;  %1908 = vmatmul.f32.vlgmr.msra.gmra.mxu1 %v6041_v63  ;;  %8152 = vst [vmem:[#allocation19_spill] sm:$0xff] %v6116_v17 }
 0x343   :  { %1928 = vmatmul.f32.vlgmr.msra.gmra.mxu2 %v6041_v63  ;;  %2184 = vmatpush.msra.mxu0 %v6044_v31  ;;  %8153 = vst [vmem:[#allocation46_spill] sm:$0xff] %v6118_v11 }
 0x344   :  { %2312 = vmatpush.msra.mxu1 %v6050_v24  ;;  %8154 = vst [vmem:[#allocation30_spill] sm:$0xff] %v6124_v34  ;;  %2332 = vmatpush.msra.mxu2 %v6126_v36 }
 0x345   :  { %2185 = vmatpush.msra.mxu0 %v6048_v29  ;;  %8155 = vst [vmem:[#allocation80_spill] sm:$0xff] %v6132_v62 }
 0x346   :  { %2313 = vmatpush.msra.mxu1 %v6106_v23  ;;  %8156 = vst [vmem:[#allocation43_spill] sm:$0xff] %v6136_v27  ;;  %2333 = vmatpush.msra.mxu2 %v6138_v18 }
 0x347   :  { %2186 = vmatpush.msra.mxu0 %v6054_v14 }
 0x348   :  { %2180 = vmatmul.f32.vlgmr.msrb.gmra.mxu3 %v6041_v63  ;;  %2314 = vmatpush.msra.mxu1 %v6112_v21 }
 0x349   :  { %2187 = vmatpush.msra.mxu0 %v6058_v56 }
 0x34a   :  { %2016 = vmatmul.f32.vlgmr.msrb.gmra.mxu0 %v6039_v3  ;;  %2036 = vmatmul.f32.vlgmr.msrb.gmra.mxu1 %v6039_v3 }
 0x34b   :  { %2160 = vmatmul.f32.vlgmr.msrb.gmra.mxu2 %v6041_v63  ;;  %2188 = vmatpush.msra.mxu0 %v6062_v48 }
 0x34c   :  { %2315 = vmatpush.msra.mxu1 %v6116_v17 }
 0x34d   :  { %2189 = vmatpush.msra.mxu0 %v6067_v51  ;;  %v6253_v51 = vld [vmem:[%s7505_s6] sm:$0x7] }
 0x34e   :  { %2316 = vmatpush.msra.mxu1 %v6124_v34  ;;  %v6240_v34 = vld [vmem:[#allocation11 + $0x30] sm:$0xff]  ;;  %v1867_v48 = vperm.slane %v6253_v51, 1 }
 0x34f   :  { %2190 = vmatpush.msra.mxu0 %v6071_v19  ;;  %v6216_v19 = vld [vmem:[#allocation11 + $0x60] sm:$0xff]  ;;  %8181 = vst [vmem:[#allocation33_spill] sm:$0xff] %v6240_v34 }
 0x350   :  { %2317 = vmatpush.msra.mxu1 %v6136_v27  ;;  %v6204_v27 = vld [vmem:[#allocation11 + $0x78] sm:$0xff]  ;;  %8174 = vst [vmem:[#allocation54_spill] sm:$0xff] %v6216_v19 }
 0x351   :  { %2191 = vmatpush.msra.mxu0 %v6074_v13  ;;  %v6198_v13 = vld [vmem:[#allocation9 + $0xe0] sm:$0xff]  ;;  %8171 = vst [vmem:[#allocation89_spill] sm:$0xff] %v6204_v27 }
 0x352   :  { %8170 = vst [vmem:[#allocation49_spill] sm:$0xff] %v6198_v13 }
 0x353   :  { %2192 = vmatpush.msra.mxu0 %v6077_v6  ;;  %v6186_v6 = vld [vmem:[#allocation9 + $0xf8] sm:$0xff] }
 0x354   :  { %8167 = vst [vmem:[#allocation29_spill] sm:$0xff] %v6186_v6 }
 0x355   :  { %2193 = vmatpush.msra.mxu0 %v6080_v8  ;;  %v6180_v8 = vld [vmem:[#allocation11 + $0xa8] sm:$0xff] }
 0x356   :  { %8165 = vst [vmem:[#allocation65_spill] sm:$0xff] %v6180_v8 }
 0x357   :  { %2194 = vmatpush.msra.mxu0 %v6083_v44  ;;  %v6174_v44 = vld [vmem:[#allocation9 + $0x110] sm:$0xff] }
 0x358   :  { %8164 = vst [vmem:[#allocation45_spill] sm:$0xff] %v6174_v44 }
 0x359   :  { %2195 = vmatpush.msra.mxu0 %v6086_v16  ;;  %v6172_v16 = vld [vmem:[#allocation9 + $0xa8] sm:$0xff] }
 0x35a   :  { %8163 = vst [vmem:[#allocation61_spill] sm:$0xff] %v6172_v16 }
 0x35b   :  { %2196 = vmatpush.msra.mxu0 %v6089_v26  ;;  %v6168_v26 = vld [vmem:[#allocation11 + $0xc0] sm:$0xff] }
 0x35c   :  { %8162 = vst [vmem:[#allocation75_spill] sm:$0xff] %v6168_v26 }
 0x35d   :  { %2197 = vmatpush.msra.mxu0 %v6092_v55  ;;  %v6162_v55 = vld [vmem:[#allocation9 + $0x128] sm:$0xff] }
 0x35e   :  { %8161 = vst [vmem:[#allocation56_spill] sm:$0xff] %v6162_v55 }
 0x35f   :  { %2198 = vmatpush.msra.mxu0 %v6095_v32  ;;  %v6160_v32 = vld [vmem:[#allocation9 + $0xc0] sm:$0xff] }
 0x360   :  { %8160 = vst [vmem:[#allocation20_spill] sm:$0xff] %v6160_v32 }
 0x361   :  { %2199 = vmatpush.msra.mxu0 %v6098_v53  ;;  %v6156_v53 = vld [vmem:[#allocation11 + $0xd8] sm:$0xff] }
 0x362   :  { %2200 = vmatmul.f32.vlgmr.msra.gmra.mxu0 %v6041_v63  ;;  %8159 = vst [vmem:[#allocation83_spill] sm:$0xff] %v6156_v53 }
 0x363   :  { %2420 = vmatpush.msrb.mxu0 %v6101_v28  ;;  %v6150_v28 = vld [vmem:[#allocation9 + $0x140] sm:$0xff] }
 0x364   :  { %2334 = vmatpush.msra.mxu2 %v6150_v28 }
 0x365   :  { %2421 = vmatpush.msrb.mxu0 %v6108_v38  ;;  %v6148_v38 = vld [vmem:[#allocation9 + $0xd8] sm:$0xff] }
 0x366   :  { %8158 = vst [vmem:[#allocation71_spill] sm:$0xff] %v6148_v38  ;;  %2318 = vmatpush.msra.mxu1 %v6148_v38  ;;  %2335 = vmatpush.msra.mxu2 %v6162_v55  ;;  %v6192_v38 = vld [vmem:[#allocation11 + $0x90] sm:$0xff]  ;;  %v6269_v55 = vld [vmem:[#allocation11] sm:$0xff] }
 0x367   :  { %2422 = vmatpush.msrb.mxu0 %v6114_v42  ;;  %v6144_v42 = vld [vmem:[#allocation11 + $0xf0] sm:$0xff]  ;;  %8168 = vst [vmem:[#allocation21_spill] sm:$0xff] %v6192_v38 }
 0x368   :  { %8157 = vst [vmem:[#allocation51_spill] sm:$0xff] %v6144_v42  ;;  %2319 = vmatpush.msra.mxu1 %v6160_v32  ;;  %2336 = vmatpush.msra.mxu2 %v6174_v44  ;;  %v6184_v32 = vld [vmem:[#allocation9 + $0x90] sm:$0xff]  ;;  %v6228_v44 = vld [vmem:[#allocation11 + $0x48] sm:$0xff] }
 0x369   :  { %2423 = vmatpush.msrb.mxu0 %v6118_v11  ;;  %v6142_v11 = vld [vmem:[#allocation9 + $0x160] sm:$0xff]  ;;  %8166 = vst [vmem:[#allocation44_spill] sm:$0xff] %v6184_v32 }
 0x36a   :  { %2353 = vmatpush.msra.mxu3 %v6142_v11  ;;  %2320 = vmatpush.msra.mxu1 %v6172_v16  ;;  %v6196_v16 = vld [vmem:[#allocation9 + $0x78] sm:$0xff]  ;;  %8177 = vst [vmem:[#allocation94_spill] sm:$0xff] %v6228_v44 }
 0x36b   :  { %2424 = vmatpush.msrb.mxu0 %v6132_v62  ;;  %v6152_v62 = vld [vmem:[#allocation9 + $0x148] sm:$0xff]  ;;  %2337 = vmatpush.msra.mxu2 %v6186_v6  ;;  %8169 = vst [vmem:[#allocation86_spill] sm:$0xff] %v6196_v16 }
 0x36c   :  { %2354 = vmatpush.msra.mxu3 %v6152_v62  ;;  %2321 = vmatpush.msra.mxu1 %v6184_v32  ;;  %v6208_v32 = vld [vmem:[#allocation9 + $0x60] sm:$0xff]  ;;  %v6210_v6 = vld [vmem:[#allocation9 + $0xc8] sm:$0xff]  ;;  %8189 = vst [vmem:[#allocation96_spill] sm:$0xff] %v6269_v55 }
 0x36d   :  { %2425 = vmatpush.msrb.mxu0 %v6144_v42  ;;  %v6164_v42 = vld [vmem:[#allocation9 + $0x130] sm:$0xff]  ;;  %2338 = vmatpush.msra.mxu2 %v6198_v13  ;;  %8172 = vst [vmem:[#allocation48_spill] sm:$0xff] %v6208_v32 }
 0x36e   :  { %2355 = vmatpush.msra.mxu3 %v6164_v42  ;;  %2322 = vmatpush.msra.mxu1 %v6196_v16  ;;  %8173 = vst [vmem:[#allocation90_spill] sm:$0xff] %v6210_v6  ;;  %v6220_v16 = vld [vmem:[#allocation9 + $0x48] sm:$0xff]  ;;  %v6222_v13 = vld [vmem:[#allocation9 + $0xb0] sm:$0xff] }
 0x36f   :  { %2426 = vmatpush.msrb.mxu0 %v6156_v53  ;;  %v6176_v53 = vld [vmem:[#allocation9 + $0x118] sm:$0xff]  ;;  %2339 = vmatpush.msra.mxu2 %v6210_v6  ;;  %8175 = vst [vmem:[#allocation93_spill] sm:$0xff] %v6220_v16 }
 0x370   :  { %2356 = vmatpush.msra.mxu3 %v6176_v53  ;;  %2323 = vmatpush.msra.mxu1 %v6208_v32  ;;  %8176 = vst [vmem:[#allocation22_spill] sm:$0xff] %v6222_v13  ;;  %v6232_v32 = vld [vmem:[#allocation9 + $0x30] sm:$0xff]  ;;  %v6234_v6 = vld [vmem:[#allocation9 + $0x98] sm:$0xff] }
 0x371   :  { %2427 = vmatpush.msrb.mxu0 %v6168_v26  ;;  %v6188_v26 = vld [vmem:[#allocation9 + $0x100] sm:$0xff]  ;;  %2340 = vmatpush.msra.mxu2 %v6222_v13  ;;  %8178 = vst [vmem:[#allocation59_spill] sm:$0xff] %v6232_v32 }
 0x372   :  { %2357 = vmatpush.msra.mxu3 %v6188_v26  ;;  %2324 = vmatpush.msra.mxu1 %v6220_v16  ;;  %8179 = vst [vmem:[#allocation50_spill] sm:$0xff] %v6234_v6  ;;  %v6244_v16 = vld [vmem:[#allocation9 + $0x18] sm:$0xff]  ;;  %v6246_v13 = vld [vmem:[#allocation9 + $0x80] sm:$0xff] }
 0x373   :  { %2428 = vmatpush.msrb.mxu0 %v6180_v8  ;;  %v6200_v8 = vld [vmem:[#allocation9 + $0xe8] sm:$0xff]  ;;  %2341 = vmatpush.msra.mxu2 %v6234_v6  ;;  %8182 = vst [vmem:[#allocation98_spill] sm:$0xff] %v6244_v16 }
 0x374   :  { %2358 = vmatpush.msra.mxu3 %v6200_v8  ;;  %2325 = vmatpush.msra.mxu1 %v6232_v32  ;;  %8183 = vst [vmem:[#allocation52_spill] sm:$0xff] %v6246_v13  ;;  %v6257_v32 = vld [vmem:[#allocation11 + $0x18] sm:$0xff]  ;;  %v6263_v6 = vld [vmem:[#allocation9 + $0x68] sm:$0xff] }
 0x375   :  { %2429 = vmatpush.msrb.mxu0 %v6192_v38  ;;  %v6212_v38 = vld [vmem:[#allocation9 + $0xd0] sm:$0xff]  ;;  %2342 = vmatpush.msra.mxu2 %v6246_v13  ;;  %8185 = vst [vmem:[#allocation101_spill] sm:$0xff] %v6257_v32  ;;  %v1866_v13 = vperm.slane %v6253_v51, 0 }
 0x376   :  { %2359 = vmatpush.msra.mxu3 %v6212_v38  ;;  %2326 = vmatpush.msra.mxu1 %v6244_v16  ;;  %8187 = vst [vmem:[#allocation92_spill] sm:$0xff] %v6263_v6  ;;  %v6271_v16 = vld [vmem:[#allocation11 + $0x170] sm:$0xff] }
 0x377   :  { %2430 = vmatpush.msrb.mxu0 %v6204_v27  ;;  %v6224_v27 = vld [vmem:[#allocation9 + $0xb8] sm:$0xff]  ;;  %2343 = vmatpush.msra.mxu2 %v6263_v6  ;;  %8190 = vst [vmem:[#allocation62_spill] sm:$0xff] %v6271_v16  ;;  %v6290_v6 = vld [vmem:[#allocation9 + $0x40] sm:$0xff] }
 0x378   :  { %2360 = vmatpush.msra.mxu3 %v6224_v27  ;;  %8195 = vst [vmem:[#allocation103_spill] sm:$0xff] %v6290_v6 }
 0x379   :  { %2431 = vmatpush.msrb.mxu0 %v6216_v19  ;;  %v6236_v19 = vld [vmem:[#allocation9 + $0xa0] sm:$0xff] }
 0x37a   :  { %8180 = vst [vmem:[#allocation97_spill] sm:$0xff] %v6236_v19  ;;  %2361 = vmatpush.msra.mxu3 %v6236_v19  ;;  %v6265_v19 = vld [vmem:[#allocation9 + $0x70] sm:$0xff] }
 0x37b   :  { %2432 = vmatpush.msrb.mxu0 %v6228_v44  ;;  %v6248_v44 = vld [vmem:[#allocation9 + $0x88] sm:$0xff]  ;;  %8188 = vst [vmem:[#allocation58_spill] sm:$0xff] %v6265_v19 }
 0x37c   :  { %8184 = vst [vmem:[#allocation88_spill] sm:$0xff] %v6248_v44  ;;  %2362 = vmatpush.msra.mxu3 %v6248_v44  ;;  %v6278_v44 = vld [vmem:[#allocation9 + $0x58] sm:$0xff] }
 0x37d   :  { %2433 = vmatpush.msrb.mxu0 %v6240_v34  ;;  %v6261_v34 = vld [vmem:[#allocation9] sm:$0xff]  ;;  %8192 = vst [vmem:[#allocation31_spill] sm:$0xff] %v6278_v44 }
 0x37e   :  { %8186 = vst [vmem:[#allocation55_spill] sm:$0xff] %v6261_v34  ;;  %2327 = vmatpush.msra.mxu1 %v6261_v34  ;;  %2363 = vmatpush.msra.mxu3 %v6265_v19  ;;  %v6284_v34 = vld [vmem:[#allocation11 + $0x158] sm:$0xff] }
 0x37f   :  { %2434 = vmatpush.msrb.mxu0 %v6257_v32  ;;  %v6276_v32 = vld [vmem:[#allocation9 + $0x50] sm:$0xff]  ;;  %8193 = vst [vmem:[#allocation102_spill] sm:$0xff] %v6284_v34 }
 0x380   :  { %8191 = vst [vmem:[#allocation100_spill] sm:$0xff] %v6276_v32  ;;  %2440 = vmatpush.msrb.mxu1 %v6271_v16  ;;  %2344 = vmatpush.msra.mxu2 %v6276_v32 }
 0x381   :  { %2435 = vmatpush.msrb.mxu0 %v6269_v55  ;;  %2364 = vmatpush.msra.mxu3 %v6278_v44  ;;  %v6288_v55 = vld [vmem:[#allocation9 + $0x38] sm:$0xff] }
 0x382   :  { %2441 = vmatpush.msrb.mxu1 %v6284_v34  ;;  %8194 = vst [vmem:[#allocation37_spill] sm:$0xff] %v6288_v55  ;;  %2345 = vmatpush.msra.mxu2 %v6288_v55  ;;  %v6301_v34 = vld [vmem:[#allocation9 + $0x28] sm:$0xff] }
 0x383   :  { %2604 = vmatpush.msra.mxu0 %v5878_v50  ;;  %2365 = vmatpush.msra.mxu3 %v6290_v6  ;;  %v6295_v50 = vld [vmem:[#allocation11 + $0x140] sm:$0xff] }
 0x384   :  { %8196 = vst [vmem:[#allocation76_spill] sm:$0xff] %v6295_v50  ;;  %2442 = vmatpush.msrb.mxu1 %v6295_v50  ;;  %v6311_v50 = vld [vmem:[#allocation9 + $0x10] sm:$0xff] }
 0x385   :  { %2605 = vmatpush.msra.mxu0 %v5891_v46  ;;  %v6299_v46 = vld [vmem:[#allocation9 + $0x20] sm:$0xff]  ;;  %2366 = vmatpush.msra.mxu3 %v6301_v34 }
 0x386   :  { %8197 = vst [vmem:[#allocation104_spill] sm:$0xff] %v6299_v46  ;;  %2346 = vmatpush.msra.mxu2 %v6299_v46 }
 0x387   :  { %2606 = vmatpush.msra.mxu0 %v5898_v7  ;;  %2367 = vmatpush.msra.mxu3 %v6311_v50 }
 0x389   :  { %2607 = vmatpush.msra.mxu0 %v5904_v1  ;;  %2584 = vmatpush.msrb.mxu3 %v5883_v40  ;;  %v6337_v40 = vld [vmem:[#allocation11 + $0x148] sm:$0xff] }
 0x38b   :  { %2608 = vmatpush.msra.mxu0 %v5910_v33  ;;  %2585 = vmatpush.msrb.mxu3 %v5895_v10  ;;  %v6345_v10 = vld [vmem:[#allocation11 + $0x130] sm:$0xff] }
 0x38d   :  { %2609 = vmatpush.msra.mxu0 %v5918_v58  ;;  %2586 = vmatpush.msrb.mxu3 %v5901_v35  ;;  %v6353_v35 = vld [vmem:[#allocation11 + $0x118] sm:$0xff] }
 0x38f   :  { %2610 = vmatpush.msra.mxu0 %v5926_v0  ;;  %2587 = vmatpush.msrb.mxu3 %v5907_v37  ;;  %v6362_v37 = vld [vmem:[#allocation11 + $0x98] sm:$0xff] }
 0x390   :  { %8202 = vst [vmem:[#allocation81_spill] sm:$0xff] %v6362_v37 }
 0x391   :  { %2611 = vmatpush.msra.mxu0 %v5932_v59  ;;  %2588 = vmatpush.msrb.mxu3 %v5914_v41  ;;  %v6364_v59 = vld [vmem:[#allocation11 + $0x100] sm:$0xff]  ;;  %v6373_v41 = vld [vmem:[#allocation11 + $0xe8] sm:$0xff] }
 0x393   :  { %2612 = vmatpush.msra.mxu0 %v5938_v4  ;;  %2589 = vmatpush.msrb.mxu3 %v5923_v43  ;;  %v6383_v43 = vld [vmem:[#allocation11 + $0xd0] sm:$0xff] }
 0x395   :  { %2613 = vmatpush.msra.mxu0 %v5944_v52  ;;  %2590 = vmatpush.msrb.mxu3 %v5929_v25  ;;  %v6392_v25 = vld [vmem:[#allocation11 + $0xb8] sm:$0xff] }
 0x397   :  { %2614 = vmatpush.msra.mxu0 %v5952_v30  ;;  %2591 = vmatpush.msrb.mxu3 %v5935_v47  ;;  %v6401_v47 = vld [vmem:[#allocation11 + $0x38] sm:$0xff] }
 0x398   :  { %8206 = vst [vmem:[#allocation108_spill] sm:$0xff] %v6401_v47 }
 0x399   :  { %2615 = vmatpush.msra.mxu0 %v5961_v45  ;;  %2592 = vmatpush.msrb.mxu3 %v5941_v57  ;;  %v6403_v45 = vld [vmem:[#allocation11 + $0xa0] sm:$0xff]  ;;  %v6412_v57 = vld [vmem:[#allocation11 + $0x88] sm:$0xff] }
 0x39a   :  { %8207 = vst [vmem:[#allocation91_spill] sm:$0xff] %v6403_v45 }
 0x39b   :  { %2616 = vmatpush.msra.mxu0 %v5970_v2  ;;  %2593 = vmatpush.msrb.mxu3 %v5947_v5  ;;  %8209 = vst [vmem:[#allocation110_spill] sm:$0xff] %v6412_v57 }
 0x39d   :  { %2617 = vmatpush.msra.mxu0 %v5975_v60  ;;  %2594 = vmatpush.msrb.mxu3 %v5957_v22 }
 0x39f   :  { %2618 = vmatpush.msra.mxu0 %v5984_v20  ;;  %2595 = vmatpush.msrb.mxu3 %v5963_v54 }
 0x3a1   :  { %2619 = vmatpush.msra.mxu0 %v5992_v61  ;;  %2596 = vmatpush.msrb.mxu3 %v5973_v49 }
 0x3a3   :  { %2597 = vmatpush.msrb.mxu3 %v5982_v15 }
 0x3a5   :  { %2598 = vmatpush.msrb.mxu3 %v5990_v9  ;;  %v4009_v9 = vld [vmem:[%s7503_s4] ss:$0 sm:$0xff] }
 0x3bf   :  { %v1889_v17 = vpop.f32.mrf.mxu0  ;;  %v1909_v16 = vpop.f32.mrf.mxu1 }
 0x3c0   :  { %v1890_v19 = vadd.f32 %v1889_v17, %v1866_v13  ;;  %v6305_v13 = vld [vmem:[#allocation11 + $0x128] sm:$0xff]  ;;  %v1910_v7 = vadd.f32 %v1909_v16, %v1867_v48  ;;  %v6325_v48 = vld [vmem:[#allocation11 + $0xf8] sm:$0xff]  ;;  %v8200_v16 = vld [vmem:[#allocation15_spill] sm:$0xff] }
 0x3c1   :  { %8198 = vst [vmem:[#allocation79_spill] sm:$0xff] %v6305_v13  ;;  %2443 = vmatpush.msrb.mxu1 %v6305_v13  ;;  %v6309_v17 = vld [vmem:[#allocation9 + $0x8] sm:$0xff]  ;;  %v254_v13 = vadd.f32 %v8200_v16, %v8129_v39  ;;  %v6410_v39 = vld [vmem:[#allocation11 + $0x20] sm:$0xff] }
 0x3c2   :  { %2347 = vmatpush.msra.mxu2 %v6309_v17  ;;  %8208 = vst [vmem:[#allocation35_spill] sm:$0xff] %v6410_v39 }
 0x3c3   :  { %v1997_v32 = vpop.f32.mrf.mxu3 }
 0x3c4   :  { %v2041_v44 = vadd.f32 %v1997_v32, %v1890_v19  ;;  %v6317_v19 = vld [vmem:[#allocation11 + $0x110] sm:$0xff]  ;;  %v6319_v32 = vld [vmem:[#allocation11 + $0x178] sm:$0xff] }
 0x3c5   :  { %8199 = vst [vmem:[#allocation105_spill] sm:$0xff] %v6317_v19  ;;  %2444 = vmatpush.msrb.mxu1 %v6317_v19  ;;  %2460 = vmatpush.msrb.mxu2 %v6319_v32 }
 0x3c6   :  { %v3959_v55 = vmul.f32 -1.442695, %v2041_v44  ;;  %v6313_v6 = vpop.f32.mrf.mxu2  ;;  %v6327_v44 = vld [vmem:[#allocation11 + $0x160] sm:$0xff] }
 0x3c7   :  { %v2017_v46 = vpop.f32.mrf.mxu0  ;;  %2445 = vmatpush.msrb.mxu1 %v6325_v48  ;;  %2461 = vmatpush.msrb.mxu2 %v6327_v44 }
 0x3c8   :  { %4088 = vpow2.f32 %v3959_v55  ;;  %v2061_v1 = vadd.f32 %v2017_v46, %v1910_v7  ;;  %v6335_v55 = vld [vmem:[#allocation11 + $0xe0] sm:$0xff]  ;;  %v6343_v7 = vld [vmem:[#allocation11 + $0xc8] sm:$0xff] }
 0x3c9   :  { %2446 = vmatpush.msrb.mxu1 %v6335_v55  ;;  %2462 = vmatpush.msrb.mxu2 %v6337_v40 }
 0x3ca   :  { %v3960_v19 = vmul.f32 -1.442695, %v2061_v1 }
 0x3cb   :  { %v2181_v33 = vpop.f32.mrf.mxu3  ;;  %2447 = vmatpush.msrb.mxu1 %v6343_v7  ;;  %2463 = vmatpush.msrb.mxu2 %v6345_v10 }
 0x3cc   :  { %4090 = vpow2.f32 %v3960_v19  ;;  %v2225_v46 = vadd.f32 %v2181_v33, %v254_v13  ;;  %v6351_v13 = vld [vmem:[#allocation11 + $0xb0] sm:$0xff] }
 0x3cd   :  { %v8201_v19 = vld [vmem:[#allocation57_spill] sm:$0xff]  ;;  %2448 = vmatpush.msrb.mxu1 %v6351_v13  ;;  %2464 = vmatpush.msrb.mxu2 %v6353_v35 }
 0x3ce   :  { %v4089_v58 = vpop.eup %4088  ;;  %v3962_v1 = vmul.f32 -1.442695, %v2225_v46  ;;  %v2161_v16 = vpop.f32.mrf.mxu2 }
 0x3cf   :  { %v6355_v0 = vadd.f32 1.0, %v4089_v58  ;;  %v2205_v33 = vadd.f32 %v2161_v16, %v8201_v19  ;;  %2449 = vmatpush.msrb.mxu1 %v6362_v37  ;;  %2465 = vmatpush.msrb.mxu2 %v6364_v59  ;;  %v6381_v16 = vld [vmem:[#allocation11 + $0x68] sm:$0xff]  ;;  %v6390_v19 = vld [vmem:[#allocation11 + $0x50] sm:$0xff]  ;;  %v6443_v37 = vld [vmem:[#allocation11 + $0x58] sm:$0xff] }
 0x3d0   :  { %4092 = vpow2.f32 %v3962_v1  ;;  %v6371_v1 = vld [vmem:[#allocation11 + $0x80] sm:$0xff]  ;;  %8204 = vst [vmem:[#allocation68_spill] sm:$0xff] %v6381_v16 }
 0x3d1   :  { %4094 = vrcp.f32 %v6355_v0  ;;  %v3961_v58 = vmul.f32 -1.442695, %v2205_v33  ;;  %8203 = vst [vmem:[#allocation84_spill] sm:$0xff] %v6371_v1  ;;  %2450 = vmatpush.msrb.mxu1 %v6371_v1  ;;  %2466 = vmatpush.msrb.mxu2 %v6373_v41  ;;  %v2055_v1 = vand.u32 2147483647, %v6355_v0  ;;  %vm2051_vm9 = vweird.f32 %v6355_v0 }
 0x3d2   :  { %v4091_v46 = vpop.eup %4090  ;;  %8205 = vst [vmem:[#allocation87_spill] sm:$0xff] %v6390_v19 }
 0x3d3   :  { %v6375_v4 = vadd.f32 1.0, %v4091_v46  ;;  %4096 = vpow2.f32 %v3961_v58  ;;  %2451 = vmatpush.msrb.mxu1 %v6381_v16  ;;  %2467 = vmatpush.msrb.mxu2 %v6383_v43  ;;  %vm2056_vm11 = vcmp.eq.f32.partialorder %v2055_v1, 8.507059e+37 }
 0x3d5   :  { %4098 = vrcp.f32 %v6375_v4  ;;  %2452 = vmatpush.msrb.mxu1 %v6390_v19  ;;  %2468 = vmatpush.msrb.mxu2 %v6392_v25  ;;  %v2057_v19 = vand.u32 2147483648, %v6355_v0  ;;  %vm2071_vm13 = vweird.f32 %v6375_v4  ;;  %v2075_v49 = vand.u32 2147483647, %v6375_v4 }
 0x3d6   :  { %v4093_v52 = vpop.eup %4092 }
 0x3d7   :  { %v4095_v30 = vpop.eup %4094  ;;  %v6394_v33 = vadd.f32 1.0, %v4093_v52  ;;  %2453 = vmatpush.msrb.mxu1 %v6401_v47  ;;  %2469 = vmatpush.msrb.mxu2 %v6403_v45  ;;  %v6421_v47 = vld [vmem:[#allocation11 + $0x8] sm:$0xff]  ;;  %v2058_v20 = vor.u32 1.1754944e-38, %v2057_v19  ;;  %vm2076_vm15 = vcmp.eq.f32.partialorder %v2075_v49, 8.507059e+37 }
 0x3d8   :  { %v2047_v46 = vmul.f32 %v4095_v30, %v6355_v0  ;;  %8210 = vst [vmem:[#allocation95_spill] sm:$0xff] %v6421_v47  ;;  %vm2052_vm8 = vweird.f32 %v4095_v30  ;;  %v6451_v0 = vld [vmem:[#allocation11 + $0x40] sm:$0xff] }
 0x3d9   :  { %4100 = vrcp.f32 %v6394_v33  ;;  %v4097_v58 = vpop.eup %4096  ;;  %2454 = vmatpush.msrb.mxu1 %v6410_v39  ;;  %2470 = vmatpush.msrb.mxu2 %v6412_v57  ;;  %v2037_v39 = vpop.f32.mrf.mxu1  ;;  %vm2053_vm10 = vmor %vm2051_vm9, %vm2052_vm8  ;;  %vm2235_vm5 = vweird.f32 %v6394_v33 }
 0x3da   :  { %v2048_v52 = vsub.f32 1.0, %v2047_v46  ;;  %v6417_v16 = vadd.f32 1.0, %v4097_v58  ;;  %v6423_v46 = vld [vmem:[#allocation11 + $0x70] sm:$0xff]  ;;  %v4008_v58 = vld [vmem:[%s7507_s8] ss:$0 sm:$0xff] }
 0x3db   :  { %v6414_v2 = vpop.eup %4098  ;;  %8211 = vst [vmem:[#allocation106_spill] sm:$0xff] %v6423_v46  ;;  %2455 = vmatpush.msrb.mxu1 %v6421_v47  ;;  %2471 = vmatpush.msrb.mxu2 %v6423_v46 }
 0x3dc   :  { %v2067_v5 = vmul.f32 %v6414_v2, %v6375_v4  ;;  %v2049_v60 = vmul.f32 %v4095_v30, %v2048_v52  ;;  %4102 = vrcp.f32 %v6417_v16  ;;  %v1868_v52 = vperm.slane %v6253_v51, 2 }
 0x3dd   :  { %v2084_v51 = vadd.f32 %v4008_v58, %v2037_v39  ;;  %2472 = vmatpush.msrb.mxu2 %v6443_v37  ;;  %vm2072_vm12 = vweird.f32 %v6414_v2  ;;  %vm2215_vm1 = vweird.f32 %v6417_v16 }
 0x3de   :  { %v2068_v57 = vsub.f32 1.0, %v2067_v5  ;;  %v2050_v45 = vadd.f32 %v4095_v30, %v2049_v60  ;;  %v1930_v19 = vadd.f32 %v6313_v6, %v1868_v52  ;;  %vm6462_vm14 = vmor %vm2071_vm13, %vm2072_vm12  ;;  %v6472_v60 = vld [vmem:[#allocation11 + $0x10] sm:$0xff]  ;;  %v2221_v52 = vand.u32 2147483648, %v6417_v16 }
 0x3df   :  { %v6440_v22 = vpop.eup %4100  ;;  %2473 = vmatpush.msrb.mxu2 %v6451_v0  ;;  %8215 = vst [vmem:[#allocation99_spill] sm:$0xff] %v6472_v60 }
 0x3e0   :  { %v2069_v47 = vmul.f32 %v6414_v2, %v2068_v57  ;;  %v2054_v46 = vsel %vm2053_vm10, %v4095_v30, %v2050_v45  ;;  %v2231_v61 = vmul.f32 %v6440_v22, %v6394_v33  ;;  %v2077_v30 = vand.u32 2147483648, %v6375_v4  ;;  %v6460_v45 = vld [vmem:[#allocation11 + $0x28] sm:$0xff] }
 0x3e1   :  { %v2059_v54 = vsel %vm2056_vm11, %v2058_v20, %v2054_v46  ;;  %8212 = vst [vmem:[#allocation111_spill] sm:$0xff] %v6460_v45  ;;  %2474 = vmatpush.msrb.mxu2 %v6460_v45  ;;  %v8216_v20 = vld [vmem:[#allocation60_spill] sm:$0xff]  ;;  %vm2236_vm3 = vweird.f32 %v6440_v22 }
 0x3e2   :  { %v2070_v5 = vadd.f32 %v6414_v2, %v2069_v47  ;;  %v2085_v1 = vmul.f32 %v2084_v51, %v2059_v54  ;;  %v4103_v39 = vpop.eup %4102  ;;  %v2232_v46 = vsub.f32 1.0, %v2231_v61  ;;  %v2078_v4 = vor.u32 1.1754944e-38, %v2077_v30  ;;  %2599 = vmatpush.msrb.mxu3 %v8216_v20  ;;  %v8218_v20 = vld [vmem:[#allocation28_spill] sm:$0xff]  ;;  %vm2237_vm6 = vmor %vm2235_vm5, %vm2236_vm3 }
 0x3e3   :  { %v2211_v47 = vmul.f32 %v4103_v39, %v6417_v16  ;;  %2475 = vmatpush.msrb.mxu2 %v6472_v60  ;;  %vm2216_vm0 = vweird.f32 %v4103_v39 }
 0x3e4   :  { %v2086_v6 = vadd.f32 %v2085_v1, %v1930_v19  ;;  %v2074_v15 = vsel %vm6462_vm14, %v6414_v2, %v2070_v5  ;;  %v2219_v2 = vand.u32 2147483647, %v6417_v16  ;;  %v2233_v61 = vmul.f32 %v6440_v22, %v2232_v46  ;;  %v2201_v19 = vpop.f32.mrf.mxu0  ;;  %vm2217_vm2 = vmor %vm2215_vm1, %vm2216_vm0  ;;  %v8217_v46 = vld [vmem:[#allocation85_spill] sm:$0xff] }
 0x3e5   :  { %v2212_v58 = vsub.f32 1.0, %v2211_v47  ;;  %v2079_v51 = vsel %vm2076_vm15, %v2078_v4, %v2074_v15  ;;  %v2222_v1 = vor.u32 1.1754944e-38, %v2221_v52  ;;  %v2241_v16 = vand.u32 2147483648, %v6394_v33 }
 0x3e6   :  { %4104 = vtanh.f32 %v2086_v6  ;;  %v2088_v30 = vsub.f32 1.0, %v2079_v51  ;;  %vm2220_vm4 = vcmp.eq.f32.partialorder %v2219_v2, 8.507059e+37  ;;  %v2248_v6 = vadd.f32 %v4009_v9, %v2201_v19 }
 0x3e7   :  { %v2213_v54 = vmul.f32 %v4103_v39, %v2212_v58  ;;  %v2234_v15 = vadd.f32 %v6440_v22, %v2233_v61  ;;  %v2090_v58 = vmul.f32 %v2079_v51, %v6039_v3  ;;  %v2239_v52 = vand.u32 2147483647, %v6394_v33  ;;  %v6860_v3 = vld [vmem:[#allocation9 + $0x160] sm:$0xff] }
 0x3e8   :  { %v2242_v9 = vor.u32 1.1754944e-38, %v2241_v16  ;;  %v8253_v16 = vld [vmem:[#allocation93_spill] sm:$0xff] }
 0x3e9   :  { %v2214_v5 = vadd.f32 %v4103_v39, %v2213_v54  ;;  %v295_v54 = vadd.f32 %v8218_v20, %v8217_v46  ;;  %v2238_v2 = vsel %vm2237_vm6, %v6440_v22, %v2234_v15  ;;  %vm2240_vm7 = vcmp.eq.f32.partialorder %v2239_v52, 8.507059e+37  ;;  %v8247_v15 = vld [vmem:[#allocation86_spill] sm:$0xff]  ;;  %v8250_v20 = vld [vmem:[#allocation48_spill] sm:$0xff] }
 0x3ea   :  { %v2243_v51 = vsel %vm2240_vm7, %v2242_v9, %v2238_v2  ;;  %v8254_v52 = vld [vmem:[#allocation100_spill] sm:$0xff]  ;;  %v8257_v2 = vld [vmem:[#allocation37_spill] sm:$0xff] }
 0x3eb   :  { %v2218_v57 = vsel %vm2217_vm2, %v4103_v39, %v2214_v5  ;;  %v2252_v61 = vsub.f32 1.0, %v2243_v51  ;;  %v8240_v5 = vld [vmem:[#allocation24_spill] sm:$0xff] }
 0x3ec   :  { %v4105_v49 = vpop.eup %4104  ;;  %v2223_v4 = vsel %vm2220_vm4, %v2222_v1, %v2218_v57  ;;  %v8242_v1 = vld [vmem:[#allocation22_spill] sm:$0xff]  ;;  %v8244_v57 = vld [vmem:[#allocation44_spill] sm:$0xff] }
 0x3ed   :  { %v2089_v47 = vmul.f32 %v4105_v49, %v2088_v30  ;;  %v2249_v60 = vmul.f32 %v2248_v6, %v2223_v4  ;;  %v8241_v30 = vld [vmem:[#allocation61_spill] sm:$0xff]  ;;  %v8243_v49 = vld [vmem:[#allocation34_spill] sm:$0xff]  ;;  %v8248_v4 = vld [vmem:[#allocation52_spill] sm:$0xff] }
 0x3ee   :  { %v8245_v6 = vld [vmem:[#allocation50_spill] sm:$0xff]  ;;  %v8258_v9 = vld [vmem:[#allocation72_spill] sm:$0xff] }
 0x3ef   :  { %v6491_v45 = vadd.f32 %v2090_v58, %v2089_v47  ;;  %v2250_v39 = vadd.f32 %v2249_v60, %v295_v54  ;;  %v2254_v60 = vmul.f32 %v2243_v51, %v6041_v63  ;;  %v8220_v63 = vld [vmem:[#allocation27_spill] sm:$0xff]  ;;  %v8246_v47 = vld [vmem:[#allocation40_spill] sm:$0xff]  ;;  %v8249_v58 = vld [vmem:[#allocation73_spill] sm:$0xff] }
 0x3f0   :  { %v8251_v54 = vld [vmem:[#allocation92_spill] sm:$0xff]  ;;  %v8259_v51 = vld [vmem:[#allocation98_spill] sm:$0xff] }
 0x3f1   :  { %8219 = vst [vmem:[#allocation107_spill] sm:$0xff] %v6491_v45  ;;  %2436 = vmatmul.f32.vlgmr.msrb.gmra.mxu0 %v6491_v45  ;;  %4106 = vtanh.f32 %v2250_v39  ;;  %v8255_v39 = vld [vmem:[#allocation39_spill] sm:$0xff] }
 0x3f2   :  { %2792 = vmatpush.msrb.mxu0 %v6128_v12  ;;  %v8237_v12 = vld [vmem:[#allocation20_spill] sm:$0xff] }
 0x3f4   :  { %2793 = vmatpush.msrb.mxu0 %v6142_v11  ;;  %v8235_v11 = vld [vmem:[#allocation31_spill] sm:$0xff] }
 0x3f6   :  { %2794 = vmatpush.msrb.mxu0 %v6152_v62  ;;  %v8238_v62 = vld [vmem:[#allocation90_spill] sm:$0xff] }
 0x3f7   :  { %v4107_v33 = vpop.eup %4106 }
 0x3f8   :  { %2795 = vmatpush.msrb.mxu0 %v6164_v42  ;;  %v2253_v19 = vmul.f32 %v4107_v33, %v2252_v61  ;;  %v8234_v42 = vld [vmem:[#allocation49_spill] sm:$0xff]  ;;  %v8260_v61 = vld [vmem:[#allocation104_spill] sm:$0xff] }
 0x3f9   :  { %v8261_v33 = vld [vmem:[#allocation41_spill] sm:$0xff] }
 0x3fa   :  { %2796 = vmatpush.msrb.mxu0 %v6176_v53  ;;  %v6501_v22 = vadd.f32 %v2254_v60, %v2253_v19  ;;  %v8229_v53 = vld [vmem:[#allocation43_spill] sm:$0xff]  ;;  %v8263_v60 = vld [vmem:[#allocation62_spill] sm:$0xff] }
 0x3fb   :  { %v8262_v19 = vld [vmem:[#allocation55_spill] sm:$0xff] }
 0x3fc   :  { %2797 = vmatpush.msrb.mxu0 %v6188_v26  ;;  %2328 = vmatmul.f32.vlgmr.msra.gmra.mxu1 %v6501_v22  ;;  %v8228_v26 = vld [vmem:[#allocation66_spill] sm:$0xff] }
 0x3fd   :  { %2348 = vmatmul.f32.vlgmr.msra.gmra.mxu2 %v6501_v22  ;;  %2368 = vmatmul.f32.vlgmr.msra.gmra.mxu3 %v6501_v22 }
 0x3fe   :  { %2620 = vmatmul.f32.vlgmr.msra.gmra.mxu0 %v6501_v22  ;;  %2624 = vmatpush.msra.mxu1 %v6044_v31  ;;  %v8222_v31 = vld [vmem:[#allocation56_spill] sm:$0xff] }
 0x3ff   :  { %2752 = vmatpush.msra.mxu2 %v6050_v24  ;;  %2772 = vmatpush.msra.mxu3 %v6126_v36  ;;  %v8224_v24 = vld [vmem:[#allocation23_spill] sm:$0xff]  ;;  %v8236_v36 = vld [vmem:[#allocation69_spill] sm:$0xff] }
 0x400   :  { %2798 = vmatpush.msrb.mxu0 %v6200_v8  ;;  %2625 = vmatpush.msra.mxu1 %v6048_v29  ;;  %v8223_v29 = vld [vmem:[#allocation97_spill] sm:$0xff] }
 0x401   :  { %2753 = vmatpush.msra.mxu2 %v6106_v23  ;;  %2773 = vmatpush.msra.mxu3 %v6138_v18  ;;  %v8221_v18 = vld [vmem:[#allocation19_spill] sm:$0xff]  ;;  %v8226_v8 = vld [vmem:[#allocation45_spill] sm:$0xff]  ;;  %v8231_v23 = vld [vmem:[#allocation58_spill] sm:$0xff] }
 0x402   :  { %2799 = vmatpush.msrb.mxu0 %v6212_v38  ;;  %2626 = vmatpush.msra.mxu1 %v6054_v14  ;;  %v8225_v14 = vld [vmem:[#allocation30_spill] sm:$0xff] }
 0x403   :  { %2754 = vmatpush.msra.mxu2 %v6112_v21  ;;  %2774 = vmatpush.msra.mxu3 %v6150_v28  ;;  %v8230_v28 = vld [vmem:[#allocation29_spill] sm:$0xff]  ;;  %v8232_v38 = vld [vmem:[#allocation18_spill] sm:$0xff]  ;;  %v8233_v21 = vld [vmem:[#allocation71_spill] sm:$0xff] }
 0x404   :  { %2800 = vmatpush.msrb.mxu0 %v6224_v27  ;;  %2627 = vmatpush.msra.mxu1 %v6058_v56  ;;  %v8227_v56 = vld [vmem:[#allocation88_spill] sm:$0xff]  ;;  %v8239_v27 = vld [vmem:[#allocation103_spill] sm:$0xff] }
 0x405   :  { %2476 = vmatmul.f32.vlgmr.msrb.gmra.mxu2 %v6491_v45  ;;  %2456 = vmatmul.f32.vlgmr.msrb.gmra.mxu1 %v6491_v45 }
 0x406   :  { %2600 = vmatmul.f32.vlgmr.msrb.gmra.mxu3 %v6501_v22  ;;  %2628 = vmatpush.msra.mxu1 %v8220_v63  ;;  %v8264_v63 = vld [vmem:[#allocation26_spill] sm:$0xff] }
 0x407   :  { %2755 = vmatpush.msra.mxu2 %v8221_v18  ;;  %2775 = vmatpush.msra.mxu3 %v8222_v31  ;;  %v8265_v18 = vld [vmem:[#allocation102_spill] sm:$0xff]  ;;  %v8266_v31 = vld [vmem:[#allocation77_spill] sm:$0xff] }
 0x408   :  { %2801 = vmatpush.msrb.mxu0 %v8223_v29  ;;  %2629 = vmatpush.msra.mxu1 %v8224_v24  ;;  %v8267_v29 = vld [vmem:[#allocation76_spill] sm:$0xff]  ;;  %v8268_v24 = vld [vmem:[#allocation46_spill] sm:$0xff] }
 0x409   :  { %2756 = vmatpush.msra.mxu2 %v8225_v14  ;;  %2776 = vmatpush.msra.mxu3 %v8226_v8  ;;  %v8269_v14 = vld [vmem:[#allocation79_spill] sm:$0xff]  ;;  %v8270_v8 = vld [vmem:[#allocation80_spill] sm:$0xff] }
 0x40a   :  { %2802 = vmatpush.msrb.mxu0 %v8227_v56  ;;  %2630 = vmatpush.msra.mxu1 %v8228_v26  ;;  %v8280_v56 = vld [vmem:[#allocation84_spill] sm:$0xff] }
 0x40b   :  { %2757 = vmatpush.msra.mxu2 %v8229_v53  ;;  %2777 = vmatpush.msra.mxu3 %v8230_v28  ;;  %v8283_v26 = vld [vmem:[#allocation68_spill] sm:$0xff]  ;;  %v8286_v53 = vld [vmem:[#allocation87_spill] sm:$0xff] }
 0x40c   :  { %2803 = vmatpush.msrb.mxu0 %v8231_v23  ;;  %2631 = vmatpush.msra.mxu1 %v8232_v38  ;;  %v8288_v28 = vld [vmem:[#allocation108_spill] sm:$0xff]  ;;  %v8289_v23 = vld [vmem:[#allocation101_spill] sm:$0xff]  ;;  %v8290_v38 = vld [vmem:[#allocation35_spill] sm:$0xff] }
 0x40d   :  { %2758 = vmatpush.msra.mxu2 %v8233_v21  ;;  %2778 = vmatpush.msra.mxu3 %v8234_v42  ;;  %v8291_v21 = vld [vmem:[#allocation96_spill] sm:$0xff]  ;;  %v8292_v42 = vld [vmem:[#allocation111_spill] sm:$0xff] }
 0x40e   :  { %2804 = vmatpush.msrb.mxu0 %v8235_v11  ;;  %2632 = vmatpush.msra.mxu1 %v8236_v36  ;;  %v8293_v11 = vld [vmem:[#allocation95_spill] sm:$0xff] }
 0x40f   :  { %2759 = vmatpush.msra.mxu2 %v8237_v12  ;;  %2779 = vmatpush.msra.mxu3 %v8238_v62  ;;  %v8294_v36 = vld [vmem:[#allocation99_spill] sm:$0xff] }
 0x410   :  { %2805 = vmatpush.msrb.mxu0 %v8239_v27  ;;  %2633 = vmatpush.msra.mxu1 %v8240_v5  ;;  %v6624_v27 = vld [vmem:[#allocation8 + $0x170] sm:$0xff]  ;;  %v8295_v5 = vld [vmem:[#allocation82_spill] sm:$0xff] }
 0x411   :  { %2760 = vmatpush.msra.mxu2 %v8241_v30  ;;  %2780 = vmatpush.msra.mxu3 %v8242_v1  ;;  %v8296_v30 = vld [vmem:[#allocation16_spill] sm:$0xff] }
 0x412   :  { %2806 = vmatpush.msrb.mxu0 %v6301_v34  ;;  %2634 = vmatpush.msra.mxu1 %v8243_v49  ;;  %v8252_v34 = vld [vmem:[#allocation25_spill] sm:$0xff]  ;;  %v257_v1 = vadd.f32 %v8296_v30, %v8295_v5 }
 0x413   :  { %2761 = vmatpush.msra.mxu2 %v8244_v57  ;;  %2781 = vmatpush.msra.mxu3 %v8245_v6  ;;  %v6629_v6 = vld [vmem:[#allocation8 + $0x158] sm:$0xff] }
 0x414   :  { %2807 = vmatpush.msrb.mxu0 %v6311_v50  ;;  %2635 = vmatpush.msra.mxu1 %v8246_v47  ;;  %v8256_v50 = vld [vmem:[#allocation59_spill] sm:$0xff] }
 0x415   :  { %2762 = vmatpush.msra.mxu2 %v8247_v15  ;;  %2782 = vmatpush.msra.mxu3 %v8248_v4 }
 0x416   :  { %2636 = vmatpush.msra.mxu1 %v8249_v58  ;;  %v6633_v58 = vld [vmem:[#allocation8 + $0x140] sm:$0xff] }
 0x417   :  { %2763 = vmatpush.msra.mxu2 %v8250_v20  ;;  %2783 = vmatpush.msra.mxu3 %v8251_v54  ;;  %v6636_v54 = vld [vmem:[#allocation8 + $0x128] sm:$0xff] }
 0x418   :  { %2637 = vmatpush.msra.mxu1 %v8252_v34 }
 0x419   :  { %2764 = vmatpush.msra.mxu2 %v8253_v16  ;;  %2784 = vmatpush.msra.mxu3 %v8254_v52 }
 0x41a   :  { %2638 = vmatpush.msra.mxu1 %v8255_v39 }
 0x41b   :  { %2765 = vmatpush.msra.mxu2 %v8256_v50  ;;  %2785 = vmatpush.msra.mxu3 %v8257_v2  ;;  %v6641_v50 = vld [vmem:[#allocation8 + $0x168] sm:$0xff]  ;;  %v6643_v2 = vld [vmem:[#allocation8 + $0x110] sm:$0xff] }
 0x41c   :  { %2639 = vmatpush.msra.mxu1 %v8258_v9  ;;  %3024 = vmatpush.msra.mxu0 %v6641_v50 }
 0x41d   :  { %2766 = vmatpush.msra.mxu2 %v8259_v51  ;;  %2640 = vmatmul.f32.vlgmr.msra.gmra.mxu1 %v6501_v22  ;;  %v6647_v51 = vld [vmem:[#allocation8 + $0x150] sm:$0xff] }
 0x41e   :  { %2786 = vmatpush.msra.mxu3 %v8260_v61  ;;  %2860 = vmatpush.msrb.mxu1 %v8261_v33  ;;  %v6649_v61 = vld [vmem:[#allocation8 + $0xf8] sm:$0xff] }
 0x41f   :  { %2767 = vmatpush.msra.mxu2 %v8262_v19  ;;  %3025 = vmatpush.msra.mxu0 %v6647_v51  ;;  %v6653_v19 = vld [vmem:[#allocation8 + $0x138] sm:$0xff] }
 0x420   :  { %2787 = vmatpush.msra.mxu3 %v6309_v17  ;;  %2861 = vmatpush.msrb.mxu1 %v8264_v63  ;;  %v8271_v17 = vld [vmem:[#allocation105_spill] sm:$0xff] }
 0x421   :  { %2880 = vmatpush.msrb.mxu2 %v8263_v60  ;;  %v6655_v60 = vld [vmem:[#allocation8 + $0xe0] sm:$0xff]  ;;  %3026 = vmatpush.msra.mxu0 %v6653_v19 }
 0x422   :  { %2900 = vmatpush.msrb.mxu3 %v6319_v32  ;;  %2862 = vmatpush.msrb.mxu1 %v8266_v31  ;;  %v8272_v32 = vld [vmem:[#allocation51_spill] sm:$0xff] }
 0x423   :  { %2881 = vmatpush.msrb.mxu2 %v8265_v18  ;;  %v6659_v31 = vld [vmem:[#allocation8 + $0x120] sm:$0xff] }
 0x424   :  { %2901 = vmatpush.msrb.mxu3 %v6327_v44  ;;  %2863 = vmatpush.msrb.mxu1 %v8268_v24  ;;  %v8273_v44 = vld [vmem:[#allocation83_spill] sm:$0xff] }
 0x425   :  { %2882 = vmatpush.msrb.mxu2 %v8267_v29  ;;  %v6661_v29 = vld [vmem:[#allocation8 + $0xc8] sm:$0xff]  ;;  %3027 = vmatpush.msra.mxu0 %v6659_v31 }
 0x426   :  { %2902 = vmatpush.msrb.mxu3 %v6337_v40  ;;  %2864 = vmatpush.msrb.mxu1 %v8270_v8  ;;  %v8274_v40 = vld [vmem:[#allocation75_spill] sm:$0xff]  ;;  %v6667_v8 = vld [vmem:[#allocation8 + $0x108] sm:$0xff] }
 0x427   :  { %2883 = vmatpush.msrb.mxu2 %v8269_v14  ;;  %3028 = vmatpush.msra.mxu0 %v6667_v8 }
 0x428   :  { %2903 = vmatpush.msrb.mxu3 %v6345_v10  ;;  %2865 = vmatpush.msrb.mxu1 %v8272_v32  ;;  %v8275_v10 = vld [vmem:[#allocation65_spill] sm:$0xff] }
 0x429   :  { %2884 = vmatpush.msrb.mxu2 %v8271_v17  ;;  %v6669_v17 = vld [vmem:[#allocation8 + $0xb0] sm:$0xff] }
 0x42a   :  { %2904 = vmatpush.msrb.mxu3 %v6353_v35  ;;  %2866 = vmatpush.msrb.mxu1 %v8273_v44  ;;  %v8276_v35 = vld [vmem:[#allocation21_spill] sm:$0xff]  ;;  %v8297_v44 = vld [vmem:[#allocation64_spill] sm:$0xff] }
 0x42b   :  { %2885 = vmatpush.msrb.mxu2 %v6325_v48  ;;  %v8277_v48 = vld [vmem:[#allocation81_spill] sm:$0xff] }
 0x42c   :  { %2905 = vmatpush.msrb.mxu3 %v6364_v59  ;;  %2867 = vmatpush.msrb.mxu1 %v8274_v40  ;;  %v8278_v59 = vld [vmem:[#allocation89_spill] sm:$0xff] }
 0x42d   :  { %2886 = vmatpush.msrb.mxu2 %v6335_v55  ;;  %v8279_v55 = vld [vmem:[#allocation91_spill] sm:$0xff] }
 0x42e   :  { %2906 = vmatpush.msrb.mxu3 %v6373_v41  ;;  %2868 = vmatpush.msrb.mxu1 %v8275_v10  ;;  %v8281_v41 = vld [vmem:[#allocation54_spill] sm:$0xff]  ;;  %v6675_v10 = vld [vmem:[#allocation8 + $0xf0] sm:$0xff] }
 0x42f   :  { %2887 = vmatpush.msrb.mxu2 %v6343_v7  ;;  %v8282_v7 = vld [vmem:[#allocation110_spill] sm:$0xff]  ;;  %3029 = vmatpush.msra.mxu0 %v6675_v10 }
 0x430   :  { %2907 = vmatpush.msrb.mxu3 %v6383_v43  ;;  %2869 = vmatpush.msrb.mxu1 %v8276_v35  ;;  %v8284_v43 = vld [vmem:[#allocation94_spill] sm:$0xff] }
 0x431   :  { %2888 = vmatpush.msrb.mxu2 %v6351_v13  ;;  %v8285_v13 = vld [vmem:[#allocation106_spill] sm:$0xff] }
 0x432   :  { %2908 = vmatpush.msrb.mxu3 %v6392_v25  ;;  %2870 = vmatpush.msrb.mxu1 %v8278_v59  ;;  %v8287_v25 = vld [vmem:[#allocation33_spill] sm:$0xff]  ;;  %v6677_v35 = vld [vmem:[#allocation8 + $0x98] sm:$0xff] }
 0x433   :  { %2889 = vmatpush.msrb.mxu2 %v8277_v48  ;;  %v6681_v59 = vld [vmem:[#allocation8 + $0xd8] sm:$0xff] }
 0x434   :  { %2909 = vmatpush.msrb.mxu3 %v8279_v55  ;;  %2871 = vmatpush.msrb.mxu1 %v8281_v41  ;;  %v6683_v55 = vld [vmem:[#allocation8 + $0x80] sm:$0xff] }
 0x435   :  { %2890 = vmatpush.msrb.mxu2 %v8280_v56  ;;  %3030 = vmatpush.msra.mxu0 %v6681_v59 }
 0x436   :  { %2910 = vmatpush.msrb.mxu3 %v8282_v7  ;;  %2872 = vmatpush.msrb.mxu1 %v8284_v43  ;;  %v6693_v43 = vld [vmem:[#allocation8 + $0x68] sm:$0xff] }
 0x437   :  { %2891 = vmatpush.msrb.mxu2 %v8283_v26  ;;  %v6691_v26 = vld [vmem:[#allocation8 + $0xc0] sm:$0xff] }
 0x438   :  { %2911 = vmatpush.msrb.mxu3 %v8285_v13  ;;  %2873 = vmatpush.msrb.mxu1 %v8287_v25  ;;  %v6700_v25 = vld [vmem:[#allocation8 + $0x50] sm:$0xff] }
 0x439   :  { %2892 = vmatpush.msrb.mxu2 %v8286_v53  ;;  %3031 = vmatpush.msra.mxu0 %v6691_v26  ;;  %v6698_v53 = vld [vmem:[#allocation8 + $0xa8] sm:$0xff] }
 0x43a   :  { %2912 = vmatpush.msrb.mxu3 %v6443_v37  ;;  %2874 = vmatpush.msrb.mxu1 %v8289_v23  ;;  %v6621_v37 = vld [vmem:[%s7505_s6] sm:$0x7]  ;;  %v6706_v23 = vld [vmem:[#allocation8 + $0x90] sm:$0xff] }
 0x43b   :  { %2893 = vmatpush.msrb.mxu2 %v8288_v28  ;;  %v2306_v62 = vperm.slane %v6621_v37, 0  ;;  %v2307_v4 = vperm.slane %v6621_v37, 1  ;;  %3032 = vmatpush.msra.mxu0 %v6698_v53 }
 0x43c   :  { %2913 = vmatpush.msrb.mxu3 %v6451_v0  ;;  %2875 = vmatpush.msrb.mxu1 %v8291_v21 }
 0x43d   :  { %2894 = vmatpush.msrb.mxu2 %v8290_v38  ;;  %v6708_v38 = vld [vmem:[#allocation8 + $0x38] sm:$0xff]  ;;  %3033 = vmatpush.msra.mxu0 %v6706_v23 }
 0x43e   :  { %2914 = vmatpush.msrb.mxu3 %v8292_v42  ;;  %3044 = vmatpush.msra.mxu1 %v6624_v27 }
 0x43f   :  { %2895 = vmatpush.msrb.mxu2 %v8293_v11 }
 0x440   :  { %2915 = vmatpush.msrb.mxu3 %v8294_v36  ;;  %3045 = vmatpush.msra.mxu1 %v6629_v6  ;;  %v4010_v36 = vld [vmem:[%s7507_s8] ss:$0 sm:$0xff] }
 0x442   :  { %3046 = vmatpush.msra.mxu1 %v6633_v58 }
 0x444   :  { %3047 = vmatpush.msra.mxu1 %v6636_v54 }
 0x446   :  { %3048 = vmatpush.msra.mxu1 %v6643_v2 }
 0x448   :  { %3049 = vmatpush.msra.mxu1 %v6649_v61 }
 0x44a   :  { %3050 = vmatpush.msra.mxu1 %v6655_v60 }
 0x44c   :  { %3051 = vmatpush.msra.mxu1 %v6661_v29 }
 0x44e   :  { %3052 = vmatpush.msra.mxu1 %v6669_v17 }
 0x450   :  { %3053 = vmatpush.msra.mxu1 %v6677_v35 }
 0x452   :  { %3054 = vmatpush.msra.mxu1 %v6683_v55 }
 0x454   :  { %3055 = vmatpush.msra.mxu1 %v6693_v43 }
 0x456   :  { %3056 = vmatpush.msra.mxu1 %v6700_v25 }
 0x458   :  { %3057 = vmatpush.msra.mxu1 %v6708_v38 }
 0x46e   :  { %v2437_v12 = vpop.f32.mrf.mxu0 }
 0x479   :  { %v2329_v0 = vpop.f32.mrf.mxu1 }
 0x47a   :  { %v2330_v49 = vadd.f32 %v2329_v0, %v2306_v62  ;;  %v6718_v62 = vld [vmem:[#allocation8 + $0x20] sm:$0xff] }
 0x47b   :  { %v2621_v57 = vpop.f32.mrf.mxu0  ;;  %3058 = vmatpush.msra.mxu1 %v6718_v62 }
 0x47c   :  { %v2481_v47 = vadd.f32 %v2437_v12, %v2330_v49  ;;  %v2665_v15 = vadd.f32 %v2621_v57, %v257_v1  ;;  %v6716_v12 = vld [vmem:[#allocation8 + $0x78] sm:$0xff]  ;;  %v6725_v49 = vld [vmem:[#allocation8 + $0x60] sm:$0xff]  ;;  %v6727_v57 = vld [vmem:[#allocation8 + $0x8] sm:$0xff] }
 0x47d   :  { %3034 = vmatpush.msra.mxu0 %v6716_v12  ;;  %3059 = vmatpush.msra.mxu1 %v6727_v57 }
 0x47e   :  { %v3963_v20 = vmul.f32 -1.442695, %v2481_v47  ;;  %v3966_v16 = vmul.f32 -1.442695, %v2665_v15  ;;  %v2308_v15 = vperm.slane %v6621_v37, 2 }
 0x47f   :  { %3035 = vmatpush.msra.mxu0 %v6725_v49 }
 0x480   :  { %v2349_v34 = vpop.f32.mrf.mxu2  ;;  %4108 = vpow2.f32 %v3963_v20  ;;  %v6639_v39 = vpop.f32.mrf.mxu3 }
 0x481   :  { %v2350_v52 = vadd.f32 %v2349_v34, %v2307_v4  ;;  %4110 = vpow2.f32 %v3966_v16 }
 0x482   :  { %v2457_v9 = vpop.f32.mrf.mxu1 }
 0x483   :  { %v2501_v33 = vadd.f32 %v2457_v9, %v2350_v52 }
 0x485   :  { %v3964_v63 = vmul.f32 -1.442695, %v2501_v33 }
 0x486   :  { %v4109_v18 = vpop.eup %4108 }
 0x487   :  { %v6663_v24 = vadd.f32 1.0, %v4109_v18  ;;  %4112 = vpow2.f32 %v3964_v63  ;;  %v4111_v32 = vpop.eup %4110  ;;  %v6738_v63 = vld [vmem:[#allocation8 + $0x48] sm:$0xff] }
 0x488   :  { %v6685_v41 = vadd.f32 1.0, %v4111_v32  ;;  %v2477_v4 = vpop.f32.mrf.mxu2  ;;  %3036 = vmatpush.msra.mxu0 %v6738_v63 }
 0x489   :  { %v2601_v14 = vpop.f32.mrf.mxu3  ;;  %4114 = vrcp.f32 %v6663_v24  ;;  %v2497_v11 = vand.u32 2147483648, %v6663_v24  ;;  %v2495_v30 = vand.u32 2147483647, %v6663_v24  ;;  %vm2491_vm9 = vweird.f32 %v6663_v24 }
 0x48a   :  { %v2645_v40 = vadd.f32 %v2601_v14, %v8297_v44  ;;  %v2524_v37 = vadd.f32 %v4010_v36, %v2477_v4  ;;  %vm2675_vm5 = vweird.f32 %v6685_v41 }
 0x48b   :  { %v2498_v52 = vor.u32 1.1754944e-38, %v2497_v11  ;;  %vm2496_vm11 = vcmp.eq.f32.partialorder %v2495_v30, 8.507059e+37  ;;  %v6754_v30 = vld [vmem:[#allocation8] sm:$0xff] }
 0x48c   :  { %v3965_v48 = vmul.f32 -1.442695, %v2645_v40 }
 0x48d   :  { %v4113_v56 = vpop.eup %4112 }
 0x48e   :  { %v6689_v7 = vadd.f32 1.0, %v4113_v56  ;;  %4116 = vpow2.f32 %v3965_v48  ;;  %v6745_v48 = vld [vmem:[#allocation8 + $0x30] sm:$0xff] }
 0x48f   :  { %v4115_v13 = vpop.eup %4114  ;;  %3037 = vmatpush.msra.mxu0 %v6745_v48 }
 0x490   :  { %4118 = vrcp.f32 %v6689_v7  ;;  %v2487_v28 = vmul.f32 %v4115_v13, %v6663_v24  ;;  %vm2492_vm8 = vweird.f32 %v4115_v13  ;;  %v2370_v24 = vadd.f32 %v6639_v39, %v2308_v15  ;;  %v6750_v39 = vld [vmem:[#allocation8 + $0x18] sm:$0xff] }
 0x491   :  { %4120 = vrcp.f32 %v6685_v41  ;;  %vm2493_vm10 = vmor %vm2491_vm9, %vm2492_vm8  ;;  %v2517_v44 = vand.u32 2147483648, %v6689_v7  ;;  %v2515_v56 = vand.u32 2147483647, %v6689_v7  ;;  %vm2511_vm13 = vweird.f32 %v6689_v7  ;;  %3038 = vmatpush.msra.mxu0 %v6750_v39 }
 0x492   :  { %v2488_v21 = vsub.f32 1.0, %v2487_v28 }
 0x493   :  { %v2518_v36 = vor.u32 1.1754944e-38, %v2517_v44  ;;  %vm2516_vm15 = vcmp.eq.f32.partialorder %v2515_v56, 8.507059e+37  ;;  %3039 = vmatpush.msra.mxu0 %v6754_v30 }
 0x494   :  { %v4117_v42 = vpop.eup %4116  ;;  %v2489_v0 = vmul.f32 %v4115_v13, %v2488_v21 }
 0x495   :  { %v6721_v1 = vadd.f32 1.0, %v4117_v42 }
 0x496   :  { %v4119_v47 = vpop.eup %4118  ;;  %v2490_v16 = vadd.f32 %v4115_v13, %v2489_v0 }
 0x497   :  { %v6730_v20 = vpop.eup %4120  ;;  %v2507_v34 = vmul.f32 %v4119_v47, %v6689_v7  ;;  %4122 = vrcp.f32 %v6721_v1  ;;  %vm2512_vm12 = vweird.f32 %v4119_v47  ;;  %v2659_v7 = vand.u32 2147483647, %v6721_v1 }
 0x498   :  { %v2494_v33 = vsel %vm2493_vm10, %v4115_v13, %v2490_v16  ;;  %v2671_v18 = vmul.f32 %v6730_v20, %v6685_v41  ;;  %vm2513_vm14 = vmor %vm2511_vm13, %vm2512_vm12  ;;  %vm2655_vm1 = vweird.f32 %v6721_v1  ;;  %vm2676_vm4 = vweird.f32 %v6730_v20 }
 0x499   :  { %v2508_v9 = vsub.f32 1.0, %v2507_v34  ;;  %v2499_v14 = vsel %vm2496_vm11, %v2498_v52, %v2494_v33  ;;  %v2661_v34 = vand.u32 2147483648, %v6721_v1  ;;  %v4011_v52 = vld [vmem:[%s7503_s4] ss:$0 sm:$0xff]  ;;  %vm2660_vm3 = vcmp.eq.f32.partialorder %v2659_v7, 8.507059e+37  ;;  %vm2677_vm6 = vmor %vm2675_vm5, %vm2676_vm4 }
 0x49a   :  { %v2525_v40 = vmul.f32 %v2524_v37, %v2499_v14  ;;  %v2672_v11 = vsub.f32 1.0, %v2671_v18 }
 0x49b   :  { %v2509_v32 = vmul.f32 %v4119_v47, %v2508_v9  ;;  %v2641_v9 = vpop.f32.mrf.mxu1 }
 0x49c   :  { %v2526_v21 = vadd.f32 %v2525_v40, %v2370_v24  ;;  %v2662_v24 = vor.u32 1.1754944e-38, %v2661_v34  ;;  %v2688_v44 = vadd.f32 %v4011_v52, %v2641_v9 }
 0x49d   :  { %v4123_v13 = vpop.eup %4122  ;;  %v2510_v28 = vadd.f32 %v4119_v47, %v2509_v32 }
 0x49e   :  { %v2651_v42 = vmul.f32 %v4123_v13, %v6721_v1  ;;  %4124 = vtanh.f32 %v2526_v21  ;;  %vm2656_vm0 = vweird.f32 %v4123_v13  ;;  %v8298_v21 = vld [vmem:[#allocation32_spill] sm:$0xff] }
 0x49f   :  { %v2514_v0 = vsel %vm2513_vm14, %v4119_v47, %v2510_v28  ;;  %v2673_v47 = vmul.f32 %v6730_v20, %v2672_v11  ;;  %vm2657_vm2 = vmor %vm2655_vm1, %vm2656_vm0  ;;  %v2681_v11 = vand.u32 2147483648, %v6685_v41 }
 0x4a0   :  { %v2652_v15 = vsub.f32 1.0, %v2651_v42  ;;  %v2519_v4 = vsel %vm2516_vm15, %v2518_v36, %v2514_v0  ;;  %v298_v42 = vadd.f32 %v8298_v21, %v8217_v46  ;;  %v6824_v21 = vld [vmem:[#allocation8 + $0x40] sm:$0xff] }
 0x4a1   :  { %v2528_v33 = vsub.f32 1.0, %v2519_v4  ;;  %v2530_v40 = vmul.f32 %v2519_v4, %v6491_v45  ;;  %v2674_v56 = vadd.f32 %v6730_v20, %v2673_v47  ;;  %v2682_v4 = vor.u32 1.1754944e-38, %v2681_v11  ;;  %8307 = vst [vmem:[#allocation57_spill] sm:$0xff] %v6824_v21  ;;  %v6830_v11 = vld [vmem:[#allocation8 + $0x10] sm:$0xff]  ;;  %v6858_v45 = vld [vmem:[#allocation9 + $0x158] sm:$0xff] }
 0x4a2   :  { %v2653_v16 = vmul.f32 %v4123_v13, %v2652_v15  ;;  %8309 = vst [vmem:[#allocation28_spill] sm:$0xff] %v6830_v11 }
 0x4a3   :  { %v2678_v15 = vsel %vm2677_vm6, %v6730_v20, %v2674_v56  ;;  %v6788_v20 = vld [vmem:[#allocation8 + $0x148] sm:$0xff]  ;;  %v6818_v56 = vld [vmem:[#allocation8 + $0x70] sm:$0xff] }
 0x4a4   :  { %v2654_v37 = vadd.f32 %v4123_v13, %v2653_v16  ;;  %v4125_v18 = vpop.eup %4124  ;;  %8305 = vst [vmem:[#allocation17_spill] sm:$0xff] %v6818_v56 }
 0x4a5   :  { %v2529_v14 = vmul.f32 %v4125_v18, %v2528_v33  ;;  %v6779_v33 = vld [vmem:[#allocation8 + $0x178] sm:$0xff]  ;;  %v6800_v18 = vld [vmem:[#allocation8 + $0x100] sm:$0xff] }
 0x4a6   :  { %v2658_v32 = vsel %vm2657_vm2, %v4123_v13, %v2654_v37  ;;  %v2679_v13 = vand.u32 2147483647, %v6685_v41  ;;  %v6785_v41 = vld [vmem:[#allocation8 + $0x160] sm:$0xff]  ;;  %v6794_v37 = vld [vmem:[#allocation8 + $0x118] sm:$0xff]  ;;  %8299 = vst [vmem:[#allocation112_spill] sm:$0xff] %v6800_v18 }
 0x4a7   :  { %v2663_v28 = vsel %vm2660_vm3, %v2662_v24, %v2658_v32  ;;  %v6770_v36 = vadd.f32 %v2530_v40, %v2529_v14  ;;  %v6803_v24 = vld [vmem:[#allocation8 + $0xe8] sm:$0xff]  ;;  %v6806_v14 = vld [vmem:[#allocation8 + $0xd0] sm:$0xff]  ;;  %v6809_v32 = vld [vmem:[#allocation8 + $0xb8] sm:$0xff] }
 0x4a8   :  { %v2689_v1 = vmul.f32 %v2688_v44, %v2663_v28  ;;  %vm2680_vm7 = vcmp.eq.f32.partialorder %v2679_v13, 8.507059e+37  ;;  %8300 = vst [vmem:[#allocation109_spill] sm:$0xff] %v6803_v24  ;;  %v6812_v44 = vld [vmem:[#allocation8 + $0xa0] sm:$0xff]  ;;  %v6815_v40 = vld [vmem:[#allocation8 + $0x88] sm:$0xff]  ;;  %v6821_v28 = vld [vmem:[#allocation8 + $0x58] sm:$0xff] }
 0x4a9   :  { %2876 = vmatmul.f32.vlgmr.msrb.gmra.mxu1 %v6770_v36  ;;  %v2683_v7 = vsel %vm2680_vm7, %v2682_v4, %v2678_v15  ;;  %8301 = vst [vmem:[#allocation113_spill] sm:$0xff] %v6806_v14  ;;  %v6837_v13 = vld [vmem:[#allocation9 + $0x150] sm:$0xff]  ;;  %v6843_v15 = vld [vmem:[#allocation9 + $0x120] sm:$0xff]  ;;  %v3297_v4 = vld [vmem:[#allocation11 + $0x168] sm:$0xff] }
 0x4aa   :  { %v2690_v0 = vadd.f32 %v2689_v1, %v298_v42  ;;  %v2692_v34 = vsub.f32 1.0, %v2683_v7  ;;  %v2694_v47 = vmul.f32 %v2683_v7, %v6501_v22  ;;  %v6791_v22 = vld [vmem:[#allocation8 + $0x130] sm:$0xff]  ;;  %8302 = vst [vmem:[#allocation114_spill] sm:$0xff] %v6809_v32  ;;  %v6827_v42 = vld [vmem:[#allocation8 + $0x28] sm:$0xff] }
 0x4ab   :  { %8303 = vst [vmem:[#allocation47_spill] sm:$0xff] %v6812_v44  ;;  %v6835_v1 = vld [vmem:[#allocation9 + $0x168] sm:$0xff] }
 0x4ac   :  { %4126 = vtanh.f32 %v2690_v0  ;;  %8304 = vst [vmem:[#allocation63_spill] sm:$0xff] %v6815_v40  ;;  %v6840_v0 = vld [vmem:[#allocation9 + $0x138] sm:$0xff]  ;;  %v6847_v7 = vld [vmem:[#allocation9 + $0x108] sm:$0xff] }
 0x4ad   :  { %8306 = vst [vmem:[#allocation15_spill] sm:$0xff] %v6821_v28 }
 0x4ae   :  { %8308 = vst [vmem:[#allocation60_spill] sm:$0xff] %v6827_v42 }
 0x4af   :  { %8310 = vst [vmem:[#allocation27_spill] sm:$0xff] %v6847_v7 }
 0x4b2   :  { %v4127_v16 = vpop.eup %4126 }
 0x4b3   :  { %v2693_v52 = vmul.f32 %v4127_v16, %v2692_v34  ;;  %v6849_v34 = vld [vmem:[#allocation9 + $0x170] sm:$0xff]  ;;  %v6851_v16 = vld [vmem:[#allocation9 + $0x178] sm:$0xff] }
 0x4b4   :  { %3232 = vmatpush.msrb.mxu1 %v6851_v16 }
 0x4b5   :  { %v6777_v9 = vadd.f32 %v2694_v47, %v2693_v52  ;;  %v3294_v52 = vld [vmem:[#allocation11 + $0x150] sm:$0xff] }
 0x4b6   :  { %v6856_v47 = vld [vmem:[#allocation9 + $0xf0] sm:$0xff]  ;;  %3233 = vmatpush.msrb.mxu1 %v6860_v3 }
 0x4b7   :  { %2768 = vmatmul.f32.vlgmr.msra.gmra.mxu2 %v6777_v9  ;;  %2788 = vmatmul.f32.vlgmr.msra.gmra.mxu3 %v6777_v9  ;;  %8311 = vst [vmem:[#allocation19_spill] sm:$0xff] %v6856_v47 }
 0x4b8   :  { %2808 = vmatmul.f32.vlgmr.msrb.gmra.mxu0 %v6777_v9  ;;  %3060 = vmatmul.f32.vlgmr.msra.gmra.mxu1 %v6777_v9 }
 0x4b9   :  { %3064 = vmatpush.msra.mxu2 %v6779_v33  ;;  %3192 = vmatpush.msra.mxu3 %v6835_v1 }
 0x4ba   :  { %3212 = vmatpush.msrb.mxu0 %v6849_v34 }
 0x4bb   :  { %3065 = vmatpush.msra.mxu2 %v6785_v41  ;;  %3193 = vmatpush.msra.mxu3 %v6837_v13 }
 0x4bc   :  { %3213 = vmatpush.msrb.mxu0 %v6858_v45 }
 0x4bd   :  { %3066 = vmatpush.msra.mxu2 %v6788_v20  ;;  %3194 = vmatpush.msra.mxu3 %v6840_v0 }
 0x4bf   :  { %3067 = vmatpush.msra.mxu2 %v6791_v22  ;;  %2916 = vmatmul.f32.vlgmr.msrb.gmra.mxu3 %v6770_v36 }
 0x4c0   :  { %2896 = vmatmul.f32.vlgmr.msrb.gmra.mxu2 %v6770_v36  ;;  %3040 = vmatmul.f32.vlgmr.msra.gmra.mxu0 %v6777_v9 }
 0x4c1   :  { %3068 = vmatpush.msra.mxu2 %v6794_v37  ;;  %3195 = vmatpush.msra.mxu3 %v6843_v15 }
 0x4c3   :  { %3069 = vmatpush.msra.mxu2 %v6800_v18  ;;  %3196 = vmatpush.msra.mxu3 %v6847_v7  ;;  %v7037_v18 = vld [vmem:[#allocation11 + $0x178] sm:$0xff] }
 0x4c5   :  { %3070 = vmatpush.msra.mxu2 %v6803_v24  ;;  %3197 = vmatpush.msra.mxu3 %v6856_v47  ;;  %v6909_v47 = vld [vmem:[#allocation11 + $0xd8] sm:$0xff]  ;;  %v6921_v24 = vld [vmem:[#allocation11 + $0xc0] sm:$0xff] }
 0x4c6   :  { %8324 = vst [vmem:[#allocation49_spill] sm:$0xff] %v6909_v47 }
 0x4c7   :  { %3071 = vmatpush.msra.mxu2 %v6806_v14  ;;  %v6903_v14 = vld [vmem:[#allocation9 + $0xf8] sm:$0xff]  ;;  %8328 = vst [vmem:[#allocation90_spill] sm:$0xff] %v6921_v24 }
 0x4c8   :  { %8322 = vst [vmem:[#allocation18_spill] sm:$0xff] %v6903_v14 }
 0x4c9   :  { %3072 = vmatpush.msra.mxu2 %v6809_v32  ;;  %v6891_v32 = vld [vmem:[#allocation9 + $0x110] sm:$0xff] }
 0x4ca   :  { %8318 = vst [vmem:[#allocation66_spill] sm:$0xff] %v6891_v32 }
 0x4cb   :  { %3073 = vmatpush.msra.mxu2 %v6812_v44  ;;  %v6889_v44 = vld [vmem:[#allocation9 + $0xa8] sm:$0xff] }
 0x4cc   :  { %8317 = vst [vmem:[#allocation88_spill] sm:$0xff] %v6889_v44 }
 0x4cd   :  { %3074 = vmatpush.msra.mxu2 %v6815_v40  ;;  %v6885_v40 = vld [vmem:[#allocation11 + $0x108] sm:$0xff] }
 0x4ce   :  { %8316 = vst [vmem:[#allocation45_spill] sm:$0xff] %v6885_v40 }
 0x4cf   :  { %3075 = vmatpush.msra.mxu2 %v6818_v56  ;;  %v6879_v56 = vld [vmem:[#allocation9 + $0x128] sm:$0xff] }
 0x4d1   :  { %3076 = vmatpush.msra.mxu2 %v6821_v28  ;;  %v6877_v28 = vld [vmem:[#allocation9 + $0xc0] sm:$0xff] }
 0x4d2   :  { %8314 = vst [vmem:[#allocation23_spill] sm:$0xff] %v6877_v28 }
 0x4d3   :  { %3077 = vmatpush.msra.mxu2 %v6824_v21  ;;  %v6869_v21 = vld [vmem:[#allocation9 + $0x148] sm:$0xff] }
 0x4d4   :  { %3234 = vmatpush.msrb.mxu1 %v6869_v21 }
 0x4d5   :  { %3078 = vmatpush.msra.mxu2 %v6827_v42  ;;  %v6867_v42 = vld [vmem:[#allocation9 + $0x140] sm:$0xff] }
 0x4d6   :  { %3214 = vmatpush.msrb.mxu0 %v6867_v42 }
 0x4d7   :  { %3079 = vmatpush.msra.mxu2 %v6830_v11  ;;  %v6865_v11 = vld [vmem:[#allocation9 + $0xd8] sm:$0xff] }
 0x4d8   :  { %3080 = vmatmul.f32.vlgmr.msra.gmra.mxu2 %v6777_v9  ;;  %8312 = vst [vmem:[#allocation56_spill] sm:$0xff] %v6865_v11  ;;  %3198 = vmatpush.msra.mxu3 %v6865_v11  ;;  %v6897_v11 = vld [vmem:[#allocation11 + $0xf0] sm:$0xff] }
 0x4d9   :  { %3300 = vmatpush.msrb.mxu2 %v3297_v4  ;;  %v3291_v4 = vld [vmem:[#allocation11 + $0x138] sm:$0xff]  ;;  %3215 = vmatpush.msrb.mxu0 %v6879_v56  ;;  %8320 = vst [vmem:[#allocation29_spill] sm:$0xff] %v6897_v11 }
 0x4da   :  { %3199 = vmatpush.msra.mxu3 %v6877_v28  ;;  %v6901_v28 = vld [vmem:[#allocation9 + $0x90] sm:$0xff] }
 0x4db   :  { %3301 = vmatpush.msrb.mxu2 %v3294_v52  ;;  %v6873_v52 = vld [vmem:[#allocation11 + $0x120] sm:$0xff]  ;;  %3216 = vmatpush.msrb.mxu0 %v6891_v32  ;;  %8321 = vst [vmem:[#allocation58_spill] sm:$0xff] %v6901_v28  ;;  %v6995_v32 = vld [vmem:[#allocation11 + $0x30] sm:$0xff] }
 0x4dc   :  { %8313 = vst [vmem:[#allocation97_spill] sm:$0xff] %v6873_v52  ;;  %3200 = vmatpush.msra.mxu3 %v6889_v44  ;;  %v6913_v44 = vld [vmem:[#allocation9 + $0x78] sm:$0xff] }
 0x4dd   :  { %3302 = vmatpush.msrb.mxu2 %v3291_v4  ;;  %v6881_v4 = vld [vmem:[#allocation9 + $0x130] sm:$0xff]  ;;  %3217 = vmatpush.msrb.mxu0 %v6903_v14  ;;  %8325 = vst [vmem:[#allocation31_spill] sm:$0xff] %v6913_v44  ;;  %v6933_v14 = vld [vmem:[#allocation11 + $0xa8] sm:$0xff] }
 0x4de   :  { %8315 = vst [vmem:[#allocation30_spill] sm:$0xff] %v6881_v4  ;;  %3235 = vmatpush.msrb.mxu1 %v6881_v4  ;;  %3201 = vmatpush.msra.mxu3 %v6901_v28  ;;  %v6925_v28 = vld [vmem:[#allocation9 + $0x60] sm:$0xff] }
 0x4df   :  { %3303 = vmatpush.msrb.mxu2 %v6873_v52  ;;  %v6893_v52 = vld [vmem:[#allocation9 + $0x118] sm:$0xff]  ;;  %8329 = vst [vmem:[#allocation103_spill] sm:$0xff] %v6925_v28 }
 0x4e0   :  { %8319 = vst [vmem:[#allocation43_spill] sm:$0xff] %v6893_v52  ;;  %3236 = vmatpush.msrb.mxu1 %v6893_v52  ;;  %v6915_v52 = vld [vmem:[#allocation9 + $0xe0] sm:$0xff]  ;;  %3202 = vmatpush.msra.mxu3 %v6913_v44  ;;  %v6937_v44 = vld [vmem:[#allocation9 + $0x48] sm:$0xff] }
 0x4e1   :  { %3304 = vmatpush.msrb.mxu2 %v6885_v40  ;;  %v6905_v40 = vld [vmem:[#allocation9 + $0x100] sm:$0xff]  ;;  %8326 = vst [vmem:[#allocation69_spill] sm:$0xff] %v6915_v52  ;;  %3218 = vmatpush.msrb.mxu0 %v6915_v52  ;;  %v6945_v52 = vld [vmem:[#allocation11 + $0x90] sm:$0xff] }
 0x4e2   :  { %8323 = vst [vmem:[#allocation71_spill] sm:$0xff] %v6905_v40  ;;  %3237 = vmatpush.msrb.mxu1 %v6905_v40  ;;  %v6927_v40 = vld [vmem:[#allocation9 + $0xc8] sm:$0xff]  ;;  %3203 = vmatpush.msra.mxu3 %v6925_v28  ;;  %v6949_v28 = vld [vmem:[#allocation9 + $0x30] sm:$0xff] }
 0x4e3   :  { %3305 = vmatpush.msrb.mxu2 %v6897_v11  ;;  %v6917_v11 = vld [vmem:[#allocation9 + $0xe8] sm:$0xff]  ;;  %8330 = vst [vmem:[#allocation24_spill] sm:$0xff] %v6927_v40  ;;  %3219 = vmatpush.msrb.mxu0 %v6927_v40  ;;  %v6957_v40 = vld [vmem:[#allocation11 + $0x78] sm:$0xff] }
 0x4e4   :  { %8327 = vst [vmem:[#allocation20_spill] sm:$0xff] %v6917_v11  ;;  %3238 = vmatpush.msrb.mxu1 %v6917_v11  ;;  %v6939_v11 = vld [vmem:[#allocation9 + $0xb0] sm:$0xff]  ;;  %3204 = vmatpush.msra.mxu3 %v6937_v44 }
 0x4e5   :  { %3306 = vmatpush.msrb.mxu2 %v6909_v47  ;;  %v6929_v47 = vld [vmem:[#allocation9 + $0xd0] sm:$0xff]  ;;  %8332 = vst [vmem:[#allocation22_spill] sm:$0xff] %v6933_v14  ;;  %3220 = vmatpush.msrb.mxu0 %v6939_v11 }
 0x4e6   :  { %8331 = vst [vmem:[#allocation61_spill] sm:$0xff] %v6929_v47  ;;  %3239 = vmatpush.msrb.mxu1 %v6929_v47  ;;  %v6951_v47 = vld [vmem:[#allocation9 + $0x98] sm:$0xff]  ;;  %3205 = vmatpush.msra.mxu3 %v6949_v28 }
 0x4e7   :  { %3307 = vmatpush.msrb.mxu2 %v6921_v24  ;;  %8333 = vst [vmem:[#allocation34_spill] sm:$0xff] %v6937_v44  ;;  %v6941_v24 = vld [vmem:[#allocation9 + $0xb8] sm:$0xff]  ;;  %3221 = vmatpush.msrb.mxu0 %v6951_v47 }
 0x4e8   :  { %8334 = vst [vmem:[#allocation44_spill] sm:$0xff] %v6939_v11  ;;  %3240 = vmatpush.msrb.mxu1 %v6941_v24  ;;  %v6961_v44 = vld [vmem:[#allocation9 + $0x18] sm:$0xff]  ;;  %v6969_v11 = vld [vmem:[#allocation11 + $0x60] sm:$0xff] }
 0x4e9   :  { %3308 = vmatpush.msrb.mxu2 %v6933_v14  ;;  %8335 = vst [vmem:[#allocation50_spill] sm:$0xff] %v6941_v24  ;;  %v6953_v14 = vld [vmem:[#allocation9 + $0xa0] sm:$0xff]  ;;  %3206 = vmatpush.msra.mxu3 %v6961_v44 }
 0x4ea   :  { %8336 = vst [vmem:[#allocation40_spill] sm:$0xff] %v6945_v52  ;;  %3241 = vmatpush.msrb.mxu1 %v6953_v14  ;;  %v6963_v24 = vld [vmem:[#allocation9 + $0x80] sm:$0xff] }
 0x4eb   :  { %3309 = vmatpush.msrb.mxu2 %v6945_v52  ;;  %8337 = vst [vmem:[#allocation86_spill] sm:$0xff] %v6949_v28  ;;  %v6965_v52 = vld [vmem:[#allocation9 + $0x88] sm:$0xff]  ;;  %3222 = vmatpush.msrb.mxu0 %v6963_v24  ;;  %v6973_v28 = vld [vmem:[#allocation9] sm:$0xff] }
 0x4ec   :  { %8338 = vst [vmem:[#allocation52_spill] sm:$0xff] %v6951_v47  ;;  %3242 = vmatpush.msrb.mxu1 %v6965_v52  ;;  %3207 = vmatpush.msra.mxu3 %v6973_v28 }
 0x4ed   :  { %8339 = vst [vmem:[#allocation73_spill] sm:$0xff] %v6953_v14  ;;  %3310 = vmatpush.msrb.mxu2 %v6957_v40  ;;  %v6975_v14 = vld [vmem:[#allocation9 + $0x68] sm:$0xff] }
 0x4ee   :  { %8340 = vst [vmem:[#allocation48_spill] sm:$0xff] %v6957_v40  ;;  %v6977_v40 = vld [vmem:[#allocation9 + $0x70] sm:$0xff]  ;;  %3223 = vmatpush.msrb.mxu0 %v6975_v14 }
 0x4ef   :  { %8341 = vst [vmem:[#allocation92_spill] sm:$0xff] %v6961_v44  ;;  %3311 = vmatpush.msrb.mxu2 %v6969_v11  ;;  %v6983_v44 = vld [vmem:[#allocation11 + $0x48] sm:$0xff]  ;;  %3243 = vmatpush.msrb.mxu1 %v6977_v40 }
 0x4f0   :  { %8342 = vst [vmem:[#allocation25_spill] sm:$0xff] %v6963_v24  ;;  %v6985_v24 = vld [vmem:[#allocation11 + $0x170] sm:$0xff] }
 0x4f1   :  { %8343 = vst [vmem:[#allocation93_spill] sm:$0xff] %v6965_v52  ;;  %3312 = vmatpush.msrb.mxu2 %v6983_v44  ;;  %v6991_v52 = vld [vmem:[#allocation9 + $0x58] sm:$0xff]  ;;  %3320 = vmatpush.msrb.mxu3 %v6985_v24 }
 0x4f2   :  { %8344 = vst [vmem:[#allocation100_spill] sm:$0xff] %v6969_v11  ;;  %v6989_v11 = vld [vmem:[#allocation9 + $0x50] sm:$0xff]  ;;  %3244 = vmatpush.msrb.mxu1 %v6991_v52 }
 0x4f3   :  { %8345 = vst [vmem:[#allocation39_spill] sm:$0xff] %v6973_v28  ;;  %3224 = vmatpush.msrb.mxu0 %v6989_v11  ;;  %v6997_v28 = vld [vmem:[#allocation11 + $0x158] sm:$0xff]  ;;  %3313 = vmatpush.msrb.mxu2 %v6995_v32 }
 0x4f4   :  { %8346 = vst [vmem:[#allocation59_spill] sm:$0xff] %v6975_v14  ;;  %v7001_v14 = vld [vmem:[#allocation9 + $0x38] sm:$0xff]  ;;  %3321 = vmatpush.msrb.mxu3 %v6997_v28 }
 0x4f5   :  { %8347 = vst [vmem:[#allocation37_spill] sm:$0xff] %v6977_v40  ;;  %v7003_v40 = vld [vmem:[#allocation9 + $0x40] sm:$0xff]  ;;  %3225 = vmatpush.msrb.mxu0 %v7001_v14 }
 0x4f6   :  { %8348 = vst [vmem:[#allocation72_spill] sm:$0xff] %v6983_v44  ;;  %v7007_v44 = vld [vmem:[#allocation11 + $0x18] sm:$0xff]  ;;  %3245 = vmatpush.msrb.mxu1 %v7003_v40 }
 0x4f7   :  { %8349 = vst [vmem:[#allocation98_spill] sm:$0xff] %v6985_v24  ;;  %v7009_v24 = vld [vmem:[#allocation11 + $0x140] sm:$0xff]  ;;  %3314 = vmatpush.msrb.mxu2 %v7007_v44 }
 0x4f8   :  { %8350 = vst [vmem:[#allocation104_spill] sm:$0xff] %v6989_v11  ;;  %v7013_v11 = vld [vmem:[#allocation9 + $0x20] sm:$0xff]  ;;  %3322 = vmatpush.msrb.mxu3 %v7009_v24 }
 0x4f9   :  { %8351 = vst [vmem:[#allocation41_spill] sm:$0xff] %v6991_v52  ;;  %v7015_v52 = vld [vmem:[#allocation9 + $0x28] sm:$0xff]  ;;  %3226 = vmatpush.msrb.mxu0 %v7013_v11 }
 0x4fa   :  { %8352 = vst [vmem:[#allocation55_spill] sm:$0xff] %v6995_v32  ;;  %v7019_v32 = vld [vmem:[#allocation11] sm:$0xff]  ;;  %3246 = vmatpush.msrb.mxu1 %v7015_v52 }
 0x4fb   :  { %8353 = vst [vmem:[#allocation62_spill] sm:$0xff] %v6997_v28  ;;  %v7021_v28 = vld [vmem:[#allocation11 + $0x128] sm:$0xff]  ;;  %3315 = vmatpush.msrb.mxu2 %v7019_v32 }
 0x4fc   :  { %8354 = vst [vmem:[#allocation26_spill] sm:$0xff] %v7001_v14  ;;  %v8362_v14 = vld [vmem:[#allocation36_spill] sm:$0xff]  ;;  %3323 = vmatpush.msrb.mxu3 %v7021_v28 }
 0x4fd   :  { %8355 = vst [vmem:[#allocation102_spill] sm:$0xff] %v7003_v40  ;;  %v260_v7 = vadd.f32 %v8362_v14, %v8295_v5  ;;  %v7029_v40 = vld [vmem:[#allocation9 + $0x10] sm:$0xff]  ;;  %v7042_v14 = vld [vmem:[%s7505_s6] sm:$0x7]  ;;  %3484 = vmatpush.msra.mxu2 %v6624_v27  ;;  %v7057_v27 = vld [vmem:[#allocation11 + $0xe0] sm:$0xff] }
 0x4fe   :  { %8356 = vst [vmem:[#allocation77_spill] sm:$0xff] %v7007_v44  ;;  %v7027_v44 = vld [vmem:[#allocation9 + $0x8] sm:$0xff]  ;;  %3247 = vmatpush.msrb.mxu1 %v7029_v40  ;;  %v2746_v5 = vperm.slane %v7042_v14, 0 }
 0x4ff   :  { %8357 = vst [vmem:[#allocation76_spill] sm:$0xff] %v7009_v24  ;;  %3227 = vmatpush.msrb.mxu0 %v7027_v44  ;;  %3485 = vmatpush.msra.mxu2 %v6629_v6  ;;  %v7065_v6 = vld [vmem:[#allocation11 + $0xc8] sm:$0xff] }
 0x500   :  { %8358 = vst [vmem:[#allocation46_spill] sm:$0xff] %v7013_v11  ;;  %v7035_v11 = vld [vmem:[#allocation11 + $0x110] sm:$0xff]  ;;  %3464 = vmatpush.msra.mxu1 %v6641_v50 }
 0x501   :  { %8359 = vst [vmem:[#allocation79_spill] sm:$0xff] %v7015_v52  ;;  %3324 = vmatpush.msrb.mxu3 %v7035_v11  ;;  %3340 = vmatpush.msra.mxu0 %v7037_v18  ;;  %v7067_v50 = vld [vmem:[#allocation11 + $0x130] sm:$0xff] }
 0x502   :  { %8360 = vst [vmem:[#allocation80_spill] sm:$0xff] %v7019_v32  ;;  %3465 = vmatpush.msra.mxu1 %v6647_v51  ;;  %3486 = vmatpush.msra.mxu2 %v6633_v58  ;;  %v7076_v58 = vld [vmem:[#allocation11 + $0x118] sm:$0xff]  ;;  %v2747_v51 = vperm.slane %v7042_v14, 1 }
 0x503   :  { %8361 = vst [vmem:[#allocation105_spill] sm:$0xff] %v7021_v28  ;;  %v7049_v28 = vld [vmem:[#allocation11 + $0xf8] sm:$0xff] }
 0x504   :  { %8363 = vst [vmem:[#allocation51_spill] sm:$0xff] %v7027_v44  ;;  %v7051_v44 = vld [vmem:[#allocation11 + $0x160] sm:$0xff]  ;;  %3325 = vmatpush.msrb.mxu3 %v7049_v28  ;;  %3466 = vmatpush.msra.mxu1 %v6653_v19 }
 0x505   :  { %8364 = vst [vmem:[#allocation83_spill] sm:$0xff] %v7035_v11  ;;  %3341 = vmatpush.msra.mxu0 %v7051_v44  ;;  %3487 = vmatpush.msra.mxu2 %v6636_v54 }
 0x506   :  { %8365 = vst [vmem:[#allocation75_spill] sm:$0xff] %v7049_v28  ;;  %3326 = vmatpush.msrb.mxu3 %v7057_v27  ;;  %3467 = vmatpush.msra.mxu1 %v6659_v31  ;;  %v7094_v31 = vld [vmem:[#allocation11 + $0xe8] sm:$0xff] }
 0x507   :  { %8366 = vst [vmem:[#allocation65_spill] sm:$0xff] %v7057_v27  ;;  %3488 = vmatpush.msra.mxu2 %v6643_v2  ;;  %v7092_v2 = vld [vmem:[#allocation11 + $0x80] sm:$0xff] }
 0x508   :  { %8367 = vst [vmem:[#allocation21_spill] sm:$0xff] %v7065_v6  ;;  %3327 = vmatpush.msrb.mxu3 %v7065_v6  ;;  %3468 = vmatpush.msra.mxu1 %v6667_v8 }
 0x509   :  { %3489 = vmatpush.msra.mxu2 %v6649_v61  ;;  %v7102_v61 = vld [vmem:[#allocation11 + $0x68] sm:$0xff] }
 0x50a   :  { %3469 = vmatpush.msra.mxu1 %v6675_v10  ;;  %8369 = vst [vmem:[#allocation81_spill] sm:$0xff] %v7102_v61  ;;  %v7112_v10 = vld [vmem:[#allocation11 + $0xb8] sm:$0xff] }
 0x50b   :  { %3490 = vmatpush.msra.mxu2 %v6655_v60  ;;  %v7110_v60 = vld [vmem:[#allocation11 + $0x50] sm:$0xff] }
 0x50c   :  { %3470 = vmatpush.msra.mxu1 %v6681_v59  ;;  %8370 = vst [vmem:[#allocation89_spill] sm:$0xff] %v7110_v60  ;;  %v7121_v59 = vld [vmem:[#allocation11 + $0xa0] sm:$0xff] }
 0x50d   :  { %3491 = vmatpush.msra.mxu2 %v6661_v29  ;;  %v7119_v29 = vld [vmem:[#allocation11 + $0x38] sm:$0xff] }
 0x50e   :  { %3471 = vmatpush.msra.mxu1 %v6691_v26  ;;  %8371 = vst [vmem:[#allocation91_spill] sm:$0xff] %v7119_v29  ;;  %v7131_v26 = vld [vmem:[#allocation11 + $0x20] sm:$0xff] }
 0x50f   :  { %3492 = vmatpush.msra.mxu2 %v6669_v17  ;;  %8372 = vst [vmem:[#allocation84_spill] sm:$0xff] %v7131_v26 }
 0x510   :  { %3472 = vmatpush.msra.mxu1 %v6698_v53  ;;  %v7143_v53 = vld [vmem:[#allocation11 + $0x70] sm:$0xff] }
 0x511   :  { %3493 = vmatpush.msra.mxu2 %v6677_v35  ;;  %v7141_v35 = vld [vmem:[#allocation11 + $0x8] sm:$0xff]  ;;  %8375 = vst [vmem:[#allocation68_spill] sm:$0xff] %v7143_v53 }
 0x512   :  { %3473 = vmatpush.msra.mxu1 %v6706_v23  ;;  %8374 = vst [vmem:[#allocation110_spill] sm:$0xff] %v7141_v35  ;;  %v7153_v23 = vld [vmem:[#allocation11 + $0x58] sm:$0xff] }
 0x513   :  { %3494 = vmatpush.msra.mxu2 %v6683_v55  ;;  %8376 = vst [vmem:[#allocation94_spill] sm:$0xff] %v7153_v23 }
 0x514   :  { %3474 = vmatpush.msra.mxu1 %v6716_v12 }
 0x515   :  { %3495 = vmatpush.msra.mxu2 %v6693_v43  ;;  %v7160_v43 = vld [vmem:[#allocation11 + $0x40] sm:$0xff] }
 0x516   :  { %3475 = vmatpush.msra.mxu1 %v6725_v49  ;;  %8377 = vst [vmem:[#allocation106_spill] sm:$0xff] %v7160_v43 }
 0x517   :  { %3496 = vmatpush.msra.mxu2 %v6700_v25 }
 0x518   :  { %3476 = vmatpush.msra.mxu1 %v6738_v63  ;;  %v7170_v63 = vld [vmem:[#allocation11 + $0x28] sm:$0xff] }
 0x519   :  { %3497 = vmatpush.msra.mxu2 %v6708_v38  ;;  %8378 = vst [vmem:[#allocation87_spill] sm:$0xff] %v7170_v63  ;;  %v4012_v38 = vld [vmem:[%s7507_s8] ss:$0 sm:$0xff] }
 0x51a   :  { %3477 = vmatpush.msra.mxu1 %v6745_v48  ;;  %v7179_v48 = vld [vmem:[#allocation11 + $0x10] sm:$0xff] }
 0x51b   :  { %3498 = vmatpush.msra.mxu2 %v6718_v62  ;;  %8379 = vst [vmem:[#allocation33_spill] sm:$0xff] %v7179_v48 }
 0x51c   :  { %3478 = vmatpush.msra.mxu1 %v6750_v39 }
 0x51d   :  { %3499 = vmatpush.msra.mxu2 %v6727_v57  ;;  %v8380_v57 = vld [vmem:[#allocation42_spill] sm:$0xff] }
 0x51e   :  { %3479 = vmatpush.msra.mxu1 %v6754_v30  ;;  %v4013_v30 = vld [vmem:[%s7503_s4] ss:$0 sm:$0xff] }
 0x526   :  { %v6979_v47 = vpop.f32.mrf.mxu1 }
 0x535   :  { %v7031_v4 = vpop.f32.mrf.mxu0  ;;  %v3061_v24 = vpop.f32.mrf.mxu1 }
 0x536   :  { %v3105_v32 = vadd.f32 %v3061_v24, %v260_v7  ;;  %v7059_v24 = vld [vmem:[#allocation11 + $0x148] sm:$0xff] }
 0x537   :  { %3342 = vmatpush.msra.mxu0 %v7059_v24 }
 0x538   :  { %v3970_v52 = vmul.f32 -1.442695, %v3105_v32 }
 0x539   :  { %3343 = vmatpush.msra.mxu0 %v7067_v50 }
 0x53a   :  { %4128 = vpow2.f32 %v3970_v52  ;;  %v2769_v7 = vpop.f32.mrf.mxu2  ;;  %v2789_v19 = vpop.f32.mrf.mxu3 }
 0x53b   :  { %v2770_v11 = vadd.f32 %v2769_v7, %v2746_v5  ;;  %v7074_v5 = vld [vmem:[#allocation11 + $0xb0] sm:$0xff]  ;;  %v8368_v7 = vld [vmem:[#allocation74_spill] sm:$0xff]  ;;  %3344 = vmatpush.msra.mxu0 %v7076_v58 }
 0x53c   :  { %3328 = vmatpush.msrb.mxu3 %v7074_v5 }
 0x53d   :  { %v2921_v32 = vadd.f32 %v6979_v47, %v2770_v11  ;;  %v3041_v52 = vpop.f32.mrf.mxu0  ;;  %v7084_v11 = vld [vmem:[#allocation11 + $0x98] sm:$0xff]  ;;  %v7086_v47 = vld [vmem:[#allocation11 + $0x100] sm:$0xff] }
 0x53e   :  { %v3085_v27 = vadd.f32 %v3041_v52, %v8368_v7  ;;  %3329 = vmatpush.msrb.mxu3 %v7084_v11  ;;  %3345 = vmatpush.msra.mxu0 %v7086_v47  ;;  %v7104_v52 = vld [vmem:[#allocation11 + $0xd0] sm:$0xff] }
 0x53f   :  { %v3967_v54 = vmul.f32 -1.442695, %v2921_v32  ;;  %v2790_v32 = vadd.f32 %v2789_v19, %v2747_v51  ;;  %v7133_v19 = vld [vmem:[#allocation11 + $0x88] sm:$0xff] }
 0x540   :  { %v4129_v6 = vpop.eup %4128  ;;  %v3969_v28 = vmul.f32 -1.442695, %v3085_v27  ;;  %3330 = vmatpush.msrb.mxu3 %v7092_v2  ;;  %3346 = vmatpush.msra.mxu0 %v7094_v31  ;;  %8373 = vst [vmem:[#allocation54_spill] sm:$0xff] %v7133_v19 }
 0x541   :  { %4130 = vpow2.f32 %v3967_v54  ;;  %v7098_v27 = vadd.f32 1.0, %v4129_v6 }
 0x542   :  { %4132 = vpow2.f32 %v3969_v28  ;;  %3331 = vmatpush.msrb.mxu3 %v7102_v61  ;;  %3347 = vmatpush.msra.mxu0 %v7104_v52 }
 0x543   :  { %v2897_v8 = vpop.f32.mrf.mxu2  ;;  %4134 = vrcp.f32 %v7098_v27  ;;  %vm3115_vm3 = vweird.f32 %v7098_v27 }
 0x544   :  { %v2941_v7 = vadd.f32 %v2897_v8, %v2790_v32  ;;  %3332 = vmatpush.msrb.mxu3 %v7110_v60  ;;  %3348 = vmatpush.msra.mxu0 %v7112_v10 }
 0x546   :  { %v3968_v28 = vmul.f32 -1.442695, %v2941_v7  ;;  %3333 = vmatpush.msrb.mxu3 %v7119_v29  ;;  %3349 = vmatpush.msra.mxu0 %v7121_v59 }
 0x547   :  { %v4131_v6 = vpop.eup %4130 }
 0x548   :  { %v4133_v51 = vpop.eup %4132  ;;  %v7123_v54 = vadd.f32 1.0, %v4131_v6  ;;  %4136 = vpow2.f32 %v3968_v28  ;;  %3334 = vmatpush.msrb.mxu3 %v7131_v26  ;;  %3350 = vmatpush.msra.mxu0 %v7133_v19  ;;  %v2917_v6 = vpop.f32.mrf.mxu3 }
 0x549   :  { %v7127_v17 = vadd.f32 1.0, %v4133_v51  ;;  %v7147_v32 = vpop.eup %4134 }
 0x54a   :  { %4138 = vrcp.f32 %v7123_v54  ;;  %3335 = vmatpush.msrb.mxu3 %v7141_v35  ;;  %3351 = vmatpush.msra.mxu0 %v7143_v53  ;;  %v3111_v28 = vmul.f32 %v7147_v32, %v7098_v27  ;;  %v2937_v26 = vand.u32 2147483648, %v7123_v54  ;;  %vm2931_vm10 = vweird.f32 %v7123_v54 }
 0x54b   :  { %4140 = vrcp.f32 %v7127_v17  ;;  %vm3095_vm12 = vweird.f32 %v7127_v17  ;;  %vm3116_vm1 = vweird.f32 %v7147_v32 }
 0x54c   :  { %3352 = vmatpush.msra.mxu0 %v7153_v23  ;;  %v3112_v62 = vsub.f32 1.0, %v3111_v28  ;;  %v2748_v28 = vperm.slane %v7042_v14, 2  ;;  %v2964_v23 = vadd.f32 %v4012_v38, %v2917_v6  ;;  %vm3117_vm5 = vmor %vm3115_vm3, %vm3116_vm1 }
 0x54e   :  { %v4137_v55 = vpop.eup %4136  ;;  %3353 = vmatpush.msra.mxu0 %v7160_v43  ;;  %v3101_v43 = vand.u32 2147483648, %v7127_v17  ;;  %v3113_v14 = vmul.f32 %v7147_v32, %v3112_v62 }
 0x54f   :  { %v7155_v8 = vadd.f32 1.0, %v4137_v55  ;;  %v2935_v55 = vand.u32 2147483647, %v7123_v54 }
 0x550   :  { %v4139_v12 = vpop.eup %4138  ;;  %3354 = vmatpush.msra.mxu0 %v7170_v63  ;;  %v3102_v38 = vor.u32 1.1754944e-38, %v3101_v43  ;;  %v3114_v62 = vadd.f32 %v7147_v32, %v3113_v14 }
 0x551   :  { %v4141_v7 = vpop.eup %4140  ;;  %4142 = vrcp.f32 %v7155_v8  ;;  %v2927_v25 = vmul.f32 %v4139_v12, %v7123_v54  ;;  %vm2932_vm8 = vweird.f32 %v4139_v12  ;;  %vm2936_vm13 = vcmp.eq.f32.partialorder %v2935_v55, 8.507059e+37 }
 0x552   :  { %v3091_v49 = vmul.f32 %v4141_v7, %v7127_v17  ;;  %3355 = vmatpush.msra.mxu0 %v7179_v48  ;;  %vm3096_vm9 = vweird.f32 %v4141_v7  ;;  %vm7192_vm11 = vmor %vm2931_vm10, %vm2932_vm8  ;;  %v2938_v54 = vor.u32 1.1754944e-38, %v2937_v26  ;;  %vm2951_vm2 = vweird.f32 %v7155_v8 }
 0x553   :  { %v2928_v51 = vsub.f32 1.0, %v2927_v25  ;;  %v3099_v25 = vand.u32 2147483647, %v7127_v17  ;;  %vm3097_vm14 = vmor %vm3095_vm12, %vm3096_vm9  ;;  %v2957_v17 = vand.u32 2147483648, %v7155_v8 }
 0x554   :  { %v3092_v35 = vsub.f32 1.0, %v3091_v49  ;;  %v301_v49 = vadd.f32 %v8380_v57, %v8217_v46 }
 0x555   :  { %v2929_v63 = vmul.f32 %v4139_v12, %v2928_v51  ;;  %vm3100_vm15 = vcmp.eq.f32.partialorder %v3099_v25, 8.507059e+37  ;;  %v3118_v25 = vsel %vm3117_vm5, %v7147_v32, %v3114_v62  ;;  %v8400_v32 = vld [vmem:[#allocation61_spill] sm:$0xff] }
 0x556   :  { %v3093_v29 = vmul.f32 %v4141_v7, %v3092_v35  ;;  %v8408_v62 = vld [vmem:[#allocation73_spill] sm:$0xff] }
 0x557   :  { %v4143_v39 = vpop.eup %4142  ;;  %v2930_v53 = vadd.f32 %v4139_v12, %v2929_v63 }
 0x558   :  { %v2947_v60 = vmul.f32 %v4143_v39, %v7155_v8  ;;  %v3094_v51 = vadd.f32 %v4141_v7, %v3093_v29  ;;  %v2810_v29 = vadd.f32 %v7031_v4, %v2748_v28  ;;  %vm2952_vm0 = vweird.f32 %v4143_v39 }
 0x559   :  { %v2934_v6 = vsel %vm7192_vm11, %v4139_v12, %v2930_v53  ;;  %v2955_v53 = vand.u32 2147483647, %v7155_v8  ;;  %vm2953_vm4 = vmor %vm2951_vm2, %vm2952_vm0 }
 0x55a   :  { %v2948_v63 = vsub.f32 1.0, %v2947_v60  ;;  %v3098_v57 = vsel %vm3097_vm14, %v4141_v7, %v3094_v51  ;;  %v2939_v46 = vsel %vm2936_vm13, %v2938_v54, %v2934_v6  ;;  %v3121_v60 = vand.u32 2147483648, %v7098_v27  ;;  %v8402_v6 = vld [vmem:[#allocation44_spill] sm:$0xff] }
 0x55b   :  { %v3081_v48 = vpop.f32.mrf.mxu2  ;;  %v3103_v61 = vsel %vm3100_vm15, %v3102_v38, %v3098_v57  ;;  %v2965_v55 = vmul.f32 %v2964_v23, %v2939_v46  ;;  %v3119_v7 = vand.u32 2147483647, %v7098_v27  ;;  %v2958_v46 = vor.u32 1.1754944e-38, %v2957_v17  ;;  %v8403_v57 = vld [vmem:[#allocation63_spill] sm:$0xff]  ;;  %v8405_v17 = vld [vmem:[#allocation58_spill] sm:$0xff] }
 0x55c   :  { %v2949_v19 = vmul.f32 %v4143_v39, %v2948_v63  ;;  %v3128_v26 = vadd.f32 %v4013_v30, %v3081_v48  ;;  %vm2956_vm6 = vcmp.eq.f32.partialorder %v2955_v53, 8.507059e+37  ;;  %v3122_v28 = vor.u32 1.1754944e-38, %v3121_v60  ;;  %v8401_v63 = vld [vmem:[#allocation88_spill] sm:$0xff]  ;;  %v8409_v60 = vld [vmem:[#allocation31_spill] sm:$0xff]  ;;  %v8410_v53 = vld [vmem:[#allocation25_spill] sm:$0xff] }
 0x55d   :  { %v2966_v4 = vadd.f32 %v2965_v55, %v2810_v29  ;;  %vm3120_vm7 = vcmp.eq.f32.partialorder %v3119_v7, 8.507059e+37  ;;  %v8404_v29 = vld [vmem:[#allocation50_spill] sm:$0xff]  ;;  %v8406_v55 = vld [vmem:[#allocation52_spill] sm:$0xff]  ;;  %v8414_v7 = vld [vmem:[#allocation59_spill] sm:$0xff] }
 0x55e   :  { %v2950_v12 = vadd.f32 %v4143_v39, %v2949_v19  ;;  %v3129_v43 = vmul.f32 %v3128_v26, %v3103_v61  ;;  %v3123_v19 = vsel %vm3120_vm7, %v3122_v28, %v3118_v25  ;;  %v8407_v26 = vld [vmem:[#allocation17_spill] sm:$0xff]  ;;  %v8418_v25 = vld [vmem:[#allocation104_spill] sm:$0xff] }
 0x55f   :  { %4144 = vtanh.f32 %v2966_v4  ;;  %v3132_v30 = vsub.f32 1.0, %v3123_v19  ;;  %v8412_v4 = vld [vmem:[#allocation93_spill] sm:$0xff]  ;;  %v8419_v28 = vld [vmem:[#allocation60_spill] sm:$0xff] }
 0x560   :  { %v2954_v23 = vsel %vm2953_vm4, %v4143_v39, %v2950_v12  ;;  %v3130_v48 = vadd.f32 %v3129_v43, %v301_v49  ;;  %v3134_v39 = vmul.f32 %v3123_v19, %v6777_v9  ;;  %v8385_v9 = vld [vmem:[#allocation27_spill] sm:$0xff]  ;;  %v8421_v19 = vld [vmem:[#allocation86_spill] sm:$0xff] }
 0x561   :  { %v2959_v35 = vsel %vm2956_vm6, %v2958_v46, %v2954_v23  ;;  %v8411_v12 = vld [vmem:[#allocation15_spill] sm:$0xff]  ;;  %v8415_v46 = vld [vmem:[#allocation57_spill] sm:$0xff] }
 0x562   :  { %4146 = vtanh.f32 %v3130_v48  ;;  %v2968_v8 = vsub.f32 1.0, %v2959_v35  ;;  %v2970_v27 = vmul.f32 %v2959_v35, %v6770_v36  ;;  %v8413_v43 = vld [vmem:[#allocation103_spill] sm:$0xff]  ;;  %v8416_v23 = vld [vmem:[#allocation37_spill] sm:$0xff]  ;;  %v8417_v48 = vld [vmem:[#allocation34_spill] sm:$0xff] }
 0x563   :  { %v8420_v35 = vld [vmem:[#allocation41_spill] sm:$0xff] }
 0x565   :  { %v4145_v61 = vpop.eup %4144 }
 0x566   :  { %v2969_v51 = vmul.f32 %v4145_v61, %v2968_v8  ;;  %v8422_v8 = vld [vmem:[#allocation26_spill] sm:$0xff]  ;;  %v8423_v61 = vld [vmem:[#allocation28_spill] sm:$0xff] }
 0x568   :  { %v4147_v14 = vpop.eup %4146  ;;  %v7216_v38 = vadd.f32 %v2970_v27, %v2969_v51  ;;  %v8424_v51 = vld [vmem:[#allocation102_spill] sm:$0xff] }
 0x569   :  { %v3133_v54 = vmul.f32 %v4147_v14, %v3132_v30  ;;  %v8425_v30 = vld [vmem:[#allocation92_spill] sm:$0xff]  ;;  %v8426_v27 = vld [vmem:[#allocation46_spill] sm:$0xff]  ;;  %v8427_v14 = vld [vmem:[#allocation79_spill] sm:$0xff] }
 0x56a   :  { %3316 = vmatmul.f32.vlgmr.msrb.gmra.mxu2 %v7216_v38 }
 0x56b   :  { %v7218_v49 = vadd.f32 %v3134_v39, %v3133_v54  ;;  %3672 = vmatpush.msrb.mxu2 %v6851_v16  ;;  %v8399_v16 = vld [vmem:[#allocation47_spill] sm:$0xff] }
 0x56c   :  { %v8428_v54 = vld [vmem:[#allocation39_spill] sm:$0xff] }
 0x56d   :  { %3208 = vmatmul.f32.vlgmr.msra.gmra.mxu3 %v7218_v49  ;;  %3228 = vmatmul.f32.vlgmr.msrb.gmra.mxu0 %v7218_v49  ;;  %v8429_v39 = vld [vmem:[#allocation51_spill] sm:$0xff] }
 0x56e   :  { %3248 = vmatmul.f32.vlgmr.msrb.gmra.mxu1 %v7218_v49  ;;  %3504 = vmatpush.msra.mxu3 %v6779_v33  ;;  %v8386_v33 = vld [vmem:[#allocation66_spill] sm:$0xff] }
 0x56f   :  { %3632 = vmatpush.msrb.mxu0 %v6835_v1  ;;  %3652 = vmatpush.msrb.mxu1 %v6849_v34  ;;  %v8394_v1 = vld [vmem:[#allocation69_spill] sm:$0xff]  ;;  %v8398_v34 = vld [vmem:[#allocation24_spill] sm:$0xff] }
 0x570   :  { %3505 = vmatpush.msra.mxu3 %v6785_v41  ;;  %3673 = vmatpush.msrb.mxu2 %v6860_v3  ;;  %v8383_v3 = vld [vmem:[#allocation112_spill] sm:$0xff]  ;;  %v8387_v41 = vld [vmem:[#allocation109_spill] sm:$0xff] }
 0x571   :  { %3633 = vmatpush.msrb.mxu0 %v6837_v13  ;;  %3653 = vmatpush.msrb.mxu1 %v6858_v45  ;;  %v8384_v45 = vld [vmem:[#allocation30_spill] sm:$0xff] }
 0x572   :  { %3506 = vmatpush.msra.mxu3 %v6788_v20  ;;  %3674 = vmatpush.msrb.mxu2 %v6869_v21  ;;  %v8388_v20 = vld [vmem:[#allocation43_spill] sm:$0xff]  ;;  %v8390_v21 = vld [vmem:[#allocation18_spill] sm:$0xff] }
 0x573   :  { %3500 = vmatmul.f32.vlgmr.msra.gmra.mxu2 %v7218_v49  ;;  %3634 = vmatpush.msrb.mxu0 %v6840_v0  ;;  %v8395_v13 = vld [vmem:[#allocation114_spill] sm:$0xff]  ;;  %v8396_v0 = vld [vmem:[#allocation20_spill] sm:$0xff] }
 0x574   :  { %3507 = vmatpush.msra.mxu3 %v6791_v22  ;;  %3654 = vmatpush.msrb.mxu1 %v6867_v42  ;;  %v8389_v22 = vld [vmem:[#allocation19_spill] sm:$0xff] }
 0x575   :  { %3336 = vmatmul.f32.vlgmr.msrb.gmra.mxu3 %v7216_v38  ;;  %3356 = vmatmul.f32.vlgmr.msra.gmra.mxu0 %v7216_v38  ;;  %v8392_v42 = vld [vmem:[#allocation71_spill] sm:$0xff] }
 0x576   :  { %3480 = vmatmul.f32.vlgmr.msra.gmra.mxu1 %v7218_v49  ;;  %3508 = vmatpush.msra.mxu3 %v6794_v37  ;;  %v8391_v37 = vld [vmem:[#allocation113_spill] sm:$0xff] }
 0x577   :  { %3635 = vmatpush.msrb.mxu0 %v6843_v15  ;;  %3655 = vmatpush.msrb.mxu1 %v6879_v56  ;;  %v8393_v56 = vld [vmem:[#allocation56_spill] sm:$0xff]  ;;  %v8397_v15 = vld [vmem:[#allocation23_spill] sm:$0xff] }
 0x578   :  { %3509 = vmatpush.msra.mxu3 %v8383_v3  ;;  %3675 = vmatpush.msrb.mxu2 %v8384_v45  ;;  %v8430_v3 = vld [vmem:[#allocation98_spill] sm:$0xff] }
 0x579   :  { %3636 = vmatpush.msrb.mxu0 %v8385_v9  ;;  %3656 = vmatpush.msrb.mxu1 %v8386_v33  ;;  %v8431_v45 = vld [vmem:[#allocation62_spill] sm:$0xff]  ;;  %v8432_v9 = vld [vmem:[#allocation76_spill] sm:$0xff]  ;;  %v8433_v33 = vld [vmem:[#allocation105_spill] sm:$0xff] }
 0x57a   :  { %3510 = vmatpush.msra.mxu3 %v8387_v41  ;;  %3676 = vmatpush.msrb.mxu2 %v8388_v20  ;;  %v8434_v41 = vld [vmem:[#allocation83_spill] sm:$0xff]  ;;  %v3737_v20 = vld [vmem:[#allocation11 + $0x168] sm:$0xff] }
 0x57b   :  { %3637 = vmatpush.msrb.mxu0 %v8389_v22  ;;  %3657 = vmatpush.msrb.mxu1 %v8390_v21  ;;  %v3734_v22 = vld [vmem:[#allocation11 + $0x150] sm:$0xff]  ;;  %v3731_v21 = vld [vmem:[#allocation11 + $0x138] sm:$0xff] }
 0x57c   :  { %3511 = vmatpush.msra.mxu3 %v8391_v37  ;;  %3677 = vmatpush.msrb.mxu2 %v8392_v42  ;;  %v8449_v37 = vld [vmem:[#allocation97_spill] sm:$0xff] }
 0x57d   :  { %3638 = vmatpush.msrb.mxu0 %v8393_v56  ;;  %3658 = vmatpush.msrb.mxu1 %v8394_v1  ;;  %v8450_v56 = vld [vmem:[#allocation45_spill] sm:$0xff] }
 0x57e   :  { %3512 = vmatpush.msra.mxu3 %v8395_v13  ;;  %3678 = vmatpush.msrb.mxu2 %v8396_v0  ;;  %v3879_v1 = vld [vmem:[%s7509_s10 + $0x78] sm:$0xff]  ;;  %v7335_v13 = vld [vmem:[%s7505_s6] sm:$0x7] }
 0x57f   :  { %3639 = vmatpush.msrb.mxu0 %v8397_v15  ;;  %3659 = vmatpush.msrb.mxu1 %v8398_v34  ;;  %v3186_v0 = vperm.slane %v7335_v13, 0  ;;  %v8451_v15 = vld [vmem:[#allocation29_spill] sm:$0xff] }
 0x580   :  { %3513 = vmatpush.msra.mxu3 %v8399_v16  ;;  %3679 = vmatpush.msrb.mxu2 %v8400_v32  ;;  %v3878_v34 = vld [vmem:[%s7509_s10 + $0x70] sm:$0xff] }
 0x581   :  { %3640 = vmatpush.msrb.mxu0 %v8401_v63  ;;  %3660 = vmatpush.msrb.mxu1 %v8402_v6  ;;  %v8452_v32 = vld [vmem:[#allocation49_spill] sm:$0xff]  ;;  %v3877_v63 = vld [vmem:[%s7509_s10 + $0x68] sm:$0xff] }
 0x582   :  { %3514 = vmatpush.msra.mxu3 %v8403_v57  ;;  %3680 = vmatpush.msrb.mxu2 %v8404_v29  ;;  %v8453_v29 = vld [vmem:[#allocation90_spill] sm:$0xff] }
 0x583   :  { %3641 = vmatpush.msrb.mxu0 %v8405_v17  ;;  %3661 = vmatpush.msrb.mxu1 %v8406_v55  ;;  %v3876_v17 = vld [vmem:[%s7509_s10 + $0x60] sm:$0xff]  ;;  %v3187_v55 = vperm.slane %v7335_v13, 1 }
 0x584   :  { %3515 = vmatpush.msra.mxu3 %v8407_v26  ;;  %3681 = vmatpush.msrb.mxu2 %v8408_v62 }
 0x585   :  { %3642 = vmatpush.msrb.mxu0 %v8409_v60  ;;  %3662 = vmatpush.msrb.mxu1 %v8410_v53  ;;  %v8454_v60 = vld [vmem:[#allocation22_spill] sm:$0xff] }
 0x586   :  { %3516 = vmatpush.msra.mxu3 %v8411_v12  ;;  %3682 = vmatpush.msrb.mxu2 %v8412_v4  ;;  %v3875_v53 = vld [vmem:[%s7509_s10 + $0x58] sm:$0xff] }
 0x587   :  { %3643 = vmatpush.msrb.mxu0 %v8413_v43  ;;  %3663 = vmatpush.msrb.mxu1 %v8414_v7  ;;  %v8455_v4 = vld [vmem:[#allocation78_spill] sm:$0xff] }
 0x588   :  { %3517 = vmatpush.msra.mxu3 %v8415_v46  ;;  %3683 = vmatpush.msrb.mxu2 %v8416_v23  ;;  %v8456_v7 = vld [vmem:[#allocation82_spill] sm:$0xff]  ;;  %v8457_v46 = vld [vmem:[#allocation67_spill] sm:$0xff] }
 0x589   :  { %3644 = vmatpush.msrb.mxu0 %v8417_v48  ;;  %3664 = vmatpush.msrb.mxu1 %v8418_v25  ;;  %v263_v23 = vadd.f32 %v8457_v46, %v8456_v7  ;;  %v8458_v25 = vld [vmem:[#allocation40_spill] sm:$0xff] }
 0x58a   :  { %3518 = vmatpush.msra.mxu3 %v8419_v28  ;;  %3684 = vmatpush.msrb.mxu2 %v8420_v35  ;;  %v3874_v28 = vld [vmem:[%s7509_s10 + $0x50] sm:$0xff] }
 0x58b   :  { %3645 = vmatpush.msrb.mxu0 %v8421_v19  ;;  %3665 = vmatpush.msrb.mxu1 %v8422_v8 }
 0x58c   :  { %3519 = vmatpush.msra.mxu3 %v8423_v61  ;;  %3685 = vmatpush.msrb.mxu2 %v8424_v51  ;;  %v8459_v51 = vld [vmem:[#allocation48_spill] sm:$0xff] }
 0x58d   :  { %3520 = vmatmul.f32.vlgmr.msra.gmra.mxu3 %v7218_v49  ;;  %3646 = vmatpush.msrb.mxu0 %v8425_v30  ;;  %v3873_v30 = vld [vmem:[%s7509_s10 + $0x48] sm:$0xff] }
 0x58e   :  { %3666 = vmatpush.msrb.mxu1 %v8426_v27  ;;  %3686 = vmatpush.msrb.mxu2 %v8427_v14 }
 0x58f   :  { %3647 = vmatpush.msrb.mxu0 %v8428_v54  ;;  %3740 = vmatpush.msrb.mxu3 %v3737_v20 }
 0x590   :  { %3667 = vmatpush.msrb.mxu1 %v8429_v39  ;;  %3687 = vmatpush.msrb.mxu2 %v7029_v40  ;;  %v8435_v40 = vld [vmem:[#allocation75_spill] sm:$0xff]  ;;  %v8460_v39 = vld [vmem:[#allocation100_spill] sm:$0xff] }
 0x591   :  { %3760 = vmatpush.msra.mxu0 %v8430_v3  ;;  %3741 = vmatpush.msrb.mxu3 %v3734_v22  ;;  %v3872_v3 = vld [vmem:[%s7509_s10 + $0x40] sm:$0xff]  ;;  %v3865_v22 = vld [vmem:[%s7509_s10 + $0x8] sm:$0xff] }
 0x592   :  { %3780 = vmatpush.msra.mxu1 %v7037_v18  ;;  %v8436_v18 = vld [vmem:[#allocation65_spill] sm:$0xff]  ;;  %3884 = vmatpush.msra.mxu2 %v3879_v1  ;;  %v3864_v1 = vld [vmem:[%s7509_s10] sm:$0xff] }
 0x593   :  { %3761 = vmatpush.msra.mxu0 %v8431_v45  ;;  %3742 = vmatpush.msrb.mxu3 %v3731_v21 }
 0x594   :  { %3781 = vmatpush.msra.mxu1 %v7051_v44  ;;  %v8437_v44 = vld [vmem:[#allocation21_spill] sm:$0xff]  ;;  %3885 = vmatpush.msra.mxu2 %v3878_v34 }
 0x595   :  { %3762 = vmatpush.msra.mxu0 %v8432_v9  ;;  %3743 = vmatpush.msrb.mxu3 %v8449_v37  ;;  %v8461_v9 = vld [vmem:[#allocation72_spill] sm:$0xff] }
 0x596   :  { %3782 = vmatpush.msra.mxu1 %v7059_v24  ;;  %v8438_v24 = vld [vmem:[#allocation54_spill] sm:$0xff]  ;;  %3886 = vmatpush.msra.mxu2 %v3877_v63 }
 0x597   :  { %3763 = vmatpush.msra.mxu0 %v8433_v33  ;;  %3744 = vmatpush.msrb.mxu3 %v8450_v56  ;;  %v3871_v33 = vld [vmem:[%s7509_s10 + $0x38] sm:$0xff] }
 0x598   :  { %3783 = vmatpush.msra.mxu1 %v7067_v50  ;;  %v8439_v50 = vld [vmem:[#allocation81_spill] sm:$0xff]  ;;  %3887 = vmatpush.msra.mxu2 %v3876_v17 }
 0x599   :  { %3764 = vmatpush.msra.mxu0 %v8434_v41  ;;  %3745 = vmatpush.msrb.mxu3 %v8451_v15  ;;  %v4014_v15 = vld [vmem:[%s7507_s8] ss:$0 sm:$0xff] }
 0x59a   :  { %3784 = vmatpush.msra.mxu1 %v7076_v58  ;;  %v8440_v58 = vld [vmem:[#allocation68_spill] sm:$0xff]  ;;  %3888 = vmatpush.msra.mxu2 %v3875_v53 }
 0x59b   :  { %3765 = vmatpush.msra.mxu0 %v8435_v40  ;;  %3746 = vmatpush.msrb.mxu3 %v8452_v32  ;;  %v8462_v40 = vld [vmem:[#allocation55_spill] sm:$0xff]  ;;  %v8466_v32 = vld [vmem:[#allocation53_spill] sm:$0xff] }
 0x59c   :  { %3785 = vmatpush.msra.mxu1 %v7086_v47  ;;  %v8441_v47 = vld [vmem:[#allocation89_spill] sm:$0xff]  ;;  %3889 = vmatpush.msra.mxu2 %v3874_v28 }
 0x59d   :  { %3766 = vmatpush.msra.mxu0 %v8436_v18  ;;  %3747 = vmatpush.msrb.mxu3 %v8453_v29  ;;  %v3870_v18 = vld [vmem:[%s7509_s10 + $0x30] sm:$0xff] }
 0x59e   :  { %3786 = vmatpush.msra.mxu1 %v7094_v31  ;;  %v8442_v31 = vld [vmem:[#allocation94_spill] sm:$0xff]  ;;  %3890 = vmatpush.msra.mxu2 %v3873_v30 }
 0x59f   :  { %3767 = vmatpush.msra.mxu0 %v8437_v44  ;;  %3748 = vmatpush.msrb.mxu3 %v8454_v60 }
 0x5a0   :  { %3787 = vmatpush.msra.mxu1 %v7104_v52  ;;  %v8443_v52 = vld [vmem:[#allocation91_spill] sm:$0xff]  ;;  %3891 = vmatpush.msra.mxu2 %v3872_v3 }
 0x5a1   :  { %3768 = vmatpush.msra.mxu0 %v7074_v5  ;;  %v8444_v5 = vld [vmem:[#allocation106_spill] sm:$0xff]  ;;  %3749 = vmatpush.msrb.mxu3 %v8458_v25 }
 0x5a2   :  { %3788 = vmatpush.msra.mxu1 %v7112_v10  ;;  %v8445_v10 = vld [vmem:[#allocation84_spill] sm:$0xff]  ;;  %3892 = vmatpush.msra.mxu2 %v3871_v33 }
 0x5a3   :  { %3769 = vmatpush.msra.mxu0 %v7084_v11  ;;  %v8446_v11 = vld [vmem:[#allocation87_spill] sm:$0xff]  ;;  %3750 = vmatpush.msrb.mxu3 %v8459_v51 }
 0x5a4   :  { %3789 = vmatpush.msra.mxu1 %v7121_v59  ;;  %v8447_v59 = vld [vmem:[#allocation110_spill] sm:$0xff]  ;;  %3893 = vmatpush.msra.mxu2 %v3870_v18 }
 0x5a5   :  { %3770 = vmatpush.msra.mxu0 %v7092_v2  ;;  %v8448_v2 = vld [vmem:[#allocation33_spill] sm:$0xff]  ;;  %3751 = vmatpush.msrb.mxu3 %v8460_v39 }
 0x5a6   :  { %3790 = vmatpush.msra.mxu1 %v8438_v24 }
 0x5a7   :  { %3771 = vmatpush.msra.mxu0 %v8439_v50  ;;  %3752 = vmatpush.msrb.mxu3 %v8461_v9  ;;  %v3869_v50 = vld [vmem:[%s7509_s10 + $0x28] sm:$0xff] }
 0x5a8   :  { %3791 = vmatpush.msra.mxu1 %v8440_v58  ;;  %3894 = vmatpush.msra.mxu2 %v3869_v50 }
 0x5a9   :  { %3772 = vmatpush.msra.mxu0 %v8441_v47  ;;  %3753 = vmatpush.msrb.mxu3 %v8462_v40  ;;  %v8463_v47 = vld [vmem:[#allocation77_spill] sm:$0xff] }
 0x5aa   :  { %3792 = vmatpush.msra.mxu1 %v8442_v31  ;;  %v3868_v31 = vld [vmem:[%s7509_s10 + $0x20] sm:$0xff] }
 0x5ab   :  { %3773 = vmatpush.msra.mxu0 %v8443_v52  ;;  %3754 = vmatpush.msrb.mxu3 %v8463_v47 }
 0x5ac   :  { %3793 = vmatpush.msra.mxu1 %v8444_v5  ;;  %v8464_v5 = vld [vmem:[#allocation80_spill] sm:$0xff]  ;;  %3895 = vmatpush.msra.mxu2 %v3868_v31 }
 0x5ad   :  { %3774 = vmatpush.msra.mxu0 %v8445_v10  ;;  %3755 = vmatpush.msrb.mxu3 %v8464_v5 }
 0x5ae   :  { %3794 = vmatpush.msra.mxu1 %v8446_v11 }
 0x5af   :  { %3775 = vmatpush.msra.mxu0 %v8447_v59  ;;  %v3867_v59 = vld [vmem:[%s7509_s10 + $0x18] sm:$0xff] }
 0x5b0   :  { %3795 = vmatpush.msra.mxu1 %v8448_v2  ;;  %v3866_v2 = vld [vmem:[%s7509_s10 + $0x10] sm:$0xff]  ;;  %3896 = vmatpush.msra.mxu2 %v3867_v59 }
 0x5b2   :  { %3897 = vmatpush.msra.mxu2 %v3866_v2 }
 0x5b4   :  { %3898 = vmatpush.msra.mxu2 %v3865_v22 }
 0x5b6   :  { %3899 = vmatpush.msra.mxu2 %v3864_v1 }
 0x5ea   :  { %v3229_v12 = vpop.f32.mrf.mxu0 }
 0x5eb   :  { %v7326_v42 = vpop.f32.mrf.mxu1  ;;  %v3230_v8 = vadd.f32 %v3229_v12, %v3187_v55 }
 0x5ed   :  { %v3317_v16 = vpop.f32.mrf.mxu2 }
 0x5f0   :  { %v3209_v6 = vpop.f32.mrf.mxu3 }
 0x5f1   :  { %v3210_v57 = vadd.f32 %v3209_v6, %v3186_v0  ;;  %v3188_v0 = vperm.slane %v7335_v13, 2 }
 0x5f2   :  { %v3357_v6 = vpop.f32.mrf.mxu0 }
 0x5f3   :  { %v3361_v26 = vadd.f32 %v3317_v16, %v3210_v57  ;;  %v3481_v62 = vpop.f32.mrf.mxu1  ;;  %v8465_v16 = vld [vmem:[#allocation85_spill] sm:$0xff]  ;;  %v3250_v12 = vadd.f32 %v7326_v42, %v3188_v0 }
 0x5f4   :  { %v3525_v43 = vadd.f32 %v3481_v62, %v8455_v4  ;;  %v304_v63 = vadd.f32 %v8466_v32, %v8465_v16  ;;  %v3404_v4 = vadd.f32 %v4014_v15, %v3357_v6  ;;  %v8470_v16 = vld [vmem:[#allocation115_spill] sm:$0xff]  ;;  %v8471_v32 = vld [vmem:[#allocation70_spill] sm:$0xff] }
 0x5f5   :  { %v3971_v48 = vmul.f32 -1.442695, %v3361_v26 }
 0x5f6   :  { %v3973_v35 = vmul.f32 -1.442695, %v3525_v43  ;;  %v3501_v19 = vpop.f32.mrf.mxu2 }
 0x5f7   :  { %4148 = vpow2.f32 %v3971_v48  ;;  %v3545_v61 = vadd.f32 %v3501_v19, %v263_v23  ;;  %v4015_v48 = vld [vmem:[%s7503_s4] ss:$0 sm:$0xff] }
 0x5f8   :  { %4150 = vpow2.f32 %v3973_v35  ;;  %v3337_v27 = vpop.f32.mrf.mxu3 }
 0x5f9   :  { %v3974_v14 = vmul.f32 -1.442695, %v3545_v61  ;;  %v3381_v54 = vadd.f32 %v3337_v27, %v3230_v8 }
 0x5fb   :  { %4152 = vpow2.f32 %v3974_v14  ;;  %v3972_v45 = vmul.f32 -1.442695, %v3381_v54 }
 0x5fd   :  { %v4149_v41 = vpop.eup %4148  ;;  %4154 = vpow2.f32 %v3972_v45 }
 0x5fe   :  { %v4151_v44 = vpop.eup %4150  ;;  %v3365_v24 = vadd.f32 1.0, %v4149_v41 }
 0x5ff   :  { %v3529_v58 = vadd.f32 1.0, %v4151_v44 }
 0x600   :  { %4156 = vrcp.f32 %v3365_v24  ;;  %v3375_v17 = vand.u32 2147483647, %v3365_v24  ;;  %v3377_v55 = vand.u32 2147483648, %v3365_v24  ;;  %vm3371_vm10 = vweird.f32 %v3365_v24 }
 0x601   :  { %v4153_v52 = vpop.eup %4152  ;;  %4158 = vrcp.f32 %v3529_v58  ;;  %v3539_v62 = vand.u32 2147483647, %v3529_v58  ;;  %v3541_v53 = vand.u32 2147483648, %v3529_v58  ;;  %vm3535_vm11 = vweird.f32 %v3529_v58 }
 0x602   :  { %v7386_v10 = vadd.f32 1.0, %v4153_v52  ;;  %vm3376_vm13 = vcmp.eq.f32.partialorder %v3375_v17, 8.507059e+37  ;;  %v3378_v25 = vor.u32 1.1754944e-38, %v3377_v55 }
 0x603   :  { %v4155_v11 = vpop.eup %4154  ;;  %vm3540_vm15 = vcmp.eq.f32.partialorder %v3539_v62, 8.507059e+37  ;;  %v3542_v8 = vor.u32 1.1754944e-38, %v3541_v53 }
 0x604   :  { %4160 = vrcp.f32 %v7386_v10  ;;  %v7395_v20 = vadd.f32 1.0, %v4155_v11  ;;  %vm3555_vm2 = vweird.f32 %v7386_v10  ;;  %v3561_v40 = vand.u32 2147483648, %v7386_v10 }
 0x606   :  { %v4157_v21 = vpop.eup %4156  ;;  %4162 = vrcp.f32 %v7395_v20  ;;  %v3397_v30 = vand.u32 2147483648, %v7395_v20  ;;  %v3395_v33 = vand.u32 2147483647, %v7395_v20  ;;  %vm3391_vm4 = vweird.f32 %v7395_v20 }
 0x607   :  { %v4159_v37 = vpop.eup %4158  ;;  %v3367_v56 = vmul.f32 %v4157_v21, %v3365_v24  ;;  %vm3372_vm8 = vweird.f32 %v4157_v21  ;;  %v3559_v24 = vand.u32 2147483647, %v7386_v10  ;;  %v3562_v5 = vor.u32 1.1754944e-38, %v3561_v40 }
 0x608   :  { %v3531_v34 = vmul.f32 %v4159_v37, %v3529_v58  ;;  %vm3536_vm9 = vweird.f32 %v4159_v37  ;;  %vm3373_vm12 = vmor %vm3371_vm10, %vm3372_vm8  ;;  %v3398_v58 = vor.u32 1.1754944e-38, %v3397_v30  ;;  %vm3396_vm6 = vcmp.eq.f32.partialorder %v3395_v33, 8.507059e+37 }
 0x609   :  { %v3368_v57 = vsub.f32 1.0, %v3367_v56  ;;  %vm3537_vm14 = vmor %vm3535_vm11, %vm3536_vm9  ;;  %vm3560_vm7 = vcmp.eq.f32.partialorder %v3559_v24, 8.507059e+37 }
 0x60a   :  { %v7410_v29 = vpop.eup %4160  ;;  %v3532_v26 = vsub.f32 1.0, %v3531_v34  ;;  %v8469_v34 = vld [vmem:[#allocation38_spill] sm:$0xff] }
 0x60b   :  { %v3369_v60 = vmul.f32 %v4157_v21, %v3368_v57  ;;  %v3551_v13 = vmul.f32 %v7410_v29, %v7386_v10  ;;  %vm3556_vm0 = vweird.f32 %v7410_v29 }
 0x60c   :  { %v3533_v43 = vmul.f32 %v4159_v37, %v3532_v26  ;;  %v4163_v7 = vpop.eup %4162  ;;  %vm7426_vm3 = vmor %vm3555_vm2, %vm3556_vm0 }
 0x60d   :  { %v3370_v46 = vadd.f32 %v4157_v21, %v3369_v60  ;;  %v3552_v23 = vsub.f32 1.0, %v3551_v13  ;;  %v3387_v28 = vmul.f32 %v4163_v7, %v7395_v20  ;;  %vm3392_vm1 = vweird.f32 %v4163_v7 }
 0x60e   :  { %v3534_v35 = vadd.f32 %v4159_v37, %v3533_v43  ;;  %vm3393_vm5 = vmor %vm3391_vm4, %vm3392_vm1 }
 0x60f   :  { %v3374_v19 = vsel %vm3373_vm12, %v4157_v21, %v3370_v46  ;;  %v3553_v42 = vmul.f32 %v7410_v29, %v3552_v23  ;;  %v3388_v51 = vsub.f32 1.0, %v3387_v28 }
 0x610   :  { %v3379_v61 = vsel %vm3376_vm13, %v3378_v25, %v3374_v19  ;;  %v3521_v27 = vpop.f32.mrf.mxu3  ;;  %v3538_v14 = vsel %vm3537_vm14, %v4159_v37, %v3534_v35 }
 0x611   :  { %v3405_v54 = vmul.f32 %v3404_v4, %v3379_v61  ;;  %v3543_v39 = vsel %vm3540_vm15, %v3542_v8, %v3538_v14  ;;  %v3568_v3 = vadd.f32 %v4015_v48, %v3521_v27  ;;  %v3554_v45 = vadd.f32 %v7410_v29, %v3553_v42  ;;  %v7458_v4 = vld [vmem:[%s7510_s11] ss:$0 sm:$0xff] }
 0x612   :  { %v3389_v9 = vmul.f32 %v4163_v7, %v3388_v51 }
 0x613   :  { %v3406_v41 = vadd.f32 %v3405_v54, %v3250_v12  ;;  %v3569_v18 = vmul.f32 %v3568_v3, %v3543_v39  ;;  %v3558_v31 = vsel %vm7426_vm3, %v7410_v29, %v3554_v45  ;;  %v4016_v54 = vld [vmem:[%s7507_s8] ss:$0 sm:$0xff] }
 0x614   :  { %v3390_v50 = vadd.f32 %v4163_v7, %v3389_v9  ;;  %v3563_v59 = vsel %vm3560_vm7, %v3562_v5, %v3558_v31 }
 0x615   :  { %4164 = vtanh.f32 %v3406_v41  ;;  %v3570_v47 = vadd.f32 %v3569_v18, %v304_v63  ;;  %v3572_v22 = vsub.f32 1.0, %v3563_v59  ;;  %v3574_v0 = vmul.f32 %v3563_v59, %v7218_v49  ;;  %v8472_v49 = vld [vmem:[#allocation107_spill] sm:$0xff]  ;;  %v3624_v63 = vld [vmem:[%s7505_s6] sm:$0x7] }
 0x616   :  { %v3394_v52 = vsel %vm3393_vm5, %v4163_v7, %v3390_v50  ;;  %v3626_v6 = vperm.slane %v3624_v63, 0  ;;  %v3627_v17 = vperm.slane %v3624_v63, 1  ;;  %v3628_v3 = vperm.slane %v3624_v63, 2 }
 0x617   :  { %4166 = vtanh.f32 %v3570_v47  ;;  %v3399_v11 = vsel %vm3396_vm6, %v3398_v58, %v3394_v52 }
 0x618   :  { %v3408_v2 = vsub.f32 1.0, %v3399_v11  ;;  %v3410_v20 = vmul.f32 %v3399_v11, %v7216_v38 }
 0x61b   :  { %v4165_v10 = vpop.eup %4164 }
 0x61c   :  { %v3409_v21 = vmul.f32 %v4165_v10, %v3408_v2 }
 0x61d   :  { %v4167_v37 = vpop.eup %4166 }
 0x61e   :  { %v3573_v56 = vmul.f32 %v4167_v37, %v3572_v22  ;;  %v7436_v1 = vadd.f32 %v3410_v20, %v3409_v21 }
 0x620   :  { %3756 = vmatmul.f32.vlgmr.msrb.gmra.mxu3 %v7436_v1  ;;  %v3575_v15 = vadd.f32 %v3574_v0, %v3573_v56 }
 0x622   :  { %3648 = vmatmul.f32.vlgmr.msrb.gmra.mxu0 %v3575_v15  ;;  %3853 = vst [vmem:[%s7512_s13] sm:$0xff] %v3575_v15  ;;  %3668 = vmatmul.f32.vlgmr.msrb.gmra.mxu1 %v3575_v15 }
 0x623   :  { %3688 = vmatmul.f32.vlgmr.msrb.gmra.mxu2 %v3575_v15 }
 0x62a   :  { %3776 = vmatmul.f32.vlgmr.msra.gmra.mxu0 %v7436_v1  ;;  %3796 = vmatmul.f32.vlgmr.msra.gmra.mxu1 %v7436_v1 }
 0x62b   :  { %3900 = vmatmul.f32.vlgmr.msra.gmra.mxu2 %v8469_v34 }
 0x633   :  { %3903 = vmatmul.f32.gmra.mxu2 %v8470_v16 }
 0x63b   :  { %3906 = vmatmul.f32.gmra.mxu2 %v8471_v32 }
 0x643   :  { %3909 = vmatmul.f32.gmra.mxu2 %v8472_v49 }
 0x64b   :  { %3912 = vmatmul.f32.gmra.mxu2 %v6770_v36 }
 0x653   :  { %3915 = vmatmul.f32.gmra.mxu2 %v7216_v38 }
 0x65b   :  { %3918 = vmatmul.f32.gmra.mxu2 %v7436_v1 }
 0x69f   :  { %v3649_v57 = vpop.f32.mrf.mxu0  ;;  %v3669_v55 = vpop.f32.mrf.mxu1 }
 0x6a0   :  { %v3650_v29 = vadd.f32 %v3649_v57, %v3626_v6  ;;  %v3670_v60 = vadd.f32 %v3669_v55, %v3627_v17 }
 0x6a3   :  { %v3757_v26 = vpop.f32.mrf.mxu3 }
 0x6a4   :  { %v3801_v62 = vadd.f32 %v3757_v26, %v3650_v29 }
 0x6a6   :  { %v3975_v13 = vmul.f32 -1.442695, %v3801_v62  ;;  %v3689_v53 = vpop.f32.mrf.mxu2 }
 0x6a7   :  { %v3777_v12 = vpop.f32.mrf.mxu0  ;;  %v3797_v39 = vpop.f32.mrf.mxu1  ;;  %v3690_v58 = vadd.f32 %v3689_v53, %v3628_v3 }
 0x6a8   :  { %4168 = vpow2.f32 %v3975_v13  ;;  %v3821_v36 = vadd.f32 %v3777_v12, %v3670_v60  ;;  %v3844_v44 = vadd.f32 %v4016_v54, %v3797_v39 }
 0x6aa   :  { %v3976_v38 = vmul.f32 -1.442695, %v3821_v36 }
 0x6ac   :  { %4170 = vpow2.f32 %v3976_v38 }
 0x6ae   :  { %v4169_v43 = vpop.eup %4168  ;;  %v3901_v7 = vpop.f32.mrf.mxu2 }
 0x6af   :  { %v3805_v46 = vadd.f32 1.0, %v4169_v43  ;;  %v3902_v23 = vadd.f32 %v7458_v4, %v3901_v7 }
 0x6b1   :  { %4172 = vrcp.f32 %v3805_v46  ;;  %3925 = vst [vmem:[%s7511_s12] sm:$0xff] %v3902_v23  ;;  %v3817_v51 = vand.u32 2147483648, %v3805_v46  ;;  %v3815_v14 = vand.u32 2147483647, %v3805_v46  ;;  %vm3811_vm9 = vweird.f32 %v3805_v46 }
 0x6b2   :  { %v4171_v48 = vpop.eup %4170 }
 0x6b3   :  { %v3825_v25 = vadd.f32 1.0, %v4171_v48  ;;  %v3818_v41 = vor.u32 1.1754944e-38, %v3817_v51  ;;  %vm3816_vm11 = vcmp.eq.f32.partialorder %v3815_v14, 8.507059e+37 }
 0x6b5   :  { %4174 = vrcp.f32 %v3825_v25  ;;  %v3837_v52 = vand.u32 2147483648, %v3825_v25  ;;  %vm3831_vm13 = vweird.f32 %v3825_v25  ;;  %v3835_v5 = vand.u32 2147483647, %v3825_v25 }
 0x6b6   :  { %v3904_v28 = vpop.f32.mrf.mxu2 }
 0x6b7   :  { %v4173_v35 = vpop.eup %4172  ;;  %v3905_v19 = vadd.f32 %v7458_v4, %v3904_v28  ;;  %v3838_v10 = vor.u32 1.1754944e-38, %v3837_v52  ;;  %vm3836_vm15 = vcmp.eq.f32.partialorder %v3835_v5, 8.507059e+37 }
 0x6b8   :  { %v3807_v42 = vmul.f32 %v4173_v35, %v3805_v46  ;;  %vm3812_vm8 = vweird.f32 %v4173_v35 }
 0x6b9   :  { %3926 = vst [vmem:[%s7511_s12 + $0x8] sm:$0xff] %v3905_v19  ;;  %vm3813_vm10 = vmor %vm3811_vm9, %vm3812_vm8 }
 0x6ba   :  { %v3808_v8 = vsub.f32 1.0, %v3807_v42 }
 0x6bb   :  { %v4175_v61 = vpop.eup %4174 }
 0x6bc   :  { %v3827_v30 = vmul.f32 %v4175_v61, %v3825_v25  ;;  %v3809_v27 = vmul.f32 %v4173_v35, %v3808_v8  ;;  %vm3832_vm12 = vweird.f32 %v4175_v61 }
 0x6bd   :  { %vm3833_vm14 = vmor %vm3831_vm13, %vm3832_vm12 }
 0x6be   :  { %v3828_v45 = vsub.f32 1.0, %v3827_v30  ;;  %v3810_v9 = vadd.f32 %v4173_v35, %v3809_v27  ;;  %v3907_v33 = vpop.f32.mrf.mxu2 }
 0x6bf   :  { %v3908_v40 = vadd.f32 %v7458_v4, %v3907_v33 }
 0x6c0   :  { %v3814_v18 = vsel %vm3813_vm10, %v4173_v35, %v3810_v9  ;;  %v3829_v24 = vmul.f32 %v4175_v61, %v3828_v45 }
 0x6c1   :  { %v3819_v50 = vsel %vm3816_vm11, %v3818_v41, %v3814_v18  ;;  %3927 = vst [vmem:[%s7511_s12 + $0x10] sm:$0xff] %v3908_v40 }
 0x6c2   :  { %v3845_v47 = vmul.f32 %v3844_v44, %v3819_v50  ;;  %v3830_v31 = vadd.f32 %v4175_v61, %v3829_v24 }
 0x6c4   :  { %v3846_v11 = vadd.f32 %v3845_v47, %v3690_v58  ;;  %v3834_v59 = vsel %vm3833_vm14, %v4175_v61, %v3830_v31 }
 0x6c5   :  { %v3839_v21 = vsel %vm3836_vm15, %v3838_v10, %v3834_v59 }
 0x6c6   :  { %4176 = vtanh.f32 %v3846_v11  ;;  %v3910_v2 = vpop.f32.mrf.mxu2  ;;  %v3848_v20 = vsub.f32 1.0, %v3839_v21  ;;  %v3850_v0 = vmul.f32 %v3839_v21, %v7436_v1 }
 0x6c7   :  { %v3911_v22 = vadd.f32 %v7458_v4, %v3910_v2 }
 0x6c9   :  { %3928 = vst [vmem:[%s7511_s12 + $0x18] sm:$0xff] %v3911_v22 }
 0x6cc   :  { %v4177_v37 = vpop.eup %4176 }
 0x6cd   :  { %v3849_v56 = vmul.f32 %v4177_v37, %v3848_v20 }
 0x6ce   :  { %v3913_v15 = vpop.f32.mrf.mxu2 }
 0x6cf   :  { %v3914_v34 = vadd.f32 %v7458_v4, %v3913_v15  ;;  %v3851_v16 = vadd.f32 %v3850_v0, %v3849_v56 }
 0x6d1   :  { %3929 = vst [vmem:[%s7511_s12 + $0x20] sm:$0xff] %v3914_v34  ;;  %3921 = vmatmul.f32.gmra.mxu2 %v3851_v16 }
 0x6d2   :  { %3977 = vst [vmem:[%s7512_s13 + $0x8] sm:$0xff] %v3851_v16 }
 0x6d6   :  { %v3916_v32 = vpop.f32.mrf.mxu2 }
 0x6d7   :  { %v3917_v49 = vadd.f32 %v7458_v4, %v3916_v32 }
 0x6d9   :  { %3930 = vst [vmem:[%s7511_s12 + $0x28] sm:$0xff] %v3917_v49 }
 0x6de   :  { %v3919_v1 = vpop.f32.mrf.mxu2 }
 0x6df   :  { %v3920_v63 = vadd.f32 %v7458_v4, %v3919_v1 }
 0x6e1   :  { %3931 = vst [vmem:[%s7511_s12 + $0x30] sm:$0xff] %v3920_v63 }
 0x754   :  { %v3922_v6 = vpop.f32.mrf.mxu2 }
 0x755   :  { %v3923_v57 = vadd.f32 %v7458_v4, %v3922_v6 }
 0x757   :  { %3932 = vst [vmem:[%s7511_s12 + $0x38] sm:$0xff] %v3923_v57 }
 0x758   :  { %3941 = vsyncpa [#allocation5], 1 }
 0x759   :  { %3942 = vsyncpa [#allocation7], 1 }
 0x75a   :  { %3943 = vsyncpa [#allocation10], 1 }

</bundles_post_ra>
